<compile_context>
chip_gen: v7x
topology: tpu7x:2x2x1
jax: 0.10.0
libtpu: 0.0.40
codegen_flags: <defaults>
</compile_context>

<pallas_src>
import functools

import jax
import jax.numpy as jnp
from jax.experimental import pallas as pl
from jax.experimental.pallas import tpu as pltpu


# ----------------------------------------------------------------------------
# Pallas kernels
# ----------------------------------------------------------------------------
def _gemm_kernel(*refs, relu_cols, has_residual, n_out):
    """o = act(x @ w + b [+ residual]) for one (TM, N) tile.

    BN affine is pre-folded into w/b on the host.  relu_cols (static) selects
    how many leading output lanes get ReLU (0 = none, n_out = all; a partial
    count is used for the fused conv||downsample block-2 GEMM).
    """
    if has_residual:
        x_ref, w_ref, b_ref, r_ref, o_ref = refs
    else:
        x_ref, w_ref, b_ref, o_ref = refs
        r_ref = None

    acc = jnp.dot(x_ref[...], w_ref[...], preferred_element_type=jnp.float32)
    acc = acc + b_ref[...]
    if r_ref is not None:
        acc = acc + r_ref[...].astype(jnp.float32)
    if relu_cols >= n_out:
        acc = jnp.maximum(acc, 0.0)
    elif relu_cols > 0:
        lane = jax.lax.broadcasted_iota(jnp.int32, acc.shape, 1)
        acc = jnp.where(lane < relu_cols, jnp.maximum(acc, 0.0), acc)
    o_ref[...] = acc.astype(o_ref.dtype)


def fused_gemm(x, w, b, residual=None, relu_cols=0, out_dtype=jnp.bfloat16):
    """(M,K)@(K,N) + bias [+ residual] [+ (partial) ReLU]; bf16 MXU, f32 accum."""
    M, K = x.shape
    N = w.shape[1]

    # Keep K 16-aligned so (TM,K)/(K,N) tiles have clean bf16 sublanes.
    Kp = ((K + 15) // 16) * 16
    if Kp != K:
        x = jnp.pad(x, ((0, 0), (0, Kp - K)))
        w = jnp.pad(w, ((0, Kp - K), (0, 0)))
        K = Kp

    # Whole-M tiles (everything fits VMEM easily even on v7x's 64 MiB); split
    # the larger convs in two so the "parallel" M axis can shard across the
    # two v7x TensorCores.  Per-call grid is therefore 1 or 2 steps.
    grid_m = 2 if (M >= 1024 and M % 16 == 0) else 1
    TM = M // grid_m

    x = x.astype(jnp.bfloat16)
    w = w.astype(jnp.bfloat16)
    b2 = b.astype(jnp.float32).reshape(1, N)

    operands = [x, w, b2]
    in_specs = [
        pl.BlockSpec((TM, K), lambda i: (i, 0)),
        pl.BlockSpec((K, N), lambda i: (0, 0)),
        pl.BlockSpec((1, N), lambda i: (0, 0)),
    ]
    if residual is not None:
        operands.append(residual.astype(jnp.bfloat16))
        in_specs.append(pl.BlockSpec((TM, N), lambda i: (i, 0)))

    return pl.pallas_call(
        functools.partial(_gemm_kernel, relu_cols=relu_cols,
                          has_residual=residual is not None, n_out=N),
        out_shape=jax.ShapeDtypeStruct((M, N), out_dtype),
        grid=(grid_m,),
        in_specs=in_specs,
        out_specs=pl.BlockSpec((TM, N), lambda i: (i, 0)),
        compiler_params=pltpu.CompilerParams(
            dimension_semantics=("parallel",)),
    )(*operands)


def _gap_head_kernel(x_ref, w1_ref, b1_ref, w2_ref, b2_ref, emb_ref, paste_ref):
    """Global-average-pool + Linear/BN/ReLU + Linear, fully fused in VMEM."""
    emb = jnp.mean(x_ref[...].astype(jnp.float32), axis=1)            # (B, C)
    emb_ref[...] = emb
    h1 = jnp.dot(emb.astype(jnp.bfloat16), w1_ref[...],
                 preferred_element_type=jnp.float32) + b1_ref[...]
    h1 = jnp.maximum(h1, 0.0)                                          # (B, 128)
    paste_ref[...] = (jnp.dot(h1.astype(jnp.bfloat16), w2_ref[...],
                              preferred_element_type=jnp.float32)
                      + b2_ref[...])                                   # (B, 128)


def gap_head(x_bhwc_flat, w1, b1, w2_pad, b2_pad, num_cls):
    """x: (B, H*W, C) bf16 -> (emb (B,C) f32, paste (B,num_cls) f32)."""
    B, HW, C = x_bhwc_flat.shape
    H1 = w1.shape[1]
    NW = w2_pad.shape[1]                 # padded to 128 lanes (unmasked store)
    emb, paste_wide = pl.pallas_call(
        _gap_head_kernel,
        out_shape=(jax.ShapeDtypeStruct((B, C), jnp.float32),
                   jax.ShapeDtypeStruct((B, NW), jnp.float32)),
    )(x_bhwc_flat.astype(jnp.bfloat16),
      w1.astype(jnp.bfloat16), b1.astype(jnp.float32).reshape(1, H1),
      w2_pad.astype(jnp.bfloat16), b2_pad.astype(jnp.float32).reshape(1, NW))
    return emb, paste_wide[:, :num_cls]


# ----------------------------------------------------------------------------
# Glue: im2col patch extraction (pure JAX reshuffling; GEMMs happen in Pallas)
# ----------------------------------------------------------------------------
def im2col(x, kh, kw, stride, padding):
    """x: (B,H,W,C) NHWC -> (B*Ho*Wo, kh*kw*C) patch matrix (keeps x's dtype)."""
    B, H, W, C = x.shape
    xp = jnp.pad(x, ((0, 0), (padding, padding), (padding, padding), (0, 0)))
    Ho = (H + 2 * padding - kh) // stride + 1
    Wo = (W + 2 * padding - kw) // stride + 1
    cols = []
    for i in range(kh):
        for j in range(kw):
            cols.append(xp[:, i:i + stride * Ho:stride, j:j + stride * Wo:stride, :])
    patches = jnp.stack(cols, axis=3)                        # (B, Ho, Wo, kh*kw, C)
    return patches.reshape(B * Ho * Wo, kh * kw * C), Ho, Wo


def conv_bn(x_nhwc, p, stride, padding, relu, residual=None):
    """Conv2d(no bias) + folded eval-mode BatchNorm2d [+ residual] [+ ReLU]."""
    B = x_nhwc.shape[0]
    patches, Ho, Wo = im2col(x_nhwc, p["kh"], p["kw"], stride, padding)
    res2d = None if residual is None else residual.reshape(B * Ho * Wo, -1)
    N = p["w"].shape[1]
    out = fused_gemm(patches, p["w"], p["b"], residual=res2d,
                     relu_cols=(N if relu else 0))
    return out.reshape(B, Ho, Wo, N)


# ----------------------------------------------------------------------------
# Deterministic parameter construction (BN folded into weights/bias here)
# ----------------------------------------------------------------------------
def _fold_bn(w, gamma, beta, rmean, rvar, bias=None, eps=1e-5):
    scale = gamma / jnp.sqrt(rvar + eps)
    shift = beta - rmean * scale
    wf = w * scale[None, :]
    bf = shift if bias is None else bias * scale + shift
    return wf, bf


def make_conv_bn_params(key, cin, cout, kh, kw):
    k1, k2, k3, k4, k5 = jax.random.split(key, 5)
    w = 0.1 * jax.random.normal(k1, (kh * kw * cin, cout), jnp.float32)
    gamma = 1.0 + 0.1 * jax.random.normal(k2, (cout,), jnp.float32)
    beta = 0.1 * jax.random.normal(k3, (cout,), jnp.float32)
    rmean = 0.1 * jax.random.normal(k4, (cout,), jnp.float32)
    rvar = jnp.abs(1.0 + 0.1 * jax.random.normal(k5, (cout,), jnp.float32))
    wf, bf = _fold_bn(w, gamma, beta, rmean, rvar)
    return dict(kh=kh, kw=kw, w=wf.astype(jnp.bfloat16), b=bf)


def make_model_params(seed=0, aug_mode="cut_paste", emb_dim=32):
    num_cls = 2 if aug_mode in ("cut_paste", "scar") else 3
    keys = jax.random.split(jax.random.PRNGKey(seed), 9)

    params = {
        "stem": make_conv_bn_params(keys[0], 3, 16, 3, 3),
        "b1c1": make_conv_bn_params(keys[1], 16, 16, 3, 3),
        "b1c2": make_conv_bn_params(keys[2], 16, 16, 3, 3),
        "b2c2": make_conv_bn_params(keys[5], emb_dim, emb_dim, 3, 3),
    }

    # block 2: fuse the 1x1 stride-2 downsample into the 3x3 stride-2 conv's
    # im2col layout (only the center-tap rows are nonzero) and concat along N.
    b2ds = make_conv_bn_params(keys[3], 16, emb_dim, 1, 1)     # (16, emb_dim)
    b2c1 = make_conv_bn_params(keys[4], 16, emb_dim, 3, 3)     # (144, emb_dim)
    cin = 16
    w_ds_emb = jnp.zeros((9 * cin, emb_dim), jnp.bfloat16)
    w_ds_emb = w_ds_emb.at[4 * cin:5 * cin, :].set(b2ds["w"])  # center tap (i=1,j=1)
    params["b2_fused"] = dict(
        w=jnp.concatenate([b2c1["w"], w_ds_emb], axis=1),      # (144, 2*emb_dim)
        b=jnp.concatenate([b2c1["b"], b2ds["b"]]),             # (2*emb_dim,)
    )

    # head1: Linear(emb_dim,128) with BN1d(128) folded in, + Linear(128,num_cls)
    # padded to 128 output lanes (sliced to num_cls outside the kernel).
    k1, k2 = jax.random.split(keys[6], 2)
    w1 = 0.1 * jax.random.normal(k1, (emb_dim, 128), jnp.float32)
    b1 = 0.1 * jax.random.normal(k2, (128,), jnp.float32)
    kb = jax.random.split(keys[7], 4)
    gamma = 1.0 + 0.1 * jax.random.normal(kb[0], (128,), jnp.float32)
    beta = 0.1 * jax.random.normal(kb[1], (128,), jnp.float32)
    rmean = 0.1 * jax.random.normal(kb[2], (128,), jnp.float32)
    rvar = jnp.abs(1.0 + 0.1 * jax.random.normal(kb[3], (128,), jnp.float32))
    w1f, b1f = _fold_bn(w1, gamma, beta, rmean, rvar, bias=b1)

    k3, k4 = jax.random.split(keys[8], 2)
    w2 = 0.1 * jax.random.normal(k3, (128, num_cls), jnp.float32)
    b2 = 0.1 * jax.random.normal(k4, (num_cls,), jnp.float32)
    w2_pad = jnp.zeros((128, 128), jnp.float32).at[:, :num_cls].set(w2)
    b2_pad = jnp.zeros((128,), jnp.float32).at[:num_cls].set(b2)

    params["head1"] = dict(w1=w1f.astype(jnp.bfloat16), b1=b1f,
                           w2=w2_pad.astype(jnp.bfloat16), b2=b2_pad)
    return params, num_cls


# ----------------------------------------------------------------------------
# Model forward (mirrors Model.forward: emb = resnet(x); paste = head1(emb))
# ----------------------------------------------------------------------------
def model_forward(params, num_cls, x_nchw):
    x = jnp.transpose(x_nchw, (0, 2, 3, 1)).astype(jnp.bfloat16)   # NCHW -> NHWC

    # --- resnet-style backbone (fc == Identity) ---
    x = conv_bn(x, params["stem"], stride=1, padding=1, relu=True)

    # basic block 1 (16 -> 16, identity shortcut)
    idn = x
    h = conv_bn(x, params["b1c1"], stride=1, padding=1, relu=True)
    x = conv_bn(h, params["b1c2"], stride=1, padding=1, relu=True, residual=idn)

    # basic block 2 (16 -> emb_dim, stride 2): 3x3 conv and 1x1 downsample
    # shortcut computed by ONE fused GEMM over the shared stride-2 im2col.
    B = x.shape[0]
    emb_dim = params["b2c2"]["w"].shape[1]
    patches, Ho, Wo = im2col(x, 3, 3, stride=2, padding=1)          # (B*Ho*Wo, 144)
    fused = fused_gemm(patches, params["b2_fused"]["w"], params["b2_fused"]["b"],
                       relu_cols=emb_dim)                           # (B*Ho*Wo, 2*emb_dim)
    h = fused[:, :emb_dim].reshape(B, Ho, Wo, emb_dim)              # relu'd conv path
    idn = fused[:, emb_dim:]                                        # downsample (no relu)
    x = conv_bn(h, params["b2c2"], stride=1, padding=1, relu=True, residual=idn)

    # --- global average pool + head1 (single fused Pallas kernel) ---
    B, H, W, C = x.shape
    emb, paste = gap_head(x.reshape(B, H * W, C),
                          params["head1"]["w1"], params["head1"]["b1"],
                          params["head1"]["w2"], params["head1"]["b2"],
                          num_cls)
    return emb, paste


# ----------------------------------------------------------------------------
if __name__ == "__main__":
    params, num_cls = make_model_params(seed=0, aug_mode="cut_paste", emb_dim=32)

    key = jax.random.PRNGKey(0)
    x = jax.random.normal(key, (2, 3, 32, 32), jnp.float32)          # NCHW, like PyTorch

    fwd = jax.jit(functools.partial(model_forward, params, num_cls))
    emb, paste = fwd(x)
    jax.block_until_ready((emb, paste))

    assert emb.shape == (2, 32) and emb.dtype == jnp.float32
    assert paste.shape == (2, num_cls) and paste.dtype == jnp.float32
    assert bool(jnp.all(jnp.isfinite(emb))) and bool(jnp.all(jnp.isfinite(paste)))
    print("KERNEL_OK")
</pallas_src>

<mosaic_0001>
module attributes {stable_mosaic.version = 11 : i64} {
  func.func @_gemm_kernel(%arg0: i32, %arg1: memref<1024x32xbf16, #tpu.memory_space<vmem>>, %arg2: memref<32x16xbf16, #tpu.memory_space<vmem>>, %arg3: memref<1x16xf32, #tpu.memory_space<vmem>>, %arg4: memref<1024x16xbf16, #tpu.memory_space<vmem>>) attributes {dimension_semantics = [#tpu.dimension_semantics<parallel>], iteration_bounds = array<i64: 2>, scalar_prefetch = 0 : i64, scratch_operands = 0 : i64, tpu.core_type = #tpu.core_type<tc>, window_params = [{transform_indices = @transform_0, window_bounds = array<i64: 1024, 32>}, {pipeline_mode = #tpu.pipeline_mode<synchronous>, transform_indices = @transform_1, window_bounds = array<i64: 32, 16>}, {pipeline_mode = #tpu.pipeline_mode<synchronous>, transform_indices = @transform_2, window_bounds = array<i64: 1, 16>}, {transform_indices = @transform_3, window_bounds = array<i64: 1024, 16>}]} {
    %c0 = arith.constant 0 : index
    %c0_0 = arith.constant 0 : index
    %0 = vector.load %arg1[%c0, %c0_0] : memref<1024x32xbf16, #tpu.memory_space<vmem>>, vector<1024x32xbf16>
    %c0_1 = arith.constant 0 : index
    %c0_2 = arith.constant 0 : index
    %1 = vector.load %arg2[%c0_1, %c0_2] : memref<32x16xbf16, #tpu.memory_space<vmem>>, vector<32x16xbf16>
    %cst = arith.constant dense<0.000000e+00> : vector<1024x16xf32>
    %2 = tpu.matmul %0, %1, %cst {dimension_numbers = #tpu.dot_dimension_numbers<[1], [0], [0], [1], [0, 0, 1, 1], [], []>} : vector<1024x32xbf16>, vector<32x16xbf16>, vector<1024x16xf32> -> vector<1024x16xf32>
    %c0_3 = arith.constant 0 : index
    %c0_4 = arith.constant 0 : index
    %3 = vector.load %arg3[%c0_3, %c0_4] : memref<1x16xf32, #tpu.memory_space<vmem>>, vector<1x16xf32>
    %4 = vector.broadcast %3 : vector<1x16xf32> to vector<1024x16xf32>
    %5 = arith.addf %2, %4 : vector<1024x16xf32>
    %cst_5 = arith.constant 0.000000e+00 : f32
    %6 = vector.broadcast %cst_5 : f32 to vector<1024x16xf32>
    %7 = arith.maximumf %5, %6 : vector<1024x16xf32>
    %8 = arith.truncf %7 : vector<1024x16xf32> to vector<1024x16xbf16>
    %c0_6 = arith.constant 0 : index
    %c0_7 = arith.constant 0 : index
    %9 = vector.load %arg4[%c0_6, %c0_7] : memref<1024x16xbf16, #tpu.memory_space<vmem>>, vector<1024x16xbf16>
    tpu.vector_store %arg4[%c0_6, %c0_7], %8 {strides = array<i32>} : memref<1024x16xbf16, #tpu.memory_space<vmem>>, vector<1024x16xbf16>,
    return
  }
  func.func @transform_0(%arg0: i32) -> (i32, i32) {
    %c0_i32 = arith.constant 0 : i32
    %c0_i32_0 = arith.constant 0 : i32
    return %arg0, %c0_i32 : i32, i32
  }
  func.func @transform_1(%arg0: i32) -> (i32, i32) {
    %c0_i32 = arith.constant 0 : i32
    %c0_i32_0 = arith.constant 0 : i32
    %c0_i32_1 = arith.constant 0 : i32
    return %c0_i32, %c0_i32_0 : i32, i32
  }
  func.func @transform_2(%arg0: i32) -> (i32, i32) {
    %c0_i32 = arith.constant 0 : i32
    %c0_i32_0 = arith.constant 0 : i32
    %c0_i32_1 = arith.constant 0 : i32
    return %c0_i32, %c0_i32_0 : i32, i32
  }
  func.func @transform_3(%arg0: i32) -> (i32, i32) {
    %c0_i32 = arith.constant 0 : i32
    %c0_i32_0 = arith.constant 0 : i32
    return %arg0, %c0_i32 : i32, i32
  }
}

module attributes {stable_mosaic.version = 11 : i64} {
  func.func @_gemm_kernel(%arg0: i32, %arg1: memref<1024x144xbf16, #tpu.memory_space<vmem>>, %arg2: memref<144x16xbf16, #tpu.memory_space<vmem>>, %arg3: memref<1x16xf32, #tpu.memory_space<vmem>>, %arg4: memref<1024x16xbf16, #tpu.memory_space<vmem>>) attributes {dimension_semantics = [#tpu.dimension_semantics<parallel>], iteration_bounds = array<i64: 2>, scalar_prefetch = 0 : i64, scratch_operands = 0 : i64, tpu.core_type = #tpu.core_type<tc>, window_params = [{transform_indices = @transform_0, window_bounds = array<i64: 1024, 144>}, {pipeline_mode = #tpu.pipeline_mode<synchronous>, transform_indices = @transform_1, window_bounds = array<i64: 144, 16>}, {pipeline_mode = #tpu.pipeline_mode<synchronous>, transform_indices = @transform_2, window_bounds = array<i64: 1, 16>}, {transform_indices = @transform_3, window_bounds = array<i64: 1024, 16>}]} {
    %c0 = arith.constant 0 : index
    %c0_0 = arith.constant 0 : index
    %0 = vector.load %arg1[%c0, %c0_0] : memref<1024x144xbf16, #tpu.memory_space<vmem>>, vector<1024x144xbf16>
    %c0_1 = arith.constant 0 : index
    %c0_2 = arith.constant 0 : index
    %1 = vector.load %arg2[%c0_1, %c0_2] : memref<144x16xbf16, #tpu.memory_space<vmem>>, vector<144x16xbf16>
    %cst = arith.constant dense<0.000000e+00> : vector<1024x16xf32>
    %2 = tpu.matmul %0, %1, %cst {dimension_numbers = #tpu.dot_dimension_numbers<[1], [0], [0], [1], [0, 0, 1, 1], [], []>} : vector<1024x144xbf16>, vector<144x16xbf16>, vector<1024x16xf32> -> vector<1024x16xf32>
    %c0_3 = arith.constant 0 : index
    %c0_4 = arith.constant 0 : index
    %3 = vector.load %arg3[%c0_3, %c0_4] : memref<1x16xf32, #tpu.memory_space<vmem>>, vector<1x16xf32>
    %4 = vector.broadcast %3 : vector<1x16xf32> to vector<1024x16xf32>
    %5 = arith.addf %2, %4 : vector<1024x16xf32>
    %cst_5 = arith.constant 0.000000e+00 : f32
    %6 = vector.broadcast %cst_5 : f32 to vector<1024x16xf32>
    %7 = arith.maximumf %5, %6 : vector<1024x16xf32>
    %8 = arith.truncf %7 : vector<1024x16xf32> to vector<1024x16xbf16>
    %c0_6 = arith.constant 0 : index
    %c0_7 = arith.constant 0 : index
    %9 = vector.load %arg4[%c0_6, %c0_7] : memref<1024x16xbf16, #tpu.memory_space<vmem>>, vector<1024x16xbf16>
    tpu.vector_store %arg4[%c0_6, %c0_7], %8 {strides = array<i32>} : memref<1024x16xbf16, #tpu.memory_space<vmem>>, vector<1024x16xbf16>,
    return
  }
  func.func @transform_0(%arg0: i32) -> (i32, i32) {
    %c0_i32 = arith.constant 0 : i32
    %c0_i32_0 = arith.constant 0 : i32
    return %arg0, %c0_i32 : i32, i32
  }
  func.func @transform_1(%arg0: i32) -> (i32, i32) {
    %c0_i32 = arith.constant 0 : i32
    %c0_i32_0 = arith.constant 0 : i32
    %c0_i32_1 = arith.constant 0 : i32
    return %c0_i32, %c0_i32_0 : i32, i32
  }
  func.func @transform_2(%arg0: i32) -> (i32, i32) {
    %c0_i32 = arith.constant 0 : i32
    %c0_i32_0 = arith.constant 0 : i32
    %c0_i32_1 = arith.constant 0 : i32
    return %c0_i32, %c0_i32_0 : i32, i32
  }
  func.func @transform_3(%arg0: i32) -> (i32, i32) {
    %c0_i32 = arith.constant 0 : i32
    %c0_i32_0 = arith.constant 0 : i32
    return %arg0, %c0_i32 : i32, i32
  }
}

module attributes {stable_mosaic.version = 11 : i64} {
  func.func @_gemm_kernel(%arg0: i32, %arg1: memref<1024x144xbf16, #tpu.memory_space<vmem>>, %arg2: memref<144x16xbf16, #tpu.memory_space<vmem>>, %arg3: memref<1x16xf32, #tpu.memory_space<vmem>>, %arg4: memref<1024x16xbf16, #tpu.memory_space<vmem>>, %arg5: memref<1024x16xbf16, #tpu.memory_space<vmem>>) attributes {dimension_semantics = [#tpu.dimension_semantics<parallel>], iteration_bounds = array<i64: 2>, scalar_prefetch = 0 : i64, scratch_operands = 0 : i64, tpu.core_type = #tpu.core_type<tc>, window_params = [{transform_indices = @transform_0, window_bounds = array<i64: 1024, 144>}, {pipeline_mode = #tpu.pipeline_mode<synchronous>, transform_indices = @transform_1, window_bounds = array<i64: 144, 16>}, {pipeline_mode = #tpu.pipeline_mode<synchronous>, transform_indices = @transform_2, window_bounds = array<i64: 1, 16>}, {transform_indices = @transform_3, window_bounds = array<i64: 1024, 16>}, {transform_indices = @transform_4, window_bounds = array<i64: 1024, 16>}]} {
    %c0 = arith.constant 0 : index
    %c0_0 = arith.constant 0 : index
    %0 = vector.load %arg1[%c0, %c0_0] : memref<1024x144xbf16, #tpu.memory_space<vmem>>, vector<1024x144xbf16>
    %c0_1 = arith.constant 0 : index
    %c0_2 = arith.constant 0 : index
    %1 = vector.load %arg2[%c0_1, %c0_2] : memref<144x16xbf16, #tpu.memory_space<vmem>>, vector<144x16xbf16>
    %cst = arith.constant dense<0.000000e+00> : vector<1024x16xf32>
    %2 = tpu.matmul %0, %1, %cst {dimension_numbers = #tpu.dot_dimension_numbers<[1], [0], [0], [1], [0, 0, 1, 1], [], []>} : vector<1024x144xbf16>, vector<144x16xbf16>, vector<1024x16xf32> -> vector<1024x16xf32>
    %c0_3 = arith.constant 0 : index
    %c0_4 = arith.constant 0 : index
    %3 = vector.load %arg3[%c0_3, %c0_4] : memref<1x16xf32, #tpu.memory_space<vmem>>, vector<1x16xf32>
    %4 = vector.broadcast %3 : vector<1x16xf32> to vector<1024x16xf32>
    %5 = arith.addf %2, %4 : vector<1024x16xf32>
    %c0_5 = arith.constant 0 : index
    %c0_6 = arith.constant 0 : index
    %6 = vector.load %arg4[%c0_5, %c0_6] : memref<1024x16xbf16, #tpu.memory_space<vmem>>, vector<1024x16xbf16>
    %7 = arith.extf %6 : vector<1024x16xbf16> to vector<1024x16xf32>
    %8 = arith.addf %5, %7 : vector<1024x16xf32>
    %cst_7 = arith.constant 0.000000e+00 : f32
    %9 = vector.broadcast %cst_7 : f32 to vector<1024x16xf32>
    %10 = arith.maximumf %8, %9 : vector<1024x16xf32>
    %11 = arith.truncf %10 : vector<1024x16xf32> to vector<1024x16xbf16>
    %c0_8 = arith.constant 0 : index
    %c0_9 = arith.constant 0 : index
    %12 = vector.load %arg5[%c0_8, %c0_9] : memref<1024x16xbf16, #tpu.memory_space<vmem>>, vector<1024x16xbf16>
    tpu.vector_store %arg5[%c0_8, %c0_9], %11 {strides = array<i32>} : memref<1024x16xbf16, #tpu.memory_space<vmem>>, vector<1024x16xbf16>,
    return
  }
  func.func @transform_0(%arg0: i32) -> (i32, i32) {
    %c0_i32 = arith.constant 0 : i32
    %c0_i32_0 = arith.constant 0 : i32
    return %arg0, %c0_i32 : i32, i32
  }
  func.func @transform_1(%arg0: i32) -> (i32, i32) {
    %c0_i32 = arith.constant 0 : i32
    %c0_i32_0 = arith.constant 0 : i32
    %c0_i32_1 = arith.constant 0 : i32
    return %c0_i32, %c0_i32_0 : i32, i32
  }
  func.func @transform_2(%arg0: i32) -> (i32, i32) {
    %c0_i32 = arith.constant 0 : i32
    %c0_i32_0 = arith.constant 0 : i32
    %c0_i32_1 = arith.constant 0 : i32
    return %c0_i32, %c0_i32_0 : i32, i32
  }
  func.func @transform_3(%arg0: i32) -> (i32, i32) {
    %c0_i32 = arith.constant 0 : i32
    %c0_i32_0 = arith.constant 0 : i32
    return %arg0, %c0_i32 : i32, i32
  }
  func.func @transform_4(%arg0: i32) -> (i32, i32) {
    %c0_i32 = arith.constant 0 : i32
    %c0_i32_0 = arith.constant 0 : i32
    return %arg0, %c0_i32 : i32, i32
  }
}

module attributes {stable_mosaic.version = 11 : i64} {
  func.func @_gemm_kernel(%arg0: i32, %arg1: memref<512x144xbf16, #tpu.memory_space<vmem>>, %arg2: memref<144x64xbf16, #tpu.memory_space<vmem>>, %arg3: memref<1x64xf32, #tpu.memory_space<vmem>>, %arg4: memref<512x64xbf16, #tpu.memory_space<vmem>>) attributes {dimension_semantics = [#tpu.dimension_semantics<parallel>], iteration_bounds = array<i64: 1>, scalar_prefetch = 0 : i64, scratch_operands = 0 : i64, tpu.core_type = #tpu.core_type<tc>, window_params = [{transform_indices = @transform_0, window_bounds = array<i64: 512, 144>}, {pipeline_mode = #tpu.pipeline_mode<synchronous>, transform_indices = @transform_1, window_bounds = array<i64: 144, 64>}, {pipeline_mode = #tpu.pipeline_mode<synchronous>, transform_indices = @transform_2, window_bounds = array<i64: 1, 64>}, {transform_indices = @transform_3, window_bounds = array<i64: 512, 64>}]} {
    %c0 = arith.constant 0 : index
    %c0_0 = arith.constant 0 : index
    %0 = vector.load %arg1[%c0, %c0_0] : memref<512x144xbf16, #tpu.memory_space<vmem>>, vector<512x144xbf16>
    %c0_1 = arith.constant 0 : index
    %c0_2 = arith.constant 0 : index
    %1 = vector.load %arg2[%c0_1, %c0_2] : memref<144x64xbf16, #tpu.memory_space<vmem>>, vector<144x64xbf16>
    %cst = arith.constant dense<0.000000e+00> : vector<512x64xf32>
    %2 = tpu.matmul %0, %1, %cst {dimension_numbers = #tpu.dot_dimension_numbers<[1], [0], [0], [1], [0, 0, 1, 1], [], []>} : vector<512x144xbf16>, vector<144x64xbf16>, vector<512x64xf32> -> vector<512x64xf32>
    %c0_3 = arith.constant 0 : index
    %c0_4 = arith.constant 0 : index
    %3 = vector.load %arg3[%c0_3, %c0_4] : memref<1x64xf32, #tpu.memory_space<vmem>>, vector<1x64xf32>
    %4 = vector.broadcast %3 : vector<1x64xf32> to vector<512x64xf32>
    %5 = arith.addf %2, %4 : vector<512x64xf32>
    %6 = tpu.iota {dimensions = array<i32: 1>} : vector<512x64xi32>
    %c32_i32 = arith.constant 32 : i32
    %7 = vector.broadcast %c32_i32 : i32 to vector<512x64xi32>
    %8 = arith.cmpi slt, %6, %7 : vector<512x64xi32>
    %cst_5 = arith.constant 0.000000e+00 : f32
    %9 = vector.broadcast %cst_5 : f32 to vector<512x64xf32>
    %10 = arith.maximumf %5, %9 : vector<512x64xf32>
    %11 = arith.select %8, %10, %5 : vector<512x64xi1>, vector<512x64xf32>
    %12 = arith.truncf %11 : vector<512x64xf32> to vector<512x64xbf16>
    %c0_6 = arith.constant 0 : index
    %c0_7 = arith.constant 0 : index
    %13 = vector.load %arg4[%c0_6, %c0_7] : memref<512x64xbf16, #tpu.memory_space<vmem>>, vector<512x64xbf16>
    tpu.vector_store %arg4[%c0_6, %c0_7], %12 {strides = array<i32>} : memref<512x64xbf16, #tpu.memory_space<vmem>>, vector<512x64xbf16>,
    return
  }
  func.func @transform_0(%arg0: i32) -> (i32, i32) {
    %c0_i32 = arith.constant 0 : i32
    %c0_i32_0 = arith.constant 0 : i32
    return %arg0, %c0_i32 : i32, i32
  }
  func.func @transform_1(%arg0: i32) -> (i32, i32) {
    %c0_i32 = arith.constant 0 : i32
    %c0_i32_0 = arith.constant 0 : i32
    %c0_i32_1 = arith.constant 0 : i32
    return %c0_i32, %c0_i32_0 : i32, i32
  }
  func.func @transform_2(%arg0: i32) -> (i32, i32) {
    %c0_i32 = arith.constant 0 : i32
    %c0_i32_0 = arith.constant 0 : i32
    %c0_i32_1 = arith.constant 0 : i32
    return %c0_i32, %c0_i32_0 : i32, i32
  }
  func.func @transform_3(%arg0: i32) -> (i32, i32) {
    %c0_i32 = arith.constant 0 : i32
    %c0_i32_0 = arith.constant 0 : i32
    return %arg0, %c0_i32 : i32, i32
  }
}

module attributes {stable_mosaic.version = 11 : i64} {
  func.func @_gemm_kernel(%arg0: i32, %arg1: memref<512x288xbf16, #tpu.memory_space<vmem>>, %arg2: memref<288x32xbf16, #tpu.memory_space<vmem>>, %arg3: memref<1x32xf32, #tpu.memory_space<vmem>>, %arg4: memref<512x32xbf16, #tpu.memory_space<vmem>>, %arg5: memref<512x32xbf16, #tpu.memory_space<vmem>>) attributes {dimension_semantics = [#tpu.dimension_semantics<parallel>], iteration_bounds = array<i64: 1>, scalar_prefetch = 0 : i64, scratch_operands = 0 : i64, tpu.core_type = #tpu.core_type<tc>, window_params = [{transform_indices = @transform_0, window_bounds = array<i64: 512, 288>}, {pipeline_mode = #tpu.pipeline_mode<synchronous>, transform_indices = @transform_1, window_bounds = array<i64: 288, 32>}, {pipeline_mode = #tpu.pipeline_mode<synchronous>, transform_indices = @transform_2, window_bounds = array<i64: 1, 32>}, {transform_indices = @transform_3, window_bounds = array<i64: 512, 32>}, {transform_indices = @transform_4, window_bounds = array<i64: 512, 32>}]} {
    %c0 = arith.constant 0 : index
    %c0_0 = arith.constant 0 : index
    %0 = vector.load %arg1[%c0, %c0_0] : memref<512x288xbf16, #tpu.memory_space<vmem>>, vector<512x288xbf16>
    %c0_1 = arith.constant 0 : index
    %c0_2 = arith.constant 0 : index
    %1 = vector.load %arg2[%c0_1, %c0_2] : memref<288x32xbf16, #tpu.memory_space<vmem>>, vector<288x32xbf16>
    %cst = arith.constant dense<0.000000e+00> : vector<512x32xf32>
    %2 = tpu.matmul %0, %1, %cst {dimension_numbers = #tpu.dot_dimension_numbers<[1], [0], [0], [1], [0, 0, 1, 1], [], []>} : vector<512x288xbf16>, vector<288x32xbf16>, vector<512x32xf32> -> vector<512x32xf32>
    %c0_3 = arith.constant 0 : index
    %c0_4 = arith.constant 0 : index
    %3 = vector.load %arg3[%c0_3, %c0_4] : memref<1x32xf32, #tpu.memory_space<vmem>>, vector<1x32xf32>
    %4 = vector.broadcast %3 : vector<1x32xf32> to vector<512x32xf32>
    %5 = arith.addf %2, %4 : vector<512x32xf32>
    %c0_5 = arith.constant 0 : index
    %c0_6 = arith.constant 0 : index
    %6 = vector.load %arg4[%c0_5, %c0_6] : memref<512x32xbf16, #tpu.memory_space<vmem>>, vector<512x32xbf16>
    %7 = arith.extf %6 : vector<512x32xbf16> to vector<512x32xf32>
    %8 = arith.addf %5, %7 : vector<512x32xf32>
    %cst_7 = arith.constant 0.000000e+00 : f32
    %9 = vector.broadcast %cst_7 : f32 to vector<512x32xf32>
    %10 = arith.maximumf %8, %9 : vector<512x32xf32>
    %11 = arith.truncf %10 : vector<512x32xf32> to vector<512x32xbf16>
    %c0_8 = arith.constant 0 : index
    %c0_9 = arith.constant 0 : index
    %12 = vector.load %arg5[%c0_8, %c0_9] : memref<512x32xbf16, #tpu.memory_space<vmem>>, vector<512x32xbf16>
    tpu.vector_store %arg5[%c0_8, %c0_9], %11 {strides = array<i32>} : memref<512x32xbf16, #tpu.memory_space<vmem>>, vector<512x32xbf16>,
    return
  }
  func.func @transform_0(%arg0: i32) -> (i32, i32) {
    %c0_i32 = arith.constant 0 : i32
    %c0_i32_0 = arith.constant 0 : i32
    return %arg0, %c0_i32 : i32, i32
  }
  func.func @transform_1(%arg0: i32) -> (i32, i32) {
    %c0_i32 = arith.constant 0 : i32
    %c0_i32_0 = arith.constant 0 : i32
    %c0_i32_1 = arith.constant 0 : i32
    return %c0_i32, %c0_i32_0 : i32, i32
  }
  func.func @transform_2(%arg0: i32) -> (i32, i32) {
    %c0_i32 = arith.constant 0 : i32
    %c0_i32_0 = arith.constant 0 : i32
    %c0_i32_1 = arith.constant 0 : i32
    return %c0_i32, %c0_i32_0 : i32, i32
  }
  func.func @transform_3(%arg0: i32) -> (i32, i32) {
    %c0_i32 = arith.constant 0 : i32
    %c0_i32_0 = arith.constant 0 : i32
    return %arg0, %c0_i32 : i32, i32
  }
  func.func @transform_4(%arg0: i32) -> (i32, i32) {
    %c0_i32 = arith.constant 0 : i32
    %c0_i32_0 = arith.constant 0 : i32
    return %arg0, %c0_i32 : i32, i32
  }
}

module attributes {stable_mosaic.version = 11 : i64} {
  func.func @_gap_head_kernel(%arg0: memref<2x256x32xbf16, #tpu.memory_space<vmem>>, %arg1: memref<32x128xbf16, #tpu.memory_space<vmem>>, %arg2: memref<1x128xf32, #tpu.memory_space<vmem>>, %arg3: memref<128x128xbf16, #tpu.memory_space<vmem>>, %arg4: memref<1x128xf32, #tpu.memory_space<vmem>>, %arg5: memref<2x32xf32, #tpu.memory_space<vmem>>, %arg6: memref<2x128xf32, #tpu.memory_space<vmem>>) attributes {dimension_semantics = [], scalar_prefetch = 0 : i64, scratch_operands = 0 : i64, tpu.core_type = #tpu.core_type<tc>} {
    %c0 = arith.constant 0 : index
    %c0_0 = arith.constant 0 : index
    %c0_1 = arith.constant 0 : index
    %0 = vector.load %arg0[%c0, %c0_0, %c0_1] : memref<2x256x32xbf16, #tpu.memory_space<vmem>>, vector<2x256x32xbf16>
    %1 = arith.extf %0 : vector<2x256x32xbf16> to vector<2x256x32xf32>
    %cst = arith.constant dense<0.000000e+00> : vector<2x32xf32>
    %2 = vector.multi_reduction <add>, %1, %cst [1] : vector<2x256x32xf32> to vector<2x32xf32>
    %cst_2 = arith.constant 2.560000e+02 : f32
    %3 = vector.broadcast %cst_2 : f32 to vector<2x32xf32>
    %4 = arith.divf %2, %3 : vector<2x32xf32>
    %c0_3 = arith.constant 0 : index
    %c0_4 = arith.constant 0 : index
    %5 = vector.load %arg5[%c0_3, %c0_4] : memref<2x32xf32, #tpu.memory_space<vmem>>, vector<2x32xf32>
    tpu.vector_store %arg5[%c0_3, %c0_4], %4 {strides = array<i32>} : memref<2x32xf32, #tpu.memory_space<vmem>>, vector<2x32xf32>,
    %6 = arith.truncf %4 : vector<2x32xf32> to vector<2x32xbf16>
    %c0_5 = arith.constant 0 : index
    %c0_6 = arith.constant 0 : index
    %7 = vector.load %arg1[%c0_5, %c0_6] : memref<32x128xbf16, #tpu.memory_space<vmem>>, vector<32x128xbf16>
    %cst_7 = arith.constant dense<0.000000e+00> : vector<2x128xf32>
    %8 = tpu.matmul %6, %7, %cst_7 {dimension_numbers = #tpu.dot_dimension_numbers<[1], [0], [0], [1], [0, 0, 1, 1], [], []>} : vector<2x32xbf16>, vector<32x128xbf16>, vector<2x128xf32> -> vector<2x128xf32>
    %c0_8 = arith.constant 0 : index
    %c0_9 = arith.constant 0 : index
    %9 = vector.load %arg2[%c0_8, %c0_9] : memref<1x128xf32, #tpu.memory_space<vmem>>, vector<1x128xf32>
    %10 = vector.broadcast %9 : vector<1x128xf32> to vector<2x128xf32>
    %11 = arith.addf %8, %10 : vector<2x128xf32>
    %cst_10 = arith.constant 0.000000e+00 : f32
    %12 = vector.broadcast %cst_10 : f32 to vector<2x128xf32>
    %13 = arith.maximumf %11, %12 : vector<2x128xf32>
    %14 = arith.truncf %13 : vector<2x128xf32> to vector<2x128xbf16>
    %c0_11 = arith.constant 0 : index
    %c0_12 = arith.constant 0 : index
    %15 = vector.load %arg3[%c0_11, %c0_12] : memref<128x128xbf16, #tpu.memory_space<vmem>>, vector<128x128xbf16>
    %cst_13 = arith.constant dense<0.000000e+00> : vector<2x128xf32>
    %16 = tpu.matmul %14, %15, %cst_13 {dimension_numbers = #tpu.dot_dimension_numbers<[1], [0], [0], [1], [0, 0, 1, 1], [], []>} : vector<2x128xbf16>, vector<128x128xbf16>, vector<2x128xf32> -> vector<2x128xf32>
    %c0_14 = arith.constant 0 : index
    %c0_15 = arith.constant 0 : index
    %17 = vector.load %arg4[%c0_14, %c0_15] : memref<1x128xf32, #tpu.memory_space<vmem>>, vector<1x128xf32>
    %18 = vector.broadcast %17 : vector<1x128xf32> to vector<2x128xf32>
    %19 = arith.addf %16, %18 : vector<2x128xf32>
    %c0_16 = arith.constant 0 : index
    %c0_17 = arith.constant 0 : index
    %20 = vector.load %arg6[%c0_16, %c0_17] : memref<2x128xf32, #tpu.memory_space<vmem>>, vector<2x128xf32>
    tpu.vector_store %arg6[%c0_16, %c0_17], %19 {strides = array<i32>} : memref<2x128xf32, #tpu.memory_space<vmem>>, vector<2x128xf32>,
    return
  }
}

</mosaic_0001>

<bundles_post_ra>
// kernel: model_forward.6
= control target key start
LH: loop header
LB: loop body
LE: loop exit
PB: predicated region body
PF: predicated region fallthrough
CT: control target
= control target key end

     0   :  { %s2912_s12 = smov 0   ;;  %s3468_s0 = inlined_call_operand.vmem [shape: bf16[2048,32], index: 0, kind: input, shape index: {}]   ;;  %s3469_s1 = inlined_call_operand.vmem [shape: bf16[32,16], index: 1, kind: input, shape index: {}]   ;;  %s3470_s2 = inlined_call_operand.vmem [shape: f32[1,16], index: 2, kind: input, shape index: {}]   ;;  %s3471_s3 = inlined_call_operand.vmem [shape: bf16[2048,16], index: 3, kind: output, shape index: {}]  }
   0x1 LB: > { %s2209_s13 = sadd.s32 4294967295, %s2890_s12   ;;  %p2213_p0 = scmp.ge.s32.totalorder %s2890_s12, 1  ;;  %s2890_s12 = sphi %s2912_s12, %s13_s12  }
   0x2   : > { %p138_p1 = scmp.lt.s32.totalorder %s2890_s12, 3 }
   0x4   : > { %p139_p2 = pnand %p2213_p0, %p138_p1 }
   0x5   : > { %v2817_v0 = vld [vmem:[%s3469_s1] sm:$0xff] (!%p139_p2)   ;;  %s2214_s16 = sshll.u32 (!%p139_p2), %s2209_s13, 7  ;;  %v2818_v1 = vld [vmem:[%s3469_s1 + $0x8] sm:$0xff] (!%p139_p2)   ;;  %vm646_vm0 = vcmask (!%p139_p2), 261120   ;;  %vm2024_vm1 = vcmask (!%p139_p2), 125952  }
   0x6   : > { %142 = sbr.rel (%p139_p2) target bundleno = 361 (0x169), region = 32  ;;  %p163_p3 = scmp.lt.s32.totalorder (!%p139_p2), %s2214_s16, 255  ;;  %2673 = vmatprep.subr.bf16.mxu0 (!%p139_p2), %v2817_v0  ;;  %2805 = vmatprep.subr.bf16.mxu1 (!%p139_p2), %v2817_v0 }
   0x7   : > { %2674 = vmatpush3.bf16.msra.mxu0 (!%p139_p2), %v2817_v0  ;;  %2807 = vmatpush3.bf16.msra.mxu1 (!%p139_p2), %v2817_v0 }
   0x8   : > { %2675 = vmatprep.subr.bf16.mxu0 (!%p139_p2), %v2818_v1  ;;  %2806 = vmatprep.subr.bf16.mxu1 (!%p139_p2), %v2818_v1 }
   0xb   : > { %2676 = vmatpush3.bf16.msra.mxu0 (!%p139_p2), %v2818_v1  ;;  %2808 = vmatpush3.bf16.msra.mxu1 (!%p139_p2), %v2818_v1 }
   0xd   : > { %s3473_s16 = smov (!%p163_p3, %s2214_s16), 255 }
   0xe   : > { %s2215_s19 = sshll.u32 %s3473_s16, 2 }
   0xf   : > { %s2934_s22 = scalar_lea.vmem %s3468_s0, %s2215_s19  ;;  %s3079_s27 = scalar_lea.vmem %s3471_s3, %s2215_s19 }
  0x10   : > { %v2819_v2 = vld [vmem:[%s2934_s22] sm:$0xff]   ;;  %v2821_v4 = vld [vmem:[%s2934_s22 + $0x8] sm:$0xff]   ;;  %v2823_v6 = vld [vmem:[%s2934_s22 + $0x10] sm:$0xff]  }
  0x11   : > { %v2820_v3 = vld [vmem:[%s2934_s22 + $0x100] sm:$0xff]   ;;  %2677 = vmatprep.mubr.msk.bf16.mxu0 %vm646_vm0, %v2819_v2  ;;  %v2822_v5 = vld [vmem:[%s2934_s22 + $0x108] sm:$0xff]   ;;  %v2824_v7 = vld [vmem:[%s2934_s22 + $0x110] sm:$0xff]  }
  0x12   : > { %2741 = vmatprep.mubr.msk.bf16.mxu1 %vm646_vm0, %v2820_v3  ;;  %2678 = vmatmul.mubr.msk.bf16.vlgmr.msra.gmra.mrb[0].mxu0 %vm646_vm0, %v2821_v4  ;;  %v2825_v8 = vld [vmem:[%s2934_s22 + $0x18] sm:$0xff]   ;;  %v2827_v10 = vld [vmem:[%s2934_s22 + $0x20] sm:$0xff]   ;;  %v2829_v12 = vld [vmem:[%s2934_s22 + $0x28] sm:$0xff]  }
  0x13   : > { %2742 = vmatmul.mubr.msk.bf16.vlgmr.msra.gmra.mrb[0].mxu1 %vm646_vm0, %v2822_v5  ;;  %2681 = vmatprep.mubr.msk.bf16.mxu0 %vm646_vm0, %v2823_v6  ;;  %v2826_v9 = vld [vmem:[%s2934_s22 + $0x118] sm:$0xff]   ;;  %v2828_v11 = vld [vmem:[%s2934_s22 + $0x120] sm:$0xff]   ;;  %v2830_v13 = vld [vmem:[%s2934_s22 + $0x128] sm:$0xff]  }
  0x14   : > { %2745 = vmatprep.mubr.msk.bf16.mxu1 %vm646_vm0, %v2824_v7  ;;  %v2831_v14 = vld [vmem:[%s2934_s22 + $0x30] sm:$0xff]   ;;  %v2833_v16 = vld [vmem:[%s2934_s22 + $0x38] sm:$0xff]   ;;  %v2835_v18 = vld [vmem:[%s2934_s22 + $0x40] sm:$0xff]  }
  0x15   : > { %v2832_v15 = vld [vmem:[%s2934_s22 + $0x130] sm:$0xff]   ;;  %v2834_v17 = vld [vmem:[%s2934_s22 + $0x138] sm:$0xff]   ;;  %v2836_v19 = vld [vmem:[%s2934_s22 + $0x140] sm:$0xff]  }
  0x16   : > { %v2837_v20 = vld [vmem:[%s2934_s22 + $0x48] sm:$0xff]   ;;  %v2839_v22 = vld [vmem:[%s2934_s22 + $0x50] sm:$0xff]   ;;  %v2841_v24 = vld [vmem:[%s2934_s22 + $0x58] sm:$0xff]  }
  0x17   : > { %v2838_v21 = vld [vmem:[%s2934_s22 + $0x148] sm:$0xff]   ;;  %v2840_v23 = vld [vmem:[%s2934_s22 + $0x150] sm:$0xff]   ;;  %v2842_v25 = vld [vmem:[%s2934_s22 + $0x158] sm:$0xff]  }
  0x18   : > { %v2843_v26 = vld [vmem:[%s2934_s22 + $0x60] sm:$0xff]   ;;  %v2845_v28 = vld [vmem:[%s2934_s22 + $0x68] sm:$0xff]   ;;  %v2847_v30 = vld [vmem:[%s2934_s22 + $0x70] sm:$0xff]  }
  0x19   : > { %v2844_v27 = vld [vmem:[%s2934_s22 + $0x160] sm:$0xff]   ;;  %v2846_v29 = vld [vmem:[%s2934_s22 + $0x168] sm:$0xff]   ;;  %v2848_v31 = vld [vmem:[%s2934_s22 + $0x170] sm:$0xff]  }
  0x1a   : > { %2682 = vmatmul.mubr.msk.bf16.gmra.mrb[4].mxu0 %vm646_vm0, %v2825_v8  ;;  %v2849_v32 = vld [vmem:[%s2934_s22 + $0x78] sm:$0xff]   ;;  %v2851_v34 = vld [vmem:[%s2934_s22 + $0x80] sm:$0xff]   ;;  %v2853_v36 = vld [vmem:[%s2934_s22 + $0x88] sm:$0xff]  }
  0x1b   : > { %2746 = vmatmul.mubr.msk.bf16.gmra.mrb[4].mxu1 %vm646_vm0, %v2826_v9  ;;  %2685 = vmatprep.mubr.msk.bf16.mxu0 %vm646_vm0, %v2827_v10  ;;  %v2850_v33 = vld [vmem:[%s2934_s22 + $0x178] sm:$0xff]   ;;  %v2852_v35 = vld [vmem:[%s2934_s22 + $0x180] sm:$0xff]   ;;  %v2854_v37 = vld [vmem:[%s2934_s22 + $0x188] sm:$0xff]  }
  0x1c   : > { %2749 = vmatprep.mubr.msk.bf16.mxu1 %vm646_vm0, %v2828_v11  ;;  %v2855_v38 = vld [vmem:[%s2934_s22 + $0x90] sm:$0xff]   ;;  %v2857_v40 = vld [vmem:[%s2934_s22 + $0x98] sm:$0xff]   ;;  %v2859_v42 = vld [vmem:[%s2934_s22 + $0xa0] sm:$0xff]  }
  0x1d   : > { %v2856_v39 = vld [vmem:[%s2934_s22 + $0x190] sm:$0xff]   ;;  %v2858_v41 = vld [vmem:[%s2934_s22 + $0x198] sm:$0xff]   ;;  %v2860_v43 = vld [vmem:[%s2934_s22 + $0x1a0] sm:$0xff]  }
  0x1e   : > { %v2861_v44 = vld [vmem:[%s2934_s22 + $0xa8] sm:$0xff]   ;;  %v2863_v46 = vld [vmem:[%s2934_s22 + $0xb0] sm:$0xff]   ;;  %v2865_v48 = vld [vmem:[%s2934_s22 + $0xb8] sm:$0xff]  }
  0x1f   : > { %v2862_v45 = vld [vmem:[%s2934_s22 + $0x1a8] sm:$0xff]   ;;  %v2864_v47 = vld [vmem:[%s2934_s22 + $0x1b0] sm:$0xff]   ;;  %v2866_v49 = vld [vmem:[%s2934_s22 + $0x1b8] sm:$0xff]  }
  0x20   : > { %v2867_v50 = vld [vmem:[%s2934_s22 + $0xc0] sm:$0xff]   ;;  %v2869_v52 = vld [vmem:[%s2934_s22 + $0xc8] sm:$0xff]   ;;  %v2871_v54 = vld [vmem:[%s2934_s22 + $0xd0] sm:$0xff]  }
  0x21   : > { %v2868_v51 = vld [vmem:[%s2934_s22 + $0x1c0] sm:$0xff]   ;;  %v2870_v53 = vld [vmem:[%s2934_s22 + $0x1c8] sm:$0xff]   ;;  %v2872_v55 = vld [vmem:[%s2934_s22 + $0x1d0] sm:$0xff]  }
  0x22   : > { %2686 = vmatmul.mubr.msk.bf16.gmra.mrb[8].mxu0 %vm646_vm0, %v2829_v12  ;;  %v2873_v56 = vld [vmem:[%s2934_s22 + $0xd8] sm:$0xff]   ;;  %v2875_v58 = vld [vmem:[%s2934_s22 + $0xe0] sm:$0xff]   ;;  %v2877_v60 = vld [vmem:[%s2934_s22 + $0xe8] sm:$0xff]  }
  0x23   : > { %2750 = vmatmul.mubr.msk.bf16.gmra.mrb[8].mxu1 %vm646_vm0, %v2830_v13  ;;  %2689 = vmatprep.mubr.msk.bf16.mxu0 %vm646_vm0, %v2831_v14  ;;  %v2874_v57 = vld [vmem:[%s2934_s22 + $0x1d8] sm:$0xff]   ;;  %v2876_v59 = vld [vmem:[%s2934_s22 + $0x1e0] sm:$0xff]   ;;  %v2878_v61 = vld [vmem:[%s2934_s22 + $0x1e8] sm:$0xff]  }
  0x24   : > { %2753 = vmatprep.mubr.msk.bf16.mxu1 %vm646_vm0, %v2832_v15  ;;  %v2879_v62 = vld [vmem:[%s2934_s22 + $0xf0] sm:$0xff]   ;;  %v2881_v0 = vld [vmem:[%s2934_s22 + $0xf8] sm:$0xff]   ;;  %v3067_v2 = vld [vmem:[%s3470_s2] ss:$0 sm:$0xff] }
  0x25   : > { %v2880_v63 = vld [vmem:[%s2934_s22 + $0x1f0] sm:$0xff]   ;;  %v2882_v1 = vld [vmem:[%s2934_s22 + $0x1f8] sm:$0xff]  }
  0x2a   : > { %2690 = vmatmul.mubr.msk.bf16.gmra.mrb[12].mxu0 %vm646_vm0, %v2833_v16 }
  0x2b   : > { %2754 = vmatmul.mubr.msk.bf16.gmra.mrb[12].mxu1 %vm646_vm0, %v2834_v17  ;;  %2693 = vmatprep.mubr.msk.bf16.mxu0 %vm646_vm0, %v2835_v18 }
  0x2c   : > { %2757 = vmatprep.mubr.msk.bf16.mxu1 %vm646_vm0, %v2836_v19 }
  0x32   : > { %2694 = vmatmul.mubr.msk.bf16.gmra.mrb[16].mxu0 %vm646_vm0, %v2837_v20 }
  0x33   : > { %2758 = vmatmul.mubr.msk.bf16.gmra.mrb[16].mxu1 %vm646_vm0, %v2838_v21  ;;  %2697 = vmatprep.mubr.msk.bf16.mxu0 %vm646_vm0, %v2839_v22 }
  0x34   : > { %2761 = vmatprep.mubr.msk.bf16.mxu1 %vm646_vm0, %v2840_v23 }
  0x3a   : > { %2698 = vmatmul.mubr.msk.bf16.gmra.mrb[20].mxu0 %vm646_vm0, %v2841_v24 }
  0x3b   : > { %2762 = vmatmul.mubr.msk.bf16.gmra.mrb[20].mxu1 %vm646_vm0, %v2842_v25  ;;  %2701 = vmatprep.mubr.msk.bf16.mxu0 %vm646_vm0, %v2843_v26 }
  0x3c   : > { %2765 = vmatprep.mubr.msk.bf16.mxu1 %vm646_vm0, %v2844_v27 }
  0x42   : > { %2702 = vmatmul.mubr.msk.bf16.gmra.mrb[24].mxu0 %vm646_vm0, %v2845_v28 }
  0x43   : > { %2766 = vmatmul.mubr.msk.bf16.gmra.mrb[24].mxu1 %vm646_vm0, %v2846_v29  ;;  %2705 = vmatprep.mubr.msk.bf16.mxu0 %vm646_vm0, %v2847_v30 }
  0x44   : > { %2769 = vmatprep.mubr.msk.bf16.mxu1 %vm646_vm0, %v2848_v31 }
  0x4a   : > { %2706 = vmatmul.mubr.msk.bf16.gmra.mrb[28].mxu0 %vm646_vm0, %v2849_v32 }
  0x4b   : > { %2770 = vmatmul.mubr.msk.bf16.gmra.mrb[28].mxu1 %vm646_vm0, %v2850_v33  ;;  %2709 = vmatprep.mubr.msk.bf16.mxu0 %vm646_vm0, %v2851_v34 }
  0x4c   : > { %2773 = vmatprep.mubr.msk.bf16.mxu1 %vm646_vm0, %v2852_v35 }
  0x52   : > { %2710 = vmatmul.mubr.msk.bf16.gmra.mrb[32].mxu0 %vm646_vm0, %v2853_v36 }
  0x53   : > { %2774 = vmatmul.mubr.msk.bf16.gmra.mrb[32].mxu1 %vm646_vm0, %v2854_v37  ;;  %2713 = vmatprep.mubr.msk.bf16.mxu0 %vm646_vm0, %v2855_v38 }
  0x54   : > { %2777 = vmatprep.mubr.msk.bf16.mxu1 %vm646_vm0, %v2856_v39 }
  0x5a   : > { %2714 = vmatmul.mubr.msk.bf16.gmra.mrb[36].mxu0 %vm646_vm0, %v2857_v40 }
  0x5b   : > { %2778 = vmatmul.mubr.msk.bf16.gmra.mrb[36].mxu1 %vm646_vm0, %v2858_v41  ;;  %2717 = vmatprep.mubr.msk.bf16.mxu0 %vm646_vm0, %v2859_v42 }
  0x5c   : > { %2781 = vmatprep.mubr.msk.bf16.mxu1 %vm646_vm0, %v2860_v43 }
  0x62   : > { %2718 = vmatmul.mubr.msk.bf16.gmra.mrb[40].mxu0 %vm646_vm0, %v2861_v44 }
  0x63   : > { %2782 = vmatmul.mubr.msk.bf16.gmra.mrb[40].mxu1 %vm646_vm0, %v2862_v45  ;;  %2721 = vmatprep.mubr.msk.bf16.mxu0 %vm646_vm0, %v2863_v46 }
  0x64   : > { %2785 = vmatprep.mubr.msk.bf16.mxu1 %vm646_vm0, %v2864_v47 }
  0x6a   : > { %2722 = vmatmul.mubr.msk.bf16.gmra.mrb[44].mxu0 %vm646_vm0, %v2865_v48 }
  0x6b   : > { %2786 = vmatmul.mubr.msk.bf16.gmra.mrb[44].mxu1 %vm646_vm0, %v2866_v49  ;;  %2725 = vmatprep.mubr.msk.bf16.mxu0 %vm646_vm0, %v2867_v50 }
  0x6c   : > { %2789 = vmatprep.mubr.msk.bf16.mxu1 %vm646_vm0, %v2868_v51 }
  0x72   : > { %2726 = vmatmul.mubr.msk.bf16.gmra.mrb[48].mxu0 %vm646_vm0, %v2869_v52 }
  0x73   : > { %2790 = vmatmul.mubr.msk.bf16.gmra.mrb[48].mxu1 %vm646_vm0, %v2870_v53  ;;  %2729 = vmatprep.mubr.msk.bf16.mxu0 %vm646_vm0, %v2871_v54 }
  0x74   : > { %2793 = vmatprep.mubr.msk.bf16.mxu1 %vm646_vm0, %v2872_v55 }
  0x7a   : > { %2730 = vmatmul.mubr.msk.bf16.gmra.mrb[52].mxu0 %vm646_vm0, %v2873_v56 }
  0x7b   : > { %2794 = vmatmul.mubr.msk.bf16.gmra.mrb[52].mxu1 %vm646_vm0, %v2874_v57  ;;  %2733 = vmatprep.mubr.msk.bf16.mxu0 %vm646_vm0, %v2875_v58 }
  0x7c   : > { %2797 = vmatprep.mubr.msk.bf16.mxu1 %vm646_vm0, %v2876_v59 }
  0x82   : > { %2734 = vmatmul.mubr.msk.bf16.gmra.mrb[56].mxu0 %vm646_vm0, %v2877_v60 }
  0x83   : > { %2798 = vmatmul.mubr.msk.bf16.gmra.mrb[56].mxu1 %vm646_vm0, %v2878_v61  ;;  %2737 = vmatprep.mubr.msk.bf16.mxu0 %vm646_vm0, %v2879_v62 }
  0x84   : > { %2801 = vmatprep.mubr.msk.bf16.mxu1 %vm646_vm0, %v2880_v63 }
  0x8a   : > { %2738 = vmatmul.mubr.msk.bf16.gmra.mrb[60].mxu0 %vm646_vm0, %v2881_v0 }
  0x8b   : > { %2802 = vmatmul.mubr.msk.bf16.gmra.mrb[60].mxu1 %vm646_vm0, %v2882_v1 }
  0xe5   : > { %v2679_v3 = vpop.f32.mrb[0].mxu0 }
  0xe6   : > { %v882_v4 = vadd.f32 %v2679_v3, %v3067_v2  ;;  %v2743_v5 = vpop.f32.mrb[0].mxu1  ;;  %v873_v6 = vpop.f32.mrb[1].mxu0 }
  0xe7   : > { %v1138_v7 = vadd.f32 %v2743_v5, %v3067_v2  ;;  %v874_v8 = vadd.f32 %v3067_v2, %v873_v6  ;;  %v1129_v9 = vpop.f32.mrb[1].mxu1  ;;  %v2680_v10 = vpop.f32.mrb[2].mxu0 }
  0xe8   : > { %v1386_v11 = vmax.f32 %v882_v4, 0.0  ;;  %v1130_v12 = vadd.f32 %v3067_v2, %v1129_v9  ;;  %v885_v13 = vadd.f32 %v2680_v10, %v3067_v2  ;;  %v2744_v14 = vpop.f32.mrb[2].mxu1  ;;  %v876_v15 = vpop.f32.mrb[3].mxu0 }
  0xe9   : > { %v1450_v16 = vmax.f32 %v1138_v7, 0.0  ;;  %v1384_v17 = vmax.f32 %v874_v8, 0.0  ;;  %v1141_v18 = vadd.f32 %v2744_v14, %v3067_v2  ;;  %v877_v19 = vadd.f32 %v3067_v2, %v876_v15  ;;  %v1132_v20 = vpop.f32.mrb[3].mxu1 }
  0xea   : > { %v2481_v21 = vpack.c.bf16 %v1386_v11, %v1386_v11  ;;  %v1448_v22 = vmax.f32 %v1130_v12, 0.0  ;;  %v1387_v23 = vmax.f32 %v885_v13, 0.0  ;;  %v1133_v24 = vadd.f32 %v3067_v2, %v1132_v20 }
  0xeb   : > { %v2545_v25 = vpack.c.bf16 %v1450_v16, %v1450_v16  ;;  %v2479_v26 = vpack.c.bf16 %v1384_v17, %v1384_v17  ;;  %v1451_v27 = vmax.f32 %v1141_v18, 0.0  ;;  %v1385_v28 = vmax.f32 %v877_v19, 0.0 }
  0xec   : > { %2027 = vst.msk [vmem:[%s3079_s27 + $0x8] sm:$0xf] %vm2024_vm1, %v2481_v21  ;;  %v2543_v29 = vpack.c.bf16 %v1448_v22, %v1448_v22  ;;  %v2482_v30 = vpack.c.bf16 %v1387_v23, %v1387_v23  ;;  %v1449_v31 = vmax.f32 %v1133_v24, 0.0 }
  0xed   : > { %2091 = vst.msk [vmem:[%s3079_s27 + $0x108] sm:$0xf] %vm2024_vm1, %v2545_v25  ;;  %2025 = vst.msk [vmem:[%s3079_s27] sm:$0xf] %vm2024_vm1, %v2479_v26  ;;  %v2546_v32 = vpack.c.bf16 %v1451_v27, %v1451_v27  ;;  %v2480_v33 = vpack.c.bf16 %v1385_v28, %v1385_v28  ;;  %v2683_v34 = vpop.f32.mrb[4].mxu0 }
  0xee   : > { %2089 = vst.msk [vmem:[%s3079_s27 + $0x100] sm:$0xf] %vm2024_vm1, %v2543_v29  ;;  %2028 = vst.msk [vmem:[%s3079_s27 + $0xc] sm:$0xf] %vm2024_vm1, %v2482_v30  ;;  %v2544_v35 = vpack.c.bf16 %v1449_v31, %v1449_v31  ;;  %v898_v36 = vadd.f32 %v2683_v34, %v3067_v2  ;;  %v2747_v37 = vpop.f32.mrb[4].mxu1  ;;  %v889_v38 = vpop.f32.mrb[5].mxu0 }
  0xef   : > { %2092 = vst.msk [vmem:[%s3079_s27 + $0x10c] sm:$0xf] %vm2024_vm1, %v2546_v32  ;;  %2026 = vst.msk [vmem:[%s3079_s27 + $0x4] sm:$0xf] %vm2024_vm1, %v2480_v33  ;;  %v1154_v39 = vadd.f32 %v2747_v37, %v3067_v2  ;;  %v890_v40 = vadd.f32 %v3067_v2, %v889_v38  ;;  %v1145_v41 = vpop.f32.mrb[5].mxu1  ;;  %v2684_v42 = vpop.f32.mrb[6].mxu0 }
  0xf0   : > { %2090 = vst.msk [vmem:[%s3079_s27 + $0x104] sm:$0xf] %vm2024_vm1, %v2544_v35  ;;  %v1390_v43 = vmax.f32 %v898_v36, 0.0  ;;  %v1146_v44 = vadd.f32 %v3067_v2, %v1145_v41  ;;  %v901_v45 = vadd.f32 %v2684_v42, %v3067_v2  ;;  %v2748_v46 = vpop.f32.mrb[6].mxu1  ;;  %v892_v47 = vpop.f32.mrb[7].mxu0 }
  0xf1   : > { %v1454_v48 = vmax.f32 %v1154_v39, 0.0  ;;  %v1388_v49 = vmax.f32 %v890_v40, 0.0  ;;  %v1157_v50 = vadd.f32 %v2748_v46, %v3067_v2  ;;  %v893_v51 = vadd.f32 %v3067_v2, %v892_v47  ;;  %v1148_v52 = vpop.f32.mrb[7].mxu1 }
  0xf2   : > { %v2485_v53 = vpack.c.bf16 %v1390_v43, %v1390_v43  ;;  %v1452_v54 = vmax.f32 %v1146_v44, 0.0  ;;  %v1391_v55 = vmax.f32 %v901_v45, 0.0  ;;  %v1149_v56 = vadd.f32 %v3067_v2, %v1148_v52 }
  0xf3   : > { %v2549_v57 = vpack.c.bf16 %v1454_v48, %v1454_v48  ;;  %v2483_v58 = vpack.c.bf16 %v1388_v49, %v1388_v49  ;;  %v1455_v59 = vmax.f32 %v1157_v50, 0.0  ;;  %v1389_v60 = vmax.f32 %v893_v51, 0.0 }
  0xf4   : > { %2031 = vst.msk [vmem:[%s3079_s27 + $0x18] sm:$0xf] %vm2024_vm1, %v2485_v53  ;;  %v2547_v61 = vpack.c.bf16 %v1452_v54, %v1452_v54  ;;  %v2486_v62 = vpack.c.bf16 %v1391_v55, %v1391_v55  ;;  %v1453_v63 = vmax.f32 %v1149_v56, 0.0 }
  0xf5   : > { %2095 = vst.msk [vmem:[%s3079_s27 + $0x118] sm:$0xf] %vm2024_vm1, %v2549_v57  ;;  %2029 = vst.msk [vmem:[%s3079_s27 + $0x10] sm:$0xf] %vm2024_vm1, %v2483_v58  ;;  %v2550_v0 = vpack.c.bf16 %v1455_v59, %v1455_v59  ;;  %v2484_v1 = vpack.c.bf16 %v1389_v60, %v1389_v60  ;;  %v2687_v3 = vpop.f32.mrb[8].mxu0 }
  0xf6   : > { %2093 = vst.msk [vmem:[%s3079_s27 + $0x110] sm:$0xf] %vm2024_vm1, %v2547_v61  ;;  %2032 = vst.msk [vmem:[%s3079_s27 + $0x1c] sm:$0xf] %vm2024_vm1, %v2486_v62  ;;  %v2548_v4 = vpack.c.bf16 %v1453_v63, %v1453_v63  ;;  %v914_v5 = vadd.f32 %v2687_v3, %v3067_v2  ;;  %v2751_v6 = vpop.f32.mrb[8].mxu1  ;;  %v905_v7 = vpop.f32.mrb[9].mxu0 }
  0xf7   : > { %2096 = vst.msk [vmem:[%s3079_s27 + $0x11c] sm:$0xf] %vm2024_vm1, %v2550_v0  ;;  %2030 = vst.msk [vmem:[%s3079_s27 + $0x14] sm:$0xf] %vm2024_vm1, %v2484_v1  ;;  %v1170_v8 = vadd.f32 %v2751_v6, %v3067_v2  ;;  %v906_v9 = vadd.f32 %v3067_v2, %v905_v7  ;;  %v1161_v10 = vpop.f32.mrb[9].mxu1  ;;  %v2688_v11 = vpop.f32.mrb[10].mxu0 }
  0xf8   : > { %2094 = vst.msk [vmem:[%s3079_s27 + $0x114] sm:$0xf] %vm2024_vm1, %v2548_v4  ;;  %v1394_v12 = vmax.f32 %v914_v5, 0.0  ;;  %v1162_v13 = vadd.f32 %v3067_v2, %v1161_v10  ;;  %v917_v14 = vadd.f32 %v2688_v11, %v3067_v2  ;;  %v2752_v15 = vpop.f32.mrb[10].mxu1  ;;  %v908_v16 = vpop.f32.mrb[11].mxu0 }
  0xf9   : > { %v1458_v17 = vmax.f32 %v1170_v8, 0.0  ;;  %v1392_v18 = vmax.f32 %v906_v9, 0.0  ;;  %v1173_v19 = vadd.f32 %v2752_v15, %v3067_v2  ;;  %v909_v20 = vadd.f32 %v3067_v2, %v908_v16  ;;  %v1164_v21 = vpop.f32.mrb[11].mxu1 }
  0xfa   : > { %v2489_v22 = vpack.c.bf16 %v1394_v12, %v1394_v12  ;;  %v1456_v23 = vmax.f32 %v1162_v13, 0.0  ;;  %v1395_v24 = vmax.f32 %v917_v14, 0.0  ;;  %v1165_v25 = vadd.f32 %v3067_v2, %v1164_v21 }
  0xfb   : > { %v2553_v26 = vpack.c.bf16 %v1458_v17, %v1458_v17  ;;  %v2487_v27 = vpack.c.bf16 %v1392_v18, %v1392_v18  ;;  %v1459_v28 = vmax.f32 %v1173_v19, 0.0  ;;  %v1393_v29 = vmax.f32 %v909_v20, 0.0 }
  0xfc   : > { %2035 = vst.msk [vmem:[%s3079_s27 + $0x28] sm:$0xf] %vm2024_vm1, %v2489_v22  ;;  %v2551_v30 = vpack.c.bf16 %v1456_v23, %v1456_v23  ;;  %v2490_v31 = vpack.c.bf16 %v1395_v24, %v1395_v24  ;;  %v1457_v32 = vmax.f32 %v1165_v25, 0.0 }
  0xfd   : > { %2099 = vst.msk [vmem:[%s3079_s27 + $0x128] sm:$0xf] %vm2024_vm1, %v2553_v26  ;;  %2033 = vst.msk [vmem:[%s3079_s27 + $0x20] sm:$0xf] %vm2024_vm1, %v2487_v27  ;;  %v2554_v33 = vpack.c.bf16 %v1459_v28, %v1459_v28  ;;  %v2488_v34 = vpack.c.bf16 %v1393_v29, %v1393_v29  ;;  %v2691_v35 = vpop.f32.mrb[12].mxu0 }
  0xfe   : > { %2097 = vst.msk [vmem:[%s3079_s27 + $0x120] sm:$0xf] %vm2024_vm1, %v2551_v30  ;;  %2036 = vst.msk [vmem:[%s3079_s27 + $0x2c] sm:$0xf] %vm2024_vm1, %v2490_v31  ;;  %v2552_v36 = vpack.c.bf16 %v1457_v32, %v1457_v32  ;;  %v930_v37 = vadd.f32 %v2691_v35, %v3067_v2  ;;  %v2755_v38 = vpop.f32.mrb[12].mxu1  ;;  %v921_v39 = vpop.f32.mrb[13].mxu0 }
  0xff   : > { %2100 = vst.msk [vmem:[%s3079_s27 + $0x12c] sm:$0xf] %vm2024_vm1, %v2554_v33  ;;  %2034 = vst.msk [vmem:[%s3079_s27 + $0x24] sm:$0xf] %vm2024_vm1, %v2488_v34  ;;  %v1186_v40 = vadd.f32 %v2755_v38, %v3067_v2  ;;  %v922_v41 = vadd.f32 %v3067_v2, %v921_v39  ;;  %v1177_v42 = vpop.f32.mrb[13].mxu1  ;;  %v2692_v43 = vpop.f32.mrb[14].mxu0 }
 0x100   : > { %2098 = vst.msk [vmem:[%s3079_s27 + $0x124] sm:$0xf] %vm2024_vm1, %v2552_v36  ;;  %v1398_v44 = vmax.f32 %v930_v37, 0.0  ;;  %v1178_v45 = vadd.f32 %v3067_v2, %v1177_v42  ;;  %v933_v46 = vadd.f32 %v2692_v43, %v3067_v2  ;;  %v2756_v47 = vpop.f32.mrb[14].mxu1  ;;  %v924_v48 = vpop.f32.mrb[15].mxu0 }
 0x101   : > { %v1462_v49 = vmax.f32 %v1186_v40, 0.0  ;;  %v1396_v50 = vmax.f32 %v922_v41, 0.0  ;;  %v1189_v51 = vadd.f32 %v2756_v47, %v3067_v2  ;;  %v925_v52 = vadd.f32 %v3067_v2, %v924_v48  ;;  %v1180_v53 = vpop.f32.mrb[15].mxu1 }
 0x102   : > { %v2493_v54 = vpack.c.bf16 %v1398_v44, %v1398_v44  ;;  %v1460_v55 = vmax.f32 %v1178_v45, 0.0  ;;  %v1399_v56 = vmax.f32 %v933_v46, 0.0  ;;  %v1181_v57 = vadd.f32 %v3067_v2, %v1180_v53 }
 0x103   : > { %v2557_v58 = vpack.c.bf16 %v1462_v49, %v1462_v49  ;;  %v2491_v59 = vpack.c.bf16 %v1396_v50, %v1396_v50  ;;  %v1463_v60 = vmax.f32 %v1189_v51, 0.0  ;;  %v1397_v61 = vmax.f32 %v925_v52, 0.0 }
 0x104   : > { %2039 = vst.msk [vmem:[%s3079_s27 + $0x38] sm:$0xf] %vm2024_vm1, %v2493_v54  ;;  %v2555_v62 = vpack.c.bf16 %v1460_v55, %v1460_v55  ;;  %v2494_v63 = vpack.c.bf16 %v1399_v56, %v1399_v56  ;;  %v1461_v0 = vmax.f32 %v1181_v57, 0.0 }
 0x105   : > { %2103 = vst.msk [vmem:[%s3079_s27 + $0x138] sm:$0xf] %vm2024_vm1, %v2557_v58  ;;  %2037 = vst.msk [vmem:[%s3079_s27 + $0x30] sm:$0xf] %vm2024_vm1, %v2491_v59  ;;  %v2558_v1 = vpack.c.bf16 %v1463_v60, %v1463_v60  ;;  %v2492_v3 = vpack.c.bf16 %v1397_v61, %v1397_v61  ;;  %v2695_v4 = vpop.f32.mrb[16].mxu0 }
 0x106   : > { %2101 = vst.msk [vmem:[%s3079_s27 + $0x130] sm:$0xf] %vm2024_vm1, %v2555_v62  ;;  %2040 = vst.msk [vmem:[%s3079_s27 + $0x3c] sm:$0xf] %vm2024_vm1, %v2494_v63  ;;  %v2556_v5 = vpack.c.bf16 %v1461_v0, %v1461_v0  ;;  %v946_v6 = vadd.f32 %v2695_v4, %v3067_v2  ;;  %v2759_v7 = vpop.f32.mrb[16].mxu1  ;;  %v937_v8 = vpop.f32.mrb[17].mxu0 }
 0x107   : > { %2104 = vst.msk [vmem:[%s3079_s27 + $0x13c] sm:$0xf] %vm2024_vm1, %v2558_v1  ;;  %2038 = vst.msk [vmem:[%s3079_s27 + $0x34] sm:$0xf] %vm2024_vm1, %v2492_v3  ;;  %v1202_v9 = vadd.f32 %v2759_v7, %v3067_v2  ;;  %v938_v10 = vadd.f32 %v3067_v2, %v937_v8  ;;  %v1193_v11 = vpop.f32.mrb[17].mxu1  ;;  %v2696_v12 = vpop.f32.mrb[18].mxu0 }
 0x108   : > { %2102 = vst.msk [vmem:[%s3079_s27 + $0x134] sm:$0xf] %vm2024_vm1, %v2556_v5  ;;  %v1402_v13 = vmax.f32 %v946_v6, 0.0  ;;  %v1194_v14 = vadd.f32 %v3067_v2, %v1193_v11  ;;  %v949_v15 = vadd.f32 %v2696_v12, %v3067_v2  ;;  %v2760_v16 = vpop.f32.mrb[18].mxu1  ;;  %v940_v17 = vpop.f32.mrb[19].mxu0 }
 0x109   : > { %v1466_v18 = vmax.f32 %v1202_v9, 0.0  ;;  %v1400_v19 = vmax.f32 %v938_v10, 0.0  ;;  %v1205_v20 = vadd.f32 %v2760_v16, %v3067_v2  ;;  %v941_v21 = vadd.f32 %v3067_v2, %v940_v17  ;;  %v1196_v22 = vpop.f32.mrb[19].mxu1 }
 0x10a   : > { %v2497_v23 = vpack.c.bf16 %v1402_v13, %v1402_v13  ;;  %v1464_v24 = vmax.f32 %v1194_v14, 0.0  ;;  %v1403_v25 = vmax.f32 %v949_v15, 0.0  ;;  %v1197_v26 = vadd.f32 %v3067_v2, %v1196_v22 }
 0x10b   : > { %v2561_v27 = vpack.c.bf16 %v1466_v18, %v1466_v18  ;;  %v2495_v28 = vpack.c.bf16 %v1400_v19, %v1400_v19  ;;  %v1467_v29 = vmax.f32 %v1205_v20, 0.0  ;;  %v1401_v30 = vmax.f32 %v941_v21, 0.0 }
 0x10c   : > { %2043 = vst.msk [vmem:[%s3079_s27 + $0x48] sm:$0xf] %vm2024_vm1, %v2497_v23  ;;  %v2559_v31 = vpack.c.bf16 %v1464_v24, %v1464_v24  ;;  %v2498_v32 = vpack.c.bf16 %v1403_v25, %v1403_v25  ;;  %v1465_v33 = vmax.f32 %v1197_v26, 0.0 }
 0x10d   : > { %2107 = vst.msk [vmem:[%s3079_s27 + $0x148] sm:$0xf] %vm2024_vm1, %v2561_v27  ;;  %2041 = vst.msk [vmem:[%s3079_s27 + $0x40] sm:$0xf] %vm2024_vm1, %v2495_v28  ;;  %v2562_v34 = vpack.c.bf16 %v1467_v29, %v1467_v29  ;;  %v2496_v35 = vpack.c.bf16 %v1401_v30, %v1401_v30  ;;  %v2699_v36 = vpop.f32.mrb[20].mxu0 }
 0x10e   : > { %2105 = vst.msk [vmem:[%s3079_s27 + $0x140] sm:$0xf] %vm2024_vm1, %v2559_v31  ;;  %2044 = vst.msk [vmem:[%s3079_s27 + $0x4c] sm:$0xf] %vm2024_vm1, %v2498_v32  ;;  %v2560_v37 = vpack.c.bf16 %v1465_v33, %v1465_v33  ;;  %v962_v38 = vadd.f32 %v2699_v36, %v3067_v2  ;;  %v2763_v39 = vpop.f32.mrb[20].mxu1  ;;  %v953_v40 = vpop.f32.mrb[21].mxu0 }
 0x10f   : > { %2108 = vst.msk [vmem:[%s3079_s27 + $0x14c] sm:$0xf] %vm2024_vm1, %v2562_v34  ;;  %2042 = vst.msk [vmem:[%s3079_s27 + $0x44] sm:$0xf] %vm2024_vm1, %v2496_v35  ;;  %v1218_v41 = vadd.f32 %v2763_v39, %v3067_v2  ;;  %v954_v42 = vadd.f32 %v3067_v2, %v953_v40  ;;  %v1209_v43 = vpop.f32.mrb[21].mxu1  ;;  %v2700_v44 = vpop.f32.mrb[22].mxu0 }
 0x110   : > { %2106 = vst.msk [vmem:[%s3079_s27 + $0x144] sm:$0xf] %vm2024_vm1, %v2560_v37  ;;  %v1406_v45 = vmax.f32 %v962_v38, 0.0  ;;  %v1210_v46 = vadd.f32 %v3067_v2, %v1209_v43  ;;  %v965_v47 = vadd.f32 %v2700_v44, %v3067_v2  ;;  %v2764_v48 = vpop.f32.mrb[22].mxu1  ;;  %v956_v49 = vpop.f32.mrb[23].mxu0 }
 0x111   : > { %v1470_v50 = vmax.f32 %v1218_v41, 0.0  ;;  %v1404_v51 = vmax.f32 %v954_v42, 0.0  ;;  %v1221_v52 = vadd.f32 %v2764_v48, %v3067_v2  ;;  %v957_v53 = vadd.f32 %v3067_v2, %v956_v49  ;;  %v1212_v54 = vpop.f32.mrb[23].mxu1 }
 0x112   : > { %v2501_v55 = vpack.c.bf16 %v1406_v45, %v1406_v45  ;;  %v1468_v56 = vmax.f32 %v1210_v46, 0.0  ;;  %v1407_v57 = vmax.f32 %v965_v47, 0.0  ;;  %v1213_v58 = vadd.f32 %v3067_v2, %v1212_v54 }
 0x113   : > { %v2565_v59 = vpack.c.bf16 %v1470_v50, %v1470_v50  ;;  %v2499_v60 = vpack.c.bf16 %v1404_v51, %v1404_v51  ;;  %v1471_v61 = vmax.f32 %v1221_v52, 0.0  ;;  %v1405_v62 = vmax.f32 %v957_v53, 0.0 }
 0x114   : > { %2047 = vst.msk [vmem:[%s3079_s27 + $0x58] sm:$0xf] %vm2024_vm1, %v2501_v55  ;;  %v2563_v63 = vpack.c.bf16 %v1468_v56, %v1468_v56  ;;  %v2502_v0 = vpack.c.bf16 %v1407_v57, %v1407_v57  ;;  %v1469_v1 = vmax.f32 %v1213_v58, 0.0 }
 0x115   : > { %2111 = vst.msk [vmem:[%s3079_s27 + $0x158] sm:$0xf] %vm2024_vm1, %v2565_v59  ;;  %2045 = vst.msk [vmem:[%s3079_s27 + $0x50] sm:$0xf] %vm2024_vm1, %v2499_v60  ;;  %v2566_v3 = vpack.c.bf16 %v1471_v61, %v1471_v61  ;;  %v2500_v4 = vpack.c.bf16 %v1405_v62, %v1405_v62  ;;  %v2703_v5 = vpop.f32.mrb[24].mxu0 }
 0x116   : > { %2109 = vst.msk [vmem:[%s3079_s27 + $0x150] sm:$0xf] %vm2024_vm1, %v2563_v63  ;;  %2048 = vst.msk [vmem:[%s3079_s27 + $0x5c] sm:$0xf] %vm2024_vm1, %v2502_v0  ;;  %v2564_v6 = vpack.c.bf16 %v1469_v1, %v1469_v1  ;;  %v978_v7 = vadd.f32 %v2703_v5, %v3067_v2  ;;  %v2767_v8 = vpop.f32.mrb[24].mxu1  ;;  %v969_v9 = vpop.f32.mrb[25].mxu0 }
 0x117   : > { %2112 = vst.msk [vmem:[%s3079_s27 + $0x15c] sm:$0xf] %vm2024_vm1, %v2566_v3  ;;  %2046 = vst.msk [vmem:[%s3079_s27 + $0x54] sm:$0xf] %vm2024_vm1, %v2500_v4  ;;  %v1234_v10 = vadd.f32 %v2767_v8, %v3067_v2  ;;  %v970_v11 = vadd.f32 %v3067_v2, %v969_v9  ;;  %v1225_v12 = vpop.f32.mrb[25].mxu1  ;;  %v2704_v13 = vpop.f32.mrb[26].mxu0 }
 0x118   : > { %2110 = vst.msk [vmem:[%s3079_s27 + $0x154] sm:$0xf] %vm2024_vm1, %v2564_v6  ;;  %v1410_v14 = vmax.f32 %v978_v7, 0.0  ;;  %v1226_v15 = vadd.f32 %v3067_v2, %v1225_v12  ;;  %v981_v16 = vadd.f32 %v2704_v13, %v3067_v2  ;;  %v2768_v17 = vpop.f32.mrb[26].mxu1  ;;  %v972_v18 = vpop.f32.mrb[27].mxu0 }
 0x119   : > { %v1474_v19 = vmax.f32 %v1234_v10, 0.0  ;;  %v1408_v20 = vmax.f32 %v970_v11, 0.0  ;;  %v1237_v21 = vadd.f32 %v2768_v17, %v3067_v2  ;;  %v973_v22 = vadd.f32 %v3067_v2, %v972_v18  ;;  %v1228_v23 = vpop.f32.mrb[27].mxu1 }
 0x11a   : > { %v2505_v24 = vpack.c.bf16 %v1410_v14, %v1410_v14  ;;  %v1472_v25 = vmax.f32 %v1226_v15, 0.0  ;;  %v1411_v26 = vmax.f32 %v981_v16, 0.0  ;;  %v1229_v27 = vadd.f32 %v3067_v2, %v1228_v23 }
 0x11b   : > { %v2569_v28 = vpack.c.bf16 %v1474_v19, %v1474_v19  ;;  %v2503_v29 = vpack.c.bf16 %v1408_v20, %v1408_v20  ;;  %v1475_v30 = vmax.f32 %v1237_v21, 0.0  ;;  %v1409_v31 = vmax.f32 %v973_v22, 0.0 }
 0x11c   : > { %2051 = vst.msk [vmem:[%s3079_s27 + $0x68] sm:$0xf] %vm2024_vm1, %v2505_v24  ;;  %v2567_v32 = vpack.c.bf16 %v1472_v25, %v1472_v25  ;;  %v2506_v33 = vpack.c.bf16 %v1411_v26, %v1411_v26  ;;  %v1473_v34 = vmax.f32 %v1229_v27, 0.0 }
 0x11d   : > { %2115 = vst.msk [vmem:[%s3079_s27 + $0x168] sm:$0xf] %vm2024_vm1, %v2569_v28  ;;  %2049 = vst.msk [vmem:[%s3079_s27 + $0x60] sm:$0xf] %vm2024_vm1, %v2503_v29  ;;  %v2570_v35 = vpack.c.bf16 %v1475_v30, %v1475_v30  ;;  %v2504_v36 = vpack.c.bf16 %v1409_v31, %v1409_v31  ;;  %v2707_v37 = vpop.f32.mrb[28].mxu0 }
 0x11e   : > { %2113 = vst.msk [vmem:[%s3079_s27 + $0x160] sm:$0xf] %vm2024_vm1, %v2567_v32  ;;  %2052 = vst.msk [vmem:[%s3079_s27 + $0x6c] sm:$0xf] %vm2024_vm1, %v2506_v33  ;;  %v2568_v38 = vpack.c.bf16 %v1473_v34, %v1473_v34  ;;  %v994_v39 = vadd.f32 %v2707_v37, %v3067_v2  ;;  %v2771_v40 = vpop.f32.mrb[28].mxu1  ;;  %v985_v41 = vpop.f32.mrb[29].mxu0 }
 0x11f   : > { %2116 = vst.msk [vmem:[%s3079_s27 + $0x16c] sm:$0xf] %vm2024_vm1, %v2570_v35  ;;  %2050 = vst.msk [vmem:[%s3079_s27 + $0x64] sm:$0xf] %vm2024_vm1, %v2504_v36  ;;  %v1250_v42 = vadd.f32 %v2771_v40, %v3067_v2  ;;  %v986_v43 = vadd.f32 %v3067_v2, %v985_v41  ;;  %v1241_v44 = vpop.f32.mrb[29].mxu1  ;;  %v2708_v45 = vpop.f32.mrb[30].mxu0 }
 0x120   : > { %2114 = vst.msk [vmem:[%s3079_s27 + $0x164] sm:$0xf] %vm2024_vm1, %v2568_v38  ;;  %v1414_v46 = vmax.f32 %v994_v39, 0.0  ;;  %v1242_v47 = vadd.f32 %v3067_v2, %v1241_v44  ;;  %v997_v48 = vadd.f32 %v2708_v45, %v3067_v2  ;;  %v2772_v49 = vpop.f32.mrb[30].mxu1  ;;  %v988_v50 = vpop.f32.mrb[31].mxu0 }
 0x121   : > { %v1478_v51 = vmax.f32 %v1250_v42, 0.0  ;;  %v1412_v52 = vmax.f32 %v986_v43, 0.0  ;;  %v1253_v53 = vadd.f32 %v2772_v49, %v3067_v2  ;;  %v989_v54 = vadd.f32 %v3067_v2, %v988_v50  ;;  %v1244_v55 = vpop.f32.mrb[31].mxu1 }
 0x122   : > { %v2509_v56 = vpack.c.bf16 %v1414_v46, %v1414_v46  ;;  %v1476_v57 = vmax.f32 %v1242_v47, 0.0  ;;  %v1415_v58 = vmax.f32 %v997_v48, 0.0  ;;  %v1245_v59 = vadd.f32 %v3067_v2, %v1244_v55 }
 0x123   : > { %v2573_v60 = vpack.c.bf16 %v1478_v51, %v1478_v51  ;;  %v2507_v61 = vpack.c.bf16 %v1412_v52, %v1412_v52  ;;  %v1479_v62 = vmax.f32 %v1253_v53, 0.0  ;;  %v1413_v63 = vmax.f32 %v989_v54, 0.0 }
 0x124   : > { %2055 = vst.msk [vmem:[%s3079_s27 + $0x78] sm:$0xf] %vm2024_vm1, %v2509_v56  ;;  %v2571_v0 = vpack.c.bf16 %v1476_v57, %v1476_v57  ;;  %v2510_v1 = vpack.c.bf16 %v1415_v58, %v1415_v58  ;;  %v1477_v3 = vmax.f32 %v1245_v59, 0.0 }
 0x125   : > { %2119 = vst.msk [vmem:[%s3079_s27 + $0x178] sm:$0xf] %vm2024_vm1, %v2573_v60  ;;  %2053 = vst.msk [vmem:[%s3079_s27 + $0x70] sm:$0xf] %vm2024_vm1, %v2507_v61  ;;  %v2574_v4 = vpack.c.bf16 %v1479_v62, %v1479_v62  ;;  %v2508_v5 = vpack.c.bf16 %v1413_v63, %v1413_v63  ;;  %v2711_v6 = vpop.f32.mrb[32].mxu0 }
 0x126   : > { %2117 = vst.msk [vmem:[%s3079_s27 + $0x170] sm:$0xf] %vm2024_vm1, %v2571_v0  ;;  %2056 = vst.msk [vmem:[%s3079_s27 + $0x7c] sm:$0xf] %vm2024_vm1, %v2510_v1  ;;  %v2572_v7 = vpack.c.bf16 %v1477_v3, %v1477_v3  ;;  %v1010_v8 = vadd.f32 %v2711_v6, %v3067_v2  ;;  %v2775_v9 = vpop.f32.mrb[32].mxu1  ;;  %v1001_v10 = vpop.f32.mrb[33].mxu0 }
 0x127   : > { %2120 = vst.msk [vmem:[%s3079_s27 + $0x17c] sm:$0xf] %vm2024_vm1, %v2574_v4  ;;  %2054 = vst.msk [vmem:[%s3079_s27 + $0x74] sm:$0xf] %vm2024_vm1, %v2508_v5  ;;  %v1266_v11 = vadd.f32 %v2775_v9, %v3067_v2  ;;  %v1002_v12 = vadd.f32 %v3067_v2, %v1001_v10  ;;  %v1257_v13 = vpop.f32.mrb[33].mxu1  ;;  %v2712_v14 = vpop.f32.mrb[34].mxu0 }
 0x128   : > { %2118 = vst.msk [vmem:[%s3079_s27 + $0x174] sm:$0xf] %vm2024_vm1, %v2572_v7  ;;  %v1418_v15 = vmax.f32 %v1010_v8, 0.0  ;;  %v1258_v16 = vadd.f32 %v3067_v2, %v1257_v13  ;;  %v1013_v17 = vadd.f32 %v2712_v14, %v3067_v2  ;;  %v2776_v18 = vpop.f32.mrb[34].mxu1  ;;  %v1004_v19 = vpop.f32.mrb[35].mxu0 }
 0x129   : > { %v1482_v20 = vmax.f32 %v1266_v11, 0.0  ;;  %v1416_v21 = vmax.f32 %v1002_v12, 0.0  ;;  %v1269_v22 = vadd.f32 %v2776_v18, %v3067_v2  ;;  %v1005_v23 = vadd.f32 %v3067_v2, %v1004_v19  ;;  %v1260_v24 = vpop.f32.mrb[35].mxu1 }
 0x12a   : > { %v2513_v25 = vpack.c.bf16 %v1418_v15, %v1418_v15  ;;  %v1480_v26 = vmax.f32 %v1258_v16, 0.0  ;;  %v1419_v27 = vmax.f32 %v1013_v17, 0.0  ;;  %v1261_v28 = vadd.f32 %v3067_v2, %v1260_v24 }
 0x12b   : > { %v2577_v29 = vpack.c.bf16 %v1482_v20, %v1482_v20  ;;  %v2511_v30 = vpack.c.bf16 %v1416_v21, %v1416_v21  ;;  %v1483_v31 = vmax.f32 %v1269_v22, 0.0  ;;  %v1417_v32 = vmax.f32 %v1005_v23, 0.0 }
 0x12c   : > { %2059 = vst.msk [vmem:[%s3079_s27 + $0x88] sm:$0xf] %vm2024_vm1, %v2513_v25  ;;  %v2575_v33 = vpack.c.bf16 %v1480_v26, %v1480_v26  ;;  %v2514_v34 = vpack.c.bf16 %v1419_v27, %v1419_v27  ;;  %v1481_v35 = vmax.f32 %v1261_v28, 0.0 }
 0x12d   : > { %2123 = vst.msk [vmem:[%s3079_s27 + $0x188] sm:$0xf] %vm2024_vm1, %v2577_v29  ;;  %2057 = vst.msk [vmem:[%s3079_s27 + $0x80] sm:$0xf] %vm2024_vm1, %v2511_v30  ;;  %v2578_v36 = vpack.c.bf16 %v1483_v31, %v1483_v31  ;;  %v2512_v37 = vpack.c.bf16 %v1417_v32, %v1417_v32  ;;  %v2715_v38 = vpop.f32.mrb[36].mxu0 }
 0x12e   : > { %2121 = vst.msk [vmem:[%s3079_s27 + $0x180] sm:$0xf] %vm2024_vm1, %v2575_v33  ;;  %2060 = vst.msk [vmem:[%s3079_s27 + $0x8c] sm:$0xf] %vm2024_vm1, %v2514_v34  ;;  %v2576_v39 = vpack.c.bf16 %v1481_v35, %v1481_v35  ;;  %v1026_v40 = vadd.f32 %v2715_v38, %v3067_v2  ;;  %v2779_v41 = vpop.f32.mrb[36].mxu1  ;;  %v1017_v42 = vpop.f32.mrb[37].mxu0 }
 0x12f   : > { %2124 = vst.msk [vmem:[%s3079_s27 + $0x18c] sm:$0xf] %vm2024_vm1, %v2578_v36  ;;  %2058 = vst.msk [vmem:[%s3079_s27 + $0x84] sm:$0xf] %vm2024_vm1, %v2512_v37  ;;  %v1282_v43 = vadd.f32 %v2779_v41, %v3067_v2  ;;  %v1018_v44 = vadd.f32 %v3067_v2, %v1017_v42  ;;  %v1273_v45 = vpop.f32.mrb[37].mxu1  ;;  %v2716_v46 = vpop.f32.mrb[38].mxu0 }
 0x130   : > { %2122 = vst.msk [vmem:[%s3079_s27 + $0x184] sm:$0xf] %vm2024_vm1, %v2576_v39  ;;  %v1422_v47 = vmax.f32 %v1026_v40, 0.0  ;;  %v1274_v48 = vadd.f32 %v3067_v2, %v1273_v45  ;;  %v1029_v49 = vadd.f32 %v2716_v46, %v3067_v2  ;;  %v2780_v50 = vpop.f32.mrb[38].mxu1  ;;  %v1020_v51 = vpop.f32.mrb[39].mxu0 }
 0x131   : > { %v1486_v52 = vmax.f32 %v1282_v43, 0.0  ;;  %v1420_v53 = vmax.f32 %v1018_v44, 0.0  ;;  %v1285_v54 = vadd.f32 %v2780_v50, %v3067_v2  ;;  %v1021_v55 = vadd.f32 %v3067_v2, %v1020_v51  ;;  %v1276_v56 = vpop.f32.mrb[39].mxu1 }
 0x132   : > { %v2517_v57 = vpack.c.bf16 %v1422_v47, %v1422_v47  ;;  %v1484_v58 = vmax.f32 %v1274_v48, 0.0  ;;  %v1423_v59 = vmax.f32 %v1029_v49, 0.0  ;;  %v1277_v60 = vadd.f32 %v3067_v2, %v1276_v56 }
 0x133   : > { %v2581_v61 = vpack.c.bf16 %v1486_v52, %v1486_v52  ;;  %v2515_v62 = vpack.c.bf16 %v1420_v53, %v1420_v53  ;;  %v1487_v63 = vmax.f32 %v1285_v54, 0.0  ;;  %v1421_v0 = vmax.f32 %v1021_v55, 0.0 }
 0x134   : > { %2063 = vst.msk [vmem:[%s3079_s27 + $0x98] sm:$0xf] %vm2024_vm1, %v2517_v57  ;;  %v2579_v1 = vpack.c.bf16 %v1484_v58, %v1484_v58  ;;  %v2518_v3 = vpack.c.bf16 %v1423_v59, %v1423_v59  ;;  %v1485_v4 = vmax.f32 %v1277_v60, 0.0 }
 0x135   : > { %2127 = vst.msk [vmem:[%s3079_s27 + $0x198] sm:$0xf] %vm2024_vm1, %v2581_v61  ;;  %2061 = vst.msk [vmem:[%s3079_s27 + $0x90] sm:$0xf] %vm2024_vm1, %v2515_v62  ;;  %v2582_v5 = vpack.c.bf16 %v1487_v63, %v1487_v63  ;;  %v2516_v6 = vpack.c.bf16 %v1421_v0, %v1421_v0  ;;  %v2719_v7 = vpop.f32.mrb[40].mxu0 }
 0x136   : > { %2125 = vst.msk [vmem:[%s3079_s27 + $0x190] sm:$0xf] %vm2024_vm1, %v2579_v1  ;;  %2064 = vst.msk [vmem:[%s3079_s27 + $0x9c] sm:$0xf] %vm2024_vm1, %v2518_v3  ;;  %v2580_v8 = vpack.c.bf16 %v1485_v4, %v1485_v4  ;;  %v1042_v9 = vadd.f32 %v2719_v7, %v3067_v2  ;;  %v2783_v10 = vpop.f32.mrb[40].mxu1  ;;  %v1033_v11 = vpop.f32.mrb[41].mxu0 }
 0x137   : > { %2128 = vst.msk [vmem:[%s3079_s27 + $0x19c] sm:$0xf] %vm2024_vm1, %v2582_v5  ;;  %2062 = vst.msk [vmem:[%s3079_s27 + $0x94] sm:$0xf] %vm2024_vm1, %v2516_v6  ;;  %v1298_v12 = vadd.f32 %v2783_v10, %v3067_v2  ;;  %v1034_v13 = vadd.f32 %v3067_v2, %v1033_v11  ;;  %v1289_v14 = vpop.f32.mrb[41].mxu1  ;;  %v2720_v15 = vpop.f32.mrb[42].mxu0 }
 0x138   : > { %2126 = vst.msk [vmem:[%s3079_s27 + $0x194] sm:$0xf] %vm2024_vm1, %v2580_v8  ;;  %v1426_v16 = vmax.f32 %v1042_v9, 0.0  ;;  %v1290_v17 = vadd.f32 %v3067_v2, %v1289_v14  ;;  %v1045_v18 = vadd.f32 %v2720_v15, %v3067_v2  ;;  %v2784_v19 = vpop.f32.mrb[42].mxu1  ;;  %v1036_v20 = vpop.f32.mrb[43].mxu0 }
 0x139   : > { %v1490_v21 = vmax.f32 %v1298_v12, 0.0  ;;  %v1424_v22 = vmax.f32 %v1034_v13, 0.0  ;;  %v1301_v23 = vadd.f32 %v2784_v19, %v3067_v2  ;;  %v1037_v24 = vadd.f32 %v3067_v2, %v1036_v20  ;;  %v1292_v25 = vpop.f32.mrb[43].mxu1 }
 0x13a   : > { %v2521_v26 = vpack.c.bf16 %v1426_v16, %v1426_v16  ;;  %v1488_v27 = vmax.f32 %v1290_v17, 0.0  ;;  %v1427_v28 = vmax.f32 %v1045_v18, 0.0  ;;  %v1293_v29 = vadd.f32 %v3067_v2, %v1292_v25 }
 0x13b   : > { %v2585_v30 = vpack.c.bf16 %v1490_v21, %v1490_v21  ;;  %v2519_v31 = vpack.c.bf16 %v1424_v22, %v1424_v22  ;;  %v1491_v32 = vmax.f32 %v1301_v23, 0.0  ;;  %v1425_v33 = vmax.f32 %v1037_v24, 0.0 }
 0x13c   : > { %2067 = vst.msk [vmem:[%s3079_s27 + $0xa8] sm:$0xf] %vm2024_vm1, %v2521_v26  ;;  %v2583_v34 = vpack.c.bf16 %v1488_v27, %v1488_v27  ;;  %v2522_v35 = vpack.c.bf16 %v1427_v28, %v1427_v28  ;;  %v1489_v36 = vmax.f32 %v1293_v29, 0.0 }
 0x13d   : > { %2131 = vst.msk [vmem:[%s3079_s27 + $0x1a8] sm:$0xf] %vm2024_vm1, %v2585_v30  ;;  %2065 = vst.msk [vmem:[%s3079_s27 + $0xa0] sm:$0xf] %vm2024_vm1, %v2519_v31  ;;  %v2586_v37 = vpack.c.bf16 %v1491_v32, %v1491_v32  ;;  %v2520_v38 = vpack.c.bf16 %v1425_v33, %v1425_v33  ;;  %v2723_v39 = vpop.f32.mrb[44].mxu0 }
 0x13e   : > { %2129 = vst.msk [vmem:[%s3079_s27 + $0x1a0] sm:$0xf] %vm2024_vm1, %v2583_v34  ;;  %2068 = vst.msk [vmem:[%s3079_s27 + $0xac] sm:$0xf] %vm2024_vm1, %v2522_v35  ;;  %v2584_v40 = vpack.c.bf16 %v1489_v36, %v1489_v36  ;;  %v1058_v41 = vadd.f32 %v2723_v39, %v3067_v2  ;;  %v2787_v42 = vpop.f32.mrb[44].mxu1  ;;  %v1049_v43 = vpop.f32.mrb[45].mxu0 }
 0x13f   : > { %2132 = vst.msk [vmem:[%s3079_s27 + $0x1ac] sm:$0xf] %vm2024_vm1, %v2586_v37  ;;  %2066 = vst.msk [vmem:[%s3079_s27 + $0xa4] sm:$0xf] %vm2024_vm1, %v2520_v38  ;;  %v1314_v44 = vadd.f32 %v2787_v42, %v3067_v2  ;;  %v1050_v45 = vadd.f32 %v3067_v2, %v1049_v43  ;;  %v1305_v46 = vpop.f32.mrb[45].mxu1  ;;  %v2724_v47 = vpop.f32.mrb[46].mxu0 }
 0x140   : > { %2130 = vst.msk [vmem:[%s3079_s27 + $0x1a4] sm:$0xf] %vm2024_vm1, %v2584_v40  ;;  %v1430_v48 = vmax.f32 %v1058_v41, 0.0  ;;  %v1306_v49 = vadd.f32 %v3067_v2, %v1305_v46  ;;  %v1061_v50 = vadd.f32 %v2724_v47, %v3067_v2  ;;  %v2788_v51 = vpop.f32.mrb[46].mxu1  ;;  %v1052_v52 = vpop.f32.mrb[47].mxu0 }
 0x141   : > { %v1494_v53 = vmax.f32 %v1314_v44, 0.0  ;;  %v1428_v54 = vmax.f32 %v1050_v45, 0.0  ;;  %v1317_v55 = vadd.f32 %v2788_v51, %v3067_v2  ;;  %v1053_v56 = vadd.f32 %v3067_v2, %v1052_v52  ;;  %v1308_v57 = vpop.f32.mrb[47].mxu1  ;;  %v3385_v41 = vld [vmem:[%s3470_s2] ss:$0 sm:$0xff] }
 0x142   : > { %v2525_v58 = vpack.c.bf16 %v1430_v48, %v1430_v48  ;;  %v1492_v59 = vmax.f32 %v1306_v49, 0.0  ;;  %v1431_v60 = vmax.f32 %v1061_v50, 0.0  ;;  %v1309_v61 = vadd.f32 %v3067_v2, %v1308_v57 }
 0x143   : > { %v2589_v62 = vpack.c.bf16 %v1494_v53, %v1494_v53  ;;  %v2523_v63 = vpack.c.bf16 %v1428_v54, %v1428_v54  ;;  %v1495_v0 = vmax.f32 %v1317_v55, 0.0  ;;  %v1429_v1 = vmax.f32 %v1053_v56, 0.0 }
 0x144   : > { %2071 = vst.msk [vmem:[%s3079_s27 + $0xb8] sm:$0xf] %vm2024_vm1, %v2525_v58  ;;  %v2587_v3 = vpack.c.bf16 %v1492_v59, %v1492_v59  ;;  %v2526_v4 = vpack.c.bf16 %v1431_v60, %v1431_v60  ;;  %v1493_v5 = vmax.f32 %v1309_v61, 0.0 }
 0x145   : > { %2135 = vst.msk [vmem:[%s3079_s27 + $0x1b8] sm:$0xf] %vm2024_vm1, %v2589_v62  ;;  %2069 = vst.msk [vmem:[%s3079_s27 + $0xb0] sm:$0xf] %vm2024_vm1, %v2523_v63  ;;  %v2590_v6 = vpack.c.bf16 %v1495_v0, %v1495_v0  ;;  %v2524_v7 = vpack.c.bf16 %v1429_v1, %v1429_v1  ;;  %v2727_v8 = vpop.f32.mrb[48].mxu0 }
 0x146   : > { %2133 = vst.msk [vmem:[%s3079_s27 + $0x1b0] sm:$0xf] %vm2024_vm1, %v2587_v3  ;;  %2072 = vst.msk [vmem:[%s3079_s27 + $0xbc] sm:$0xf] %vm2024_vm1, %v2526_v4  ;;  %v2588_v9 = vpack.c.bf16 %v1493_v5, %v1493_v5  ;;  %v1074_v10 = vadd.f32 %v2727_v8, %v3067_v2  ;;  %v2791_v11 = vpop.f32.mrb[48].mxu1  ;;  %v1065_v12 = vpop.f32.mrb[49].mxu0 }
 0x147   : > { %2136 = vst.msk [vmem:[%s3079_s27 + $0x1bc] sm:$0xf] %vm2024_vm1, %v2590_v6  ;;  %2070 = vst.msk [vmem:[%s3079_s27 + $0xb4] sm:$0xf] %vm2024_vm1, %v2524_v7  ;;  %v1330_v13 = vadd.f32 %v2791_v11, %v3067_v2  ;;  %v1066_v14 = vadd.f32 %v3067_v2, %v1065_v12  ;;  %v1321_v15 = vpop.f32.mrb[49].mxu1  ;;  %v2728_v16 = vpop.f32.mrb[50].mxu0 }
 0x148   : > { %2134 = vst.msk [vmem:[%s3079_s27 + $0x1b4] sm:$0xf] %vm2024_vm1, %v2588_v9  ;;  %v1434_v17 = vmax.f32 %v1074_v10, 0.0  ;;  %v1322_v18 = vadd.f32 %v3067_v2, %v1321_v15  ;;  %v1077_v19 = vadd.f32 %v2728_v16, %v3067_v2  ;;  %v2792_v20 = vpop.f32.mrb[50].mxu1  ;;  %v1068_v21 = vpop.f32.mrb[51].mxu0 }
 0x149   : > { %v1498_v22 = vmax.f32 %v1330_v13, 0.0  ;;  %v1432_v23 = vmax.f32 %v1066_v14, 0.0  ;;  %v1333_v24 = vadd.f32 %v2792_v20, %v3067_v2  ;;  %v1069_v25 = vadd.f32 %v3067_v2, %v1068_v21  ;;  %v1324_v26 = vpop.f32.mrb[51].mxu1 }
 0x14a   : > { %v2529_v27 = vpack.c.bf16 %v1434_v17, %v1434_v17  ;;  %v1496_v28 = vmax.f32 %v1322_v18, 0.0  ;;  %v1435_v29 = vmax.f32 %v1077_v19, 0.0  ;;  %v1325_v30 = vadd.f32 %v3067_v2, %v1324_v26 }
 0x14b   : > { %v2593_v31 = vpack.c.bf16 %v1498_v22, %v1498_v22  ;;  %v2527_v32 = vpack.c.bf16 %v1432_v23, %v1432_v23  ;;  %v1499_v33 = vmax.f32 %v1333_v24, 0.0  ;;  %v1433_v34 = vmax.f32 %v1069_v25, 0.0 }
 0x14c   : > { %2075 = vst.msk [vmem:[%s3079_s27 + $0xc8] sm:$0xf] %vm2024_vm1, %v2529_v27  ;;  %v2591_v35 = vpack.c.bf16 %v1496_v28, %v1496_v28  ;;  %v2530_v36 = vpack.c.bf16 %v1435_v29, %v1435_v29  ;;  %v1497_v37 = vmax.f32 %v1325_v30, 0.0 }
 0x14d   : > { %2139 = vst.msk [vmem:[%s3079_s27 + $0x1c8] sm:$0xf] %vm2024_vm1, %v2593_v31  ;;  %2073 = vst.msk [vmem:[%s3079_s27 + $0xc0] sm:$0xf] %vm2024_vm1, %v2527_v32  ;;  %v2594_v38 = vpack.c.bf16 %v1499_v33, %v1499_v33  ;;  %v2528_v39 = vpack.c.bf16 %v1433_v34, %v1433_v34  ;;  %v2731_v40 = vpop.f32.mrb[52].mxu0 }
 0x14e   : > { %2137 = vst.msk [vmem:[%s3079_s27 + $0x1c0] sm:$0xf] %vm2024_vm1, %v2591_v35  ;;  %2076 = vst.msk [vmem:[%s3079_s27 + $0xcc] sm:$0xf] %vm2024_vm1, %v2530_v36  ;;  %v2592_v2 = vpack.c.bf16 %v1497_v37, %v1497_v37  ;;  %v1090_v42 = vadd.f32 %v3385_v41, %v2731_v40  ;;  %v2795_v43 = vpop.f32.mrb[52].mxu1  ;;  %v1081_v44 = vpop.f32.mrb[53].mxu0 }
 0x14f   : > { %2140 = vst.msk [vmem:[%s3079_s27 + $0x1cc] sm:$0xf] %vm2024_vm1, %v2594_v38  ;;  %2074 = vst.msk [vmem:[%s3079_s27 + $0xc4] sm:$0xf] %vm2024_vm1, %v2528_v39  ;;  %v1346_v45 = vadd.f32 %v3385_v41, %v2795_v43  ;;  %v1082_v46 = vadd.f32 %v3385_v41, %v1081_v44  ;;  %v1337_v47 = vpop.f32.mrb[53].mxu1  ;;  %v2732_v48 = vpop.f32.mrb[54].mxu0 }
 0x150   : > { %2138 = vst.msk [vmem:[%s3079_s27 + $0x1c4] sm:$0xf] %vm2024_vm1, %v2592_v2  ;;  %v1438_v49 = vmax.f32 %v1090_v42, 0.0  ;;  %v1338_v50 = vadd.f32 %v3385_v41, %v1337_v47  ;;  %v1093_v51 = vadd.f32 %v3385_v41, %v2732_v48  ;;  %v2796_v52 = vpop.f32.mrb[54].mxu1  ;;  %v1084_v53 = vpop.f32.mrb[55].mxu0 }
 0x151   : > { %v1502_v54 = vmax.f32 %v1346_v45, 0.0  ;;  %v1436_v55 = vmax.f32 %v1082_v46, 0.0  ;;  %v1349_v56 = vadd.f32 %v3385_v41, %v2796_v52  ;;  %v1085_v57 = vadd.f32 %v3385_v41, %v1084_v53  ;;  %v1340_v58 = vpop.f32.mrb[55].mxu1 }
 0x152   : > { %v2533_v59 = vpack.c.bf16 %v1438_v49, %v1438_v49  ;;  %v1500_v60 = vmax.f32 %v1338_v50, 0.0  ;;  %v1439_v61 = vmax.f32 %v1093_v51, 0.0  ;;  %v1341_v62 = vadd.f32 %v3385_v41, %v1340_v58 }
 0x153   : > { %v2597_v63 = vpack.c.bf16 %v1502_v54, %v1502_v54  ;;  %v2531_v0 = vpack.c.bf16 %v1436_v55, %v1436_v55  ;;  %v1503_v1 = vmax.f32 %v1349_v56, 0.0  ;;  %v1437_v3 = vmax.f32 %v1085_v57, 0.0 }
 0x154   : > { %2079 = vst.msk [vmem:[%s3079_s27 + $0xd8] sm:$0xf] %vm2024_vm1, %v2533_v59  ;;  %v2595_v4 = vpack.c.bf16 %v1500_v60, %v1500_v60  ;;  %v2534_v5 = vpack.c.bf16 %v1439_v61, %v1439_v61  ;;  %v1501_v6 = vmax.f32 %v1341_v62, 0.0 }
 0x155   : > { %2143 = vst.msk [vmem:[%s3079_s27 + $0x1d8] sm:$0xf] %vm2024_vm1, %v2597_v63  ;;  %2077 = vst.msk [vmem:[%s3079_s27 + $0xd0] sm:$0xf] %vm2024_vm1, %v2531_v0  ;;  %v2598_v7 = vpack.c.bf16 %v1503_v1, %v1503_v1  ;;  %v2532_v8 = vpack.c.bf16 %v1437_v3, %v1437_v3  ;;  %v2735_v9 = vpop.f32.mrb[56].mxu0 }
 0x156   : > { %2141 = vst.msk [vmem:[%s3079_s27 + $0x1d0] sm:$0xf] %vm2024_vm1, %v2595_v4  ;;  %2080 = vst.msk [vmem:[%s3079_s27 + $0xdc] sm:$0xf] %vm2024_vm1, %v2534_v5  ;;  %v2596_v10 = vpack.c.bf16 %v1501_v6, %v1501_v6  ;;  %v1106_v11 = vadd.f32 %v3385_v41, %v2735_v9  ;;  %v2799_v12 = vpop.f32.mrb[56].mxu1  ;;  %v1097_v13 = vpop.f32.mrb[57].mxu0 }
 0x157   : > { %2144 = vst.msk [vmem:[%s3079_s27 + $0x1dc] sm:$0xf] %vm2024_vm1, %v2598_v7  ;;  %2078 = vst.msk [vmem:[%s3079_s27 + $0xd4] sm:$0xf] %vm2024_vm1, %v2532_v8  ;;  %v1362_v14 = vadd.f32 %v3385_v41, %v2799_v12  ;;  %v1098_v15 = vadd.f32 %v3385_v41, %v1097_v13  ;;  %v1353_v16 = vpop.f32.mrb[57].mxu1  ;;  %v2736_v17 = vpop.f32.mrb[58].mxu0 }
 0x158   : > { %2142 = vst.msk [vmem:[%s3079_s27 + $0x1d4] sm:$0xf] %vm2024_vm1, %v2596_v10  ;;  %v1442_v18 = vmax.f32 %v1106_v11, 0.0  ;;  %v1354_v19 = vadd.f32 %v3385_v41, %v1353_v16  ;;  %v1109_v20 = vadd.f32 %v3385_v41, %v2736_v17  ;;  %v2800_v21 = vpop.f32.mrb[58].mxu1  ;;  %v1100_v22 = vpop.f32.mrb[59].mxu0 }
 0x159   : > { %v1506_v23 = vmax.f32 %v1362_v14, 0.0  ;;  %v1440_v24 = vmax.f32 %v1098_v15, 0.0  ;;  %v1365_v25 = vadd.f32 %v3385_v41, %v2800_v21  ;;  %v1101_v26 = vadd.f32 %v3385_v41, %v1100_v22  ;;  %v1356_v27 = vpop.f32.mrb[59].mxu1 }
 0x15a   : > { %v2537_v28 = vpack.c.bf16 %v1442_v18, %v1442_v18  ;;  %v1504_v29 = vmax.f32 %v1354_v19, 0.0  ;;  %v1443_v30 = vmax.f32 %v1109_v20, 0.0  ;;  %v1357_v31 = vadd.f32 %v3385_v41, %v1356_v27 }
 0x15b   : > { %v2601_v32 = vpack.c.bf16 %v1506_v23, %v1506_v23  ;;  %v2535_v33 = vpack.c.bf16 %v1440_v24, %v1440_v24  ;;  %v1507_v34 = vmax.f32 %v1365_v25, 0.0  ;;  %v1441_v35 = vmax.f32 %v1101_v26, 0.0 }
 0x15c   : > { %2083 = vst.msk [vmem:[%s3079_s27 + $0xe8] sm:$0xf] %vm2024_vm1, %v2537_v28  ;;  %v2599_v36 = vpack.c.bf16 %v1504_v29, %v1504_v29  ;;  %v2538_v37 = vpack.c.bf16 %v1443_v30, %v1443_v30  ;;  %v1505_v38 = vmax.f32 %v1357_v31, 0.0 }
 0x15d   : > { %2147 = vst.msk [vmem:[%s3079_s27 + $0x1e8] sm:$0xf] %vm2024_vm1, %v2601_v32  ;;  %2081 = vst.msk [vmem:[%s3079_s27 + $0xe0] sm:$0xf] %vm2024_vm1, %v2535_v33  ;;  %v2602_v39 = vpack.c.bf16 %v1507_v34, %v1507_v34  ;;  %v2536_v40 = vpack.c.bf16 %v1441_v35, %v1441_v35  ;;  %v2739_v2 = vpop.f32.mrb[60].mxu0 }
 0x15e   : > { %2145 = vst.msk [vmem:[%s3079_s27 + $0x1e0] sm:$0xf] %vm2024_vm1, %v2599_v36  ;;  %2084 = vst.msk [vmem:[%s3079_s27 + $0xec] sm:$0xf] %vm2024_vm1, %v2538_v37  ;;  %v2600_v42 = vpack.c.bf16 %v1505_v38, %v1505_v38  ;;  %v1122_v43 = vadd.f32 %v3385_v41, %v2739_v2  ;;  %v2803_v44 = vpop.f32.mrb[60].mxu1  ;;  %v1113_v45 = vpop.f32.mrb[61].mxu0 }
 0x15f   : > { %2148 = vst.msk [vmem:[%s3079_s27 + $0x1ec] sm:$0xf] %vm2024_vm1, %v2602_v39  ;;  %2082 = vst.msk [vmem:[%s3079_s27 + $0xe4] sm:$0xf] %vm2024_vm1, %v2536_v40  ;;  %v1378_v46 = vadd.f32 %v3385_v41, %v2803_v44  ;;  %v1114_v47 = vadd.f32 %v3385_v41, %v1113_v45  ;;  %v1369_v48 = vpop.f32.mrb[61].mxu1  ;;  %v2740_v49 = vpop.f32.mrb[62].mxu0 }
 0x160   : > { %2146 = vst.msk [vmem:[%s3079_s27 + $0x1e4] sm:$0xf] %vm2024_vm1, %v2600_v42  ;;  %v1446_v50 = vmax.f32 %v1122_v43, 0.0  ;;  %v1370_v51 = vadd.f32 %v3385_v41, %v1369_v48  ;;  %v1125_v52 = vadd.f32 %v3385_v41, %v2740_v49  ;;  %v2804_v53 = vpop.f32.mrb[62].mxu1  ;;  %v1116_v54 = vpop.f32.mrb[63].mxu0 }
 0x161   : > { %v1510_v55 = vmax.f32 %v1378_v46, 0.0  ;;  %v1444_v56 = vmax.f32 %v1114_v47, 0.0  ;;  %v1381_v57 = vadd.f32 %v3385_v41, %v2804_v53  ;;  %v1117_v58 = vadd.f32 %v3385_v41, %v1116_v54  ;;  %v1372_v59 = vpop.f32.mrb[63].mxu1 }
 0x162   : > { %v2541_v60 = vpack.c.bf16 %v1446_v50, %v1446_v50  ;;  %v1508_v61 = vmax.f32 %v1370_v51, 0.0  ;;  %v1447_v62 = vmax.f32 %v1125_v52, 0.0  ;;  %v1373_v63 = vadd.f32 %v3385_v41, %v1372_v59 }
 0x163   : > { %v2605_v0 = vpack.c.bf16 %v1510_v55, %v1510_v55  ;;  %v2539_v1 = vpack.c.bf16 %v1444_v56, %v1444_v56  ;;  %v1511_v3 = vmax.f32 %v1381_v57, 0.0  ;;  %v1445_v4 = vmax.f32 %v1117_v58, 0.0 }
 0x164   : > { %2087 = vst.msk [vmem:[%s3079_s27 + $0xf8] sm:$0xf] %vm2024_vm1, %v2541_v60  ;;  %v2603_v5 = vpack.c.bf16 %v1508_v61, %v1508_v61  ;;  %v2542_v6 = vpack.c.bf16 %v1447_v62, %v1447_v62  ;;  %v1509_v7 = vmax.f32 %v1373_v63, 0.0 }
 0x165   : > { %2151 = vst.msk [vmem:[%s3079_s27 + $0x1f8] sm:$0xf] %vm2024_vm1, %v2605_v0  ;;  %2085 = vst.msk [vmem:[%s3079_s27 + $0xf0] sm:$0xf] %vm2024_vm1, %v2539_v1  ;;  %v2606_v8 = vpack.c.bf16 %v1511_v3, %v1511_v3  ;;  %v2540_v9 = vpack.c.bf16 %v1445_v4, %v1445_v4 }
 0x166   : > { %2149 = vst.msk [vmem:[%s3079_s27 + $0x1f0] sm:$0xf] %vm2024_vm1, %v2603_v5  ;;  %2088 = vst.msk [vmem:[%s3079_s27 + $0xfc] sm:$0xf] %vm2024_vm1, %v2542_v6  ;;  %v2604_v41 = vpack.c.bf16 %v1509_v7, %v1509_v7 }
 0x167   : > { %2152 = vst.msk [vmem:[%s3079_s27 + $0x1fc] sm:$0xf] %vm2024_vm1, %v2606_v8  ;;  %2086 = vst.msk [vmem:[%s3079_s27 + $0xf4] sm:$0xf] %vm2024_vm1, %v2540_v9 }
 0x168   : > { %2150 = vst.msk [vmem:[%s3079_s27 + $0x1f4] sm:$0xf] %vm2024_vm1, %v2604_v41 }
 0x169 PF: > { %s13_s12 = sadd.s32 1, %s2890_s12  }
 0x16a   : > { %p10_p4 = scmp.ge.s32.totalorder %s13_s12, 4  }
 0x16c   :  { %12 = sbr.rel (!%p10_p4) target bundleno = 1 (0x1), region = 62 }

// kernel: model_forward.7
= control target key start
LH: loop header
LB: loop body
LE: loop exit
PB: predicated region body
PF: predicated region fallthrough
CT: control target
= control target key end

     0   :  { %s3253_s12 = smov 0   ;;  %s3891_s0 = inlined_call_operand.vmem [shape: bf16[2048,144], index: 0, kind: input, shape index: {}]   ;;  %s3892_s1 = inlined_call_operand.vmem [shape: bf16[144,16], index: 1, kind: input, shape index: {}]   ;;  %s3893_s2 = inlined_call_operand.vmem [shape: f32[1,16], index: 2, kind: input, shape index: {}]   ;;  %s3894_s3 = inlined_call_operand.vmem [shape: bf16[2048,16], index: 3, kind: output, shape index: {}]  }
   0x1 LB: > { %s2524_s13 = sadd.s32 4294967295, %s3230_s12   ;;  %p2528_p0 = scmp.ge.s32.totalorder %s3230_s12, 1  ;;  %s3230_s12 = sphi %s3253_s12, %s13_s12  }
   0x2   : > { %p139_p1 = scmp.lt.s32.totalorder %s3230_s12, 3 }
   0x4   : > { %p140_p2 = pnand %p2528_p0, %p139_p1 }
   0x5   : > { %v3022_v0 = vld [vmem:[%s3892_s1] sm:$0xff] (!%p140_p2)   ;;  %v3232_v1 = vmov (!%p140_p2), 0   ;;  %s2529_s16 = sshll.u32 (!%p140_p2), %s2524_s13, 7  ;;  %v3023_v2 = vld [vmem:[%s3892_s1 + $0x8] sm:$0xff] (!%p140_p2)   ;;  %v3024_v3 = vld [vmem:[%s3892_s1 + $0x10] sm:$0xff] (!%p140_p2)   ;;  %vm961_vm0 = vcmask (!%p140_p2), 130048  }
   0x6   : > { %143 = sbr.rel (%p140_p2) target bundleno = 511 (0x1ff), region = 32  ;;  %1154 = vmatprep.subr.bf16.mxu0 (!%p140_p2), %v3232_v1  ;;  %2995 = vmatprep.subr.bf16.mxu1 (!%p140_p2), %v3232_v1  ;;  %p165_p3 = scmp.lt.s32.totalorder (!%p140_p2), %s2529_s16, 255  ;;  %v3025_v4 = vld [vmem:[%s3892_s1 + $0x18] sm:$0xff] (!%p140_p2)   ;;  %v3026_v7 = vld [vmem:[%s3892_s1 + $0x20] sm:$0xff] (!%p140_p2)   ;;  %v3027_v8 = vld [vmem:[%s3892_s1 + $0x28] sm:$0xff] (!%p140_p2)   ;;  %vm2339_vm1 = vcmask (!%p140_p2), 125952  }
   0x7   : > { %1155 = vmatpush1.bf16.msra.mxu0 (!%p140_p2), %v3022_v0  ;;  %3004 = vmatpush1.bf16.msra.mxu1 (!%p140_p2), %v3022_v0  ;;  %v3028_v9 = vld [vmem:[%s3892_s1 + $0x30] sm:$0xff] (!%p140_p2)   ;;  %v3029_v10 = vld [vmem:[%s3892_s1 + $0x38] sm:$0xff] (!%p140_p2)   ;;  %v3030_v11 = vld [vmem:[%s3892_s1 + $0x40] sm:$0xff] (!%p140_p2)  }
   0x8   : > { %1156 = vmatprep.subr.bf16.mxu0 (!%p140_p2), %v3232_v1  ;;  %2996 = vmatprep.subr.bf16.mxu1 (!%p140_p2), %v3232_v1 }
   0xb   : > { %1157 = vmatpush1.bf16.msra.mxu0 (!%p140_p2), %v3023_v2  ;;  %3005 = vmatpush1.bf16.msra.mxu1 (!%p140_p2), %v3023_v2 }
   0xc   : > { %1158 = vmatprep.subr.bf16.mxu0 (!%p140_p2), %v3232_v1  ;;  %2997 = vmatprep.subr.bf16.mxu1 (!%p140_p2), %v3232_v1 }
   0xd   : > { %s3896_s16 = smov (!%p165_p3, %s2529_s16), 255 }
   0xe   : > { %s2866_s21 = sshll.u32 %s3896_s16, 3  ;;  %s2533_s13 = sshll.u32 %s3896_s16, 2 }
   0xf   : > { %s3276_s24 = scalar_lea.vmem %s3891_s0, %s2866_s21  ;;  %1159 = vmatpush1.bf16.msra.mxu0 %v3024_v3  ;;  %3006 = vmatpush1.bf16.msra.mxu1 %v3024_v3  ;;  %s3479_s16 = scalar_lea.vmem %s3894_s3, %s2533_s13 }
  0x10   : > { %v3033_v5 = vld [vmem:[%s3276_s24 + $0x4] ss:$8 sps:$4 sm:$0xff]   ;;  %1160 = vmatprep.subr.bf16.mxu0 %v3232_v1  ;;  %2998 = vmatprep.subr.bf16.mxu1 %v3232_v1  ;;  %v3031_v12 = vld [vmem:[%s3276_s24] ss:$8 sps:$4 sm:$0xff]   ;;  %v3037_v14 = vld [vmem:[%s3276_s24 + $0x14] ss:$8 sps:$4 sm:$0xff]  }
  0x11   : > { %v3036_v6 = vld [vmem:[%s3276_s24 + $0x204] ss:$8 sps:$4 sm:$0xff]   ;;  %2672 = vmatprep.mubr.msk.bf16.mxu0 %vm961_vm0, %v3033_v5  ;;  %v3034_v13 = vld [vmem:[%s3276_s24 + $0x200] ss:$8 sps:$4 sm:$0xff]   ;;  %v3039_v15 = vld [vmem:[%s3276_s24 + $0x214] ss:$8 sps:$4 sm:$0xff]  }
  0x12   : > { %2704 = vmatprep.mubr.msk.bf16.mxu1 %vm961_vm0, %v3036_v6  ;;  %v3041_v16 = vld [vmem:[%s3276_s24 + $0x10] ss:$8 sps:$4 sm:$0xff]   ;;  %v3043_v18 = vld [vmem:[%s3276_s24 + $0x24] ss:$8 sps:$4 sm:$0xff]   ;;  %v3047_v20 = vld [vmem:[%s3276_s24 + $0x20] ss:$8 sps:$4 sm:$0xff]  }
  0x13   : > { %1161 = vmatpush1.bf16.msra.mxu0 %v3025_v4  ;;  %3007 = vmatpush1.bf16.msra.mxu1 %v3025_v4  ;;  %v3042_v17 = vld [vmem:[%s3276_s24 + $0x210] ss:$8 sps:$4 sm:$0xff]   ;;  %v3045_v19 = vld [vmem:[%s3276_s24 + $0x224] ss:$8 sps:$4 sm:$0xff]   ;;  %v3048_v21 = vld [vmem:[%s3276_s24 + $0x220] ss:$8 sps:$4 sm:$0xff]  }
  0x14   : > { %1162 = vmatprep.subr.bf16.mxu0 %v3232_v1  ;;  %2999 = vmatprep.subr.bf16.mxu1 %v3232_v1  ;;  %v3049_v22 = vld [vmem:[%s3276_s24 + $0x34] ss:$8 sps:$4 sm:$0xff]   ;;  %v3053_v24 = vld [vmem:[%s3276_s24 + $0x30] ss:$8 sps:$4 sm:$0xff]   ;;  %v3055_v26 = vld [vmem:[%s3276_s24 + $0x44] ss:$8 sps:$4 sm:$0xff]  }
  0x15   : > { %v3051_v23 = vld [vmem:[%s3276_s24 + $0x234] ss:$8 sps:$4 sm:$0xff]   ;;  %v3054_v25 = vld [vmem:[%s3276_s24 + $0x230] ss:$8 sps:$4 sm:$0xff]   ;;  %v3057_v27 = vld [vmem:[%s3276_s24 + $0x244] ss:$8 sps:$4 sm:$0xff]  }
  0x16   : > { %v3059_v28 = vld [vmem:[%s3276_s24 + $0x40] ss:$8 sps:$4 sm:$0xff]   ;;  %v3061_v30 = vld [vmem:[%s3276_s24 + $0x54] ss:$8 sps:$4 sm:$0xff]   ;;  %v3065_v32 = vld [vmem:[%s3276_s24 + $0x50] ss:$8 sps:$4 sm:$0xff]  }
  0x17   : > { %1163 = vmatpush1.bf16.msra.mxu0 %v3026_v7  ;;  %3008 = vmatpush1.bf16.msra.mxu1 %v3026_v7  ;;  %v3060_v29 = vld [vmem:[%s3276_s24 + $0x240] ss:$8 sps:$4 sm:$0xff]   ;;  %v3063_v31 = vld [vmem:[%s3276_s24 + $0x254] ss:$8 sps:$4 sm:$0xff]   ;;  %v3066_v33 = vld [vmem:[%s3276_s24 + $0x250] ss:$8 sps:$4 sm:$0xff]  }
  0x18   : > { %1164 = vmatprep.subr.bf16.mxu0 %v3232_v1  ;;  %3000 = vmatprep.subr.bf16.mxu1 %v3232_v1  ;;  %v3067_v34 = vld [vmem:[%s3276_s24 + $0x64] ss:$8 sps:$4 sm:$0xff]   ;;  %v3071_v36 = vld [vmem:[%s3276_s24 + $0x60] ss:$8 sps:$4 sm:$0xff]   ;;  %v3073_v38 = vld [vmem:[%s3276_s24 + $0x74] ss:$8 sps:$4 sm:$0xff]  }
  0x19   : > { %v3069_v35 = vld [vmem:[%s3276_s24 + $0x264] ss:$8 sps:$4 sm:$0xff]   ;;  %v3072_v37 = vld [vmem:[%s3276_s24 + $0x260] ss:$8 sps:$4 sm:$0xff]   ;;  %v3075_v39 = vld [vmem:[%s3276_s24 + $0x274] ss:$8 sps:$4 sm:$0xff]  }
  0x1a   : > { %v3077_v40 = vld [vmem:[%s3276_s24 + $0x70] ss:$8 sps:$4 sm:$0xff]   ;;  %v3079_v42 = vld [vmem:[%s3276_s24 + $0x84] ss:$8 sps:$4 sm:$0xff]   ;;  %v3083_v44 = vld [vmem:[%s3276_s24 + $0x80] ss:$8 sps:$4 sm:$0xff]  }
  0x1b   : > { %1165 = vmatpush1.bf16.msra.mxu0 %v3027_v8  ;;  %3009 = vmatpush1.bf16.msra.mxu1 %v3027_v8  ;;  %v3078_v41 = vld [vmem:[%s3276_s24 + $0x270] ss:$8 sps:$4 sm:$0xff]   ;;  %v3081_v43 = vld [vmem:[%s3276_s24 + $0x284] ss:$8 sps:$4 sm:$0xff]   ;;  %v3084_v45 = vld [vmem:[%s3276_s24 + $0x280] ss:$8 sps:$4 sm:$0xff]  }
  0x1c   : > { %1166 = vmatprep.subr.bf16.mxu0 %v3232_v1  ;;  %3001 = vmatprep.subr.bf16.mxu1 %v3232_v1  ;;  %v3085_v46 = vld [vmem:[%s3276_s24 + $0x94] ss:$8 sps:$4 sm:$0xff]   ;;  %v3089_v48 = vld [vmem:[%s3276_s24 + $0x90] ss:$8 sps:$4 sm:$0xff]   ;;  %v3091_v50 = vld [vmem:[%s3276_s24 + $0xa4] ss:$8 sps:$4 sm:$0xff]  }
  0x1d   : > { %v3087_v47 = vld [vmem:[%s3276_s24 + $0x294] ss:$8 sps:$4 sm:$0xff]   ;;  %v3090_v49 = vld [vmem:[%s3276_s24 + $0x290] ss:$8 sps:$4 sm:$0xff]   ;;  %v3093_v51 = vld [vmem:[%s3276_s24 + $0x2a4] ss:$8 sps:$4 sm:$0xff]  }
  0x1e   : > { %v3095_v52 = vld [vmem:[%s3276_s24 + $0xa0] ss:$8 sps:$4 sm:$0xff]   ;;  %v3097_v54 = vld [vmem:[%s3276_s24 + $0xb4] ss:$8 sps:$4 sm:$0xff]   ;;  %v3101_v56 = vld [vmem:[%s3276_s24 + $0xb0] ss:$8 sps:$4 sm:$0xff]  }
  0x1f   : > { %1167 = vmatpush1.bf16.msra.mxu0 %v3028_v9  ;;  %3010 = vmatpush1.bf16.msra.mxu1 %v3028_v9  ;;  %v3096_v53 = vld [vmem:[%s3276_s24 + $0x2a0] ss:$8 sps:$4 sm:$0xff]   ;;  %v3099_v55 = vld [vmem:[%s3276_s24 + $0x2b4] ss:$8 sps:$4 sm:$0xff]   ;;  %v3102_v57 = vld [vmem:[%s3276_s24 + $0x2b0] ss:$8 sps:$4 sm:$0xff]  }
  0x20   : > { %1168 = vmatprep.subr.bf16.mxu0 %v3232_v1  ;;  %3002 = vmatprep.subr.bf16.mxu1 %v3232_v1  ;;  %v3103_v58 = vld [vmem:[%s3276_s24 + $0xc4] ss:$8 sps:$4 sm:$0xff]   ;;  %v3107_v60 = vld [vmem:[%s3276_s24 + $0xc0] ss:$8 sps:$4 sm:$0xff]   ;;  %v3109_v62 = vld [vmem:[%s3276_s24 + $0xd4] ss:$8 sps:$4 sm:$0xff]  }
  0x21   : > { %v3105_v59 = vld [vmem:[%s3276_s24 + $0x2c4] ss:$8 sps:$4 sm:$0xff]   ;;  %v3108_v61 = vld [vmem:[%s3276_s24 + $0x2c0] ss:$8 sps:$4 sm:$0xff]   ;;  %v3111_v63 = vld [vmem:[%s3276_s24 + $0x2d4] ss:$8 sps:$4 sm:$0xff]  }
  0x22   : > { %v3113_v0 = vld [vmem:[%s3276_s24 + $0xd0] ss:$8 sps:$4 sm:$0xff]   ;;  %v3115_v2 = vld [vmem:[%s3276_s24 + $0xe4] ss:$8 sps:$4 sm:$0xff]   ;;  %v3119_v4 = vld [vmem:[%s3276_s24 + $0xe0] ss:$8 sps:$4 sm:$0xff]  }
  0x23   : > { %1169 = vmatpush1.bf16.msra.mxu0 %v3029_v10  ;;  %3011 = vmatpush1.bf16.msra.mxu1 %v3029_v10  ;;  %v3117_v3 = vld [vmem:[%s3276_s24 + $0x2e4] ss:$8 sps:$4 sm:$0xff]   ;;  %v3120_v5 = vld [vmem:[%s3276_s24 + $0x2e0] ss:$8 sps:$4 sm:$0xff]   ;;  %v3121_v6 = vld [vmem:[%s3276_s24 + $0xf4] ss:$8 sps:$4 sm:$0xff]  }
  0x24   : > { %1170 = vmatprep.subr.bf16.mxu0 %v3232_v1  ;;  %3003 = vmatprep.subr.bf16.mxu1 %v3232_v1  ;;  %v3114_v1 = vld [vmem:[%s3276_s24 + $0x2d0] ss:$8 sps:$4 sm:$0xff]   ;;  %v3123_v7 = vld [vmem:[%s3276_s24 + $0x2f4] ss:$8 sps:$4 sm:$0xff]   ;;  %v3127_v10 = vld [vmem:[%s3276_s24 + $0x104] ss:$8 sps:$4 sm:$0xff]  }
  0x25   : > { %v3125_v8 = vld [vmem:[%s3276_s24 + $0xf0] ss:$8 sps:$4 sm:$0xff]  }
  0x26   : > { %v3126_v9 = vld [vmem:[%s3276_s24 + $0x2f0] ss:$8 sps:$4 sm:$0xff]  }
  0x27   : > { %1171 = vmatpush1.bf16.msra.mxu0 %v3030_v11  ;;  %3012 = vmatpush1.bf16.msra.mxu1 %v3030_v11  ;;  %v3129_v11 = vld [vmem:[%s3276_s24 + $0x304] ss:$8 sps:$4 sm:$0xff]  }
  0x2a   : > { %1187 = vmatmul.mubr.bf16.vlgmr.msra.gmra.mrb[0].mxu0 %v3031_v12  ;;  %1443 = vmatmul.mubr.bf16.vlgmr.msra.gmra.mrb[0].mxu1 %v3034_v13  ;;  %v3131_v12 = vld [vmem:[%s3276_s24 + $0x100] ss:$8 sps:$4 sm:$0xff]  }
  0x2b   : > { %2673 = vmatprep.mubr.msk.bf16.mxu0 %vm961_vm0, %v3037_v14  ;;  %2705 = vmatprep.mubr.msk.bf16.mxu1 %vm961_vm0, %v3039_v15  ;;  %v3132_v13 = vld [vmem:[%s3276_s24 + $0x300] ss:$8 sps:$4 sm:$0xff]   ;;  %v3133_v14 = vld [vmem:[%s3276_s24 + $0x114] ss:$8 sps:$4 sm:$0xff]  }
  0x2c   : > { %v3135_v15 = vld [vmem:[%s3276_s24 + $0x314] ss:$8 sps:$4 sm:$0xff]  }
  0x32   : > { %1195 = vmatmul.mubr.bf16.gmra.mrb[4].mxu0 %v3041_v16  ;;  %1451 = vmatmul.mubr.bf16.gmra.mrb[4].mxu1 %v3042_v17  ;;  %v3137_v16 = vld [vmem:[%s3276_s24 + $0x110] ss:$8 sps:$4 sm:$0xff]  }
  0x33   : > { %2674 = vmatprep.mubr.msk.bf16.mxu0 %vm961_vm0, %v3043_v18  ;;  %2706 = vmatprep.mubr.msk.bf16.mxu1 %vm961_vm0, %v3045_v19  ;;  %v3138_v17 = vld [vmem:[%s3276_s24 + $0x310] ss:$8 sps:$4 sm:$0xff]   ;;  %v3139_v18 = vld [vmem:[%s3276_s24 + $0x124] ss:$8 sps:$4 sm:$0xff]  }
  0x34   : > { %v3141_v19 = vld [vmem:[%s3276_s24 + $0x324] ss:$8 sps:$4 sm:$0xff]  }
  0x3a   : > { %1203 = vmatmul.mubr.bf16.gmra.mrb[8].mxu0 %v3047_v20  ;;  %1459 = vmatmul.mubr.bf16.gmra.mrb[8].mxu1 %v3048_v21  ;;  %v3143_v20 = vld [vmem:[%s3276_s24 + $0x120] ss:$8 sps:$4 sm:$0xff]  }
  0x3b   : > { %2675 = vmatprep.mubr.msk.bf16.mxu0 %vm961_vm0, %v3049_v22  ;;  %2707 = vmatprep.mubr.msk.bf16.mxu1 %vm961_vm0, %v3051_v23  ;;  %v3144_v21 = vld [vmem:[%s3276_s24 + $0x320] ss:$8 sps:$4 sm:$0xff]   ;;  %v3145_v22 = vld [vmem:[%s3276_s24 + $0x134] ss:$8 sps:$4 sm:$0xff]  }
  0x3c   : > { %v3147_v23 = vld [vmem:[%s3276_s24 + $0x334] ss:$8 sps:$4 sm:$0xff]  }
  0x42   : > { %1211 = vmatmul.mubr.bf16.gmra.mrb[12].mxu0 %v3053_v24  ;;  %1467 = vmatmul.mubr.bf16.gmra.mrb[12].mxu1 %v3054_v25  ;;  %v3149_v24 = vld [vmem:[%s3276_s24 + $0x130] ss:$8 sps:$4 sm:$0xff]  }
  0x43   : > { %2676 = vmatprep.mubr.msk.bf16.mxu0 %vm961_vm0, %v3055_v26  ;;  %2708 = vmatprep.mubr.msk.bf16.mxu1 %vm961_vm0, %v3057_v27  ;;  %v3150_v25 = vld [vmem:[%s3276_s24 + $0x330] ss:$8 sps:$4 sm:$0xff]   ;;  %v3151_v26 = vld [vmem:[%s3276_s24 + $0x144] ss:$8 sps:$4 sm:$0xff]  }
  0x44   : > { %v3153_v27 = vld [vmem:[%s3276_s24 + $0x344] ss:$8 sps:$4 sm:$0xff]  }
  0x4a   : > { %1219 = vmatmul.mubr.bf16.gmra.mrb[16].mxu0 %v3059_v28  ;;  %1475 = vmatmul.mubr.bf16.gmra.mrb[16].mxu1 %v3060_v29  ;;  %v3155_v28 = vld [vmem:[%s3276_s24 + $0x140] ss:$8 sps:$4 sm:$0xff]  }
  0x4b   : > { %2677 = vmatprep.mubr.msk.bf16.mxu0 %vm961_vm0, %v3061_v30  ;;  %2709 = vmatprep.mubr.msk.bf16.mxu1 %vm961_vm0, %v3063_v31  ;;  %v3156_v29 = vld [vmem:[%s3276_s24 + $0x340] ss:$8 sps:$4 sm:$0xff]   ;;  %v3157_v30 = vld [vmem:[%s3276_s24 + $0x154] ss:$8 sps:$4 sm:$0xff]  }
  0x4c   : > { %v3159_v31 = vld [vmem:[%s3276_s24 + $0x354] ss:$8 sps:$4 sm:$0xff]  }
  0x52   : > { %1227 = vmatmul.mubr.bf16.gmra.mrb[20].mxu0 %v3065_v32  ;;  %1483 = vmatmul.mubr.bf16.gmra.mrb[20].mxu1 %v3066_v33  ;;  %v3161_v32 = vld [vmem:[%s3276_s24 + $0x150] ss:$8 sps:$4 sm:$0xff]  }
  0x53   : > { %2678 = vmatprep.mubr.msk.bf16.mxu0 %vm961_vm0, %v3067_v34  ;;  %2710 = vmatprep.mubr.msk.bf16.mxu1 %vm961_vm0, %v3069_v35  ;;  %v3162_v33 = vld [vmem:[%s3276_s24 + $0x350] ss:$8 sps:$4 sm:$0xff]   ;;  %v3163_v34 = vld [vmem:[%s3276_s24 + $0x164] ss:$8 sps:$4 sm:$0xff]  }
  0x54   : > { %v3165_v35 = vld [vmem:[%s3276_s24 + $0x364] ss:$8 sps:$4 sm:$0xff]  }
  0x5a   : > { %1235 = vmatmul.mubr.bf16.gmra.mrb[24].mxu0 %v3071_v36  ;;  %1491 = vmatmul.mubr.bf16.gmra.mrb[24].mxu1 %v3072_v37  ;;  %v3167_v36 = vld [vmem:[%s3276_s24 + $0x160] ss:$8 sps:$4 sm:$0xff]  }
  0x5b   : > { %2679 = vmatprep.mubr.msk.bf16.mxu0 %vm961_vm0, %v3073_v38  ;;  %2711 = vmatprep.mubr.msk.bf16.mxu1 %vm961_vm0, %v3075_v39  ;;  %v3168_v37 = vld [vmem:[%s3276_s24 + $0x360] ss:$8 sps:$4 sm:$0xff]   ;;  %v3169_v38 = vld [vmem:[%s3276_s24 + $0x174] ss:$8 sps:$4 sm:$0xff]  }
  0x5c   : > { %v3171_v39 = vld [vmem:[%s3276_s24 + $0x374] ss:$8 sps:$4 sm:$0xff]  }
  0x62   : > { %1243 = vmatmul.mubr.bf16.gmra.mrb[28].mxu0 %v3077_v40  ;;  %1499 = vmatmul.mubr.bf16.gmra.mrb[28].mxu1 %v3078_v41  ;;  %v3173_v40 = vld [vmem:[%s3276_s24 + $0x170] ss:$8 sps:$4 sm:$0xff]  }
  0x63   : > { %2680 = vmatprep.mubr.msk.bf16.mxu0 %vm961_vm0, %v3079_v42  ;;  %2712 = vmatprep.mubr.msk.bf16.mxu1 %vm961_vm0, %v3081_v43  ;;  %v3174_v41 = vld [vmem:[%s3276_s24 + $0x370] ss:$8 sps:$4 sm:$0xff]   ;;  %v3175_v42 = vld [vmem:[%s3276_s24 + $0x184] ss:$8 sps:$4 sm:$0xff]  }
  0x64   : > { %v3177_v43 = vld [vmem:[%s3276_s24 + $0x384] ss:$8 sps:$4 sm:$0xff]  }
  0x6a   : > { %1251 = vmatmul.mubr.bf16.gmra.mrb[32].mxu0 %v3083_v44  ;;  %1507 = vmatmul.mubr.bf16.gmra.mrb[32].mxu1 %v3084_v45  ;;  %v3179_v44 = vld [vmem:[%s3276_s24 + $0x180] ss:$8 sps:$4 sm:$0xff]  }
  0x6b   : > { %2681 = vmatprep.mubr.msk.bf16.mxu0 %vm961_vm0, %v3085_v46  ;;  %2713 = vmatprep.mubr.msk.bf16.mxu1 %vm961_vm0, %v3087_v47  ;;  %v3180_v45 = vld [vmem:[%s3276_s24 + $0x380] ss:$8 sps:$4 sm:$0xff]   ;;  %v3181_v46 = vld [vmem:[%s3276_s24 + $0x194] ss:$8 sps:$4 sm:$0xff]  }
  0x6c   : > { %v3183_v47 = vld [vmem:[%s3276_s24 + $0x394] ss:$8 sps:$4 sm:$0xff]  }
  0x72   : > { %1259 = vmatmul.mubr.bf16.gmra.mrb[36].mxu0 %v3089_v48  ;;  %1515 = vmatmul.mubr.bf16.gmra.mrb[36].mxu1 %v3090_v49  ;;  %v3185_v48 = vld [vmem:[%s3276_s24 + $0x190] ss:$8 sps:$4 sm:$0xff]  }
  0x73   : > { %2682 = vmatprep.mubr.msk.bf16.mxu0 %vm961_vm0, %v3091_v50  ;;  %2714 = vmatprep.mubr.msk.bf16.mxu1 %vm961_vm0, %v3093_v51  ;;  %v3186_v49 = vld [vmem:[%s3276_s24 + $0x390] ss:$8 sps:$4 sm:$0xff]   ;;  %v3187_v50 = vld [vmem:[%s3276_s24 + $0x1a4] ss:$8 sps:$4 sm:$0xff]  }
  0x74   : > { %v3189_v51 = vld [vmem:[%s3276_s24 + $0x3a4] ss:$8 sps:$4 sm:$0xff]  }
  0x7a   : > { %1267 = vmatmul.mubr.bf16.gmra.mrb[40].mxu0 %v3095_v52  ;;  %1523 = vmatmul.mubr.bf16.gmra.mrb[40].mxu1 %v3096_v53  ;;  %v3191_v52 = vld [vmem:[%s3276_s24 + $0x1a0] ss:$8 sps:$4 sm:$0xff]  }
  0x7b   : > { %2683 = vmatprep.mubr.msk.bf16.mxu0 %vm961_vm0, %v3097_v54  ;;  %2715 = vmatprep.mubr.msk.bf16.mxu1 %vm961_vm0, %v3099_v55  ;;  %v3192_v53 = vld [vmem:[%s3276_s24 + $0x3a0] ss:$8 sps:$4 sm:$0xff]   ;;  %v3193_v54 = vld [vmem:[%s3276_s24 + $0x1b4] ss:$8 sps:$4 sm:$0xff]  }
  0x7c   : > { %v3195_v55 = vld [vmem:[%s3276_s24 + $0x3b4] ss:$8 sps:$4 sm:$0xff]  }
  0x82   : > { %1275 = vmatmul.mubr.bf16.gmra.mrb[44].mxu0 %v3101_v56  ;;  %1531 = vmatmul.mubr.bf16.gmra.mrb[44].mxu1 %v3102_v57  ;;  %v3463_v56 = vld [vmem:[%s3893_s2] ss:$0 sm:$0xff] }
  0x83   : > { %2684 = vmatprep.mubr.msk.bf16.mxu0 %vm961_vm0, %v3103_v58  ;;  %2716 = vmatprep.mubr.msk.bf16.mxu1 %vm961_vm0, %v3105_v59 }
  0x8a   : > { %1283 = vmatmul.mubr.bf16.gmra.mrb[48].mxu0 %v3107_v60  ;;  %1539 = vmatmul.mubr.bf16.gmra.mrb[48].mxu1 %v3108_v61 }
  0x8b   : > { %2685 = vmatprep.mubr.msk.bf16.mxu0 %vm961_vm0, %v3109_v62  ;;  %2717 = vmatprep.mubr.msk.bf16.mxu1 %vm961_vm0, %v3111_v63  ;;  %v3197_v63 = vld [vmem:[%s3276_s24 + $0x1b0] ss:$8 sps:$4 sm:$0xff]  }
  0x92   : > { %1291 = vmatmul.mubr.bf16.gmra.mrb[52].mxu0 %v3113_v0  ;;  %1547 = vmatmul.mubr.bf16.gmra.mrb[52].mxu1 %v3114_v1  ;;  %v3198_v0 = vld [vmem:[%s3276_s24 + $0x3b0] ss:$8 sps:$4 sm:$0xff]  }
  0x93   : > { %2686 = vmatprep.mubr.msk.bf16.mxu0 %vm961_vm0, %v3115_v2  ;;  %2718 = vmatprep.mubr.msk.bf16.mxu1 %vm961_vm0, %v3117_v3  ;;  %v3199_v3 = vld [vmem:[%s3276_s24 + $0x1c4] ss:$8 sps:$4 sm:$0xff]  }
  0x9a   : > { %1299 = vmatmul.mubr.bf16.gmra.mrb[56].mxu0 %v3119_v4  ;;  %1555 = vmatmul.mubr.bf16.gmra.mrb[56].mxu1 %v3120_v5  ;;  %v3201_v4 = vld [vmem:[%s3276_s24 + $0x3c4] ss:$8 sps:$4 sm:$0xff]  }
  0x9b   : > { %2687 = vmatprep.mubr.msk.bf16.mxu0 %vm961_vm0, %v3121_v6  ;;  %2719 = vmatprep.mubr.msk.bf16.mxu1 %vm961_vm0, %v3123_v7 }
  0xa2   : > { %1307 = vmatmul.mubr.bf16.gmra.mrb[60].mxu0 %v3125_v8  ;;  %1563 = vmatmul.mubr.bf16.gmra.mrb[60].mxu1 %v3126_v9 }
  0xa3   : > { %2688 = vmatprep.mubr.msk.bf16.mxu0 %vm961_vm0, %v3127_v10  ;;  %2720 = vmatprep.mubr.msk.bf16.mxu1 %vm961_vm0, %v3129_v11 }
  0xaa   : > { %1315 = vmatmul.mubr.bf16.gmra.mrb[64].mxu0 %v3131_v12  ;;  %1571 = vmatmul.mubr.bf16.gmra.mrb[64].mxu1 %v3132_v13 }
  0xab   : > { %2689 = vmatprep.mubr.msk.bf16.mxu0 %vm961_vm0, %v3133_v14  ;;  %2721 = vmatprep.mubr.msk.bf16.mxu1 %vm961_vm0, %v3135_v15 }
  0xb2   : > { %1323 = vmatmul.mubr.bf16.gmra.mrb[68].mxu0 %v3137_v16  ;;  %1579 = vmatmul.mubr.bf16.gmra.mrb[68].mxu1 %v3138_v17 }
  0xb3   : > { %2690 = vmatprep.mubr.msk.bf16.mxu0 %vm961_vm0, %v3139_v18  ;;  %2722 = vmatprep.mubr.msk.bf16.mxu1 %vm961_vm0, %v3141_v19 }
  0xba   : > { %1331 = vmatmul.mubr.bf16.gmra.mrb[72].mxu0 %v3143_v20  ;;  %1587 = vmatmul.mubr.bf16.gmra.mrb[72].mxu1 %v3144_v21 }
  0xbb   : > { %2691 = vmatprep.mubr.msk.bf16.mxu0 %vm961_vm0, %v3145_v22  ;;  %2723 = vmatprep.mubr.msk.bf16.mxu1 %vm961_vm0, %v3147_v23  ;;  %v3203_v23 = vld [vmem:[%s3276_s24 + $0x1c0] ss:$8 sps:$4 sm:$0xff]  }
  0xc2   : > { %1339 = vmatmul.mubr.bf16.gmra.mrb[76].mxu0 %v3149_v24  ;;  %1595 = vmatmul.mubr.bf16.gmra.mrb[76].mxu1 %v3150_v25  ;;  %v3204_v24 = vld [vmem:[%s3276_s24 + $0x3c0] ss:$8 sps:$4 sm:$0xff]  }
  0xc3   : > { %2692 = vmatprep.mubr.msk.bf16.mxu0 %vm961_vm0, %v3151_v26  ;;  %2724 = vmatprep.mubr.msk.bf16.mxu1 %vm961_vm0, %v3153_v27  ;;  %v3205_v27 = vld [vmem:[%s3276_s24 + $0x1d4] ss:$8 sps:$4 sm:$0xff]  }
  0xca   : > { %1347 = vmatmul.mubr.bf16.gmra.mrb[80].mxu0 %v3155_v28  ;;  %1603 = vmatmul.mubr.bf16.gmra.mrb[80].mxu1 %v3156_v29  ;;  %v3207_v28 = vld [vmem:[%s3276_s24 + $0x3d4] ss:$8 sps:$4 sm:$0xff]  }
  0xcb   : > { %2693 = vmatprep.mubr.msk.bf16.mxu0 %vm961_vm0, %v3157_v30  ;;  %2725 = vmatprep.mubr.msk.bf16.mxu1 %vm961_vm0, %v3159_v31 }
  0xd2   : > { %1355 = vmatmul.mubr.bf16.gmra.mrb[84].mxu0 %v3161_v32  ;;  %1611 = vmatmul.mubr.bf16.gmra.mrb[84].mxu1 %v3162_v33 }
  0xd3   : > { %2694 = vmatprep.mubr.msk.bf16.mxu0 %vm961_vm0, %v3163_v34  ;;  %2726 = vmatprep.mubr.msk.bf16.mxu1 %vm961_vm0, %v3165_v35 }
  0xda   : > { %1363 = vmatmul.mubr.bf16.gmra.mrb[88].mxu0 %v3167_v36  ;;  %1619 = vmatmul.mubr.bf16.gmra.mrb[88].mxu1 %v3168_v37 }
  0xdb   : > { %2695 = vmatprep.mubr.msk.bf16.mxu0 %vm961_vm0, %v3169_v38  ;;  %2727 = vmatprep.mubr.msk.bf16.mxu1 %vm961_vm0, %v3171_v39 }
  0xe2   : > { %1371 = vmatmul.mubr.bf16.gmra.mrb[92].mxu0 %v3173_v40  ;;  %1627 = vmatmul.mubr.bf16.gmra.mrb[92].mxu1 %v3174_v41 }
  0xe3   : > { %2696 = vmatprep.mubr.msk.bf16.mxu0 %vm961_vm0, %v3175_v42  ;;  %2728 = vmatprep.mubr.msk.bf16.mxu1 %vm961_vm0, %v3177_v43 }
  0xea   : > { %1379 = vmatmul.mubr.bf16.gmra.mrb[96].mxu0 %v3179_v44  ;;  %1635 = vmatmul.mubr.bf16.gmra.mrb[96].mxu1 %v3180_v45 }
  0xeb   : > { %2697 = vmatprep.mubr.msk.bf16.mxu0 %vm961_vm0, %v3181_v46  ;;  %2729 = vmatprep.mubr.msk.bf16.mxu1 %vm961_vm0, %v3183_v47  ;;  %v3209_v47 = vld [vmem:[%s3276_s24 + $0x1d0] ss:$8 sps:$4 sm:$0xff]  }
  0xf2   : > { %1387 = vmatmul.mubr.bf16.gmra.mrb[100].mxu0 %v3185_v48  ;;  %1643 = vmatmul.mubr.bf16.gmra.mrb[100].mxu1 %v3186_v49  ;;  %v3210_v48 = vld [vmem:[%s3276_s24 + $0x3d0] ss:$8 sps:$4 sm:$0xff]  }
  0xf3   : > { %2698 = vmatprep.mubr.msk.bf16.mxu0 %vm961_vm0, %v3187_v50  ;;  %2730 = vmatprep.mubr.msk.bf16.mxu1 %vm961_vm0, %v3189_v51  ;;  %v3211_v51 = vld [vmem:[%s3276_s24 + $0x1e4] ss:$8 sps:$4 sm:$0xff]  }
  0xfa   : > { %1395 = vmatmul.mubr.bf16.gmra.mrb[104].mxu0 %v3191_v52  ;;  %1651 = vmatmul.mubr.bf16.gmra.mrb[104].mxu1 %v3192_v53  ;;  %v3213_v52 = vld [vmem:[%s3276_s24 + $0x3e4] ss:$8 sps:$4 sm:$0xff]  }
  0xfb   : > { %2699 = vmatprep.mubr.msk.bf16.mxu0 %vm961_vm0, %v3193_v54  ;;  %2731 = vmatprep.mubr.msk.bf16.mxu1 %vm961_vm0, %v3195_v55 }
  0xfd   : > { %v1188_v57 = vpop.f32.mrb[0].mxu0  ;;  %v1444_v58 = vpop.f32.mrb[0].mxu1 }
  0xfe   : > { %v1189_v59 = vadd.f32 %v3463_v56, %v1188_v57  ;;  %v1445_v60 = vadd.f32 %v3463_v56, %v1444_v58  ;;  %v1190_v61 = vpop.f32.mrb[1].mxu0  ;;  %v1446_v62 = vpop.f32.mrb[1].mxu1 }
  0xff   : > { %v1191_v1 = vpop.f32.mrb[2].mxu0  ;;  %v1447_v2 = vpop.f32.mrb[2].mxu1 }
 0x100   : > { %v1699_v5 = vmax.f32 %v1189_v59, 0.0  ;;  %v1763_v6 = vmax.f32 %v1445_v60, 0.0  ;;  %v1192_v7 = vadd.f32 %v3463_v56, %v1191_v1  ;;  %v1448_v8 = vadd.f32 %v3463_v56, %v1447_v2  ;;  %v1193_v9 = vpop.f32.mrb[3].mxu0  ;;  %v1449_v10 = vpop.f32.mrb[3].mxu1 }
 0x101   : > { %v3216_v9 = vld [vmem:[%s3276_s24 + $0x3e0] ss:$8 sps:$4 sm:$0xff]  }
 0x102   : > { %v2867_v11 = vpack.c.bf16 %v1699_v5, %v1699_v5  ;;  %v2931_v12 = vpack.c.bf16 %v1763_v6, %v1763_v6  ;;  %v1700_v13 = vmax.f32 %v1192_v7, 0.0  ;;  %v1764_v14 = vmax.f32 %v1448_v8, 0.0  ;;  %1403 = vmatmul.mubr.bf16.gmra.mrb[108].mxu0 %v3197_v63  ;;  %1659 = vmatmul.mubr.bf16.gmra.mrb[108].mxu1 %v3198_v0  ;;  %v3215_v8 = vld [vmem:[%s3276_s24 + $0x1e0] ss:$8 sps:$4 sm:$0xff]  }
 0x103   : > { %2700 = vmatprep.mubr.msk.bf16.mxu0 %vm961_vm0, %v3199_v3  ;;  %2732 = vmatprep.mubr.msk.bf16.mxu1 %vm961_vm0, %v3201_v4 }
 0x104   : > { %2340 = vst.msk [vmem:[%s3479_s16] sm:$0xf] %vm2339_vm1, %v2867_v11  ;;  %2404 = vst.msk [vmem:[%s3479_s16 + $0x100] sm:$0xf] %vm2339_vm1, %v2931_v12  ;;  %v2868_v15 = vpack.c.bf16 %v1700_v13, %v1700_v13  ;;  %v2932_v16 = vpack.c.bf16 %v1764_v14, %v1764_v14  ;;  %v3217_v12 = vld [vmem:[%s3276_s24 + $0x1f4] ss:$8 sps:$4 sm:$0xff]  }
 0x105   : > { %v1196_v17 = vpop.f32.mrb[4].mxu0  ;;  %v1452_v18 = vpop.f32.mrb[4].mxu1  ;;  %v3219_v13 = vld [vmem:[%s3276_s24 + $0x3f4] ss:$8 sps:$4 sm:$0xff]  }
 0x106   : > { %2341 = vst.msk [vmem:[%s3479_s16 + $0x4] sm:$0xf] %vm2339_vm1, %v2868_v15  ;;  %2405 = vst.msk [vmem:[%s3479_s16 + $0x104] sm:$0xf] %vm2339_vm1, %v2932_v16  ;;  %v1197_v19 = vadd.f32 %v3463_v56, %v1196_v17  ;;  %v1453_v20 = vadd.f32 %v3463_v56, %v1452_v18  ;;  %v1198_v21 = vpop.f32.mrb[5].mxu0  ;;  %v1454_v22 = vpop.f32.mrb[5].mxu1 }
 0x107   : > { %v1199_v25 = vpop.f32.mrb[6].mxu0  ;;  %v1455_v26 = vpop.f32.mrb[6].mxu1 }
 0x108   : > { %v1701_v29 = vmax.f32 %v1197_v19, 0.0  ;;  %v1765_v30 = vmax.f32 %v1453_v20, 0.0  ;;  %v1200_v31 = vadd.f32 %v3463_v56, %v1199_v25  ;;  %v1456_v32 = vadd.f32 %v3463_v56, %v1455_v26  ;;  %v1201_v33 = vpop.f32.mrb[7].mxu0  ;;  %v1457_v34 = vpop.f32.mrb[7].mxu1 }
 0x109   : > { %v3222_v33 = vld [vmem:[%s3276_s24 + $0x3f0] ss:$8 sps:$4 sm:$0xff]  }
 0x10a   : > { %v2869_v35 = vpack.c.bf16 %v1701_v29, %v1701_v29  ;;  %v2933_v36 = vpack.c.bf16 %v1765_v30, %v1765_v30  ;;  %v1702_v37 = vmax.f32 %v1200_v31, 0.0  ;;  %v1766_v38 = vmax.f32 %v1456_v32, 0.0  ;;  %1411 = vmatmul.mubr.bf16.gmra.mrb[112].mxu0 %v3203_v23  ;;  %1667 = vmatmul.mubr.bf16.gmra.mrb[112].mxu1 %v3204_v24  ;;  %v3221_v32 = vld [vmem:[%s3276_s24 + $0x1f0] ss:$8 sps:$4 sm:$0xff]  }
 0x10b   : > { %2701 = vmatprep.mubr.msk.bf16.mxu0 %vm961_vm0, %v3205_v27  ;;  %2733 = vmatprep.mubr.msk.bf16.mxu1 %vm961_vm0, %v3207_v28 }
 0x10c   : > { %2342 = vst.msk [vmem:[%s3479_s16 + $0x8] sm:$0xf] %vm2339_vm1, %v2869_v35  ;;  %2406 = vst.msk [vmem:[%s3479_s16 + $0x108] sm:$0xf] %vm2339_vm1, %v2933_v36  ;;  %v2870_v39 = vpack.c.bf16 %v1702_v37, %v1702_v37  ;;  %v2934_v40 = vpack.c.bf16 %v1766_v38, %v1766_v38 }
 0x10d   : > { %v1204_v41 = vpop.f32.mrb[8].mxu0  ;;  %v1460_v42 = vpop.f32.mrb[8].mxu1 }
 0x10e   : > { %2343 = vst.msk [vmem:[%s3479_s16 + $0xc] sm:$0xf] %vm2339_vm1, %v2870_v39  ;;  %2407 = vst.msk [vmem:[%s3479_s16 + $0x10c] sm:$0xf] %vm2339_vm1, %v2934_v40  ;;  %v1205_v43 = vadd.f32 %v3463_v56, %v1204_v41  ;;  %v1461_v44 = vadd.f32 %v3463_v56, %v1460_v42  ;;  %v1206_v45 = vpop.f32.mrb[9].mxu0  ;;  %v1462_v46 = vpop.f32.mrb[9].mxu1 }
 0x10f   : > { %v1207_v49 = vpop.f32.mrb[10].mxu0  ;;  %v1463_v50 = vpop.f32.mrb[10].mxu1 }
 0x110   : > { %v1703_v53 = vmax.f32 %v1205_v43, 0.0  ;;  %v1767_v54 = vmax.f32 %v1461_v44, 0.0  ;;  %v1208_v55 = vadd.f32 %v3463_v56, %v1207_v49  ;;  %v1464_v57 = vadd.f32 %v3463_v56, %v1463_v50  ;;  %v1209_v58 = vpop.f32.mrb[11].mxu0  ;;  %v1465_v59 = vpop.f32.mrb[11].mxu1 }
 0x112   : > { %v2871_v60 = vpack.c.bf16 %v1703_v53, %v1703_v53  ;;  %v2935_v61 = vpack.c.bf16 %v1767_v54, %v1767_v54  ;;  %v1704_v62 = vmax.f32 %v1208_v55, 0.0  ;;  %v1768_v63 = vmax.f32 %v1464_v57, 0.0  ;;  %1419 = vmatmul.mubr.bf16.gmra.mrb[116].mxu0 %v3209_v47  ;;  %1675 = vmatmul.mubr.bf16.gmra.mrb[116].mxu1 %v3210_v48 }
 0x113   : > { %2702 = vmatprep.mubr.msk.bf16.mxu0 %vm961_vm0, %v3211_v51  ;;  %2734 = vmatprep.mubr.msk.bf16.mxu1 %vm961_vm0, %v3213_v52 }
 0x114   : > { %2344 = vst.msk [vmem:[%s3479_s16 + $0x10] sm:$0xf] %vm2339_vm1, %v2871_v60  ;;  %2408 = vst.msk [vmem:[%s3479_s16 + $0x110] sm:$0xf] %vm2339_vm1, %v2935_v61  ;;  %v2872_v0 = vpack.c.bf16 %v1704_v62, %v1704_v62  ;;  %v2936_v1 = vpack.c.bf16 %v1768_v63, %v1768_v63 }
 0x115   : > { %v1212_v2 = vpop.f32.mrb[12].mxu0  ;;  %v1468_v3 = vpop.f32.mrb[12].mxu1 }
 0x116   : > { %2345 = vst.msk [vmem:[%s3479_s16 + $0x14] sm:$0xf] %vm2339_vm1, %v2872_v0  ;;  %2409 = vst.msk [vmem:[%s3479_s16 + $0x114] sm:$0xf] %vm2339_vm1, %v2936_v1  ;;  %v1213_v4 = vadd.f32 %v3463_v56, %v1212_v2  ;;  %v1469_v5 = vadd.f32 %v3463_v56, %v1468_v3  ;;  %v1214_v6 = vpop.f32.mrb[13].mxu0  ;;  %v1470_v7 = vpop.f32.mrb[13].mxu1 }
 0x117   : > { %v1215_v10 = vpop.f32.mrb[14].mxu0  ;;  %v1471_v11 = vpop.f32.mrb[14].mxu1 }
 0x118   : > { %v1705_v14 = vmax.f32 %v1213_v4, 0.0  ;;  %v1769_v15 = vmax.f32 %v1469_v5, 0.0  ;;  %v1216_v16 = vadd.f32 %v3463_v56, %v1215_v10  ;;  %v1472_v17 = vadd.f32 %v3463_v56, %v1471_v11  ;;  %v1217_v18 = vpop.f32.mrb[15].mxu0  ;;  %v1473_v19 = vpop.f32.mrb[15].mxu1 }
 0x11a   : > { %v2873_v20 = vpack.c.bf16 %v1705_v14, %v1705_v14  ;;  %v2937_v21 = vpack.c.bf16 %v1769_v15, %v1769_v15  ;;  %v1706_v22 = vmax.f32 %v1216_v16, 0.0  ;;  %v1770_v23 = vmax.f32 %v1472_v17, 0.0  ;;  %1427 = vmatmul.mubr.bf16.gmra.mrb[120].mxu0 %v3215_v8  ;;  %1683 = vmatmul.mubr.bf16.gmra.mrb[120].mxu1 %v3216_v9 }
 0x11b   : > { %2703 = vmatprep.mubr.msk.bf16.mxu0 %vm961_vm0, %v3217_v12  ;;  %2735 = vmatprep.mubr.msk.bf16.mxu1 %vm961_vm0, %v3219_v13 }
 0x11c   : > { %2346 = vst.msk [vmem:[%s3479_s16 + $0x18] sm:$0xf] %vm2339_vm1, %v2873_v20  ;;  %2410 = vst.msk [vmem:[%s3479_s16 + $0x118] sm:$0xf] %vm2339_vm1, %v2937_v21  ;;  %v2874_v24 = vpack.c.bf16 %v1706_v22, %v1706_v22  ;;  %v2938_v25 = vpack.c.bf16 %v1770_v23, %v1770_v23 }
 0x11d   : > { %v1220_v26 = vpop.f32.mrb[16].mxu0  ;;  %v1476_v27 = vpop.f32.mrb[16].mxu1 }
 0x11e   : > { %2347 = vst.msk [vmem:[%s3479_s16 + $0x1c] sm:$0xf] %vm2339_vm1, %v2874_v24  ;;  %2411 = vst.msk [vmem:[%s3479_s16 + $0x11c] sm:$0xf] %vm2339_vm1, %v2938_v25  ;;  %v1221_v28 = vadd.f32 %v3463_v56, %v1220_v26  ;;  %v1477_v29 = vadd.f32 %v3463_v56, %v1476_v27  ;;  %v1222_v30 = vpop.f32.mrb[17].mxu0  ;;  %v1478_v31 = vpop.f32.mrb[17].mxu1 }
 0x11f   : > { %v1223_v34 = vpop.f32.mrb[18].mxu0  ;;  %v1479_v35 = vpop.f32.mrb[18].mxu1 }
 0x120   : > { %v1707_v36 = vmax.f32 %v1221_v28, 0.0  ;;  %v1771_v37 = vmax.f32 %v1477_v29, 0.0  ;;  %v1224_v38 = vadd.f32 %v3463_v56, %v1223_v34  ;;  %v1480_v39 = vadd.f32 %v3463_v56, %v1479_v35  ;;  %v1225_v40 = vpop.f32.mrb[19].mxu0  ;;  %v1481_v41 = vpop.f32.mrb[19].mxu1 }
 0x122   : > { %v2875_v42 = vpack.c.bf16 %v1707_v36, %v1707_v36  ;;  %v2939_v43 = vpack.c.bf16 %v1771_v37, %v1771_v37  ;;  %v1708_v44 = vmax.f32 %v1224_v38, 0.0  ;;  %v1772_v45 = vmax.f32 %v1480_v39, 0.0  ;;  %1435 = vmatmul.mubr.bf16.gmra.mrb[124].mxu0 %v3221_v32  ;;  %1691 = vmatmul.mubr.bf16.gmra.mrb[124].mxu1 %v3222_v33 }
 0x124   : > { %2348 = vst.msk [vmem:[%s3479_s16 + $0x20] sm:$0xf] %vm2339_vm1, %v2875_v42  ;;  %2412 = vst.msk [vmem:[%s3479_s16 + $0x120] sm:$0xf] %vm2339_vm1, %v2939_v43  ;;  %v2876_v46 = vpack.c.bf16 %v1708_v44, %v1708_v44  ;;  %v2940_v47 = vpack.c.bf16 %v1772_v45, %v1772_v45 }
 0x125   : > { %v1228_v48 = vpop.f32.mrb[20].mxu0  ;;  %v1484_v49 = vpop.f32.mrb[20].mxu1 }
 0x126   : > { %2349 = vst.msk [vmem:[%s3479_s16 + $0x24] sm:$0xf] %vm2339_vm1, %v2876_v46  ;;  %2413 = vst.msk [vmem:[%s3479_s16 + $0x124] sm:$0xf] %vm2339_vm1, %v2940_v47  ;;  %v1229_v50 = vadd.f32 %v3463_v56, %v1228_v48  ;;  %v1485_v51 = vadd.f32 %v3463_v56, %v1484_v49  ;;  %v1230_v52 = vpop.f32.mrb[21].mxu0  ;;  %v1486_v53 = vpop.f32.mrb[21].mxu1 }
 0x127   : > { %v1231_v54 = vpop.f32.mrb[22].mxu0  ;;  %v1487_v55 = vpop.f32.mrb[22].mxu1 }
 0x128   : > { %v1709_v57 = vmax.f32 %v1229_v50, 0.0  ;;  %v1773_v58 = vmax.f32 %v1485_v51, 0.0  ;;  %v1232_v59 = vadd.f32 %v3463_v56, %v1231_v54  ;;  %v1488_v60 = vadd.f32 %v3463_v56, %v1487_v55  ;;  %v1233_v61 = vpop.f32.mrb[23].mxu0  ;;  %v1489_v62 = vpop.f32.mrb[23].mxu1 }
 0x12a   : > { %v2877_v63 = vpack.c.bf16 %v1709_v57, %v1709_v57  ;;  %v2941_v0 = vpack.c.bf16 %v1773_v58, %v1773_v58  ;;  %v1710_v1 = vmax.f32 %v1232_v59, 0.0  ;;  %v1774_v2 = vmax.f32 %v1488_v60, 0.0 }
 0x12c   : > { %2350 = vst.msk [vmem:[%s3479_s16 + $0x28] sm:$0xf] %vm2339_vm1, %v2877_v63  ;;  %2414 = vst.msk [vmem:[%s3479_s16 + $0x128] sm:$0xf] %vm2339_vm1, %v2941_v0  ;;  %v2878_v3 = vpack.c.bf16 %v1710_v1, %v1710_v1  ;;  %v2942_v4 = vpack.c.bf16 %v1774_v2, %v1774_v2 }
 0x12d   : > { %v1236_v5 = vpop.f32.mrb[24].mxu0  ;;  %v1492_v6 = vpop.f32.mrb[24].mxu1 }
 0x12e   : > { %2351 = vst.msk [vmem:[%s3479_s16 + $0x2c] sm:$0xf] %vm2339_vm1, %v2878_v3  ;;  %2415 = vst.msk [vmem:[%s3479_s16 + $0x12c] sm:$0xf] %vm2339_vm1, %v2942_v4  ;;  %v1237_v7 = vadd.f32 %v3463_v56, %v1236_v5  ;;  %v1493_v8 = vadd.f32 %v3463_v56, %v1492_v6  ;;  %v1238_v9 = vpop.f32.mrb[25].mxu0  ;;  %v1494_v10 = vpop.f32.mrb[25].mxu1 }
 0x12f   : > { %v1239_v11 = vpop.f32.mrb[26].mxu0  ;;  %v1495_v12 = vpop.f32.mrb[26].mxu1 }
 0x130   : > { %v1711_v13 = vmax.f32 %v1237_v7, 0.0  ;;  %v1775_v14 = vmax.f32 %v1493_v8, 0.0  ;;  %v1240_v15 = vadd.f32 %v3463_v56, %v1239_v11  ;;  %v1496_v16 = vadd.f32 %v3463_v56, %v1495_v12  ;;  %v1241_v17 = vpop.f32.mrb[27].mxu0  ;;  %v1497_v18 = vpop.f32.mrb[27].mxu1 }
 0x132   : > { %v2879_v19 = vpack.c.bf16 %v1711_v13, %v1711_v13  ;;  %v2943_v20 = vpack.c.bf16 %v1775_v14, %v1775_v14  ;;  %v1712_v21 = vmax.f32 %v1240_v15, 0.0  ;;  %v1776_v22 = vmax.f32 %v1496_v16, 0.0 }
 0x134   : > { %2352 = vst.msk [vmem:[%s3479_s16 + $0x30] sm:$0xf] %vm2339_vm1, %v2879_v19  ;;  %2416 = vst.msk [vmem:[%s3479_s16 + $0x130] sm:$0xf] %vm2339_vm1, %v2943_v20  ;;  %v2880_v23 = vpack.c.bf16 %v1712_v21, %v1712_v21  ;;  %v2944_v24 = vpack.c.bf16 %v1776_v22, %v1776_v22 }
 0x135   : > { %v1244_v25 = vpop.f32.mrb[28].mxu0  ;;  %v1500_v26 = vpop.f32.mrb[28].mxu1 }
 0x136   : > { %2353 = vst.msk [vmem:[%s3479_s16 + $0x34] sm:$0xf] %vm2339_vm1, %v2880_v23  ;;  %2417 = vst.msk [vmem:[%s3479_s16 + $0x134] sm:$0xf] %vm2339_vm1, %v2944_v24  ;;  %v1245_v27 = vadd.f32 %v3463_v56, %v1244_v25  ;;  %v1501_v28 = vadd.f32 %v3463_v56, %v1500_v26  ;;  %v1246_v29 = vpop.f32.mrb[29].mxu0  ;;  %v1502_v30 = vpop.f32.mrb[29].mxu1 }
 0x137   : > { %v1247_v31 = vpop.f32.mrb[30].mxu0  ;;  %v1503_v32 = vpop.f32.mrb[30].mxu1 }
 0x138   : > { %v1713_v33 = vmax.f32 %v1245_v27, 0.0  ;;  %v1777_v34 = vmax.f32 %v1501_v28, 0.0  ;;  %v1248_v35 = vadd.f32 %v3463_v56, %v1247_v31  ;;  %v1504_v36 = vadd.f32 %v3463_v56, %v1503_v32  ;;  %v1249_v37 = vpop.f32.mrb[31].mxu0  ;;  %v1505_v38 = vpop.f32.mrb[31].mxu1 }
 0x13a   : > { %v2881_v39 = vpack.c.bf16 %v1713_v33, %v1713_v33  ;;  %v2945_v40 = vpack.c.bf16 %v1777_v34, %v1777_v34  ;;  %v1714_v41 = vmax.f32 %v1248_v35, 0.0  ;;  %v1778_v42 = vmax.f32 %v1504_v36, 0.0 }
 0x13c   : > { %2354 = vst.msk [vmem:[%s3479_s16 + $0x38] sm:$0xf] %vm2339_vm1, %v2881_v39  ;;  %2418 = vst.msk [vmem:[%s3479_s16 + $0x138] sm:$0xf] %vm2339_vm1, %v2945_v40  ;;  %v2882_v43 = vpack.c.bf16 %v1714_v41, %v1714_v41  ;;  %v2946_v44 = vpack.c.bf16 %v1778_v42, %v1778_v42 }
 0x13d   : > { %v1252_v45 = vpop.f32.mrb[32].mxu0  ;;  %v1508_v46 = vpop.f32.mrb[32].mxu1 }
 0x13e   : > { %2355 = vst.msk [vmem:[%s3479_s16 + $0x3c] sm:$0xf] %vm2339_vm1, %v2882_v43  ;;  %2419 = vst.msk [vmem:[%s3479_s16 + $0x13c] sm:$0xf] %vm2339_vm1, %v2946_v44  ;;  %v1253_v47 = vadd.f32 %v3463_v56, %v1252_v45  ;;  %v1509_v48 = vadd.f32 %v3463_v56, %v1508_v46  ;;  %v1254_v49 = vpop.f32.mrb[33].mxu0  ;;  %v1510_v50 = vpop.f32.mrb[33].mxu1 }
 0x13f   : > { %v1255_v51 = vpop.f32.mrb[34].mxu0  ;;  %v1511_v52 = vpop.f32.mrb[34].mxu1 }
 0x140   : > { %v1715_v53 = vmax.f32 %v1253_v47, 0.0  ;;  %v1779_v54 = vmax.f32 %v1509_v48, 0.0  ;;  %v1256_v55 = vadd.f32 %v3463_v56, %v1255_v51  ;;  %v1512_v57 = vadd.f32 %v3463_v56, %v1511_v52  ;;  %v1257_v58 = vpop.f32.mrb[35].mxu0  ;;  %v1513_v59 = vpop.f32.mrb[35].mxu1 }
 0x142   : > { %v2883_v60 = vpack.c.bf16 %v1715_v53, %v1715_v53  ;;  %v2947_v61 = vpack.c.bf16 %v1779_v54, %v1779_v54  ;;  %v1716_v62 = vmax.f32 %v1256_v55, 0.0  ;;  %v1780_v63 = vmax.f32 %v1512_v57, 0.0 }
 0x144   : > { %2356 = vst.msk [vmem:[%s3479_s16 + $0x40] sm:$0xf] %vm2339_vm1, %v2883_v60  ;;  %2420 = vst.msk [vmem:[%s3479_s16 + $0x140] sm:$0xf] %vm2339_vm1, %v2947_v61  ;;  %v2884_v0 = vpack.c.bf16 %v1716_v62, %v1716_v62  ;;  %v2948_v1 = vpack.c.bf16 %v1780_v63, %v1780_v63 }
 0x145   : > { %v1260_v2 = vpop.f32.mrb[36].mxu0  ;;  %v1516_v3 = vpop.f32.mrb[36].mxu1 }
 0x146   : > { %2357 = vst.msk [vmem:[%s3479_s16 + $0x44] sm:$0xf] %vm2339_vm1, %v2884_v0  ;;  %2421 = vst.msk [vmem:[%s3479_s16 + $0x144] sm:$0xf] %vm2339_vm1, %v2948_v1  ;;  %v1261_v4 = vadd.f32 %v3463_v56, %v1260_v2  ;;  %v1517_v5 = vadd.f32 %v3463_v56, %v1516_v3  ;;  %v1262_v6 = vpop.f32.mrb[37].mxu0  ;;  %v1518_v7 = vpop.f32.mrb[37].mxu1 }
 0x147   : > { %v1263_v8 = vpop.f32.mrb[38].mxu0  ;;  %v1519_v9 = vpop.f32.mrb[38].mxu1 }
 0x148   : > { %v1717_v10 = vmax.f32 %v1261_v4, 0.0  ;;  %v1781_v11 = vmax.f32 %v1517_v5, 0.0  ;;  %v1264_v12 = vadd.f32 %v3463_v56, %v1263_v8  ;;  %v1520_v13 = vadd.f32 %v3463_v56, %v1519_v9  ;;  %v1265_v14 = vpop.f32.mrb[39].mxu0  ;;  %v1521_v15 = vpop.f32.mrb[39].mxu1 }
 0x14a   : > { %v2885_v16 = vpack.c.bf16 %v1717_v10, %v1717_v10  ;;  %v2949_v17 = vpack.c.bf16 %v1781_v11, %v1781_v11  ;;  %v1718_v18 = vmax.f32 %v1264_v12, 0.0  ;;  %v1782_v19 = vmax.f32 %v1520_v13, 0.0 }
 0x14c   : > { %2358 = vst.msk [vmem:[%s3479_s16 + $0x48] sm:$0xf] %vm2339_vm1, %v2885_v16  ;;  %2422 = vst.msk [vmem:[%s3479_s16 + $0x148] sm:$0xf] %vm2339_vm1, %v2949_v17  ;;  %v2886_v20 = vpack.c.bf16 %v1718_v18, %v1718_v18  ;;  %v2950_v21 = vpack.c.bf16 %v1782_v19, %v1782_v19 }
 0x14d   : > { %v1268_v22 = vpop.f32.mrb[40].mxu0  ;;  %v1524_v23 = vpop.f32.mrb[40].mxu1 }
 0x14e   : > { %2359 = vst.msk [vmem:[%s3479_s16 + $0x4c] sm:$0xf] %vm2339_vm1, %v2886_v20  ;;  %2423 = vst.msk [vmem:[%s3479_s16 + $0x14c] sm:$0xf] %vm2339_vm1, %v2950_v21  ;;  %v1269_v24 = vadd.f32 %v3463_v56, %v1268_v22  ;;  %v1525_v25 = vadd.f32 %v3463_v56, %v1524_v23  ;;  %v1270_v26 = vpop.f32.mrb[41].mxu0  ;;  %v1526_v27 = vpop.f32.mrb[41].mxu1 }
 0x14f   : > { %v1271_v28 = vpop.f32.mrb[42].mxu0  ;;  %v1527_v29 = vpop.f32.mrb[42].mxu1 }
 0x150   : > { %v1719_v30 = vmax.f32 %v1269_v24, 0.0  ;;  %v1783_v31 = vmax.f32 %v1525_v25, 0.0  ;;  %v1272_v32 = vadd.f32 %v3463_v56, %v1271_v28  ;;  %v1528_v33 = vadd.f32 %v3463_v56, %v1527_v29  ;;  %v1273_v34 = vpop.f32.mrb[43].mxu0  ;;  %v1529_v35 = vpop.f32.mrb[43].mxu1 }
 0x152   : > { %v2887_v36 = vpack.c.bf16 %v1719_v30, %v1719_v30  ;;  %v2951_v37 = vpack.c.bf16 %v1783_v31, %v1783_v31  ;;  %v1720_v38 = vmax.f32 %v1272_v32, 0.0  ;;  %v1784_v39 = vmax.f32 %v1528_v33, 0.0 }
 0x154   : > { %2360 = vst.msk [vmem:[%s3479_s16 + $0x50] sm:$0xf] %vm2339_vm1, %v2887_v36  ;;  %2424 = vst.msk [vmem:[%s3479_s16 + $0x150] sm:$0xf] %vm2339_vm1, %v2951_v37  ;;  %v2888_v40 = vpack.c.bf16 %v1720_v38, %v1720_v38  ;;  %v2952_v41 = vpack.c.bf16 %v1784_v39, %v1784_v39 }
 0x155   : > { %v1276_v42 = vpop.f32.mrb[44].mxu0  ;;  %v1532_v43 = vpop.f32.mrb[44].mxu1 }
 0x156   : > { %2361 = vst.msk [vmem:[%s3479_s16 + $0x54] sm:$0xf] %vm2339_vm1, %v2888_v40  ;;  %2425 = vst.msk [vmem:[%s3479_s16 + $0x154] sm:$0xf] %vm2339_vm1, %v2952_v41  ;;  %v1277_v44 = vadd.f32 %v3463_v56, %v1276_v42  ;;  %v1533_v45 = vadd.f32 %v3463_v56, %v1532_v43  ;;  %v1278_v46 = vpop.f32.mrb[45].mxu0  ;;  %v1534_v47 = vpop.f32.mrb[45].mxu1 }
 0x157   : > { %v1279_v48 = vpop.f32.mrb[46].mxu0  ;;  %v1535_v49 = vpop.f32.mrb[46].mxu1 }
 0x158   : > { %v1721_v50 = vmax.f32 %v1277_v44, 0.0  ;;  %v1785_v51 = vmax.f32 %v1533_v45, 0.0  ;;  %v1280_v52 = vadd.f32 %v3463_v56, %v1279_v48  ;;  %v1536_v53 = vadd.f32 %v3463_v56, %v1535_v49  ;;  %v1281_v54 = vpop.f32.mrb[47].mxu0  ;;  %v1537_v55 = vpop.f32.mrb[47].mxu1 }
 0x15a   : > { %v2889_v57 = vpack.c.bf16 %v1721_v50, %v1721_v50  ;;  %v2953_v58 = vpack.c.bf16 %v1785_v51, %v1785_v51  ;;  %v1722_v59 = vmax.f32 %v1280_v52, 0.0  ;;  %v1786_v60 = vmax.f32 %v1536_v53, 0.0 }
 0x15c   : > { %2362 = vst.msk [vmem:[%s3479_s16 + $0x58] sm:$0xf] %vm2339_vm1, %v2889_v57  ;;  %2426 = vst.msk [vmem:[%s3479_s16 + $0x158] sm:$0xf] %vm2339_vm1, %v2953_v58  ;;  %v2890_v61 = vpack.c.bf16 %v1722_v59, %v1722_v59  ;;  %v2954_v62 = vpack.c.bf16 %v1786_v60, %v1786_v60 }
 0x15d   : > { %v1284_v63 = vpop.f32.mrb[48].mxu0  ;;  %v1540_v0 = vpop.f32.mrb[48].mxu1 }
 0x15e   : > { %2363 = vst.msk [vmem:[%s3479_s16 + $0x5c] sm:$0xf] %vm2339_vm1, %v2890_v61  ;;  %2427 = vst.msk [vmem:[%s3479_s16 + $0x15c] sm:$0xf] %vm2339_vm1, %v2954_v62  ;;  %v1285_v1 = vadd.f32 %v3463_v56, %v1284_v63  ;;  %v1541_v2 = vadd.f32 %v3463_v56, %v1540_v0  ;;  %v1286_v3 = vpop.f32.mrb[49].mxu0  ;;  %v1542_v4 = vpop.f32.mrb[49].mxu1 }
 0x15f   : > { %v1287_v5 = vpop.f32.mrb[50].mxu0  ;;  %v1543_v6 = vpop.f32.mrb[50].mxu1 }
 0x160   : > { %v1723_v7 = vmax.f32 %v1285_v1, 0.0  ;;  %v1787_v8 = vmax.f32 %v1541_v2, 0.0  ;;  %v1288_v9 = vadd.f32 %v3463_v56, %v1287_v5  ;;  %v1544_v10 = vadd.f32 %v3463_v56, %v1543_v6  ;;  %v1289_v11 = vpop.f32.mrb[51].mxu0  ;;  %v1545_v12 = vpop.f32.mrb[51].mxu1 }
 0x162   : > { %v2891_v13 = vpack.c.bf16 %v1723_v7, %v1723_v7  ;;  %v2955_v14 = vpack.c.bf16 %v1787_v8, %v1787_v8  ;;  %v1724_v15 = vmax.f32 %v1288_v9, 0.0  ;;  %v1788_v16 = vmax.f32 %v1544_v10, 0.0 }
 0x164   : > { %2364 = vst.msk [vmem:[%s3479_s16 + $0x60] sm:$0xf] %vm2339_vm1, %v2891_v13  ;;  %2428 = vst.msk [vmem:[%s3479_s16 + $0x160] sm:$0xf] %vm2339_vm1, %v2955_v14  ;;  %v2892_v17 = vpack.c.bf16 %v1724_v15, %v1724_v15  ;;  %v2956_v18 = vpack.c.bf16 %v1788_v16, %v1788_v16 }
 0x165   : > { %v1292_v19 = vpop.f32.mrb[52].mxu0  ;;  %v1548_v20 = vpop.f32.mrb[52].mxu1 }
 0x166   : > { %2365 = vst.msk [vmem:[%s3479_s16 + $0x64] sm:$0xf] %vm2339_vm1, %v2892_v17  ;;  %2429 = vst.msk [vmem:[%s3479_s16 + $0x164] sm:$0xf] %vm2339_vm1, %v2956_v18  ;;  %v1293_v21 = vadd.f32 %v3463_v56, %v1292_v19  ;;  %v1549_v22 = vadd.f32 %v3463_v56, %v1548_v20  ;;  %v1294_v23 = vpop.f32.mrb[53].mxu0  ;;  %v1550_v24 = vpop.f32.mrb[53].mxu1 }
 0x167   : > { %v1295_v25 = vpop.f32.mrb[54].mxu0  ;;  %v1551_v26 = vpop.f32.mrb[54].mxu1 }
 0x168   : > { %v1725_v27 = vmax.f32 %v1293_v21, 0.0  ;;  %v1789_v28 = vmax.f32 %v1549_v22, 0.0  ;;  %v1296_v29 = vadd.f32 %v3463_v56, %v1295_v25  ;;  %v1552_v30 = vadd.f32 %v3463_v56, %v1551_v26  ;;  %v1297_v31 = vpop.f32.mrb[55].mxu0  ;;  %v1553_v32 = vpop.f32.mrb[55].mxu1 }
 0x16a   : > { %v2893_v33 = vpack.c.bf16 %v1725_v27, %v1725_v27  ;;  %v2957_v34 = vpack.c.bf16 %v1789_v28, %v1789_v28  ;;  %v1726_v35 = vmax.f32 %v1296_v29, 0.0  ;;  %v1790_v36 = vmax.f32 %v1552_v30, 0.0 }
 0x16c   : > { %2366 = vst.msk [vmem:[%s3479_s16 + $0x68] sm:$0xf] %vm2339_vm1, %v2893_v33  ;;  %2430 = vst.msk [vmem:[%s3479_s16 + $0x168] sm:$0xf] %vm2339_vm1, %v2957_v34  ;;  %v2894_v37 = vpack.c.bf16 %v1726_v35, %v1726_v35  ;;  %v2958_v38 = vpack.c.bf16 %v1790_v36, %v1790_v36 }
 0x16d   : > { %v1300_v39 = vpop.f32.mrb[56].mxu0  ;;  %v1556_v40 = vpop.f32.mrb[56].mxu1 }
 0x16e   : > { %2367 = vst.msk [vmem:[%s3479_s16 + $0x6c] sm:$0xf] %vm2339_vm1, %v2894_v37  ;;  %2431 = vst.msk [vmem:[%s3479_s16 + $0x16c] sm:$0xf] %vm2339_vm1, %v2958_v38  ;;  %v1301_v41 = vadd.f32 %v3463_v56, %v1300_v39  ;;  %v1557_v42 = vadd.f32 %v3463_v56, %v1556_v40  ;;  %v1302_v43 = vpop.f32.mrb[57].mxu0  ;;  %v1558_v44 = vpop.f32.mrb[57].mxu1 }
 0x16f   : > { %v1303_v45 = vpop.f32.mrb[58].mxu0  ;;  %v1559_v46 = vpop.f32.mrb[58].mxu1 }
 0x170   : > { %v1727_v47 = vmax.f32 %v1301_v41, 0.0  ;;  %v1791_v48 = vmax.f32 %v1557_v42, 0.0  ;;  %v1304_v49 = vadd.f32 %v3463_v56, %v1303_v45  ;;  %v1560_v50 = vadd.f32 %v3463_v56, %v1559_v46  ;;  %v1305_v51 = vpop.f32.mrb[59].mxu0  ;;  %v1561_v52 = vpop.f32.mrb[59].mxu1 }
 0x172   : > { %v2895_v53 = vpack.c.bf16 %v1727_v47, %v1727_v47  ;;  %v2959_v54 = vpack.c.bf16 %v1791_v48, %v1791_v48  ;;  %v1728_v55 = vmax.f32 %v1304_v49, 0.0  ;;  %v1792_v57 = vmax.f32 %v1560_v50, 0.0 }
 0x174   : > { %2368 = vst.msk [vmem:[%s3479_s16 + $0x70] sm:$0xf] %vm2339_vm1, %v2895_v53  ;;  %2432 = vst.msk [vmem:[%s3479_s16 + $0x170] sm:$0xf] %vm2339_vm1, %v2959_v54  ;;  %v2896_v58 = vpack.c.bf16 %v1728_v55, %v1728_v55  ;;  %v2960_v59 = vpack.c.bf16 %v1792_v57, %v1792_v57 }
 0x175   : > { %v1308_v60 = vpop.f32.mrb[60].mxu0  ;;  %v1564_v61 = vpop.f32.mrb[60].mxu1 }
 0x176   : > { %2369 = vst.msk [vmem:[%s3479_s16 + $0x74] sm:$0xf] %vm2339_vm1, %v2896_v58  ;;  %2433 = vst.msk [vmem:[%s3479_s16 + $0x174] sm:$0xf] %vm2339_vm1, %v2960_v59  ;;  %v1309_v62 = vadd.f32 %v3463_v56, %v1308_v60  ;;  %v1565_v63 = vadd.f32 %v3463_v56, %v1564_v61  ;;  %v1310_v0 = vpop.f32.mrb[61].mxu0  ;;  %v1566_v1 = vpop.f32.mrb[61].mxu1 }
 0x177   : > { %v1311_v2 = vpop.f32.mrb[62].mxu0  ;;  %v1567_v3 = vpop.f32.mrb[62].mxu1 }
 0x178   : > { %v1729_v4 = vmax.f32 %v1309_v62, 0.0  ;;  %v1793_v5 = vmax.f32 %v1565_v63, 0.0  ;;  %v1312_v6 = vadd.f32 %v3463_v56, %v1311_v2  ;;  %v1568_v7 = vadd.f32 %v3463_v56, %v1567_v3  ;;  %v1313_v8 = vpop.f32.mrb[63].mxu0  ;;  %v1569_v9 = vpop.f32.mrb[63].mxu1 }
 0x17a   : > { %v2897_v10 = vpack.c.bf16 %v1729_v4, %v1729_v4  ;;  %v2961_v11 = vpack.c.bf16 %v1793_v5, %v1793_v5  ;;  %v1730_v12 = vmax.f32 %v1312_v6, 0.0  ;;  %v1794_v13 = vmax.f32 %v1568_v7, 0.0 }
 0x17c   : > { %2370 = vst.msk [vmem:[%s3479_s16 + $0x78] sm:$0xf] %vm2339_vm1, %v2897_v10  ;;  %2434 = vst.msk [vmem:[%s3479_s16 + $0x178] sm:$0xf] %vm2339_vm1, %v2961_v11  ;;  %v2898_v14 = vpack.c.bf16 %v1730_v12, %v1730_v12  ;;  %v2962_v15 = vpack.c.bf16 %v1794_v13, %v1794_v13 }
 0x17d   : > { %v1316_v16 = vpop.f32.mrb[64].mxu0  ;;  %v1572_v17 = vpop.f32.mrb[64].mxu1 }
 0x17e   : > { %2371 = vst.msk [vmem:[%s3479_s16 + $0x7c] sm:$0xf] %vm2339_vm1, %v2898_v14  ;;  %2435 = vst.msk [vmem:[%s3479_s16 + $0x17c] sm:$0xf] %vm2339_vm1, %v2962_v15  ;;  %v1317_v18 = vadd.f32 %v3463_v56, %v1316_v16  ;;  %v1573_v19 = vadd.f32 %v3463_v56, %v1572_v17  ;;  %v1318_v20 = vpop.f32.mrb[65].mxu0  ;;  %v1574_v21 = vpop.f32.mrb[65].mxu1 }
 0x17f   : > { %v1319_v22 = vpop.f32.mrb[66].mxu0  ;;  %v1575_v23 = vpop.f32.mrb[66].mxu1 }
 0x180   : > { %v1731_v24 = vmax.f32 %v1317_v18, 0.0  ;;  %v1795_v25 = vmax.f32 %v1573_v19, 0.0  ;;  %v1320_v26 = vadd.f32 %v3463_v56, %v1319_v22  ;;  %v1576_v27 = vadd.f32 %v3463_v56, %v1575_v23  ;;  %v1321_v28 = vpop.f32.mrb[67].mxu0  ;;  %v1577_v29 = vpop.f32.mrb[67].mxu1 }
 0x182   : > { %v2899_v30 = vpack.c.bf16 %v1731_v24, %v1731_v24  ;;  %v2963_v31 = vpack.c.bf16 %v1795_v25, %v1795_v25  ;;  %v1732_v32 = vmax.f32 %v1320_v26, 0.0  ;;  %v1796_v33 = vmax.f32 %v1576_v27, 0.0 }
 0x184   : > { %2372 = vst.msk [vmem:[%s3479_s16 + $0x80] sm:$0xf] %vm2339_vm1, %v2899_v30  ;;  %2436 = vst.msk [vmem:[%s3479_s16 + $0x180] sm:$0xf] %vm2339_vm1, %v2963_v31  ;;  %v2900_v34 = vpack.c.bf16 %v1732_v32, %v1732_v32  ;;  %v2964_v35 = vpack.c.bf16 %v1796_v33, %v1796_v33 }
 0x185   : > { %v1324_v36 = vpop.f32.mrb[68].mxu0  ;;  %v1580_v37 = vpop.f32.mrb[68].mxu1 }
 0x186   : > { %2373 = vst.msk [vmem:[%s3479_s16 + $0x84] sm:$0xf] %vm2339_vm1, %v2900_v34  ;;  %2437 = vst.msk [vmem:[%s3479_s16 + $0x184] sm:$0xf] %vm2339_vm1, %v2964_v35  ;;  %v1325_v38 = vadd.f32 %v3463_v56, %v1324_v36  ;;  %v1581_v39 = vadd.f32 %v3463_v56, %v1580_v37  ;;  %v1326_v40 = vpop.f32.mrb[69].mxu0  ;;  %v1582_v41 = vpop.f32.mrb[69].mxu1 }
 0x187   : > { %v1327_v42 = vpop.f32.mrb[70].mxu0  ;;  %v1583_v43 = vpop.f32.mrb[70].mxu1 }
 0x188   : > { %v1733_v44 = vmax.f32 %v1325_v38, 0.0  ;;  %v1797_v45 = vmax.f32 %v1581_v39, 0.0  ;;  %v1328_v46 = vadd.f32 %v3463_v56, %v1327_v42  ;;  %v1584_v47 = vadd.f32 %v3463_v56, %v1583_v43  ;;  %v1329_v48 = vpop.f32.mrb[71].mxu0  ;;  %v1585_v49 = vpop.f32.mrb[71].mxu1 }
 0x18a   : > { %v2901_v50 = vpack.c.bf16 %v1733_v44, %v1733_v44  ;;  %v2965_v51 = vpack.c.bf16 %v1797_v45, %v1797_v45  ;;  %v1734_v52 = vmax.f32 %v1328_v46, 0.0  ;;  %v1798_v53 = vmax.f32 %v1584_v47, 0.0 }
 0x18c   : > { %2374 = vst.msk [vmem:[%s3479_s16 + $0x88] sm:$0xf] %vm2339_vm1, %v2901_v50  ;;  %2438 = vst.msk [vmem:[%s3479_s16 + $0x188] sm:$0xf] %vm2339_vm1, %v2965_v51  ;;  %v2902_v54 = vpack.c.bf16 %v1734_v52, %v1734_v52  ;;  %v2966_v55 = vpack.c.bf16 %v1798_v53, %v1798_v53 }
 0x18d   : > { %v1332_v57 = vpop.f32.mrb[72].mxu0  ;;  %v1588_v58 = vpop.f32.mrb[72].mxu1 }
 0x18e   : > { %2375 = vst.msk [vmem:[%s3479_s16 + $0x8c] sm:$0xf] %vm2339_vm1, %v2902_v54  ;;  %2439 = vst.msk [vmem:[%s3479_s16 + $0x18c] sm:$0xf] %vm2339_vm1, %v2966_v55  ;;  %v1333_v59 = vadd.f32 %v3463_v56, %v1332_v57  ;;  %v1589_v60 = vadd.f32 %v3463_v56, %v1588_v58  ;;  %v1334_v61 = vpop.f32.mrb[73].mxu0  ;;  %v1590_v62 = vpop.f32.mrb[73].mxu1 }
 0x18f   : > { %v1335_v63 = vpop.f32.mrb[74].mxu0  ;;  %v1591_v0 = vpop.f32.mrb[74].mxu1 }
 0x190   : > { %v1735_v1 = vmax.f32 %v1333_v59, 0.0  ;;  %v1799_v2 = vmax.f32 %v1589_v60, 0.0  ;;  %v1336_v3 = vadd.f32 %v3463_v56, %v1335_v63  ;;  %v1592_v4 = vadd.f32 %v3463_v56, %v1591_v0  ;;  %v1337_v5 = vpop.f32.mrb[75].mxu0  ;;  %v1593_v6 = vpop.f32.mrb[75].mxu1 }
 0x192   : > { %v2903_v7 = vpack.c.bf16 %v1735_v1, %v1735_v1  ;;  %v2967_v8 = vpack.c.bf16 %v1799_v2, %v1799_v2  ;;  %v1736_v9 = vmax.f32 %v1336_v3, 0.0  ;;  %v1800_v10 = vmax.f32 %v1592_v4, 0.0 }
 0x194   : > { %2376 = vst.msk [vmem:[%s3479_s16 + $0x90] sm:$0xf] %vm2339_vm1, %v2903_v7  ;;  %2440 = vst.msk [vmem:[%s3479_s16 + $0x190] sm:$0xf] %vm2339_vm1, %v2967_v8  ;;  %v2904_v11 = vpack.c.bf16 %v1736_v9, %v1736_v9  ;;  %v2968_v12 = vpack.c.bf16 %v1800_v10, %v1800_v10 }
 0x195   : > { %v1340_v13 = vpop.f32.mrb[76].mxu0  ;;  %v1596_v14 = vpop.f32.mrb[76].mxu1 }
 0x196   : > { %2377 = vst.msk [vmem:[%s3479_s16 + $0x94] sm:$0xf] %vm2339_vm1, %v2904_v11  ;;  %2441 = vst.msk [vmem:[%s3479_s16 + $0x194] sm:$0xf] %vm2339_vm1, %v2968_v12  ;;  %v1341_v15 = vadd.f32 %v3463_v56, %v1340_v13  ;;  %v1597_v16 = vadd.f32 %v3463_v56, %v1596_v14  ;;  %v1342_v17 = vpop.f32.mrb[77].mxu0  ;;  %v1598_v18 = vpop.f32.mrb[77].mxu1 }
 0x197   : > { %v1343_v19 = vpop.f32.mrb[78].mxu0  ;;  %v1599_v20 = vpop.f32.mrb[78].mxu1 }
 0x198   : > { %v1737_v21 = vmax.f32 %v1341_v15, 0.0  ;;  %v1801_v22 = vmax.f32 %v1597_v16, 0.0  ;;  %v1344_v23 = vadd.f32 %v3463_v56, %v1343_v19  ;;  %v1600_v24 = vadd.f32 %v3463_v56, %v1599_v20  ;;  %v1345_v25 = vpop.f32.mrb[79].mxu0  ;;  %v1601_v26 = vpop.f32.mrb[79].mxu1  ;;  %v3742_v56 = vld [vmem:[%s3893_s2] ss:$0 sm:$0xff] }
 0x19a   : > { %v2905_v27 = vpack.c.bf16 %v1737_v21, %v1737_v21  ;;  %v2969_v28 = vpack.c.bf16 %v1801_v22, %v1801_v22  ;;  %v1738_v29 = vmax.f32 %v1344_v23, 0.0  ;;  %v1802_v30 = vmax.f32 %v1600_v24, 0.0 }
 0x19c   : > { %2378 = vst.msk [vmem:[%s3479_s16 + $0x98] sm:$0xf] %vm2339_vm1, %v2905_v27  ;;  %2442 = vst.msk [vmem:[%s3479_s16 + $0x198] sm:$0xf] %vm2339_vm1, %v2969_v28  ;;  %v2906_v31 = vpack.c.bf16 %v1738_v29, %v1738_v29  ;;  %v2970_v32 = vpack.c.bf16 %v1802_v30, %v1802_v30 }
 0x19d   : > { %v1348_v33 = vpop.f32.mrb[80].mxu0  ;;  %v1604_v34 = vpop.f32.mrb[80].mxu1 }
 0x19e   : > { %2379 = vst.msk [vmem:[%s3479_s16 + $0x9c] sm:$0xf] %vm2339_vm1, %v2906_v31  ;;  %2443 = vst.msk [vmem:[%s3479_s16 + $0x19c] sm:$0xf] %vm2339_vm1, %v2970_v32  ;;  %v1349_v35 = vadd.f32 %v3742_v56, %v1348_v33  ;;  %v1605_v36 = vadd.f32 %v3742_v56, %v1604_v34  ;;  %v1350_v37 = vpop.f32.mrb[81].mxu0  ;;  %v1606_v38 = vpop.f32.mrb[81].mxu1 }
 0x19f   : > { %v1351_v39 = vpop.f32.mrb[82].mxu0  ;;  %v1607_v40 = vpop.f32.mrb[82].mxu1 }
 0x1a0   : > { %v1739_v41 = vmax.f32 %v1349_v35, 0.0  ;;  %v1803_v42 = vmax.f32 %v1605_v36, 0.0  ;;  %v1352_v43 = vadd.f32 %v3742_v56, %v1351_v39  ;;  %v1608_v44 = vadd.f32 %v3742_v56, %v1607_v40  ;;  %v1353_v45 = vpop.f32.mrb[83].mxu0  ;;  %v1609_v46 = vpop.f32.mrb[83].mxu1 }
 0x1a2   : > { %v2907_v47 = vpack.c.bf16 %v1739_v41, %v1739_v41  ;;  %v2971_v48 = vpack.c.bf16 %v1803_v42, %v1803_v42  ;;  %v1740_v49 = vmax.f32 %v1352_v43, 0.0  ;;  %v1804_v50 = vmax.f32 %v1608_v44, 0.0 }
 0x1a4   : > { %2380 = vst.msk [vmem:[%s3479_s16 + $0xa0] sm:$0xf] %vm2339_vm1, %v2907_v47  ;;  %2444 = vst.msk [vmem:[%s3479_s16 + $0x1a0] sm:$0xf] %vm2339_vm1, %v2971_v48  ;;  %v2908_v51 = vpack.c.bf16 %v1740_v49, %v1740_v49  ;;  %v2972_v52 = vpack.c.bf16 %v1804_v50, %v1804_v50 }
 0x1a5   : > { %v1356_v53 = vpop.f32.mrb[84].mxu0  ;;  %v1612_v54 = vpop.f32.mrb[84].mxu1 }
 0x1a6   : > { %2381 = vst.msk [vmem:[%s3479_s16 + $0xa4] sm:$0xf] %vm2339_vm1, %v2908_v51  ;;  %2445 = vst.msk [vmem:[%s3479_s16 + $0x1a4] sm:$0xf] %vm2339_vm1, %v2972_v52  ;;  %v1357_v55 = vadd.f32 %v3742_v56, %v1356_v53  ;;  %v1613_v57 = vadd.f32 %v3742_v56, %v1612_v54  ;;  %v1358_v58 = vpop.f32.mrb[85].mxu0  ;;  %v1614_v59 = vpop.f32.mrb[85].mxu1 }
 0x1a7   : > { %v1359_v60 = vpop.f32.mrb[86].mxu0  ;;  %v1615_v61 = vpop.f32.mrb[86].mxu1 }
 0x1a8   : > { %v1741_v62 = vmax.f32 %v1357_v55, 0.0  ;;  %v1805_v63 = vmax.f32 %v1613_v57, 0.0  ;;  %v1360_v0 = vadd.f32 %v3742_v56, %v1359_v60  ;;  %v1616_v1 = vadd.f32 %v3742_v56, %v1615_v61  ;;  %v1361_v2 = vpop.f32.mrb[87].mxu0  ;;  %v1617_v3 = vpop.f32.mrb[87].mxu1 }
 0x1aa   : > { %v2909_v4 = vpack.c.bf16 %v1741_v62, %v1741_v62  ;;  %v2973_v5 = vpack.c.bf16 %v1805_v63, %v1805_v63  ;;  %v1742_v6 = vmax.f32 %v1360_v0, 0.0  ;;  %v1806_v7 = vmax.f32 %v1616_v1, 0.0 }
 0x1ac   : > { %2382 = vst.msk [vmem:[%s3479_s16 + $0xa8] sm:$0xf] %vm2339_vm1, %v2909_v4  ;;  %2446 = vst.msk [vmem:[%s3479_s16 + $0x1a8] sm:$0xf] %vm2339_vm1, %v2973_v5  ;;  %v2910_v8 = vpack.c.bf16 %v1742_v6, %v1742_v6  ;;  %v2974_v9 = vpack.c.bf16 %v1806_v7, %v1806_v7 }
 0x1ad   : > { %v1364_v10 = vpop.f32.mrb[88].mxu0  ;;  %v1620_v11 = vpop.f32.mrb[88].mxu1 }
 0x1ae   : > { %2383 = vst.msk [vmem:[%s3479_s16 + $0xac] sm:$0xf] %vm2339_vm1, %v2910_v8  ;;  %2447 = vst.msk [vmem:[%s3479_s16 + $0x1ac] sm:$0xf] %vm2339_vm1, %v2974_v9  ;;  %v1365_v12 = vadd.f32 %v3742_v56, %v1364_v10  ;;  %v1621_v13 = vadd.f32 %v3742_v56, %v1620_v11  ;;  %v1366_v14 = vpop.f32.mrb[89].mxu0  ;;  %v1622_v15 = vpop.f32.mrb[89].mxu1 }
 0x1af   : > { %v1367_v16 = vpop.f32.mrb[90].mxu0  ;;  %v1623_v17 = vpop.f32.mrb[90].mxu1 }
 0x1b0   : > { %v1743_v18 = vmax.f32 %v1365_v12, 0.0  ;;  %v1807_v19 = vmax.f32 %v1621_v13, 0.0  ;;  %v1368_v20 = vadd.f32 %v3742_v56, %v1367_v16  ;;  %v1624_v21 = vadd.f32 %v3742_v56, %v1623_v17  ;;  %v1369_v22 = vpop.f32.mrb[91].mxu0  ;;  %v1625_v23 = vpop.f32.mrb[91].mxu1 }
 0x1b2   : > { %v2911_v24 = vpack.c.bf16 %v1743_v18, %v1743_v18  ;;  %v2975_v25 = vpack.c.bf16 %v1807_v19, %v1807_v19  ;;  %v1744_v26 = vmax.f32 %v1368_v20, 0.0  ;;  %v1808_v27 = vmax.f32 %v1624_v21, 0.0 }
 0x1b4   : > { %2384 = vst.msk [vmem:[%s3479_s16 + $0xb0] sm:$0xf] %vm2339_vm1, %v2911_v24  ;;  %2448 = vst.msk [vmem:[%s3479_s16 + $0x1b0] sm:$0xf] %vm2339_vm1, %v2975_v25  ;;  %v2912_v28 = vpack.c.bf16 %v1744_v26, %v1744_v26  ;;  %v2976_v29 = vpack.c.bf16 %v1808_v27, %v1808_v27 }
 0x1b5   : > { %v1372_v30 = vpop.f32.mrb[92].mxu0  ;;  %v1628_v31 = vpop.f32.mrb[92].mxu1 }
 0x1b6   : > { %2385 = vst.msk [vmem:[%s3479_s16 + $0xb4] sm:$0xf] %vm2339_vm1, %v2912_v28  ;;  %2449 = vst.msk [vmem:[%s3479_s16 + $0x1b4] sm:$0xf] %vm2339_vm1, %v2976_v29  ;;  %v1373_v32 = vadd.f32 %v3742_v56, %v1372_v30  ;;  %v1629_v33 = vadd.f32 %v3742_v56, %v1628_v31  ;;  %v1374_v34 = vpop.f32.mrb[93].mxu0  ;;  %v1630_v35 = vpop.f32.mrb[93].mxu1 }
 0x1b7   : > { %v1375_v36 = vpop.f32.mrb[94].mxu0  ;;  %v1631_v37 = vpop.f32.mrb[94].mxu1 }
 0x1b8   : > { %v1745_v38 = vmax.f32 %v1373_v32, 0.0  ;;  %v1809_v39 = vmax.f32 %v1629_v33, 0.0  ;;  %v1376_v40 = vadd.f32 %v3742_v56, %v1375_v36  ;;  %v1632_v41 = vadd.f32 %v3742_v56, %v1631_v37  ;;  %v1377_v42 = vpop.f32.mrb[95].mxu0  ;;  %v1633_v43 = vpop.f32.mrb[95].mxu1 }
 0x1ba   : > { %v2913_v44 = vpack.c.bf16 %v1745_v38, %v1745_v38  ;;  %v2977_v45 = vpack.c.bf16 %v1809_v39, %v1809_v39  ;;  %v1746_v46 = vmax.f32 %v1376_v40, 0.0  ;;  %v1810_v47 = vmax.f32 %v1632_v41, 0.0 }
 0x1bc   : > { %2386 = vst.msk [vmem:[%s3479_s16 + $0xb8] sm:$0xf] %vm2339_vm1, %v2913_v44  ;;  %2450 = vst.msk [vmem:[%s3479_s16 + $0x1b8] sm:$0xf] %vm2339_vm1, %v2977_v45  ;;  %v2914_v48 = vpack.c.bf16 %v1746_v46, %v1746_v46  ;;  %v2978_v49 = vpack.c.bf16 %v1810_v47, %v1810_v47 }
 0x1bd   : > { %v1380_v50 = vpop.f32.mrb[96].mxu0  ;;  %v1636_v51 = vpop.f32.mrb[96].mxu1 }
 0x1be   : > { %2387 = vst.msk [vmem:[%s3479_s16 + $0xbc] sm:$0xf] %vm2339_vm1, %v2914_v48  ;;  %2451 = vst.msk [vmem:[%s3479_s16 + $0x1bc] sm:$0xf] %vm2339_vm1, %v2978_v49  ;;  %v1381_v52 = vadd.f32 %v3742_v56, %v1380_v50  ;;  %v1637_v53 = vadd.f32 %v3742_v56, %v1636_v51  ;;  %v1382_v54 = vpop.f32.mrb[97].mxu0  ;;  %v1638_v55 = vpop.f32.mrb[97].mxu1 }
 0x1bf   : > { %v1383_v57 = vpop.f32.mrb[98].mxu0  ;;  %v1639_v58 = vpop.f32.mrb[98].mxu1 }
 0x1c0   : > { %v1747_v59 = vmax.f32 %v1381_v52, 0.0  ;;  %v1811_v60 = vmax.f32 %v1637_v53, 0.0  ;;  %v1384_v61 = vadd.f32 %v3742_v56, %v1383_v57  ;;  %v1640_v62 = vadd.f32 %v3742_v56, %v1639_v58  ;;  %v1385_v63 = vpop.f32.mrb[99].mxu0  ;;  %v1641_v0 = vpop.f32.mrb[99].mxu1 }
 0x1c2   : > { %v2915_v1 = vpack.c.bf16 %v1747_v59, %v1747_v59  ;;  %v2979_v2 = vpack.c.bf16 %v1811_v60, %v1811_v60  ;;  %v1748_v3 = vmax.f32 %v1384_v61, 0.0  ;;  %v1812_v4 = vmax.f32 %v1640_v62, 0.0 }
 0x1c4   : > { %2388 = vst.msk [vmem:[%s3479_s16 + $0xc0] sm:$0xf] %vm2339_vm1, %v2915_v1  ;;  %2452 = vst.msk [vmem:[%s3479_s16 + $0x1c0] sm:$0xf] %vm2339_vm1, %v2979_v2  ;;  %v2916_v5 = vpack.c.bf16 %v1748_v3, %v1748_v3  ;;  %v2980_v6 = vpack.c.bf16 %v1812_v4, %v1812_v4 }
 0x1c5   : > { %v1388_v7 = vpop.f32.mrb[100].mxu0  ;;  %v1644_v8 = vpop.f32.mrb[100].mxu1 }
 0x1c6   : > { %2389 = vst.msk [vmem:[%s3479_s16 + $0xc4] sm:$0xf] %vm2339_vm1, %v2916_v5  ;;  %2453 = vst.msk [vmem:[%s3479_s16 + $0x1c4] sm:$0xf] %vm2339_vm1, %v2980_v6  ;;  %v1389_v9 = vadd.f32 %v3742_v56, %v1388_v7  ;;  %v1645_v10 = vadd.f32 %v3742_v56, %v1644_v8  ;;  %v1390_v11 = vpop.f32.mrb[101].mxu0  ;;  %v1646_v12 = vpop.f32.mrb[101].mxu1 }
 0x1c7   : > { %v1391_v13 = vpop.f32.mrb[102].mxu0  ;;  %v1647_v14 = vpop.f32.mrb[102].mxu1 }
 0x1c8   : > { %v1749_v15 = vmax.f32 %v1389_v9, 0.0  ;;  %v1813_v16 = vmax.f32 %v1645_v10, 0.0  ;;  %v1392_v17 = vadd.f32 %v3742_v56, %v1391_v13  ;;  %v1648_v18 = vadd.f32 %v3742_v56, %v1647_v14  ;;  %v1393_v19 = vpop.f32.mrb[103].mxu0  ;;  %v1649_v20 = vpop.f32.mrb[103].mxu1 }
 0x1ca   : > { %v2917_v21 = vpack.c.bf16 %v1749_v15, %v1749_v15  ;;  %v2981_v22 = vpack.c.bf16 %v1813_v16, %v1813_v16  ;;  %v1750_v23 = vmax.f32 %v1392_v17, 0.0  ;;  %v1814_v24 = vmax.f32 %v1648_v18, 0.0 }
 0x1cc   : > { %2390 = vst.msk [vmem:[%s3479_s16 + $0xc8] sm:$0xf] %vm2339_vm1, %v2917_v21  ;;  %2454 = vst.msk [vmem:[%s3479_s16 + $0x1c8] sm:$0xf] %vm2339_vm1, %v2981_v22  ;;  %v2918_v25 = vpack.c.bf16 %v1750_v23, %v1750_v23  ;;  %v2982_v26 = vpack.c.bf16 %v1814_v24, %v1814_v24 }
 0x1cd   : > { %v1396_v27 = vpop.f32.mrb[104].mxu0  ;;  %v1652_v28 = vpop.f32.mrb[104].mxu1 }
 0x1ce   : > { %2391 = vst.msk [vmem:[%s3479_s16 + $0xcc] sm:$0xf] %vm2339_vm1, %v2918_v25  ;;  %2455 = vst.msk [vmem:[%s3479_s16 + $0x1cc] sm:$0xf] %vm2339_vm1, %v2982_v26  ;;  %v1397_v29 = vadd.f32 %v3742_v56, %v1396_v27  ;;  %v1653_v30 = vadd.f32 %v3742_v56, %v1652_v28  ;;  %v1398_v31 = vpop.f32.mrb[105].mxu0  ;;  %v1654_v32 = vpop.f32.mrb[105].mxu1 }
 0x1cf   : > { %v1399_v33 = vpop.f32.mrb[106].mxu0  ;;  %v1655_v34 = vpop.f32.mrb[106].mxu1 }
 0x1d0   : > { %v1751_v35 = vmax.f32 %v1397_v29, 0.0  ;;  %v1815_v36 = vmax.f32 %v1653_v30, 0.0  ;;  %v1400_v37 = vadd.f32 %v3742_v56, %v1399_v33  ;;  %v1656_v38 = vadd.f32 %v3742_v56, %v1655_v34  ;;  %v1401_v39 = vpop.f32.mrb[107].mxu0  ;;  %v1657_v40 = vpop.f32.mrb[107].mxu1 }
 0x1d2   : > { %v2919_v41 = vpack.c.bf16 %v1751_v35, %v1751_v35  ;;  %v2983_v42 = vpack.c.bf16 %v1815_v36, %v1815_v36  ;;  %v1752_v43 = vmax.f32 %v1400_v37, 0.0  ;;  %v1816_v44 = vmax.f32 %v1656_v38, 0.0 }
 0x1d4   : > { %2392 = vst.msk [vmem:[%s3479_s16 + $0xd0] sm:$0xf] %vm2339_vm1, %v2919_v41  ;;  %2456 = vst.msk [vmem:[%s3479_s16 + $0x1d0] sm:$0xf] %vm2339_vm1, %v2983_v42  ;;  %v2920_v45 = vpack.c.bf16 %v1752_v43, %v1752_v43  ;;  %v2984_v46 = vpack.c.bf16 %v1816_v44, %v1816_v44 }
 0x1d5   : > { %v1404_v47 = vpop.f32.mrb[108].mxu0  ;;  %v1660_v48 = vpop.f32.mrb[108].mxu1 }
 0x1d6   : > { %2393 = vst.msk [vmem:[%s3479_s16 + $0xd4] sm:$0xf] %vm2339_vm1, %v2920_v45  ;;  %2457 = vst.msk [vmem:[%s3479_s16 + $0x1d4] sm:$0xf] %vm2339_vm1, %v2984_v46  ;;  %v1405_v49 = vadd.f32 %v3742_v56, %v1404_v47  ;;  %v1661_v50 = vadd.f32 %v3742_v56, %v1660_v48  ;;  %v1406_v51 = vpop.f32.mrb[109].mxu0  ;;  %v1662_v52 = vpop.f32.mrb[109].mxu1 }
 0x1d7   : > { %v1407_v53 = vpop.f32.mrb[110].mxu0  ;;  %v1663_v54 = vpop.f32.mrb[110].mxu1 }
 0x1d8   : > { %v1753_v55 = vmax.f32 %v1405_v49, 0.0  ;;  %v1817_v57 = vmax.f32 %v1661_v50, 0.0  ;;  %v1408_v58 = vadd.f32 %v3742_v56, %v1407_v53  ;;  %v1664_v59 = vadd.f32 %v3742_v56, %v1663_v54  ;;  %v1409_v60 = vpop.f32.mrb[111].mxu0  ;;  %v1665_v61 = vpop.f32.mrb[111].mxu1 }
 0x1da   : > { %v2921_v62 = vpack.c.bf16 %v1753_v55, %v1753_v55  ;;  %v2985_v63 = vpack.c.bf16 %v1817_v57, %v1817_v57  ;;  %v1754_v0 = vmax.f32 %v1408_v58, 0.0  ;;  %v1818_v1 = vmax.f32 %v1664_v59, 0.0 }
 0x1dc   : > { %2394 = vst.msk [vmem:[%s3479_s16 + $0xd8] sm:$0xf] %vm2339_vm1, %v2921_v62  ;;  %2458 = vst.msk [vmem:[%s3479_s16 + $0x1d8] sm:$0xf] %vm2339_vm1, %v2985_v63  ;;  %v2922_v2 = vpack.c.bf16 %v1754_v0, %v1754_v0  ;;  %v2986_v3 = vpack.c.bf16 %v1818_v1, %v1818_v1 }
 0x1dd   : > { %v1412_v4 = vpop.f32.mrb[112].mxu0  ;;  %v1668_v5 = vpop.f32.mrb[112].mxu1 }
 0x1de   : > { %2395 = vst.msk [vmem:[%s3479_s16 + $0xdc] sm:$0xf] %vm2339_vm1, %v2922_v2  ;;  %2459 = vst.msk [vmem:[%s3479_s16 + $0x1dc] sm:$0xf] %vm2339_vm1, %v2986_v3  ;;  %v1413_v6 = vadd.f32 %v3742_v56, %v1412_v4  ;;  %v1669_v7 = vadd.f32 %v3742_v56, %v1668_v5  ;;  %v1414_v8 = vpop.f32.mrb[113].mxu0  ;;  %v1670_v9 = vpop.f32.mrb[113].mxu1 }
 0x1df   : > { %v1415_v10 = vpop.f32.mrb[114].mxu0  ;;  %v1671_v11 = vpop.f32.mrb[114].mxu1 }
 0x1e0   : > { %v1755_v12 = vmax.f32 %v1413_v6, 0.0  ;;  %v1819_v13 = vmax.f32 %v1669_v7, 0.0  ;;  %v1416_v14 = vadd.f32 %v3742_v56, %v1415_v10  ;;  %v1672_v15 = vadd.f32 %v3742_v56, %v1671_v11  ;;  %v1417_v16 = vpop.f32.mrb[115].mxu0  ;;  %v1673_v17 = vpop.f32.mrb[115].mxu1 }
 0x1e2   : > { %v2923_v18 = vpack.c.bf16 %v1755_v12, %v1755_v12  ;;  %v2987_v19 = vpack.c.bf16 %v1819_v13, %v1819_v13  ;;  %v1756_v20 = vmax.f32 %v1416_v14, 0.0  ;;  %v1820_v21 = vmax.f32 %v1672_v15, 0.0 }
 0x1e4   : > { %2396 = vst.msk [vmem:[%s3479_s16 + $0xe0] sm:$0xf] %vm2339_vm1, %v2923_v18  ;;  %2460 = vst.msk [vmem:[%s3479_s16 + $0x1e0] sm:$0xf] %vm2339_vm1, %v2987_v19  ;;  %v2924_v22 = vpack.c.bf16 %v1756_v20, %v1756_v20  ;;  %v2988_v23 = vpack.c.bf16 %v1820_v21, %v1820_v21 }
 0x1e5   : > { %v1420_v24 = vpop.f32.mrb[116].mxu0  ;;  %v1676_v25 = vpop.f32.mrb[116].mxu1 }
 0x1e6   : > { %2397 = vst.msk [vmem:[%s3479_s16 + $0xe4] sm:$0xf] %vm2339_vm1, %v2924_v22  ;;  %2461 = vst.msk [vmem:[%s3479_s16 + $0x1e4] sm:$0xf] %vm2339_vm1, %v2988_v23  ;;  %v1421_v26 = vadd.f32 %v3742_v56, %v1420_v24  ;;  %v1677_v27 = vadd.f32 %v3742_v56, %v1676_v25  ;;  %v1422_v28 = vpop.f32.mrb[117].mxu0  ;;  %v1678_v29 = vpop.f32.mrb[117].mxu1 }
 0x1e7   : > { %v1423_v30 = vpop.f32.mrb[118].mxu0  ;;  %v1679_v31 = vpop.f32.mrb[118].mxu1 }
 0x1e8   : > { %v1757_v32 = vmax.f32 %v1421_v26, 0.0  ;;  %v1821_v33 = vmax.f32 %v1677_v27, 0.0  ;;  %v1424_v34 = vadd.f32 %v3742_v56, %v1423_v30  ;;  %v1680_v35 = vadd.f32 %v3742_v56, %v1679_v31  ;;  %v1425_v36 = vpop.f32.mrb[119].mxu0  ;;  %v1681_v37 = vpop.f32.mrb[119].mxu1 }
 0x1ea   : > { %v2925_v38 = vpack.c.bf16 %v1757_v32, %v1757_v32  ;;  %v2989_v39 = vpack.c.bf16 %v1821_v33, %v1821_v33  ;;  %v1758_v40 = vmax.f32 %v1424_v34, 0.0  ;;  %v1822_v41 = vmax.f32 %v1680_v35, 0.0 }
 0x1ec   : > { %2398 = vst.msk [vmem:[%s3479_s16 + $0xe8] sm:$0xf] %vm2339_vm1, %v2925_v38  ;;  %2462 = vst.msk [vmem:[%s3479_s16 + $0x1e8] sm:$0xf] %vm2339_vm1, %v2989_v39  ;;  %v2926_v42 = vpack.c.bf16 %v1758_v40, %v1758_v40  ;;  %v2990_v43 = vpack.c.bf16 %v1822_v41, %v1822_v41 }
 0x1ed   : > { %v1428_v44 = vpop.f32.mrb[120].mxu0  ;;  %v1684_v45 = vpop.f32.mrb[120].mxu1 }
 0x1ee   : > { %2399 = vst.msk [vmem:[%s3479_s16 + $0xec] sm:$0xf] %vm2339_vm1, %v2926_v42  ;;  %2463 = vst.msk [vmem:[%s3479_s16 + $0x1ec] sm:$0xf] %vm2339_vm1, %v2990_v43  ;;  %v1429_v46 = vadd.f32 %v3742_v56, %v1428_v44  ;;  %v1685_v47 = vadd.f32 %v3742_v56, %v1684_v45  ;;  %v1430_v48 = vpop.f32.mrb[121].mxu0  ;;  %v1686_v49 = vpop.f32.mrb[121].mxu1 }
 0x1ef   : > { %v1431_v50 = vpop.f32.mrb[122].mxu0  ;;  %v1687_v51 = vpop.f32.mrb[122].mxu1 }
 0x1f0   : > { %v1759_v52 = vmax.f32 %v1429_v46, 0.0  ;;  %v1823_v53 = vmax.f32 %v1685_v47, 0.0  ;;  %v1432_v54 = vadd.f32 %v3742_v56, %v1431_v50  ;;  %v1688_v55 = vadd.f32 %v3742_v56, %v1687_v51  ;;  %v1433_v57 = vpop.f32.mrb[123].mxu0  ;;  %v1689_v58 = vpop.f32.mrb[123].mxu1 }
 0x1f2   : > { %v2927_v59 = vpack.c.bf16 %v1759_v52, %v1759_v52  ;;  %v2991_v60 = vpack.c.bf16 %v1823_v53, %v1823_v53  ;;  %v1760_v61 = vmax.f32 %v1432_v54, 0.0  ;;  %v1824_v62 = vmax.f32 %v1688_v55, 0.0 }
 0x1f4   : > { %2400 = vst.msk [vmem:[%s3479_s16 + $0xf0] sm:$0xf] %vm2339_vm1, %v2927_v59  ;;  %2464 = vst.msk [vmem:[%s3479_s16 + $0x1f0] sm:$0xf] %vm2339_vm1, %v2991_v60  ;;  %v2928_v63 = vpack.c.bf16 %v1760_v61, %v1760_v61  ;;  %v2992_v0 = vpack.c.bf16 %v1824_v62, %v1824_v62 }
 0x1f5   : > { %v1436_v1 = vpop.f32.mrb[124].mxu0  ;;  %v1692_v2 = vpop.f32.mrb[124].mxu1 }
 0x1f6   : > { %2401 = vst.msk [vmem:[%s3479_s16 + $0xf4] sm:$0xf] %vm2339_vm1, %v2928_v63  ;;  %2465 = vst.msk [vmem:[%s3479_s16 + $0x1f4] sm:$0xf] %vm2339_vm1, %v2992_v0  ;;  %v1437_v3 = vadd.f32 %v3742_v56, %v1436_v1  ;;  %v1693_v4 = vadd.f32 %v3742_v56, %v1692_v2  ;;  %v1438_v5 = vpop.f32.mrb[125].mxu0  ;;  %v1694_v6 = vpop.f32.mrb[125].mxu1 }
 0x1f7   : > { %v1439_v7 = vpop.f32.mrb[126].mxu0  ;;  %v1695_v8 = vpop.f32.mrb[126].mxu1 }
 0x1f8   : > { %v1761_v9 = vmax.f32 %v1437_v3, 0.0  ;;  %v1825_v10 = vmax.f32 %v1693_v4, 0.0  ;;  %v1440_v11 = vadd.f32 %v3742_v56, %v1439_v7  ;;  %v1696_v12 = vadd.f32 %v3742_v56, %v1695_v8  ;;  %v1441_v13 = vpop.f32.mrb[127].mxu0  ;;  %v1697_v14 = vpop.f32.mrb[127].mxu1 }
 0x1fa   : > { %v2929_v15 = vpack.c.bf16 %v1761_v9, %v1761_v9  ;;  %v2993_v16 = vpack.c.bf16 %v1825_v10, %v1825_v10  ;;  %v1762_v17 = vmax.f32 %v1440_v11, 0.0  ;;  %v1826_v18 = vmax.f32 %v1696_v12, 0.0 }
 0x1fc   : > { %2402 = vst.msk [vmem:[%s3479_s16 + $0xf8] sm:$0xf] %vm2339_vm1, %v2929_v15  ;;  %2466 = vst.msk [vmem:[%s3479_s16 + $0x1f8] sm:$0xf] %vm2339_vm1, %v2993_v16  ;;  %v2930_v19 = vpack.c.bf16 %v1762_v17, %v1762_v17  ;;  %v2994_v20 = vpack.c.bf16 %v1826_v18, %v1826_v18 }
 0x1fe   : > { %2403 = vst.msk [vmem:[%s3479_s16 + $0xfc] sm:$0xf] %vm2339_vm1, %v2930_v19  ;;  %2467 = vst.msk [vmem:[%s3479_s16 + $0x1fc] sm:$0xf] %vm2339_vm1, %v2994_v20 }
 0x1ff PF: > { %s13_s12 = sadd.s32 1, %s3230_s12  }
 0x200   : > { %p10_p4 = scmp.ge.s32.totalorder %s13_s12, 4  }
 0x202   :  { %12 = sbr.rel (!%p10_p4) target bundleno = 1 (0x1), region = 62 }

// kernel: model_forward.8
= control target key start
LH: loop header
LB: loop body
LE: loop exit
PB: predicated region body
PF: predicated region fallthrough
CT: control target
= control target key end

     0   :  { %s4025_s15 = smov 0   ;;  %s4741_s0 = inlined_call_operand.vmem [shape: bf16[2048,144], index: 0, kind: input, shape index: {}]   ;;  %s4742_s1 = inlined_call_operand.vmem [shape: bf16[144,16], index: 1, kind: input, shape index: {}]   ;;  %s4743_s2 = inlined_call_operand.vmem [shape: f32[1,16], index: 2, kind: input, shape index: {}]   ;;  %s4744_s3 = inlined_call_operand.vmem [shape: bf16[2048,16], index: 3, kind: input, shape index: {}]   ;;  %s4745_s4 = inlined_call_operand.vmem [shape: bf16[2048,16], index: 4, kind: output, shape index: {}]  }
   0x1 LB: > { %s2969_s16 = sadd.s32 4294967295, %s3997_s15   ;;  %p2973_p0 = scmp.ge.s32.totalorder %s3997_s15, 1  ;;  %s3997_s15 = sphi %s4025_s15, %s14_s15  }
   0x2   : > { %p175_p1 = scmp.lt.s32.totalorder %s3997_s15, 3 }
   0x4   : > { %p176_p2 = pnand %p2973_p0, %p175_p1 }
   0x5   : > { %v3788_v0 = vld [vmem:[%s4742_s1] sm:$0xff] (!%p176_p2)   ;;  %v3999_v1 = vmov (!%p176_p2), 0   ;;  %s2974_s19 = sshll.u32 (!%p176_p2), %s2969_s16, 7  ;;  %v3789_v2 = vld [vmem:[%s4742_s1 + $0x8] sm:$0xff] (!%p176_p2)   ;;  %v3790_v3 = vld [vmem:[%s4742_s1 + $0x10] sm:$0xff] (!%p176_p2)   ;;  %vm1010_vm0 = vcmask (!%p176_p2), 130048  }
   0x6   : > { %179 = sbr.rel (%p176_p2) target bundleno = 513 (0x201), region = 36  ;;  %1203 = vmatprep.subr.bf16.mxu0 (!%p176_p2), %v3999_v1  ;;  %3761 = vmatprep.subr.bf16.mxu1 (!%p176_p2), %v3999_v1  ;;  %p208_p3 = scmp.lt.s32.totalorder (!%p176_p2), %s2974_s19, 255  ;;  %v3791_v4 = vld [vmem:[%s4742_s1 + $0x18] sm:$0xff] (!%p176_p2)   ;;  %v3792_v7 = vld [vmem:[%s4742_s1 + $0x20] sm:$0xff] (!%p176_p2)   ;;  %v3793_v8 = vld [vmem:[%s4742_s1 + $0x28] sm:$0xff] (!%p176_p2)   ;;  %vm2772_vm1 = vcmask (!%p176_p2), 125952  }
   0x7   : > { %1204 = vmatpush1.bf16.msra.mxu0 (!%p176_p2), %v3788_v0  ;;  %3770 = vmatpush1.bf16.msra.mxu1 (!%p176_p2), %v3788_v0  ;;  %v3794_v9 = vld [vmem:[%s4742_s1 + $0x30] sm:$0xff] (!%p176_p2)   ;;  %v3795_v10 = vld [vmem:[%s4742_s1 + $0x38] sm:$0xff] (!%p176_p2)   ;;  %v3796_v11 = vld [vmem:[%s4742_s1 + $0x40] sm:$0xff] (!%p176_p2)  }
   0x8   : > { %1205 = vmatprep.subr.bf16.mxu0 (!%p176_p2), %v3999_v1  ;;  %3762 = vmatprep.subr.bf16.mxu1 (!%p176_p2), %v3999_v1 }
   0xb   : > { %1206 = vmatpush1.bf16.msra.mxu0 (!%p176_p2), %v3789_v2  ;;  %3771 = vmatpush1.bf16.msra.mxu1 (!%p176_p2), %v3789_v2 }
   0xc   : > { %1207 = vmatprep.subr.bf16.mxu0 (!%p176_p2), %v3999_v1  ;;  %3763 = vmatprep.subr.bf16.mxu1 (!%p176_p2), %v3999_v1 }
   0xd   : > { %s4747_s19 = smov (!%p208_p3, %s2974_s19), 255 }
   0xe   : > { %s3313_s24 = sshll.u32 %s4747_s19, 3  ;;  %s2978_s14 = sshll.u32 %s4747_s19, 2 }
   0xf   : > { %s4048_s27 = scalar_lea.vmem %s4741_s0, %s3313_s24  ;;  %1208 = vmatpush1.bf16.msra.mxu0 %v3790_v3  ;;  %3772 = vmatpush1.bf16.msra.mxu1 %v3790_v3  ;;  %s4236_s18 = scalar_lea.vmem %s4744_s3, %s2978_s14 }
  0x10   : > { %v3799_v5 = vld [vmem:[%s4048_s27 + $0x4] ss:$8 sps:$4 sm:$0xff]   ;;  %1209 = vmatprep.subr.bf16.mxu0 %v3999_v1  ;;  %3764 = vmatprep.subr.bf16.mxu1 %v3999_v1  ;;  %v3797_v12 = vld [vmem:[%s4048_s27] ss:$8 sps:$4 sm:$0xff]   ;;  %v3803_v14 = vld [vmem:[%s4048_s27 + $0x14] ss:$8 sps:$4 sm:$0xff]   ;;  %s4264_s24 = scalar_lea.vmem %s4745_s4, %s2978_s14 }
  0x11   : > { %v3802_v6 = vld [vmem:[%s4048_s27 + $0x204] ss:$8 sps:$4 sm:$0xff]   ;;  %3119 = vmatprep.mubr.msk.bf16.mxu0 %vm1010_vm0, %v3799_v5  ;;  %v3800_v13 = vld [vmem:[%s4048_s27 + $0x200] ss:$8 sps:$4 sm:$0xff]   ;;  %v3805_v15 = vld [vmem:[%s4048_s27 + $0x214] ss:$8 sps:$4 sm:$0xff]  }
  0x12   : > { %3151 = vmatprep.mubr.msk.bf16.mxu1 %vm1010_vm0, %v3802_v6  ;;  %v3807_v16 = vld [vmem:[%s4048_s27 + $0x10] ss:$8 sps:$4 sm:$0xff]   ;;  %v3809_v18 = vld [vmem:[%s4048_s27 + $0x24] ss:$8 sps:$4 sm:$0xff]   ;;  %v3813_v20 = vld [vmem:[%s4048_s27 + $0x20] ss:$8 sps:$4 sm:$0xff]  }
  0x13   : > { %1210 = vmatpush1.bf16.msra.mxu0 %v3791_v4  ;;  %3773 = vmatpush1.bf16.msra.mxu1 %v3791_v4  ;;  %v3808_v17 = vld [vmem:[%s4048_s27 + $0x210] ss:$8 sps:$4 sm:$0xff]   ;;  %v3811_v19 = vld [vmem:[%s4048_s27 + $0x224] ss:$8 sps:$4 sm:$0xff]   ;;  %v3814_v21 = vld [vmem:[%s4048_s27 + $0x220] ss:$8 sps:$4 sm:$0xff]  }
  0x14   : > { %1211 = vmatprep.subr.bf16.mxu0 %v3999_v1  ;;  %3765 = vmatprep.subr.bf16.mxu1 %v3999_v1  ;;  %v3815_v22 = vld [vmem:[%s4048_s27 + $0x34] ss:$8 sps:$4 sm:$0xff]   ;;  %v3819_v24 = vld [vmem:[%s4048_s27 + $0x30] ss:$8 sps:$4 sm:$0xff]   ;;  %v3821_v26 = vld [vmem:[%s4048_s27 + $0x44] ss:$8 sps:$4 sm:$0xff]  }
  0x15   : > { %v3817_v23 = vld [vmem:[%s4048_s27 + $0x234] ss:$8 sps:$4 sm:$0xff]   ;;  %v3820_v25 = vld [vmem:[%s4048_s27 + $0x230] ss:$8 sps:$4 sm:$0xff]   ;;  %v3823_v27 = vld [vmem:[%s4048_s27 + $0x244] ss:$8 sps:$4 sm:$0xff]  }
  0x16   : > { %v3825_v28 = vld [vmem:[%s4048_s27 + $0x40] ss:$8 sps:$4 sm:$0xff]   ;;  %v3827_v30 = vld [vmem:[%s4048_s27 + $0x54] ss:$8 sps:$4 sm:$0xff]   ;;  %v3831_v32 = vld [vmem:[%s4048_s27 + $0x50] ss:$8 sps:$4 sm:$0xff]  }
  0x17   : > { %1212 = vmatpush1.bf16.msra.mxu0 %v3792_v7  ;;  %3774 = vmatpush1.bf16.msra.mxu1 %v3792_v7  ;;  %v3826_v29 = vld [vmem:[%s4048_s27 + $0x240] ss:$8 sps:$4 sm:$0xff]   ;;  %v3829_v31 = vld [vmem:[%s4048_s27 + $0x254] ss:$8 sps:$4 sm:$0xff]   ;;  %v3832_v33 = vld [vmem:[%s4048_s27 + $0x250] ss:$8 sps:$4 sm:$0xff]  }
  0x18   : > { %1213 = vmatprep.subr.bf16.mxu0 %v3999_v1  ;;  %3766 = vmatprep.subr.bf16.mxu1 %v3999_v1  ;;  %v3833_v34 = vld [vmem:[%s4048_s27 + $0x64] ss:$8 sps:$4 sm:$0xff]   ;;  %v3837_v36 = vld [vmem:[%s4048_s27 + $0x60] ss:$8 sps:$4 sm:$0xff]   ;;  %v3839_v38 = vld [vmem:[%s4048_s27 + $0x74] ss:$8 sps:$4 sm:$0xff]  }
  0x19   : > { %v3835_v35 = vld [vmem:[%s4048_s27 + $0x264] ss:$8 sps:$4 sm:$0xff]   ;;  %v3838_v37 = vld [vmem:[%s4048_s27 + $0x260] ss:$8 sps:$4 sm:$0xff]   ;;  %v3841_v39 = vld [vmem:[%s4048_s27 + $0x274] ss:$8 sps:$4 sm:$0xff]  }
  0x1a   : > { %v3843_v40 = vld [vmem:[%s4048_s27 + $0x70] ss:$8 sps:$4 sm:$0xff]   ;;  %v3845_v42 = vld [vmem:[%s4048_s27 + $0x84] ss:$8 sps:$4 sm:$0xff]   ;;  %v3849_v44 = vld [vmem:[%s4048_s27 + $0x80] ss:$8 sps:$4 sm:$0xff]  }
  0x1b   : > { %1214 = vmatpush1.bf16.msra.mxu0 %v3793_v8  ;;  %3775 = vmatpush1.bf16.msra.mxu1 %v3793_v8  ;;  %v3844_v41 = vld [vmem:[%s4048_s27 + $0x270] ss:$8 sps:$4 sm:$0xff]   ;;  %v3847_v43 = vld [vmem:[%s4048_s27 + $0x284] ss:$8 sps:$4 sm:$0xff]   ;;  %v3850_v45 = vld [vmem:[%s4048_s27 + $0x280] ss:$8 sps:$4 sm:$0xff]  }
  0x1c   : > { %1215 = vmatprep.subr.bf16.mxu0 %v3999_v1  ;;  %3767 = vmatprep.subr.bf16.mxu1 %v3999_v1  ;;  %v3851_v46 = vld [vmem:[%s4048_s27 + $0x94] ss:$8 sps:$4 sm:$0xff]   ;;  %v3855_v48 = vld [vmem:[%s4048_s27 + $0x90] ss:$8 sps:$4 sm:$0xff]   ;;  %v3857_v50 = vld [vmem:[%s4048_s27 + $0xa4] ss:$8 sps:$4 sm:$0xff]  }
  0x1d   : > { %v3853_v47 = vld [vmem:[%s4048_s27 + $0x294] ss:$8 sps:$4 sm:$0xff]   ;;  %v3856_v49 = vld [vmem:[%s4048_s27 + $0x290] ss:$8 sps:$4 sm:$0xff]   ;;  %v3859_v51 = vld [vmem:[%s4048_s27 + $0x2a4] ss:$8 sps:$4 sm:$0xff]  }
  0x1e   : > { %v3861_v52 = vld [vmem:[%s4048_s27 + $0xa0] ss:$8 sps:$4 sm:$0xff]   ;;  %v3863_v54 = vld [vmem:[%s4048_s27 + $0xb4] ss:$8 sps:$4 sm:$0xff]   ;;  %v3867_v56 = vld [vmem:[%s4048_s27 + $0xb0] ss:$8 sps:$4 sm:$0xff]  }
  0x1f   : > { %1216 = vmatpush1.bf16.msra.mxu0 %v3794_v9  ;;  %3776 = vmatpush1.bf16.msra.mxu1 %v3794_v9  ;;  %v3862_v53 = vld [vmem:[%s4048_s27 + $0x2a0] ss:$8 sps:$4 sm:$0xff]   ;;  %v3865_v55 = vld [vmem:[%s4048_s27 + $0x2b4] ss:$8 sps:$4 sm:$0xff]   ;;  %v3868_v57 = vld [vmem:[%s4048_s27 + $0x2b0] ss:$8 sps:$4 sm:$0xff]  }
  0x20   : > { %1217 = vmatprep.subr.bf16.mxu0 %v3999_v1  ;;  %3768 = vmatprep.subr.bf16.mxu1 %v3999_v1  ;;  %v3869_v58 = vld [vmem:[%s4048_s27 + $0xc4] ss:$8 sps:$4 sm:$0xff]   ;;  %v3873_v60 = vld [vmem:[%s4048_s27 + $0xc0] ss:$8 sps:$4 sm:$0xff]   ;;  %v3875_v62 = vld [vmem:[%s4048_s27 + $0xd4] ss:$8 sps:$4 sm:$0xff]  }
  0x21   : > { %v3871_v59 = vld [vmem:[%s4048_s27 + $0x2c4] ss:$8 sps:$4 sm:$0xff]   ;;  %v3874_v61 = vld [vmem:[%s4048_s27 + $0x2c0] ss:$8 sps:$4 sm:$0xff]   ;;  %v3877_v63 = vld [vmem:[%s4048_s27 + $0x2d4] ss:$8 sps:$4 sm:$0xff]  }
  0x22   : > { %v3879_v0 = vld [vmem:[%s4048_s27 + $0xd0] ss:$8 sps:$4 sm:$0xff]   ;;  %v3881_v2 = vld [vmem:[%s4048_s27 + $0xe4] ss:$8 sps:$4 sm:$0xff]   ;;  %v3885_v4 = vld [vmem:[%s4048_s27 + $0xe0] ss:$8 sps:$4 sm:$0xff]  }
  0x23   : > { %1218 = vmatpush1.bf16.msra.mxu0 %v3795_v10  ;;  %3777 = vmatpush1.bf16.msra.mxu1 %v3795_v10  ;;  %v3883_v3 = vld [vmem:[%s4048_s27 + $0x2e4] ss:$8 sps:$4 sm:$0xff]   ;;  %v3886_v5 = vld [vmem:[%s4048_s27 + $0x2e0] ss:$8 sps:$4 sm:$0xff]   ;;  %v3887_v6 = vld [vmem:[%s4048_s27 + $0xf4] ss:$8 sps:$4 sm:$0xff]  }
  0x24   : > { %1219 = vmatprep.subr.bf16.mxu0 %v3999_v1  ;;  %3769 = vmatprep.subr.bf16.mxu1 %v3999_v1  ;;  %v3880_v1 = vld [vmem:[%s4048_s27 + $0x2d0] ss:$8 sps:$4 sm:$0xff]   ;;  %v3889_v7 = vld [vmem:[%s4048_s27 + $0x2f4] ss:$8 sps:$4 sm:$0xff]   ;;  %v3893_v10 = vld [vmem:[%s4048_s27 + $0x104] ss:$8 sps:$4 sm:$0xff]  }
  0x25   : > { %v3891_v8 = vld [vmem:[%s4048_s27 + $0xf0] ss:$8 sps:$4 sm:$0xff]  }
  0x26   : > { %v3892_v9 = vld [vmem:[%s4048_s27 + $0x2f0] ss:$8 sps:$4 sm:$0xff]  }
  0x27   : > { %1220 = vmatpush1.bf16.msra.mxu0 %v3796_v11  ;;  %3778 = vmatpush1.bf16.msra.mxu1 %v3796_v11  ;;  %v3895_v11 = vld [vmem:[%s4048_s27 + $0x304] ss:$8 sps:$4 sm:$0xff]  }
  0x2a   : > { %1236 = vmatmul.mubr.bf16.vlgmr.msra.gmra.mrb[0].mxu0 %v3797_v12  ;;  %1492 = vmatmul.mubr.bf16.vlgmr.msra.gmra.mrb[0].mxu1 %v3800_v13  ;;  %v3897_v12 = vld [vmem:[%s4048_s27 + $0x100] ss:$8 sps:$4 sm:$0xff]  }
  0x2b   : > { %3120 = vmatprep.mubr.msk.bf16.mxu0 %vm1010_vm0, %v3803_v14  ;;  %3152 = vmatprep.mubr.msk.bf16.mxu1 %vm1010_vm0, %v3805_v15  ;;  %v3898_v13 = vld [vmem:[%s4048_s27 + $0x300] ss:$8 sps:$4 sm:$0xff]   ;;  %v3899_v14 = vld [vmem:[%s4048_s27 + $0x114] ss:$8 sps:$4 sm:$0xff]  }
  0x2c   : > { %v3901_v15 = vld [vmem:[%s4048_s27 + $0x314] ss:$8 sps:$4 sm:$0xff]  }
  0x32   : > { %1244 = vmatmul.mubr.bf16.gmra.mrb[4].mxu0 %v3807_v16  ;;  %1500 = vmatmul.mubr.bf16.gmra.mrb[4].mxu1 %v3808_v17  ;;  %v3903_v16 = vld [vmem:[%s4048_s27 + $0x110] ss:$8 sps:$4 sm:$0xff]  }
  0x33   : > { %3121 = vmatprep.mubr.msk.bf16.mxu0 %vm1010_vm0, %v3809_v18  ;;  %3153 = vmatprep.mubr.msk.bf16.mxu1 %vm1010_vm0, %v3811_v19  ;;  %v3904_v17 = vld [vmem:[%s4048_s27 + $0x310] ss:$8 sps:$4 sm:$0xff]   ;;  %v3905_v18 = vld [vmem:[%s4048_s27 + $0x124] ss:$8 sps:$4 sm:$0xff]  }
  0x34   : > { %v3907_v19 = vld [vmem:[%s4048_s27 + $0x324] ss:$8 sps:$4 sm:$0xff]  }
  0x3a   : > { %1252 = vmatmul.mubr.bf16.gmra.mrb[8].mxu0 %v3813_v20  ;;  %1508 = vmatmul.mubr.bf16.gmra.mrb[8].mxu1 %v3814_v21  ;;  %v3909_v20 = vld [vmem:[%s4048_s27 + $0x120] ss:$8 sps:$4 sm:$0xff]  }
  0x3b   : > { %3122 = vmatprep.mubr.msk.bf16.mxu0 %vm1010_vm0, %v3815_v22  ;;  %3154 = vmatprep.mubr.msk.bf16.mxu1 %vm1010_vm0, %v3817_v23  ;;  %v3910_v21 = vld [vmem:[%s4048_s27 + $0x320] ss:$8 sps:$4 sm:$0xff]   ;;  %v3911_v22 = vld [vmem:[%s4048_s27 + $0x134] ss:$8 sps:$4 sm:$0xff]  }
  0x3c   : > { %v3913_v23 = vld [vmem:[%s4048_s27 + $0x334] ss:$8 sps:$4 sm:$0xff]  }
  0x42   : > { %1260 = vmatmul.mubr.bf16.gmra.mrb[12].mxu0 %v3819_v24  ;;  %1516 = vmatmul.mubr.bf16.gmra.mrb[12].mxu1 %v3820_v25  ;;  %v3915_v24 = vld [vmem:[%s4048_s27 + $0x130] ss:$8 sps:$4 sm:$0xff]  }
  0x43   : > { %3123 = vmatprep.mubr.msk.bf16.mxu0 %vm1010_vm0, %v3821_v26  ;;  %3155 = vmatprep.mubr.msk.bf16.mxu1 %vm1010_vm0, %v3823_v27  ;;  %v3916_v25 = vld [vmem:[%s4048_s27 + $0x330] ss:$8 sps:$4 sm:$0xff]   ;;  %v3917_v26 = vld [vmem:[%s4048_s27 + $0x144] ss:$8 sps:$4 sm:$0xff]  }
  0x44   : > { %v3919_v27 = vld [vmem:[%s4048_s27 + $0x344] ss:$8 sps:$4 sm:$0xff]  }
  0x4a   : > { %1268 = vmatmul.mubr.bf16.gmra.mrb[16].mxu0 %v3825_v28  ;;  %1524 = vmatmul.mubr.bf16.gmra.mrb[16].mxu1 %v3826_v29  ;;  %v3921_v28 = vld [vmem:[%s4048_s27 + $0x140] ss:$8 sps:$4 sm:$0xff]  }
  0x4b   : > { %3124 = vmatprep.mubr.msk.bf16.mxu0 %vm1010_vm0, %v3827_v30  ;;  %3156 = vmatprep.mubr.msk.bf16.mxu1 %vm1010_vm0, %v3829_v31  ;;  %v3922_v29 = vld [vmem:[%s4048_s27 + $0x340] ss:$8 sps:$4 sm:$0xff]   ;;  %v3923_v30 = vld [vmem:[%s4048_s27 + $0x154] ss:$8 sps:$4 sm:$0xff]  }
  0x4c   : > { %v3925_v31 = vld [vmem:[%s4048_s27 + $0x354] ss:$8 sps:$4 sm:$0xff]  }
  0x52   : > { %1276 = vmatmul.mubr.bf16.gmra.mrb[20].mxu0 %v3831_v32  ;;  %1532 = vmatmul.mubr.bf16.gmra.mrb[20].mxu1 %v3832_v33  ;;  %v3927_v32 = vld [vmem:[%s4048_s27 + $0x150] ss:$8 sps:$4 sm:$0xff]  }
  0x53   : > { %3125 = vmatprep.mubr.msk.bf16.mxu0 %vm1010_vm0, %v3833_v34  ;;  %3157 = vmatprep.mubr.msk.bf16.mxu1 %vm1010_vm0, %v3835_v35  ;;  %v3928_v33 = vld [vmem:[%s4048_s27 + $0x350] ss:$8 sps:$4 sm:$0xff]   ;;  %v3929_v34 = vld [vmem:[%s4048_s27 + $0x164] ss:$8 sps:$4 sm:$0xff]  }
  0x54   : > { %v3931_v35 = vld [vmem:[%s4048_s27 + $0x364] ss:$8 sps:$4 sm:$0xff]  }
  0x5a   : > { %1284 = vmatmul.mubr.bf16.gmra.mrb[24].mxu0 %v3837_v36  ;;  %1540 = vmatmul.mubr.bf16.gmra.mrb[24].mxu1 %v3838_v37  ;;  %v3933_v36 = vld [vmem:[%s4048_s27 + $0x160] ss:$8 sps:$4 sm:$0xff]  }
  0x5b   : > { %3126 = vmatprep.mubr.msk.bf16.mxu0 %vm1010_vm0, %v3839_v38  ;;  %3158 = vmatprep.mubr.msk.bf16.mxu1 %vm1010_vm0, %v3841_v39  ;;  %v3934_v37 = vld [vmem:[%s4048_s27 + $0x360] ss:$8 sps:$4 sm:$0xff]   ;;  %v3935_v38 = vld [vmem:[%s4048_s27 + $0x174] ss:$8 sps:$4 sm:$0xff]  }
  0x5c   : > { %v3937_v39 = vld [vmem:[%s4048_s27 + $0x374] ss:$8 sps:$4 sm:$0xff]  }
  0x62   : > { %1292 = vmatmul.mubr.bf16.gmra.mrb[28].mxu0 %v3843_v40  ;;  %1548 = vmatmul.mubr.bf16.gmra.mrb[28].mxu1 %v3844_v41  ;;  %v3939_v40 = vld [vmem:[%s4048_s27 + $0x170] ss:$8 sps:$4 sm:$0xff]  }
  0x63   : > { %3127 = vmatprep.mubr.msk.bf16.mxu0 %vm1010_vm0, %v3845_v42  ;;  %3159 = vmatprep.mubr.msk.bf16.mxu1 %vm1010_vm0, %v3847_v43  ;;  %v3940_v41 = vld [vmem:[%s4048_s27 + $0x370] ss:$8 sps:$4 sm:$0xff]   ;;  %v3941_v42 = vld [vmem:[%s4048_s27 + $0x184] ss:$8 sps:$4 sm:$0xff]  }
  0x64   : > { %v3943_v43 = vld [vmem:[%s4048_s27 + $0x384] ss:$8 sps:$4 sm:$0xff]  }
  0x6a   : > { %1300 = vmatmul.mubr.bf16.gmra.mrb[32].mxu0 %v3849_v44  ;;  %1556 = vmatmul.mubr.bf16.gmra.mrb[32].mxu1 %v3850_v45  ;;  %v3945_v44 = vld [vmem:[%s4048_s27 + $0x180] ss:$8 sps:$4 sm:$0xff]  }
  0x6b   : > { %3128 = vmatprep.mubr.msk.bf16.mxu0 %vm1010_vm0, %v3851_v46  ;;  %3160 = vmatprep.mubr.msk.bf16.mxu1 %vm1010_vm0, %v3853_v47  ;;  %v3946_v45 = vld [vmem:[%s4048_s27 + $0x380] ss:$8 sps:$4 sm:$0xff]   ;;  %v3947_v46 = vld [vmem:[%s4048_s27 + $0x194] ss:$8 sps:$4 sm:$0xff]  }
  0x6c   : > { %v3949_v47 = vld [vmem:[%s4048_s27 + $0x394] ss:$8 sps:$4 sm:$0xff]  }
  0x72   : > { %1308 = vmatmul.mubr.bf16.gmra.mrb[36].mxu0 %v3855_v48  ;;  %1564 = vmatmul.mubr.bf16.gmra.mrb[36].mxu1 %v3856_v49  ;;  %v3951_v48 = vld [vmem:[%s4048_s27 + $0x190] ss:$8 sps:$4 sm:$0xff]  }
  0x73   : > { %3129 = vmatprep.mubr.msk.bf16.mxu0 %vm1010_vm0, %v3857_v50  ;;  %3161 = vmatprep.mubr.msk.bf16.mxu1 %vm1010_vm0, %v3859_v51  ;;  %v3952_v49 = vld [vmem:[%s4048_s27 + $0x390] ss:$8 sps:$4 sm:$0xff]   ;;  %v3953_v50 = vld [vmem:[%s4048_s27 + $0x1a4] ss:$8 sps:$4 sm:$0xff]  }
  0x74   : > { %v3955_v51 = vld [vmem:[%s4048_s27 + $0x3a4] ss:$8 sps:$4 sm:$0xff]  }
  0x7a   : > { %1316 = vmatmul.mubr.bf16.gmra.mrb[40].mxu0 %v3861_v52  ;;  %1572 = vmatmul.mubr.bf16.gmra.mrb[40].mxu1 %v3862_v53  ;;  %v3957_v52 = vld [vmem:[%s4048_s27 + $0x1a0] ss:$8 sps:$4 sm:$0xff]  }
  0x7b   : > { %3130 = vmatprep.mubr.msk.bf16.mxu0 %vm1010_vm0, %v3863_v54  ;;  %3162 = vmatprep.mubr.msk.bf16.mxu1 %vm1010_vm0, %v3865_v55  ;;  %v3958_v53 = vld [vmem:[%s4048_s27 + $0x3a0] ss:$8 sps:$4 sm:$0xff]   ;;  %v3959_v54 = vld [vmem:[%s4048_s27 + $0x1b4] ss:$8 sps:$4 sm:$0xff]  }
  0x7c   : > { %v3961_v55 = vld [vmem:[%s4048_s27 + $0x3b4] ss:$8 sps:$4 sm:$0xff]  }
  0x82   : > { %1324 = vmatmul.mubr.bf16.gmra.mrb[44].mxu0 %v3867_v56  ;;  %1580 = vmatmul.mubr.bf16.gmra.mrb[44].mxu1 %v3868_v57  ;;  %v3443_v56 = vld [vmem:[%s4236_s18] sm:$0xff]  }
  0x83   : > { %3131 = vmatprep.mubr.msk.bf16.mxu0 %vm1010_vm0, %v3869_v58  ;;  %3163 = vmatprep.mubr.msk.bf16.mxu1 %vm1010_vm0, %v3871_v59  ;;  %v3729_v57 = vld [vmem:[%s4236_s18 + $0x100] sm:$0xff]   ;;  %v3444_v59 = vunpack.c.l.bf16 %v3443_v56 }
  0x84   : > { %v4245_v58 = vld [vmem:[%s4743_s2] ss:$0 sm:$0xff] }
  0x8a   : > { %1332 = vmatmul.mubr.bf16.gmra.mrb[48].mxu0 %v3873_v60  ;;  %1588 = vmatmul.mubr.bf16.gmra.mrb[48].mxu1 %v3874_v61  ;;  %v3572_v60 = vunpack.c.l.bf16 %v3729_v57 }
  0x8b   : > { %3132 = vmatprep.mubr.msk.bf16.mxu0 %vm1010_vm0, %v3875_v62  ;;  %3164 = vmatprep.mubr.msk.bf16.mxu1 %vm1010_vm0, %v3877_v63 }
  0x92   : > { %1340 = vmatmul.mubr.bf16.gmra.mrb[52].mxu0 %v3879_v0  ;;  %1596 = vmatmul.mubr.bf16.gmra.mrb[52].mxu1 %v3880_v1 }
  0x93   : > { %3133 = vmatprep.mubr.msk.bf16.mxu0 %vm1010_vm0, %v3881_v2  ;;  %3165 = vmatprep.mubr.msk.bf16.mxu1 %vm1010_vm0, %v3883_v3  ;;  %v3445_v3 = vunpack.c.h.bf16 %v3443_v56 }
  0x9a   : > { %1348 = vmatmul.mubr.bf16.gmra.mrb[56].mxu0 %v3885_v4  ;;  %1604 = vmatmul.mubr.bf16.gmra.mrb[56].mxu1 %v3886_v5  ;;  %v3573_v4 = vunpack.c.h.bf16 %v3729_v57  ;;  %v3963_v5 = vld [vmem:[%s4048_s27 + $0x1b0] ss:$8 sps:$4 sm:$0xff]  }
  0x9b   : > { %3134 = vmatprep.mubr.msk.bf16.mxu0 %vm1010_vm0, %v3887_v6  ;;  %3166 = vmatprep.mubr.msk.bf16.mxu1 %vm1010_vm0, %v3889_v7  ;;  %v3964_v6 = vld [vmem:[%s4048_s27 + $0x3b0] ss:$8 sps:$4 sm:$0xff]  }
  0xa2   : > { %1356 = vmatmul.mubr.bf16.gmra.mrb[60].mxu0 %v3891_v8  ;;  %1612 = vmatmul.mubr.bf16.gmra.mrb[60].mxu1 %v3892_v9  ;;  %v3965_v9 = vld [vmem:[%s4048_s27 + $0x1c4] ss:$8 sps:$4 sm:$0xff]  }
  0xa3   : > { %3135 = vmatprep.mubr.msk.bf16.mxu0 %vm1010_vm0, %v3893_v10  ;;  %3167 = vmatprep.mubr.msk.bf16.mxu1 %vm1010_vm0, %v3895_v11  ;;  %v3967_v10 = vld [vmem:[%s4048_s27 + $0x3c4] ss:$8 sps:$4 sm:$0xff]  }
  0xaa   : > { %1364 = vmatmul.mubr.bf16.gmra.mrb[64].mxu0 %v3897_v12  ;;  %1620 = vmatmul.mubr.bf16.gmra.mrb[64].mxu1 %v3898_v13 }
  0xab   : > { %3136 = vmatprep.mubr.msk.bf16.mxu0 %vm1010_vm0, %v3899_v14  ;;  %3168 = vmatprep.mubr.msk.bf16.mxu1 %vm1010_vm0, %v3901_v15 }
  0xb2   : > { %1372 = vmatmul.mubr.bf16.gmra.mrb[68].mxu0 %v3903_v16  ;;  %1628 = vmatmul.mubr.bf16.gmra.mrb[68].mxu1 %v3904_v17  ;;  %v3698_v17 = vld [vmem:[%s4236_s18 + $0x8] sm:$0xff]  }
  0xb3   : > { %3137 = vmatprep.mubr.msk.bf16.mxu0 %vm1010_vm0, %v3905_v18  ;;  %3169 = vmatprep.mubr.msk.bf16.mxu1 %vm1010_vm0, %v3907_v19  ;;  %v3730_v18 = vld [vmem:[%s4236_s18 + $0x108] sm:$0xff]  }
  0xba   : > { %1380 = vmatmul.mubr.bf16.gmra.mrb[72].mxu0 %v3909_v20  ;;  %1636 = vmatmul.mubr.bf16.gmra.mrb[72].mxu1 %v3910_v21 }
  0xbb   : > { %3138 = vmatprep.mubr.msk.bf16.mxu0 %vm1010_vm0, %v3911_v22  ;;  %3170 = vmatprep.mubr.msk.bf16.mxu1 %vm1010_vm0, %v3913_v23  ;;  %v3448_v23 = vunpack.c.l.bf16 %v3698_v17 }
  0xc2   : > { %1388 = vmatmul.mubr.bf16.gmra.mrb[76].mxu0 %v3915_v24  ;;  %1644 = vmatmul.mubr.bf16.gmra.mrb[76].mxu1 %v3916_v25  ;;  %v3576_v24 = vunpack.c.l.bf16 %v3730_v18 }
  0xc3   : > { %3139 = vmatprep.mubr.msk.bf16.mxu0 %vm1010_vm0, %v3917_v26  ;;  %3171 = vmatprep.mubr.msk.bf16.mxu1 %vm1010_vm0, %v3919_v27 }
  0xca   : > { %1396 = vmatmul.mubr.bf16.gmra.mrb[80].mxu0 %v3921_v28  ;;  %1652 = vmatmul.mubr.bf16.gmra.mrb[80].mxu1 %v3922_v29 }
  0xcb   : > { %3140 = vmatprep.mubr.msk.bf16.mxu0 %vm1010_vm0, %v3923_v30  ;;  %3172 = vmatprep.mubr.msk.bf16.mxu1 %vm1010_vm0, %v3925_v31  ;;  %v3449_v31 = vunpack.c.h.bf16 %v3698_v17 }
  0xd2   : > { %1404 = vmatmul.mubr.bf16.gmra.mrb[84].mxu0 %v3927_v32  ;;  %1660 = vmatmul.mubr.bf16.gmra.mrb[84].mxu1 %v3928_v33  ;;  %v3577_v32 = vunpack.c.h.bf16 %v3730_v18 }
  0xd3   : > { %3141 = vmatprep.mubr.msk.bf16.mxu0 %vm1010_vm0, %v3929_v34  ;;  %3173 = vmatprep.mubr.msk.bf16.mxu1 %vm1010_vm0, %v3931_v35 }
  0xda   : > { %1412 = vmatmul.mubr.bf16.gmra.mrb[88].mxu0 %v3933_v36  ;;  %1668 = vmatmul.mubr.bf16.gmra.mrb[88].mxu1 %v3934_v37 }
  0xdb   : > { %3142 = vmatprep.mubr.msk.bf16.mxu0 %vm1010_vm0, %v3935_v38  ;;  %3174 = vmatprep.mubr.msk.bf16.mxu1 %vm1010_vm0, %v3937_v39  ;;  %v3969_v39 = vld [vmem:[%s4048_s27 + $0x1c0] ss:$8 sps:$4 sm:$0xff]  }
  0xe2   : > { %1420 = vmatmul.mubr.bf16.gmra.mrb[92].mxu0 %v3939_v40  ;;  %1676 = vmatmul.mubr.bf16.gmra.mrb[92].mxu1 %v3940_v41  ;;  %v3970_v40 = vld [vmem:[%s4048_s27 + $0x3c0] ss:$8 sps:$4 sm:$0xff]  }
  0xe3   : > { %3143 = vmatprep.mubr.msk.bf16.mxu0 %vm1010_vm0, %v3941_v42  ;;  %3175 = vmatprep.mubr.msk.bf16.mxu1 %vm1010_vm0, %v3943_v43  ;;  %v3971_v43 = vld [vmem:[%s4048_s27 + $0x1d4] ss:$8 sps:$4 sm:$0xff]  }
  0xea   : > { %1428 = vmatmul.mubr.bf16.gmra.mrb[96].mxu0 %v3945_v44  ;;  %1684 = vmatmul.mubr.bf16.gmra.mrb[96].mxu1 %v3946_v45  ;;  %v3973_v44 = vld [vmem:[%s4048_s27 + $0x3d4] ss:$8 sps:$4 sm:$0xff]  }
  0xeb   : > { %3144 = vmatprep.mubr.msk.bf16.mxu0 %vm1010_vm0, %v3947_v46  ;;  %3176 = vmatprep.mubr.msk.bf16.mxu1 %vm1010_vm0, %v3949_v47 }
  0xf2   : > { %1436 = vmatmul.mubr.bf16.gmra.mrb[100].mxu0 %v3951_v48  ;;  %1692 = vmatmul.mubr.bf16.gmra.mrb[100].mxu1 %v3952_v49 }
  0xf3   : > { %3145 = vmatprep.mubr.msk.bf16.mxu0 %vm1010_vm0, %v3953_v50  ;;  %3177 = vmatprep.mubr.msk.bf16.mxu1 %vm1010_vm0, %v3955_v51  ;;  %v3699_v51 = vld [vmem:[%s4236_s18 + $0x10] sm:$0xff]  }
  0xf4   : > { %v3452_v57 = vunpack.c.l.bf16 %v3699_v51 }
  0xfa   : > { %1444 = vmatmul.mubr.bf16.gmra.mrb[104].mxu0 %v3957_v52  ;;  %1700 = vmatmul.mubr.bf16.gmra.mrb[104].mxu1 %v3958_v53  ;;  %v3731_v52 = vld [vmem:[%s4236_s18 + $0x110] sm:$0xff]  }
  0xfb   : > { %3146 = vmatprep.mubr.msk.bf16.mxu0 %vm1010_vm0, %v3959_v54  ;;  %3178 = vmatprep.mubr.msk.bf16.mxu1 %vm1010_vm0, %v3961_v55 }
  0xfd   : > { %v1237_v61 = vpop.f32.mrb[0].mxu0  ;;  %v1493_v62 = vpop.f32.mrb[0].mxu1 }
  0xfe   : > { %v1238_v63 = vadd.f32 %v4245_v58, %v1237_v61  ;;  %v1494_v0 = vadd.f32 %v4245_v58, %v1493_v62  ;;  %v1239_v1 = vpop.f32.mrb[1].mxu0  ;;  %v1495_v2 = vpop.f32.mrb[1].mxu1 }
  0xff   : > { %v1240_v7 = vpop.f32.mrb[2].mxu0  ;;  %v1496_v8 = vpop.f32.mrb[2].mxu1  ;;  %v3453_v2 = vunpack.c.h.bf16 %v3699_v51 }
 0x100   : > { %v2004_v11 = vadd.f32 %v3444_v59, %v1238_v63  ;;  %v2068_v12 = vadd.f32 %v3572_v60, %v1494_v0  ;;  %v1241_v13 = vadd.f32 %v4245_v58, %v1240_v7  ;;  %v1497_v14 = vadd.f32 %v4245_v58, %v1496_v8  ;;  %v1242_v15 = vpop.f32.mrb[3].mxu0  ;;  %v1498_v16 = vpop.f32.mrb[3].mxu1 }
 0x101   : > { %v3580_v59 = vunpack.c.l.bf16 %v3731_v52  ;;  %v3979_v15 = vld [vmem:[%s4048_s27 + $0x3e4] ss:$8 sps:$4 sm:$0xff]  }
 0x102   : > { %v2132_v19 = vmax.f32 %v2004_v11, 0.0  ;;  %v2196_v20 = vmax.f32 %v2068_v12, 0.0  ;;  %v2005_v21 = vadd.f32 %v3445_v3, %v1241_v13  ;;  %v2069_v22 = vadd.f32 %v3573_v4, %v1497_v14  ;;  %1452 = vmatmul.mubr.bf16.gmra.mrb[108].mxu0 %v3963_v5  ;;  %1708 = vmatmul.mubr.bf16.gmra.mrb[108].mxu1 %v3964_v6  ;;  %v3976_v11 = vld [vmem:[%s4048_s27 + $0x3d0] ss:$8 sps:$4 sm:$0xff]   ;;  %v3977_v14 = vld [vmem:[%s4048_s27 + $0x1e4] ss:$8 sps:$4 sm:$0xff]  }
 0x103   : > { %3147 = vmatprep.mubr.msk.bf16.mxu0 %vm1010_vm0, %v3965_v9  ;;  %3179 = vmatprep.mubr.msk.bf16.mxu1 %vm1010_vm0, %v3967_v10  ;;  %v3581_v3 = vunpack.c.h.bf16 %v3731_v52  ;;  %v3975_v10 = vld [vmem:[%s4048_s27 + $0x1d0] ss:$8 sps:$4 sm:$0xff]  }
 0x104   : > { %v3314_v25 = vpack.c.bf16 %v2132_v19, %v2132_v19  ;;  %v3378_v26 = vpack.c.bf16 %v2196_v20, %v2196_v20  ;;  %v2133_v27 = vmax.f32 %v2005_v21, 0.0  ;;  %v2197_v28 = vmax.f32 %v2069_v22, 0.0  ;;  %v3700_v22 = vld [vmem:[%s4236_s18 + $0x18] sm:$0xff]  }
 0x105   : > { %v1245_v29 = vpop.f32.mrb[4].mxu0  ;;  %v1501_v30 = vpop.f32.mrb[4].mxu1 }
 0x106   : > { %2773 = vst.msk [vmem:[%s4264_s24] sm:$0xf] %vm2772_vm1, %v3314_v25  ;;  %2837 = vst.msk [vmem:[%s4264_s24 + $0x100] sm:$0xf] %vm2772_vm1, %v3378_v26  ;;  %v3315_v33 = vpack.c.bf16 %v2133_v27, %v2133_v27  ;;  %v3379_v34 = vpack.c.bf16 %v2197_v28, %v2197_v28  ;;  %v1246_v35 = vadd.f32 %v4245_v58, %v1245_v29  ;;  %v1247_v37 = vpop.f32.mrb[5].mxu0  ;;  %v1503_v38 = vpop.f32.mrb[5].mxu1  ;;  %v3456_v28 = vunpack.c.l.bf16 %v3700_v22 }
 0x107   : > { %v1502_v36 = vadd.f32 %v4245_v58, %v1501_v30  ;;  %v1248_v41 = vpop.f32.mrb[6].mxu0  ;;  %v1504_v42 = vpop.f32.mrb[6].mxu1 }
 0x108   : > { %2774 = vst.msk [vmem:[%s4264_s24 + $0x4] sm:$0xf] %vm2772_vm1, %v3315_v33  ;;  %2838 = vst.msk [vmem:[%s4264_s24 + $0x104] sm:$0xf] %vm2772_vm1, %v3379_v34  ;;  %v2006_v45 = vadd.f32 %v3448_v23, %v1246_v35  ;;  %v1249_v47 = vadd.f32 %v4245_v58, %v1248_v41  ;;  %v1505_v48 = vadd.f32 %v4245_v58, %v1504_v42  ;;  %v1250_v49 = vpop.f32.mrb[7].mxu0  ;;  %v1506_v50 = vpop.f32.mrb[7].mxu1 }
 0x109   : > { %v2070_v46 = vadd.f32 %v3576_v24, %v1502_v36  ;;  %v3732_v23 = vld [vmem:[%s4236_s18 + $0x118] sm:$0xff]   ;;  %v3457_v36 = vunpack.c.h.bf16 %v3700_v22 }
 0x10a   : > { %v2134_v53 = vmax.f32 %v2006_v45, 0.0  ;;  %v2007_v55 = vadd.f32 %v3449_v31, %v1249_v47  ;;  %v2071_v56 = vadd.f32 %v3577_v32, %v1505_v48  ;;  %1460 = vmatmul.mubr.bf16.gmra.mrb[112].mxu0 %v3969_v39  ;;  %1716 = vmatmul.mubr.bf16.gmra.mrb[112].mxu1 %v3970_v40  ;;  %v3584_v29 = vunpack.c.l.bf16 %v3732_v23  ;;  %v3982_v45 = vld [vmem:[%s4048_s27 + $0x3e0] ss:$8 sps:$4 sm:$0xff]   ;;  %v3983_v48 = vld [vmem:[%s4048_s27 + $0x1f4] ss:$8 sps:$4 sm:$0xff]  }
 0x10b   : > { %v2198_v54 = vmax.f32 %v2070_v46, 0.0  ;;  %3148 = vmatprep.mubr.msk.bf16.mxu0 %vm1010_vm0, %v3971_v43  ;;  %3180 = vmatprep.mubr.msk.bf16.mxu1 %vm1010_vm0, %v3973_v44  ;;  %v3585_v37 = vunpack.c.h.bf16 %v3732_v23  ;;  %v3981_v44 = vld [vmem:[%s4048_s27 + $0x1e0] ss:$8 sps:$4 sm:$0xff]   ;;  %v3985_v49 = vld [vmem:[%s4048_s27 + $0x3f4] ss:$8 sps:$4 sm:$0xff]  }
 0x10c   : > { %v3316_v60 = vpack.c.bf16 %v2134_v53, %v2134_v53  ;;  %v2135_v62 = vmax.f32 %v2007_v55, 0.0  ;;  %v2199_v63 = vmax.f32 %v2071_v56, 0.0  ;;  %v3701_v56 = vld [vmem:[%s4236_s18 + $0x20] sm:$0xff]  }
 0x10d   : > { %v3380_v61 = vpack.c.bf16 %v2198_v54, %v2198_v54  ;;  %v1253_v0 = vpop.f32.mrb[8].mxu0  ;;  %v1509_v1 = vpop.f32.mrb[8].mxu1 }
 0x10e   : > { %2775 = vst.msk [vmem:[%s4264_s24 + $0x8] sm:$0xf] %vm2772_vm1, %v3316_v60  ;;  %v3317_v4 = vpack.c.bf16 %v2135_v62, %v2135_v62  ;;  %v3381_v5 = vpack.c.bf16 %v2199_v63, %v2199_v63  ;;  %v1254_v6 = vadd.f32 %v4245_v58, %v1253_v0  ;;  %v1510_v7 = vadd.f32 %v4245_v58, %v1509_v1  ;;  %v1255_v8 = vpop.f32.mrb[9].mxu0  ;;  %v1511_v9 = vpop.f32.mrb[9].mxu1 }
 0x10f   : > { %2839 = vst.msk [vmem:[%s4264_s24 + $0x108] sm:$0xf] %vm2772_vm1, %v3380_v61  ;;  %v1256_v12 = vpop.f32.mrb[10].mxu0  ;;  %v1512_v13 = vpop.f32.mrb[10].mxu1  ;;  %v3460_v63 = vunpack.c.l.bf16 %v3701_v56 }
 0x110   : > { %2776 = vst.msk [vmem:[%s4264_s24 + $0xc] sm:$0xf] %vm2772_vm1, %v3317_v4  ;;  %2840 = vst.msk [vmem:[%s4264_s24 + $0x10c] sm:$0xf] %vm2772_vm1, %v3381_v5  ;;  %v2008_v16 = vadd.f32 %v3452_v57, %v1254_v6  ;;  %v2072_v17 = vadd.f32 %v3580_v59, %v1510_v7  ;;  %v1257_v18 = vadd.f32 %v4245_v58, %v1256_v12  ;;  %v1258_v20 = vpop.f32.mrb[11].mxu0  ;;  %v1514_v21 = vpop.f32.mrb[11].mxu1  ;;  %v3461_v7 = vunpack.c.h.bf16 %v3701_v56 }
 0x111   : > { %v1513_v19 = vadd.f32 %v4245_v58, %v1512_v13  ;;  %v3733_v57 = vld [vmem:[%s4236_s18 + $0x120] sm:$0xff]   ;;  %v3735_v56 = vld [vmem:[%s4236_s18 + $0x130] sm:$0xff]  }
 0x112   : > { %v2136_v24 = vmax.f32 %v2008_v16, 0.0  ;;  %v2200_v25 = vmax.f32 %v2072_v17, 0.0  ;;  %v2009_v26 = vadd.f32 %v3453_v2, %v1257_v18  ;;  %1468 = vmatmul.mubr.bf16.gmra.mrb[116].mxu0 %v3975_v10  ;;  %1724 = vmatmul.mubr.bf16.gmra.mrb[116].mxu1 %v3976_v11  ;;  %v3588_v0 = vunpack.c.l.bf16 %v3733_v57  ;;  %v3988_v16 = vld [vmem:[%s4048_s27 + $0x3f0] ss:$8 sps:$4 sm:$0xff]  }
 0x113   : > { %v2073_v27 = vadd.f32 %v3581_v3, %v1513_v19  ;;  %3149 = vmatprep.mubr.msk.bf16.mxu0 %vm1010_vm0, %v3977_v14  ;;  %3181 = vmatprep.mubr.msk.bf16.mxu1 %vm1010_vm0, %v3979_v15  ;;  %v3589_v8 = vunpack.c.h.bf16 %v3733_v57  ;;  %v3987_v15 = vld [vmem:[%s4048_s27 + $0x1f0] ss:$8 sps:$4 sm:$0xff]  }
 0x114   : > { %v3318_v30 = vpack.c.bf16 %v2136_v24, %v2136_v24  ;;  %v3382_v31 = vpack.c.bf16 %v2200_v25, %v2200_v25  ;;  %v2137_v32 = vmax.f32 %v2009_v26, 0.0  ;;  %v3702_v25 = vld [vmem:[%s4236_s18 + $0x28] sm:$0xff]  }
 0x115   : > { %v2201_v33 = vmax.f32 %v2073_v27, 0.0  ;;  %v1261_v34 = vpop.f32.mrb[12].mxu0  ;;  %v1517_v35 = vpop.f32.mrb[12].mxu1  ;;  %v3734_v26 = vld [vmem:[%s4236_s18 + $0x128] sm:$0xff]  }
 0x116   : > { %2777 = vst.msk [vmem:[%s4264_s24 + $0x10] sm:$0xf] %vm2772_vm1, %v3318_v30  ;;  %2841 = vst.msk [vmem:[%s4264_s24 + $0x110] sm:$0xf] %vm2772_vm1, %v3382_v31  ;;  %v3319_v38 = vpack.c.bf16 %v2137_v32, %v2137_v32  ;;  %v1262_v40 = vadd.f32 %v4245_v58, %v1261_v34  ;;  %v1518_v41 = vadd.f32 %v4245_v58, %v1517_v35  ;;  %v1263_v42 = vpop.f32.mrb[13].mxu0  ;;  %v1519_v43 = vpop.f32.mrb[13].mxu1  ;;  %v3464_v31 = vunpack.c.l.bf16 %v3702_v25 }
 0x117   : > { %v3383_v39 = vpack.c.bf16 %v2201_v33, %v2201_v33  ;;  %v1264_v46 = vpop.f32.mrb[14].mxu0  ;;  %v1520_v47 = vpop.f32.mrb[14].mxu1  ;;  %v3592_v32 = vunpack.c.l.bf16 %v3734_v26 }
 0x118   : > { %2778 = vst.msk [vmem:[%s4264_s24 + $0x14] sm:$0xf] %vm2772_vm1, %v3319_v38  ;;  %v2010_v50 = vadd.f32 %v3456_v28, %v1262_v40  ;;  %v2074_v51 = vadd.f32 %v3584_v29, %v1518_v41  ;;  %v1265_v52 = vadd.f32 %v4245_v58, %v1264_v46  ;;  %v1521_v53 = vadd.f32 %v4245_v58, %v1520_v47  ;;  %v1266_v54 = vpop.f32.mrb[15].mxu0  ;;  %v1522_v55 = vpop.f32.mrb[15].mxu1 }
 0x119   : > { %2842 = vst.msk [vmem:[%s4264_s24 + $0x114] sm:$0xf] %vm2772_vm1, %v3383_v39  ;;  %v3465_v39 = vunpack.c.h.bf16 %v3702_v25  ;;  %v3593_v40 = vunpack.c.h.bf16 %v3734_v26  ;;  %v3703_v55 = vld [vmem:[%s4236_s18 + $0x30] sm:$0xff]  }
 0x11a   : > { %v2138_v59 = vmax.f32 %v2010_v50, 0.0  ;;  %v2202_v60 = vmax.f32 %v2074_v51, 0.0  ;;  %v2011_v61 = vadd.f32 %v3457_v36, %v1265_v52  ;;  %v2075_v62 = vadd.f32 %v3585_v37, %v1521_v53  ;;  %1476 = vmatmul.mubr.bf16.gmra.mrb[120].mxu0 %v3981_v44  ;;  %1732 = vmatmul.mubr.bf16.gmra.mrb[120].mxu1 %v3982_v45 }
 0x11b   : > { %3150 = vmatprep.mubr.msk.bf16.mxu0 %vm1010_vm0, %v3983_v48  ;;  %3182 = vmatprep.mubr.msk.bf16.mxu1 %vm1010_vm0, %v3985_v49 }
 0x11c   : > { %v3320_v1 = vpack.c.bf16 %v2138_v59, %v2138_v59  ;;  %v3384_v2 = vpack.c.bf16 %v2202_v60, %v2202_v60  ;;  %v2139_v3 = vmax.f32 %v2011_v61, 0.0  ;;  %v2203_v4 = vmax.f32 %v2075_v62, 0.0 }
 0x11d   : > { %v1269_v5 = vpop.f32.mrb[16].mxu0  ;;  %v1525_v6 = vpop.f32.mrb[16].mxu1  ;;  %v3468_v62 = vunpack.c.l.bf16 %v3703_v55 }
 0x11e   : > { %2779 = vst.msk [vmem:[%s4264_s24 + $0x18] sm:$0xf] %vm2772_vm1, %v3320_v1  ;;  %2843 = vst.msk [vmem:[%s4264_s24 + $0x118] sm:$0xf] %vm2772_vm1, %v3384_v2  ;;  %v3321_v9 = vpack.c.bf16 %v2139_v3, %v2139_v3  ;;  %v3385_v10 = vpack.c.bf16 %v2203_v4, %v2203_v4  ;;  %v1270_v11 = vadd.f32 %v4245_v58, %v1269_v5  ;;  %v1271_v13 = vpop.f32.mrb[17].mxu0  ;;  %v1527_v14 = vpop.f32.mrb[17].mxu1 }
 0x11f   : > { %v1526_v12 = vadd.f32 %v4245_v58, %v1525_v6  ;;  %v1272_v17 = vpop.f32.mrb[18].mxu0  ;;  %v1528_v18 = vpop.f32.mrb[18].mxu1  ;;  %v3469_v6 = vunpack.c.h.bf16 %v3703_v55 }
 0x120   : > { %2780 = vst.msk [vmem:[%s4264_s24 + $0x1c] sm:$0xf] %vm2772_vm1, %v3321_v9  ;;  %2844 = vst.msk [vmem:[%s4264_s24 + $0x11c] sm:$0xf] %vm2772_vm1, %v3385_v10  ;;  %v2012_v19 = vadd.f32 %v3460_v63, %v1270_v11  ;;  %v1273_v21 = vadd.f32 %v4245_v58, %v1272_v17  ;;  %v1529_v22 = vadd.f32 %v4245_v58, %v1528_v18  ;;  %v1274_v23 = vpop.f32.mrb[19].mxu0  ;;  %v1530_v24 = vpop.f32.mrb[19].mxu1  ;;  %v3596_v63 = vunpack.c.l.bf16 %v3735_v56 }
 0x121   : > { %v2076_v20 = vadd.f32 %v3588_v0, %v1526_v12  ;;  %v3736_v23 = vld [vmem:[%s4236_s18 + $0x138] sm:$0xff]  }
 0x122   : > { %v2140_v27 = vmax.f32 %v2012_v19, 0.0  ;;  %v2013_v29 = vadd.f32 %v3461_v7, %v1273_v21  ;;  %v2077_v30 = vadd.f32 %v3589_v8, %v1529_v22  ;;  %1484 = vmatmul.mubr.bf16.gmra.mrb[124].mxu0 %v3987_v15  ;;  %1740 = vmatmul.mubr.bf16.gmra.mrb[124].mxu1 %v3988_v16  ;;  %v3597_v7 = vunpack.c.h.bf16 %v3735_v56  ;;  %v3704_v22 = vld [vmem:[%s4236_s18 + $0x38] sm:$0xff]  }
 0x123   : > { %v2204_v28 = vmax.f32 %v2076_v20, 0.0 }
 0x124   : > { %v3322_v33 = vpack.c.bf16 %v2140_v27, %v2140_v27  ;;  %v2141_v35 = vmax.f32 %v2013_v29, 0.0  ;;  %v2205_v36 = vmax.f32 %v2077_v30, 0.0  ;;  %v3600_v29 = vunpack.c.l.bf16 %v3736_v23 }
 0x125   : > { %v3386_v34 = vpack.c.bf16 %v2204_v28, %v2204_v28  ;;  %v1277_v37 = vpop.f32.mrb[20].mxu0  ;;  %v1533_v38 = vpop.f32.mrb[20].mxu1  ;;  %v3472_v28 = vunpack.c.l.bf16 %v3704_v22 }
 0x126   : > { %2781 = vst.msk [vmem:[%s4264_s24 + $0x20] sm:$0xf] %vm2772_vm1, %v3322_v33  ;;  %v3323_v41 = vpack.c.bf16 %v2141_v35, %v2141_v35  ;;  %v3387_v42 = vpack.c.bf16 %v2205_v36, %v2205_v36  ;;  %v1278_v43 = vadd.f32 %v4245_v58, %v1277_v37  ;;  %v1534_v44 = vadd.f32 %v4245_v58, %v1533_v38  ;;  %v1279_v45 = vpop.f32.mrb[21].mxu0  ;;  %v1535_v46 = vpop.f32.mrb[21].mxu1 }
 0x127   : > { %2845 = vst.msk [vmem:[%s4264_s24 + $0x120] sm:$0xf] %vm2772_vm1, %v3386_v34  ;;  %v1280_v47 = vpop.f32.mrb[22].mxu0  ;;  %v1536_v48 = vpop.f32.mrb[22].mxu1  ;;  %v3473_v36 = vunpack.c.h.bf16 %v3704_v22  ;;  %v3601_v37 = vunpack.c.h.bf16 %v3736_v23 }
 0x128   : > { %2782 = vst.msk [vmem:[%s4264_s24 + $0x24] sm:$0xf] %vm2772_vm1, %v3323_v41  ;;  %2846 = vst.msk [vmem:[%s4264_s24 + $0x124] sm:$0xf] %vm2772_vm1, %v3387_v42  ;;  %v2014_v49 = vadd.f32 %v3464_v31, %v1278_v43  ;;  %v2078_v50 = vadd.f32 %v3592_v32, %v1534_v44  ;;  %v1281_v51 = vadd.f32 %v4245_v58, %v1280_v47  ;;  %v1282_v53 = vpop.f32.mrb[23].mxu0  ;;  %v1538_v54 = vpop.f32.mrb[23].mxu1 }
 0x129   : > { %v1537_v52 = vadd.f32 %v4245_v58, %v1536_v48  ;;  %v3737_v53 = vld [vmem:[%s4236_s18 + $0x140] sm:$0xff]  }
 0x12a   : > { %v2142_v57 = vmax.f32 %v2014_v49, 0.0  ;;  %v2206_v59 = vmax.f32 %v2078_v50, 0.0  ;;  %v2015_v60 = vadd.f32 %v3465_v39, %v1281_v51 }
 0x12b   : > { %v2079_v61 = vadd.f32 %v3593_v40, %v1537_v52  ;;  %v3705_v52 = vld [vmem:[%s4236_s18 + $0x40] sm:$0xff]  }
 0x12c   : > { %v3324_v0 = vpack.c.bf16 %v2142_v57, %v2142_v57  ;;  %v3388_v1 = vpack.c.bf16 %v2206_v59, %v2206_v59  ;;  %v2143_v2 = vmax.f32 %v2015_v60, 0.0  ;;  %v3476_v59 = vunpack.c.l.bf16 %v3705_v52 }
 0x12d   : > { %v2207_v3 = vmax.f32 %v2079_v61, 0.0  ;;  %v1285_v4 = vpop.f32.mrb[24].mxu0  ;;  %v1541_v5 = vpop.f32.mrb[24].mxu1  ;;  %v3604_v60 = vunpack.c.l.bf16 %v3737_v53 }
 0x12e   : > { %2783 = vst.msk [vmem:[%s4264_s24 + $0x28] sm:$0xf] %vm2772_vm1, %v3324_v0  ;;  %2847 = vst.msk [vmem:[%s4264_s24 + $0x128] sm:$0xf] %vm2772_vm1, %v3388_v1  ;;  %v3325_v8 = vpack.c.bf16 %v2143_v2, %v2143_v2  ;;  %v1286_v10 = vadd.f32 %v4245_v58, %v1285_v4  ;;  %v1542_v11 = vadd.f32 %v4245_v58, %v1541_v5  ;;  %v1287_v12 = vpop.f32.mrb[25].mxu0  ;;  %v1543_v13 = vpop.f32.mrb[25].mxu1  ;;  %v3605_v4 = vunpack.c.h.bf16 %v3737_v53 }
 0x12f   : > { %v3389_v9 = vpack.c.bf16 %v2207_v3, %v2207_v3  ;;  %v1288_v14 = vpop.f32.mrb[26].mxu0  ;;  %v1544_v15 = vpop.f32.mrb[26].mxu1  ;;  %v3477_v3 = vunpack.c.h.bf16 %v3705_v52 }
 0x130   : > { %2784 = vst.msk [vmem:[%s4264_s24 + $0x2c] sm:$0xf] %vm2772_vm1, %v3325_v8  ;;  %v2016_v16 = vadd.f32 %v3468_v62, %v1286_v10  ;;  %v2080_v17 = vadd.f32 %v3596_v63, %v1542_v11  ;;  %v1289_v18 = vadd.f32 %v4245_v58, %v1288_v14  ;;  %v1545_v19 = vadd.f32 %v4245_v58, %v1544_v15  ;;  %v1290_v20 = vpop.f32.mrb[27].mxu0  ;;  %v1546_v21 = vpop.f32.mrb[27].mxu1 }
 0x131   : > { %2848 = vst.msk [vmem:[%s4264_s24 + $0x12c] sm:$0xf] %vm2772_vm1, %v3389_v9  ;;  %v3738_v20 = vld [vmem:[%s4236_s18 + $0x148] sm:$0xff]  }
 0x132   : > { %v2144_v24 = vmax.f32 %v2016_v16, 0.0  ;;  %v2208_v25 = vmax.f32 %v2080_v17, 0.0  ;;  %v2017_v26 = vadd.f32 %v3469_v6, %v1289_v18  ;;  %v2081_v27 = vadd.f32 %v3597_v7, %v1545_v19  ;;  %v3706_v19 = vld [vmem:[%s4236_s18 + $0x48] sm:$0xff]  }
 0x134   : > { %v3326_v30 = vpack.c.bf16 %v2144_v24, %v2144_v24  ;;  %v3390_v31 = vpack.c.bf16 %v2208_v25, %v2208_v25  ;;  %v2145_v32 = vmax.f32 %v2017_v26, 0.0  ;;  %v2209_v33 = vmax.f32 %v2081_v27, 0.0 }
 0x135   : > { %v1293_v34 = vpop.f32.mrb[28].mxu0  ;;  %v1549_v35 = vpop.f32.mrb[28].mxu1  ;;  %v3480_v25 = vunpack.c.l.bf16 %v3706_v19  ;;  %v3608_v26 = vunpack.c.l.bf16 %v3738_v20 }
 0x136   : > { %2785 = vst.msk [vmem:[%s4264_s24 + $0x30] sm:$0xf] %vm2772_vm1, %v3326_v30  ;;  %2849 = vst.msk [vmem:[%s4264_s24 + $0x130] sm:$0xf] %vm2772_vm1, %v3390_v31  ;;  %v3327_v38 = vpack.c.bf16 %v2145_v32, %v2145_v32  ;;  %v3391_v39 = vpack.c.bf16 %v2209_v33, %v2209_v33  ;;  %v1294_v40 = vadd.f32 %v4245_v58, %v1293_v34  ;;  %v1295_v42 = vpop.f32.mrb[29].mxu0  ;;  %v1551_v43 = vpop.f32.mrb[29].mxu1  ;;  %v3481_v33 = vunpack.c.h.bf16 %v3706_v19 }
 0x137   : > { %v1550_v41 = vadd.f32 %v4245_v58, %v1549_v35  ;;  %v1296_v44 = vpop.f32.mrb[30].mxu0  ;;  %v1552_v45 = vpop.f32.mrb[30].mxu1  ;;  %v3609_v34 = vunpack.c.h.bf16 %v3738_v20 }
 0x138   : > { %2786 = vst.msk [vmem:[%s4264_s24 + $0x34] sm:$0xf] %vm2772_vm1, %v3327_v38  ;;  %2850 = vst.msk [vmem:[%s4264_s24 + $0x134] sm:$0xf] %vm2772_vm1, %v3391_v39  ;;  %v2018_v46 = vadd.f32 %v3472_v28, %v1294_v40  ;;  %v1297_v48 = vadd.f32 %v4245_v58, %v1296_v44  ;;  %v1553_v49 = vadd.f32 %v4245_v58, %v1552_v45  ;;  %v1298_v50 = vpop.f32.mrb[31].mxu0  ;;  %v1554_v51 = vpop.f32.mrb[31].mxu1 }
 0x139   : > { %v2082_v47 = vadd.f32 %v3600_v29, %v1550_v41  ;;  %v3739_v50 = vld [vmem:[%s4236_s18 + $0x150] sm:$0xff]  }
 0x13a   : > { %v2146_v54 = vmax.f32 %v2018_v46, 0.0  ;;  %v2019_v56 = vadd.f32 %v3473_v36, %v1297_v48  ;;  %v2083_v57 = vadd.f32 %v3601_v37, %v1553_v49  ;;  %v3707_v49 = vld [vmem:[%s4236_s18 + $0x50] sm:$0xff]  }
 0x13b   : > { %v2210_v55 = vmax.f32 %v2082_v47, 0.0 }
 0x13c   : > { %v3328_v61 = vpack.c.bf16 %v2146_v54, %v2146_v54  ;;  %v2147_v63 = vmax.f32 %v2019_v56, 0.0  ;;  %v2211_v0 = vmax.f32 %v2083_v57, 0.0  ;;  %v3612_v56 = vunpack.c.l.bf16 %v3739_v50 }
 0x13d   : > { %v3392_v62 = vpack.c.bf16 %v2210_v55, %v2210_v55  ;;  %v1301_v1 = vpop.f32.mrb[32].mxu0  ;;  %v1557_v2 = vpop.f32.mrb[32].mxu1  ;;  %v3484_v55 = vunpack.c.l.bf16 %v3707_v49 }
 0x13e   : > { %2787 = vst.msk [vmem:[%s4264_s24 + $0x38] sm:$0xf] %vm2772_vm1, %v3328_v61  ;;  %v3329_v5 = vpack.c.bf16 %v2147_v63, %v2147_v63  ;;  %v3393_v6 = vpack.c.bf16 %v2211_v0, %v2211_v0  ;;  %v1302_v7 = vadd.f32 %v4245_v58, %v1301_v1  ;;  %v1558_v8 = vadd.f32 %v4245_v58, %v1557_v2  ;;  %v1303_v9 = vpop.f32.mrb[33].mxu0  ;;  %v1559_v10 = vpop.f32.mrb[33].mxu1 }
 0x13f   : > { %2851 = vst.msk [vmem:[%s4264_s24 + $0x138] sm:$0xf] %vm2772_vm1, %v3392_v62  ;;  %v1304_v11 = vpop.f32.mrb[34].mxu0  ;;  %v1560_v12 = vpop.f32.mrb[34].mxu1  ;;  %v3485_v0 = vunpack.c.h.bf16 %v3707_v49  ;;  %v3613_v1 = vunpack.c.h.bf16 %v3739_v50 }
 0x140   : > { %2788 = vst.msk [vmem:[%s4264_s24 + $0x3c] sm:$0xf] %vm2772_vm1, %v3329_v5  ;;  %2852 = vst.msk [vmem:[%s4264_s24 + $0x13c] sm:$0xf] %vm2772_vm1, %v3393_v6  ;;  %v2020_v13 = vadd.f32 %v3476_v59, %v1302_v7  ;;  %v2084_v14 = vadd.f32 %v3604_v60, %v1558_v8  ;;  %v1305_v15 = vadd.f32 %v4245_v58, %v1304_v11  ;;  %v1306_v17 = vpop.f32.mrb[35].mxu0  ;;  %v1562_v18 = vpop.f32.mrb[35].mxu1 }
 0x141   : > { %v1561_v16 = vadd.f32 %v4245_v58, %v1560_v12  ;;  %v3740_v17 = vld [vmem:[%s4236_s18 + $0x158] sm:$0xff]  }
 0x142   : > { %v2148_v21 = vmax.f32 %v2020_v13, 0.0  ;;  %v2212_v22 = vmax.f32 %v2084_v14, 0.0  ;;  %v2021_v23 = vadd.f32 %v3477_v3, %v1305_v15 }
 0x143   : > { %v2085_v24 = vadd.f32 %v3605_v4, %v1561_v16  ;;  %v3708_v16 = vld [vmem:[%s4236_s18 + $0x58] sm:$0xff]  }
 0x144   : > { %v3330_v27 = vpack.c.bf16 %v2148_v21, %v2148_v21  ;;  %v3394_v28 = vpack.c.bf16 %v2212_v22, %v2212_v22  ;;  %v2149_v29 = vmax.f32 %v2021_v23, 0.0  ;;  %v3488_v22 = vunpack.c.l.bf16 %v3708_v16 }
 0x145   : > { %v2213_v30 = vmax.f32 %v2085_v24, 0.0  ;;  %v1309_v31 = vpop.f32.mrb[36].mxu0  ;;  %v1565_v32 = vpop.f32.mrb[36].mxu1  ;;  %v3616_v23 = vunpack.c.l.bf16 %v3740_v17 }
 0x146   : > { %2789 = vst.msk [vmem:[%s4264_s24 + $0x40] sm:$0xf] %vm2772_vm1, %v3330_v27  ;;  %2853 = vst.msk [vmem:[%s4264_s24 + $0x140] sm:$0xf] %vm2772_vm1, %v3394_v28  ;;  %v3331_v35 = vpack.c.bf16 %v2149_v29, %v2149_v29  ;;  %v1310_v37 = vadd.f32 %v4245_v58, %v1309_v31  ;;  %v1566_v38 = vadd.f32 %v4245_v58, %v1565_v32  ;;  %v1311_v39 = vpop.f32.mrb[37].mxu0  ;;  %v1567_v40 = vpop.f32.mrb[37].mxu1  ;;  %v3617_v31 = vunpack.c.h.bf16 %v3740_v17 }
 0x147   : > { %v3395_v36 = vpack.c.bf16 %v2213_v30, %v2213_v30  ;;  %v1312_v41 = vpop.f32.mrb[38].mxu0  ;;  %v1568_v42 = vpop.f32.mrb[38].mxu1  ;;  %v3489_v30 = vunpack.c.h.bf16 %v3708_v16 }
 0x148   : > { %2790 = vst.msk [vmem:[%s4264_s24 + $0x44] sm:$0xf] %vm2772_vm1, %v3331_v35  ;;  %v2022_v43 = vadd.f32 %v3480_v25, %v1310_v37  ;;  %v2086_v44 = vadd.f32 %v3608_v26, %v1566_v38  ;;  %v1313_v45 = vadd.f32 %v4245_v58, %v1312_v41  ;;  %v1569_v46 = vadd.f32 %v4245_v58, %v1568_v42  ;;  %v1314_v47 = vpop.f32.mrb[39].mxu0  ;;  %v1570_v48 = vpop.f32.mrb[39].mxu1 }
 0x149   : > { %2854 = vst.msk [vmem:[%s4264_s24 + $0x144] sm:$0xf] %vm2772_vm1, %v3395_v36  ;;  %v3741_v47 = vld [vmem:[%s4236_s18 + $0x160] sm:$0xff]  }
 0x14a   : > { %v2150_v51 = vmax.f32 %v2022_v43, 0.0  ;;  %v2214_v52 = vmax.f32 %v2086_v44, 0.0  ;;  %v2023_v53 = vadd.f32 %v3481_v33, %v1313_v45  ;;  %v2087_v54 = vadd.f32 %v3609_v34, %v1569_v46  ;;  %v3709_v46 = vld [vmem:[%s4236_s18 + $0x60] sm:$0xff]  }
 0x14c   : > { %v3332_v57 = vpack.c.bf16 %v2150_v51, %v2150_v51  ;;  %v3396_v59 = vpack.c.bf16 %v2214_v52, %v2214_v52  ;;  %v2151_v60 = vmax.f32 %v2023_v53, 0.0  ;;  %v2215_v61 = vmax.f32 %v2087_v54, 0.0 }
 0x14d   : > { %v1317_v62 = vpop.f32.mrb[40].mxu0  ;;  %v1573_v63 = vpop.f32.mrb[40].mxu1  ;;  %v3492_v52 = vunpack.c.l.bf16 %v3709_v46  ;;  %v3620_v53 = vunpack.c.l.bf16 %v3741_v47 }
 0x14e   : > { %2791 = vst.msk [vmem:[%s4264_s24 + $0x48] sm:$0xf] %vm2772_vm1, %v3332_v57  ;;  %2855 = vst.msk [vmem:[%s4264_s24 + $0x148] sm:$0xf] %vm2772_vm1, %v3396_v59  ;;  %v3333_v2 = vpack.c.bf16 %v2151_v60, %v2151_v60  ;;  %v3397_v3 = vpack.c.bf16 %v2215_v61, %v2215_v61  ;;  %v1318_v4 = vadd.f32 %v4245_v58, %v1317_v62  ;;  %v1319_v6 = vpop.f32.mrb[41].mxu0  ;;  %v1575_v7 = vpop.f32.mrb[41].mxu1  ;;  %v3493_v61 = vunpack.c.h.bf16 %v3709_v46 }
 0x14f   : > { %v1574_v5 = vadd.f32 %v4245_v58, %v1573_v63  ;;  %v1320_v8 = vpop.f32.mrb[42].mxu0  ;;  %v1576_v9 = vpop.f32.mrb[42].mxu1  ;;  %v3621_v62 = vunpack.c.h.bf16 %v3741_v47 }
 0x150   : > { %2792 = vst.msk [vmem:[%s4264_s24 + $0x4c] sm:$0xf] %vm2772_vm1, %v3333_v2  ;;  %2856 = vst.msk [vmem:[%s4264_s24 + $0x14c] sm:$0xf] %vm2772_vm1, %v3397_v3  ;;  %v2024_v10 = vadd.f32 %v3484_v55, %v1318_v4  ;;  %v1321_v12 = vadd.f32 %v4245_v58, %v1320_v8  ;;  %v1577_v13 = vadd.f32 %v4245_v58, %v1576_v9  ;;  %v1322_v14 = vpop.f32.mrb[43].mxu0  ;;  %v1578_v15 = vpop.f32.mrb[43].mxu1 }
 0x151   : > { %v2088_v11 = vadd.f32 %v3612_v56, %v1574_v5  ;;  %v3742_v14 = vld [vmem:[%s4236_s18 + $0x168] sm:$0xff]  }
 0x152   : > { %v2152_v18 = vmax.f32 %v2024_v10, 0.0  ;;  %v2025_v20 = vadd.f32 %v3485_v0, %v1321_v12  ;;  %v2089_v21 = vadd.f32 %v3613_v1, %v1577_v13  ;;  %v3710_v13 = vld [vmem:[%s4236_s18 + $0x68] sm:$0xff]  }
 0x153   : > { %v2216_v19 = vmax.f32 %v2088_v11, 0.0 }
 0x154   : > { %v3334_v24 = vpack.c.bf16 %v2152_v18, %v2152_v18  ;;  %v2153_v26 = vmax.f32 %v2025_v20, 0.0  ;;  %v2217_v27 = vmax.f32 %v2089_v21, 0.0  ;;  %v3624_v20 = vunpack.c.l.bf16 %v3742_v14 }
 0x155   : > { %v3398_v25 = vpack.c.bf16 %v2216_v19, %v2216_v19  ;;  %v1325_v28 = vpop.f32.mrb[44].mxu0  ;;  %v1581_v29 = vpop.f32.mrb[44].mxu1  ;;  %v3496_v19 = vunpack.c.l.bf16 %v3710_v13 }
 0x156   : > { %2793 = vst.msk [vmem:[%s4264_s24 + $0x50] sm:$0xf] %vm2772_vm1, %v3334_v24  ;;  %v3335_v32 = vpack.c.bf16 %v2153_v26, %v2153_v26  ;;  %v3399_v33 = vpack.c.bf16 %v2217_v27, %v2217_v27  ;;  %v1326_v34 = vadd.f32 %v4245_v58, %v1325_v28  ;;  %v1582_v35 = vadd.f32 %v4245_v58, %v1581_v29  ;;  %v1327_v36 = vpop.f32.mrb[45].mxu0  ;;  %v1583_v37 = vpop.f32.mrb[45].mxu1 }
 0x157   : > { %2857 = vst.msk [vmem:[%s4264_s24 + $0x150] sm:$0xf] %vm2772_vm1, %v3398_v25  ;;  %v1328_v38 = vpop.f32.mrb[46].mxu0  ;;  %v1584_v39 = vpop.f32.mrb[46].mxu1  ;;  %v3497_v27 = vunpack.c.h.bf16 %v3710_v13  ;;  %v3625_v28 = vunpack.c.h.bf16 %v3742_v14 }
 0x158   : > { %2794 = vst.msk [vmem:[%s4264_s24 + $0x54] sm:$0xf] %vm2772_vm1, %v3335_v32  ;;  %2858 = vst.msk [vmem:[%s4264_s24 + $0x154] sm:$0xf] %vm2772_vm1, %v3399_v33  ;;  %v2026_v40 = vadd.f32 %v3488_v22, %v1326_v34  ;;  %v2090_v41 = vadd.f32 %v3616_v23, %v1582_v35  ;;  %v1329_v42 = vadd.f32 %v4245_v58, %v1328_v38  ;;  %v1330_v44 = vpop.f32.mrb[47].mxu0  ;;  %v1586_v45 = vpop.f32.mrb[47].mxu1 }
 0x159   : > { %v1585_v43 = vadd.f32 %v4245_v58, %v1584_v39  ;;  %v3743_v44 = vld [vmem:[%s4236_s18 + $0x170] sm:$0xff]  }
 0x15a   : > { %v2154_v48 = vmax.f32 %v2026_v40, 0.0  ;;  %v2218_v49 = vmax.f32 %v2090_v41, 0.0  ;;  %v2027_v50 = vadd.f32 %v3489_v30, %v1329_v42 }
 0x15b   : > { %v2091_v51 = vadd.f32 %v3617_v31, %v1585_v43  ;;  %v3711_v43 = vld [vmem:[%s4236_s18 + $0x70] sm:$0xff]  }
 0x15c   : > { %v3336_v54 = vpack.c.bf16 %v2154_v48, %v2154_v48  ;;  %v3400_v55 = vpack.c.bf16 %v2218_v49, %v2218_v49  ;;  %v2155_v56 = vmax.f32 %v2027_v50, 0.0  ;;  %v3500_v49 = vunpack.c.l.bf16 %v3711_v43 }
 0x15d   : > { %v2219_v57 = vmax.f32 %v2091_v51, 0.0  ;;  %v1333_v59 = vpop.f32.mrb[48].mxu0  ;;  %v1589_v60 = vpop.f32.mrb[48].mxu1  ;;  %v3628_v50 = vunpack.c.l.bf16 %v3743_v44 }
 0x15e   : > { %2795 = vst.msk [vmem:[%s4264_s24 + $0x58] sm:$0xf] %vm2772_vm1, %v3336_v54  ;;  %2859 = vst.msk [vmem:[%s4264_s24 + $0x158] sm:$0xf] %vm2772_vm1, %v3400_v55  ;;  %v3337_v63 = vpack.c.bf16 %v2155_v56, %v2155_v56  ;;  %v1334_v1 = vadd.f32 %v4245_v58, %v1333_v59  ;;  %v1590_v2 = vadd.f32 %v4245_v58, %v1589_v60  ;;  %v1335_v3 = vpop.f32.mrb[49].mxu0  ;;  %v1591_v4 = vpop.f32.mrb[49].mxu1  ;;  %v3501_v56 = vunpack.c.h.bf16 %v3711_v43 }
 0x15f   : > { %v3401_v0 = vpack.c.bf16 %v2219_v57, %v2219_v57  ;;  %v1336_v5 = vpop.f32.mrb[50].mxu0  ;;  %v1592_v6 = vpop.f32.mrb[50].mxu1  ;;  %v3629_v57 = vunpack.c.h.bf16 %v3743_v44 }
 0x160   : > { %2796 = vst.msk [vmem:[%s4264_s24 + $0x5c] sm:$0xf] %vm2772_vm1, %v3337_v63  ;;  %v2028_v7 = vadd.f32 %v3492_v52, %v1334_v1  ;;  %v2092_v8 = vadd.f32 %v3620_v53, %v1590_v2  ;;  %v1337_v9 = vadd.f32 %v4245_v58, %v1336_v5  ;;  %v1593_v10 = vadd.f32 %v4245_v58, %v1592_v6  ;;  %v1338_v11 = vpop.f32.mrb[51].mxu0  ;;  %v1594_v12 = vpop.f32.mrb[51].mxu1 }
 0x161   : > { %2860 = vst.msk [vmem:[%s4264_s24 + $0x15c] sm:$0xf] %vm2772_vm1, %v3401_v0  ;;  %v3744_v11 = vld [vmem:[%s4236_s18 + $0x178] sm:$0xff]  }
 0x162   : > { %v2156_v15 = vmax.f32 %v2028_v7, 0.0  ;;  %v2220_v16 = vmax.f32 %v2092_v8, 0.0  ;;  %v2029_v17 = vadd.f32 %v3493_v61, %v1337_v9  ;;  %v2093_v18 = vadd.f32 %v3621_v62, %v1593_v10  ;;  %v4477_v61 = vld [vmem:[%s4743_s2] ss:$0 sm:$0xff]  ;;  %v3712_v10 = vld [vmem:[%s4236_s18 + $0x78] sm:$0xff]  }
 0x164   : > { %v3338_v21 = vpack.c.bf16 %v2156_v15, %v2156_v15  ;;  %v3402_v22 = vpack.c.bf16 %v2220_v16, %v2220_v16  ;;  %v2157_v23 = vmax.f32 %v2029_v17, 0.0  ;;  %v2221_v24 = vmax.f32 %v2093_v18, 0.0 }
 0x165   : > { %v1341_v25 = vpop.f32.mrb[52].mxu0  ;;  %v1597_v26 = vpop.f32.mrb[52].mxu1  ;;  %v3504_v16 = vunpack.c.l.bf16 %v3712_v10  ;;  %v3632_v17 = vunpack.c.l.bf16 %v3744_v11 }
 0x166   : > { %2797 = vst.msk [vmem:[%s4264_s24 + $0x60] sm:$0xf] %vm2772_vm1, %v3338_v21  ;;  %2861 = vst.msk [vmem:[%s4264_s24 + $0x160] sm:$0xf] %vm2772_vm1, %v3402_v22  ;;  %v3339_v29 = vpack.c.bf16 %v2157_v23, %v2157_v23  ;;  %v3403_v30 = vpack.c.bf16 %v2221_v24, %v2221_v24  ;;  %v1342_v31 = vadd.f32 %v4245_v58, %v1341_v25  ;;  %v1343_v33 = vpop.f32.mrb[53].mxu0  ;;  %v1599_v34 = vpop.f32.mrb[53].mxu1  ;;  %v3505_v24 = vunpack.c.h.bf16 %v3712_v10 }
 0x167   : > { %v1598_v32 = vadd.f32 %v4245_v58, %v1597_v26  ;;  %v1344_v35 = vpop.f32.mrb[54].mxu0  ;;  %v1600_v36 = vpop.f32.mrb[54].mxu1  ;;  %v3633_v25 = vunpack.c.h.bf16 %v3744_v11 }
 0x168   : > { %2798 = vst.msk [vmem:[%s4264_s24 + $0x64] sm:$0xf] %vm2772_vm1, %v3339_v29  ;;  %2862 = vst.msk [vmem:[%s4264_s24 + $0x164] sm:$0xf] %vm2772_vm1, %v3403_v30  ;;  %v2030_v37 = vadd.f32 %v3496_v19, %v1342_v31  ;;  %v1345_v39 = vadd.f32 %v4245_v58, %v1344_v35  ;;  %v1601_v40 = vadd.f32 %v4245_v58, %v1600_v36  ;;  %v1346_v41 = vpop.f32.mrb[55].mxu0  ;;  %v1602_v42 = vpop.f32.mrb[55].mxu1 }
 0x169   : > { %v2094_v38 = vadd.f32 %v3624_v20, %v1598_v32  ;;  %v3745_v41 = vld [vmem:[%s4236_s18 + $0x180] sm:$0xff]  }
 0x16a   : > { %v2158_v45 = vmax.f32 %v2030_v37, 0.0  ;;  %v2031_v47 = vadd.f32 %v3497_v27, %v1345_v39  ;;  %v2095_v48 = vadd.f32 %v3625_v28, %v1601_v40  ;;  %v3713_v40 = vld [vmem:[%s4236_s18 + $0x80] sm:$0xff]  }
 0x16b   : > { %v2222_v46 = vmax.f32 %v2094_v38, 0.0 }
 0x16c   : > { %v3340_v51 = vpack.c.bf16 %v2158_v45, %v2158_v45  ;;  %v2159_v53 = vmax.f32 %v2031_v47, 0.0  ;;  %v2223_v54 = vmax.f32 %v2095_v48, 0.0  ;;  %v3636_v47 = vunpack.c.l.bf16 %v3745_v41 }
 0x16d   : > { %v3404_v52 = vpack.c.bf16 %v2222_v46, %v2222_v46  ;;  %v1349_v55 = vpop.f32.mrb[56].mxu0  ;;  %v1605_v58 = vpop.f32.mrb[56].mxu1  ;;  %v3508_v46 = vunpack.c.l.bf16 %v3713_v40 }
 0x16e   : > { %2799 = vst.msk [vmem:[%s4264_s24 + $0x68] sm:$0xf] %vm2772_vm1, %v3340_v51  ;;  %v3341_v59 = vpack.c.bf16 %v2159_v53, %v2159_v53  ;;  %v3405_v60 = vpack.c.bf16 %v2223_v54, %v2223_v54  ;;  %v1350_v62 = vadd.f32 %v4477_v61, %v1349_v55  ;;  %v1606_v63 = vadd.f32 %v4477_v61, %v1605_v58  ;;  %v1351_v0 = vpop.f32.mrb[57].mxu0  ;;  %v1607_v1 = vpop.f32.mrb[57].mxu1 }
 0x16f   : > { %2863 = vst.msk [vmem:[%s4264_s24 + $0x168] sm:$0xf] %vm2772_vm1, %v3404_v52  ;;  %v1352_v2 = vpop.f32.mrb[58].mxu0  ;;  %v1608_v3 = vpop.f32.mrb[58].mxu1  ;;  %v3509_v54 = vunpack.c.h.bf16 %v3713_v40  ;;  %v3637_v55 = vunpack.c.h.bf16 %v3745_v41 }
 0x170   : > { %2800 = vst.msk [vmem:[%s4264_s24 + $0x6c] sm:$0xf] %vm2772_vm1, %v3341_v59  ;;  %2864 = vst.msk [vmem:[%s4264_s24 + $0x16c] sm:$0xf] %vm2772_vm1, %v3405_v60  ;;  %v2032_v4 = vadd.f32 %v3500_v49, %v1350_v62  ;;  %v2096_v5 = vadd.f32 %v3628_v50, %v1606_v63  ;;  %v1353_v6 = vadd.f32 %v4477_v61, %v1352_v2  ;;  %v1354_v8 = vpop.f32.mrb[59].mxu0  ;;  %v1610_v9 = vpop.f32.mrb[59].mxu1 }
 0x171   : > { %v1609_v7 = vadd.f32 %v4477_v61, %v1608_v3  ;;  %v3746_v8 = vld [vmem:[%s4236_s18 + $0x188] sm:$0xff]  }
 0x172   : > { %v2160_v12 = vmax.f32 %v2032_v4, 0.0  ;;  %v2224_v13 = vmax.f32 %v2096_v5, 0.0  ;;  %v2033_v14 = vadd.f32 %v3501_v56, %v1353_v6 }
 0x173   : > { %v2097_v15 = vadd.f32 %v3629_v57, %v1609_v7  ;;  %v3714_v7 = vld [vmem:[%s4236_s18 + $0x88] sm:$0xff]  }
 0x174   : > { %v3342_v18 = vpack.c.bf16 %v2160_v12, %v2160_v12  ;;  %v3406_v19 = vpack.c.bf16 %v2224_v13, %v2224_v13  ;;  %v2161_v20 = vmax.f32 %v2033_v14, 0.0  ;;  %v3512_v13 = vunpack.c.l.bf16 %v3714_v7 }
 0x175   : > { %v2225_v21 = vmax.f32 %v2097_v15, 0.0  ;;  %v1357_v22 = vpop.f32.mrb[60].mxu0  ;;  %v1613_v23 = vpop.f32.mrb[60].mxu1  ;;  %v3640_v14 = vunpack.c.l.bf16 %v3746_v8 }
 0x176   : > { %2801 = vst.msk [vmem:[%s4264_s24 + $0x70] sm:$0xf] %vm2772_vm1, %v3342_v18  ;;  %2865 = vst.msk [vmem:[%s4264_s24 + $0x170] sm:$0xf] %vm2772_vm1, %v3406_v19  ;;  %v3343_v26 = vpack.c.bf16 %v2161_v20, %v2161_v20  ;;  %v1358_v28 = vadd.f32 %v4477_v61, %v1357_v22  ;;  %v1614_v29 = vadd.f32 %v4477_v61, %v1613_v23  ;;  %v1359_v30 = vpop.f32.mrb[61].mxu0  ;;  %v1615_v31 = vpop.f32.mrb[61].mxu1  ;;  %v3641_v22 = vunpack.c.h.bf16 %v3746_v8 }
 0x177   : > { %v3407_v27 = vpack.c.bf16 %v2225_v21, %v2225_v21  ;;  %v1360_v32 = vpop.f32.mrb[62].mxu0  ;;  %v1616_v33 = vpop.f32.mrb[62].mxu1  ;;  %v3513_v21 = vunpack.c.h.bf16 %v3714_v7 }
 0x178   : > { %2802 = vst.msk [vmem:[%s4264_s24 + $0x74] sm:$0xf] %vm2772_vm1, %v3343_v26  ;;  %v2034_v34 = vadd.f32 %v3504_v16, %v1358_v28  ;;  %v2098_v35 = vadd.f32 %v3632_v17, %v1614_v29  ;;  %v1361_v36 = vadd.f32 %v4477_v61, %v1360_v32  ;;  %v1617_v37 = vadd.f32 %v4477_v61, %v1616_v33  ;;  %v1362_v38 = vpop.f32.mrb[63].mxu0  ;;  %v1618_v39 = vpop.f32.mrb[63].mxu1 }
 0x179   : > { %2866 = vst.msk [vmem:[%s4264_s24 + $0x174] sm:$0xf] %vm2772_vm1, %v3407_v27  ;;  %v3747_v38 = vld [vmem:[%s4236_s18 + $0x190] sm:$0xff]  }
 0x17a   : > { %v2162_v42 = vmax.f32 %v2034_v34, 0.0  ;;  %v2226_v43 = vmax.f32 %v2098_v35, 0.0  ;;  %v2035_v44 = vadd.f32 %v3505_v24, %v1361_v36  ;;  %v2099_v45 = vadd.f32 %v3633_v25, %v1617_v37  ;;  %v3715_v37 = vld [vmem:[%s4236_s18 + $0x90] sm:$0xff]  }
 0x17c   : > { %v3344_v48 = vpack.c.bf16 %v2162_v42, %v2162_v42  ;;  %v3408_v49 = vpack.c.bf16 %v2226_v43, %v2226_v43  ;;  %v2163_v50 = vmax.f32 %v2035_v44, 0.0  ;;  %v2227_v51 = vmax.f32 %v2099_v45, 0.0 }
 0x17d   : > { %v1365_v52 = vpop.f32.mrb[64].mxu0  ;;  %v1621_v53 = vpop.f32.mrb[64].mxu1  ;;  %v3516_v43 = vunpack.c.l.bf16 %v3715_v37  ;;  %v3644_v44 = vunpack.c.l.bf16 %v3747_v38 }
 0x17e   : > { %2803 = vst.msk [vmem:[%s4264_s24 + $0x78] sm:$0xf] %vm2772_vm1, %v3344_v48  ;;  %2867 = vst.msk [vmem:[%s4264_s24 + $0x178] sm:$0xf] %vm2772_vm1, %v3408_v49  ;;  %v3345_v58 = vpack.c.bf16 %v2163_v50, %v2163_v50  ;;  %v3409_v56 = vpack.c.bf16 %v2227_v51, %v2227_v51  ;;  %v1366_v57 = vadd.f32 %v4477_v61, %v1365_v52  ;;  %v1367_v60 = vpop.f32.mrb[65].mxu0  ;;  %v1623_v62 = vpop.f32.mrb[65].mxu1  ;;  %v3517_v51 = vunpack.c.h.bf16 %v3715_v37 }
 0x17f   : > { %v1622_v59 = vadd.f32 %v4477_v61, %v1621_v53  ;;  %v1368_v63 = vpop.f32.mrb[66].mxu0  ;;  %v1624_v0 = vpop.f32.mrb[66].mxu1  ;;  %v3645_v52 = vunpack.c.h.bf16 %v3747_v38 }
 0x180   : > { %2804 = vst.msk [vmem:[%s4264_s24 + $0x7c] sm:$0xf] %vm2772_vm1, %v3345_v58  ;;  %2868 = vst.msk [vmem:[%s4264_s24 + $0x17c] sm:$0xf] %vm2772_vm1, %v3409_v56  ;;  %v2036_v1 = vadd.f32 %v3508_v46, %v1366_v57  ;;  %v1369_v3 = vadd.f32 %v4477_v61, %v1368_v63  ;;  %v1625_v4 = vadd.f32 %v4477_v61, %v1624_v0  ;;  %v1370_v5 = vpop.f32.mrb[67].mxu0  ;;  %v1626_v6 = vpop.f32.mrb[67].mxu1 }
 0x181   : > { %v2100_v2 = vadd.f32 %v3636_v47, %v1622_v59  ;;  %v3748_v5 = vld [vmem:[%s4236_s18 + $0x198] sm:$0xff]  }
 0x182   : > { %v2164_v9 = vmax.f32 %v2036_v1, 0.0  ;;  %v2037_v11 = vadd.f32 %v3509_v54, %v1369_v3  ;;  %v2101_v12 = vadd.f32 %v3637_v55, %v1625_v4  ;;  %v3716_v4 = vld [vmem:[%s4236_s18 + $0x98] sm:$0xff]  }
 0x183   : > { %v2228_v10 = vmax.f32 %v2100_v2, 0.0 }
 0x184   : > { %v3346_v15 = vpack.c.bf16 %v2164_v9, %v2164_v9  ;;  %v2165_v17 = vmax.f32 %v2037_v11, 0.0  ;;  %v2229_v18 = vmax.f32 %v2101_v12, 0.0  ;;  %v3648_v11 = vunpack.c.l.bf16 %v3748_v5 }
 0x185   : > { %v3410_v16 = vpack.c.bf16 %v2228_v10, %v2228_v10  ;;  %v1373_v19 = vpop.f32.mrb[68].mxu0  ;;  %v1629_v20 = vpop.f32.mrb[68].mxu1  ;;  %v3520_v10 = vunpack.c.l.bf16 %v3716_v4 }
 0x186   : > { %2805 = vst.msk [vmem:[%s4264_s24 + $0x80] sm:$0xf] %vm2772_vm1, %v3346_v15  ;;  %v3347_v23 = vpack.c.bf16 %v2165_v17, %v2165_v17  ;;  %v3411_v24 = vpack.c.bf16 %v2229_v18, %v2229_v18  ;;  %v1374_v25 = vadd.f32 %v4477_v61, %v1373_v19  ;;  %v1630_v26 = vadd.f32 %v4477_v61, %v1629_v20  ;;  %v1375_v27 = vpop.f32.mrb[69].mxu0  ;;  %v1631_v28 = vpop.f32.mrb[69].mxu1 }
 0x187   : > { %2869 = vst.msk [vmem:[%s4264_s24 + $0x180] sm:$0xf] %vm2772_vm1, %v3410_v16  ;;  %v1376_v29 = vpop.f32.mrb[70].mxu0  ;;  %v1632_v30 = vpop.f32.mrb[70].mxu1  ;;  %v3521_v18 = vunpack.c.h.bf16 %v3716_v4  ;;  %v3649_v19 = vunpack.c.h.bf16 %v3748_v5 }
 0x188   : > { %2806 = vst.msk [vmem:[%s4264_s24 + $0x84] sm:$0xf] %vm2772_vm1, %v3347_v23  ;;  %2870 = vst.msk [vmem:[%s4264_s24 + $0x184] sm:$0xf] %vm2772_vm1, %v3411_v24  ;;  %v2038_v31 = vadd.f32 %v3512_v13, %v1374_v25  ;;  %v2102_v32 = vadd.f32 %v3640_v14, %v1630_v26  ;;  %v1377_v33 = vadd.f32 %v4477_v61, %v1376_v29  ;;  %v1378_v35 = vpop.f32.mrb[71].mxu0  ;;  %v1634_v36 = vpop.f32.mrb[71].mxu1 }
 0x189   : > { %v1633_v34 = vadd.f32 %v4477_v61, %v1632_v30  ;;  %v3749_v35 = vld [vmem:[%s4236_s18 + $0x1a0] sm:$0xff]  }
 0x18a   : > { %v2166_v39 = vmax.f32 %v2038_v31, 0.0  ;;  %v2230_v40 = vmax.f32 %v2102_v32, 0.0  ;;  %v2039_v41 = vadd.f32 %v3513_v21, %v1377_v33 }
 0x18b   : > { %v2103_v42 = vadd.f32 %v3641_v22, %v1633_v34  ;;  %v3717_v34 = vld [vmem:[%s4236_s18 + $0xa0] sm:$0xff]  }
 0x18c   : > { %v3348_v45 = vpack.c.bf16 %v2166_v39, %v2166_v39  ;;  %v3412_v46 = vpack.c.bf16 %v2230_v40, %v2230_v40  ;;  %v2167_v47 = vmax.f32 %v2039_v41, 0.0  ;;  %v3524_v40 = vunpack.c.l.bf16 %v3717_v34 }
 0x18d   : > { %v2231_v48 = vmax.f32 %v2103_v42, 0.0  ;;  %v1381_v49 = vpop.f32.mrb[72].mxu0  ;;  %v1637_v50 = vpop.f32.mrb[72].mxu1  ;;  %v3652_v41 = vunpack.c.l.bf16 %v3749_v35 }
 0x18e   : > { %2807 = vst.msk [vmem:[%s4264_s24 + $0x88] sm:$0xf] %vm2772_vm1, %v3348_v45  ;;  %2871 = vst.msk [vmem:[%s4264_s24 + $0x188] sm:$0xf] %vm2772_vm1, %v3412_v46  ;;  %v3349_v53 = vpack.c.bf16 %v2167_v47, %v2167_v47  ;;  %v1382_v55 = vadd.f32 %v4477_v61, %v1381_v49  ;;  %v1638_v58 = vadd.f32 %v4477_v61, %v1637_v50  ;;  %v1383_v56 = vpop.f32.mrb[73].mxu0  ;;  %v1639_v57 = vpop.f32.mrb[73].mxu1  ;;  %v3653_v49 = vunpack.c.h.bf16 %v3749_v35 }
 0x18f   : > { %v3413_v54 = vpack.c.bf16 %v2231_v48, %v2231_v48  ;;  %v1384_v59 = vpop.f32.mrb[74].mxu0  ;;  %v1640_v60 = vpop.f32.mrb[74].mxu1  ;;  %v3525_v48 = vunpack.c.h.bf16 %v3717_v34 }
 0x190   : > { %2808 = vst.msk [vmem:[%s4264_s24 + $0x8c] sm:$0xf] %vm2772_vm1, %v3349_v53  ;;  %v2040_v62 = vadd.f32 %v3516_v43, %v1382_v55  ;;  %v2104_v63 = vadd.f32 %v3644_v44, %v1638_v58  ;;  %v1385_v0 = vadd.f32 %v4477_v61, %v1384_v59  ;;  %v1641_v1 = vadd.f32 %v4477_v61, %v1640_v60  ;;  %v1386_v2 = vpop.f32.mrb[75].mxu0  ;;  %v1642_v3 = vpop.f32.mrb[75].mxu1 }
 0x191   : > { %2872 = vst.msk [vmem:[%s4264_s24 + $0x18c] sm:$0xf] %vm2772_vm1, %v3413_v54  ;;  %v3750_v2 = vld [vmem:[%s4236_s18 + $0x1a8] sm:$0xff]  }
 0x192   : > { %v2168_v6 = vmax.f32 %v2040_v62, 0.0  ;;  %v2232_v7 = vmax.f32 %v2104_v63, 0.0  ;;  %v2041_v8 = vadd.f32 %v3517_v51, %v1385_v0  ;;  %v2105_v9 = vadd.f32 %v3645_v52, %v1641_v1  ;;  %v3718_v1 = vld [vmem:[%s4236_s18 + $0xa8] sm:$0xff]  }
 0x194   : > { %v3350_v12 = vpack.c.bf16 %v2168_v6, %v2168_v6  ;;  %v3414_v13 = vpack.c.bf16 %v2232_v7, %v2232_v7  ;;  %v2169_v14 = vmax.f32 %v2041_v8, 0.0  ;;  %v2233_v15 = vmax.f32 %v2105_v9, 0.0 }
 0x195   : > { %v1389_v16 = vpop.f32.mrb[76].mxu0  ;;  %v1645_v17 = vpop.f32.mrb[76].mxu1  ;;  %v3528_v7 = vunpack.c.l.bf16 %v3718_v1  ;;  %v3656_v8 = vunpack.c.l.bf16 %v3750_v2 }
 0x196   : > { %2809 = vst.msk [vmem:[%s4264_s24 + $0x90] sm:$0xf] %vm2772_vm1, %v3350_v12  ;;  %2873 = vst.msk [vmem:[%s4264_s24 + $0x190] sm:$0xf] %vm2772_vm1, %v3414_v13  ;;  %v3351_v20 = vpack.c.bf16 %v2169_v14, %v2169_v14  ;;  %v3415_v21 = vpack.c.bf16 %v2233_v15, %v2233_v15  ;;  %v1390_v22 = vadd.f32 %v4477_v61, %v1389_v16  ;;  %v1391_v24 = vpop.f32.mrb[77].mxu0  ;;  %v1647_v25 = vpop.f32.mrb[77].mxu1  ;;  %v3529_v15 = vunpack.c.h.bf16 %v3718_v1 }
 0x197   : > { %v1646_v23 = vadd.f32 %v4477_v61, %v1645_v17  ;;  %v1392_v26 = vpop.f32.mrb[78].mxu0  ;;  %v1648_v27 = vpop.f32.mrb[78].mxu1  ;;  %v3657_v16 = vunpack.c.h.bf16 %v3750_v2 }
 0x198   : > { %2810 = vst.msk [vmem:[%s4264_s24 + $0x94] sm:$0xf] %vm2772_vm1, %v3351_v20  ;;  %2874 = vst.msk [vmem:[%s4264_s24 + $0x194] sm:$0xf] %vm2772_vm1, %v3415_v21  ;;  %v2042_v28 = vadd.f32 %v3520_v10, %v1390_v22  ;;  %v1393_v30 = vadd.f32 %v4477_v61, %v1392_v26  ;;  %v1649_v31 = vadd.f32 %v4477_v61, %v1648_v27  ;;  %v1394_v32 = vpop.f32.mrb[79].mxu0  ;;  %v1650_v33 = vpop.f32.mrb[79].mxu1 }
 0x199   : > { %v2106_v29 = vadd.f32 %v3648_v11, %v1646_v23  ;;  %v3751_v32 = vld [vmem:[%s4236_s18 + $0x1b0] sm:$0xff]  }
 0x19a   : > { %v2170_v36 = vmax.f32 %v2042_v28, 0.0  ;;  %v2043_v38 = vadd.f32 %v3521_v18, %v1393_v30  ;;  %v2107_v39 = vadd.f32 %v3649_v19, %v1649_v31  ;;  %v3719_v31 = vld [vmem:[%s4236_s18 + $0xb0] sm:$0xff]  }
 0x19b   : > { %v2234_v37 = vmax.f32 %v2106_v29, 0.0 }
 0x19c   : > { %v3352_v42 = vpack.c.bf16 %v2170_v36, %v2170_v36  ;;  %v2171_v44 = vmax.f32 %v2043_v38, 0.0  ;;  %v2235_v45 = vmax.f32 %v2107_v39, 0.0  ;;  %v3660_v38 = vunpack.c.l.bf16 %v3751_v32 }
 0x19d   : > { %v3416_v43 = vpack.c.bf16 %v2234_v37, %v2234_v37  ;;  %v1397_v46 = vpop.f32.mrb[80].mxu0  ;;  %v1653_v47 = vpop.f32.mrb[80].mxu1  ;;  %v3532_v37 = vunpack.c.l.bf16 %v3719_v31 }
 0x19e   : > { %2811 = vst.msk [vmem:[%s4264_s24 + $0x98] sm:$0xf] %vm2772_vm1, %v3352_v42  ;;  %v3353_v50 = vpack.c.bf16 %v2171_v44, %v2171_v44  ;;  %v3417_v51 = vpack.c.bf16 %v2235_v45, %v2235_v45  ;;  %v1398_v52 = vadd.f32 %v4477_v61, %v1397_v46  ;;  %v1654_v53 = vadd.f32 %v4477_v61, %v1653_v47  ;;  %v1399_v54 = vpop.f32.mrb[81].mxu0  ;;  %v1655_v55 = vpop.f32.mrb[81].mxu1 }
 0x19f   : > { %2875 = vst.msk [vmem:[%s4264_s24 + $0x198] sm:$0xf] %vm2772_vm1, %v3416_v43  ;;  %v1400_v58 = vpop.f32.mrb[82].mxu0  ;;  %v1656_v56 = vpop.f32.mrb[82].mxu1  ;;  %v3533_v45 = vunpack.c.h.bf16 %v3719_v31  ;;  %v3661_v46 = vunpack.c.h.bf16 %v3751_v32 }
 0x1a0   : > { %2812 = vst.msk [vmem:[%s4264_s24 + $0x9c] sm:$0xf] %vm2772_vm1, %v3353_v50  ;;  %2876 = vst.msk [vmem:[%s4264_s24 + $0x19c] sm:$0xf] %vm2772_vm1, %v3417_v51  ;;  %v2044_v57 = vadd.f32 %v3524_v40, %v1398_v52  ;;  %v2108_v59 = vadd.f32 %v3652_v41, %v1654_v53  ;;  %v1401_v60 = vadd.f32 %v4477_v61, %v1400_v58  ;;  %v1402_v63 = vpop.f32.mrb[83].mxu0  ;;  %v1658_v0 = vpop.f32.mrb[83].mxu1 }
 0x1a1   : > { %v1657_v62 = vadd.f32 %v4477_v61, %v1656_v56  ;;  %v3752_v63 = vld [vmem:[%s4236_s18 + $0x1b8] sm:$0xff]  }
 0x1a2   : > { %v2172_v3 = vmax.f32 %v2044_v57, 0.0  ;;  %v2236_v4 = vmax.f32 %v2108_v59, 0.0  ;;  %v2045_v5 = vadd.f32 %v3525_v48, %v1401_v60 }
 0x1a3   : > { %v2109_v6 = vadd.f32 %v3653_v49, %v1657_v62  ;;  %v3720_v62 = vld [vmem:[%s4236_s18 + $0xb8] sm:$0xff]  }
 0x1a4   : > { %v3354_v9 = vpack.c.bf16 %v2172_v3, %v2172_v3  ;;  %v3418_v10 = vpack.c.bf16 %v2236_v4, %v2236_v4  ;;  %v2173_v11 = vmax.f32 %v2045_v5, 0.0  ;;  %v3536_v4 = vunpack.c.l.bf16 %v3720_v62 }
 0x1a5   : > { %v2237_v12 = vmax.f32 %v2109_v6, 0.0  ;;  %v1405_v13 = vpop.f32.mrb[84].mxu0  ;;  %v1661_v14 = vpop.f32.mrb[84].mxu1  ;;  %v3664_v5 = vunpack.c.l.bf16 %v3752_v63 }
 0x1a6   : > { %2813 = vst.msk [vmem:[%s4264_s24 + $0xa0] sm:$0xf] %vm2772_vm1, %v3354_v9  ;;  %2877 = vst.msk [vmem:[%s4264_s24 + $0x1a0] sm:$0xf] %vm2772_vm1, %v3418_v10  ;;  %v3355_v17 = vpack.c.bf16 %v2173_v11, %v2173_v11  ;;  %v1406_v19 = vadd.f32 %v4477_v61, %v1405_v13  ;;  %v1662_v20 = vadd.f32 %v4477_v61, %v1661_v14  ;;  %v1407_v21 = vpop.f32.mrb[85].mxu0  ;;  %v1663_v22 = vpop.f32.mrb[85].mxu1  ;;  %v3665_v13 = vunpack.c.h.bf16 %v3752_v63 }
 0x1a7   : > { %v3419_v18 = vpack.c.bf16 %v2237_v12, %v2237_v12  ;;  %v1408_v23 = vpop.f32.mrb[86].mxu0  ;;  %v1664_v24 = vpop.f32.mrb[86].mxu1  ;;  %v3537_v12 = vunpack.c.h.bf16 %v3720_v62 }
 0x1a8   : > { %2814 = vst.msk [vmem:[%s4264_s24 + $0xa4] sm:$0xf] %vm2772_vm1, %v3355_v17  ;;  %v2046_v25 = vadd.f32 %v3528_v7, %v1406_v19  ;;  %v2110_v26 = vadd.f32 %v3656_v8, %v1662_v20  ;;  %v1409_v27 = vadd.f32 %v4477_v61, %v1408_v23  ;;  %v1665_v28 = vadd.f32 %v4477_v61, %v1664_v24  ;;  %v1410_v29 = vpop.f32.mrb[87].mxu0  ;;  %v1666_v30 = vpop.f32.mrb[87].mxu1 }
 0x1a9   : > { %2878 = vst.msk [vmem:[%s4264_s24 + $0x1a4] sm:$0xf] %vm2772_vm1, %v3419_v18  ;;  %v3753_v29 = vld [vmem:[%s4236_s18 + $0x1c0] sm:$0xff]  }
 0x1aa   : > { %v2174_v33 = vmax.f32 %v2046_v25, 0.0  ;;  %v2238_v34 = vmax.f32 %v2110_v26, 0.0  ;;  %v2047_v35 = vadd.f32 %v3529_v15, %v1409_v27  ;;  %v2111_v36 = vadd.f32 %v3657_v16, %v1665_v28  ;;  %v3721_v28 = vld [vmem:[%s4236_s18 + $0xc0] sm:$0xff]  }
 0x1ac   : > { %v3356_v39 = vpack.c.bf16 %v2174_v33, %v2174_v33  ;;  %v3420_v40 = vpack.c.bf16 %v2238_v34, %v2238_v34  ;;  %v2175_v41 = vmax.f32 %v2047_v35, 0.0  ;;  %v2239_v42 = vmax.f32 %v2111_v36, 0.0 }
 0x1ad   : > { %v1413_v43 = vpop.f32.mrb[88].mxu0  ;;  %v1669_v44 = vpop.f32.mrb[88].mxu1  ;;  %v3540_v34 = vunpack.c.l.bf16 %v3721_v28  ;;  %v3668_v35 = vunpack.c.l.bf16 %v3753_v29 }
 0x1ae   : > { %2815 = vst.msk [vmem:[%s4264_s24 + $0xa8] sm:$0xf] %vm2772_vm1, %v3356_v39  ;;  %2879 = vst.msk [vmem:[%s4264_s24 + $0x1a8] sm:$0xf] %vm2772_vm1, %v3420_v40  ;;  %v3357_v47 = vpack.c.bf16 %v2175_v41, %v2175_v41  ;;  %v3421_v48 = vpack.c.bf16 %v2239_v42, %v2239_v42  ;;  %v1414_v49 = vadd.f32 %v4477_v61, %v1413_v43  ;;  %v1415_v51 = vpop.f32.mrb[89].mxu0  ;;  %v1671_v52 = vpop.f32.mrb[89].mxu1  ;;  %v3541_v42 = vunpack.c.h.bf16 %v3721_v28 }
 0x1af   : > { %v1670_v50 = vadd.f32 %v4477_v61, %v1669_v44  ;;  %v1416_v53 = vpop.f32.mrb[90].mxu0  ;;  %v1672_v54 = vpop.f32.mrb[90].mxu1  ;;  %v3669_v43 = vunpack.c.h.bf16 %v3753_v29 }
 0x1b0   : > { %2816 = vst.msk [vmem:[%s4264_s24 + $0xac] sm:$0xf] %vm2772_vm1, %v3357_v47  ;;  %2880 = vst.msk [vmem:[%s4264_s24 + $0x1ac] sm:$0xf] %vm2772_vm1, %v3421_v48  ;;  %v2048_v55 = vadd.f32 %v3532_v37, %v1414_v49  ;;  %v1417_v56 = vadd.f32 %v4477_v61, %v1416_v53  ;;  %v1673_v57 = vadd.f32 %v4477_v61, %v1672_v54  ;;  %v1418_v59 = vpop.f32.mrb[91].mxu0  ;;  %v1674_v60 = vpop.f32.mrb[91].mxu1 }
 0x1b1   : > { %v2112_v58 = vadd.f32 %v3660_v38, %v1670_v50  ;;  %v3754_v59 = vld [vmem:[%s4236_s18 + $0x1c8] sm:$0xff]  }
 0x1b2   : > { %v2176_v0 = vmax.f32 %v2048_v55, 0.0  ;;  %v2049_v2 = vadd.f32 %v3533_v45, %v1417_v56  ;;  %v2113_v3 = vadd.f32 %v3661_v46, %v1673_v57  ;;  %v3722_v57 = vld [vmem:[%s4236_s18 + $0xc8] sm:$0xff]  }
 0x1b3   : > { %v2240_v1 = vmax.f32 %v2112_v58, 0.0 }
 0x1b4   : > { %v3358_v6 = vpack.c.bf16 %v2176_v0, %v2176_v0  ;;  %v2177_v8 = vmax.f32 %v2049_v2, 0.0  ;;  %v2241_v9 = vmax.f32 %v2113_v3, 0.0  ;;  %v3672_v2 = vunpack.c.l.bf16 %v3754_v59 }
 0x1b5   : > { %v3422_v7 = vpack.c.bf16 %v2240_v1, %v2240_v1  ;;  %v1421_v10 = vpop.f32.mrb[92].mxu0  ;;  %v1677_v11 = vpop.f32.mrb[92].mxu1  ;;  %v3544_v1 = vunpack.c.l.bf16 %v3722_v57 }
 0x1b6   : > { %2817 = vst.msk [vmem:[%s4264_s24 + $0xb0] sm:$0xf] %vm2772_vm1, %v3358_v6  ;;  %v3359_v14 = vpack.c.bf16 %v2177_v8, %v2177_v8  ;;  %v3423_v15 = vpack.c.bf16 %v2241_v9, %v2241_v9  ;;  %v1422_v16 = vadd.f32 %v4477_v61, %v1421_v10  ;;  %v1678_v17 = vadd.f32 %v4477_v61, %v1677_v11  ;;  %v1423_v18 = vpop.f32.mrb[93].mxu0  ;;  %v1679_v19 = vpop.f32.mrb[93].mxu1 }
 0x1b7   : > { %2881 = vst.msk [vmem:[%s4264_s24 + $0x1b0] sm:$0xf] %vm2772_vm1, %v3422_v7  ;;  %v1424_v20 = vpop.f32.mrb[94].mxu0  ;;  %v1680_v21 = vpop.f32.mrb[94].mxu1  ;;  %v3545_v9 = vunpack.c.h.bf16 %v3722_v57  ;;  %v3673_v10 = vunpack.c.h.bf16 %v3754_v59 }
 0x1b8   : > { %2818 = vst.msk [vmem:[%s4264_s24 + $0xb4] sm:$0xf] %vm2772_vm1, %v3359_v14  ;;  %2882 = vst.msk [vmem:[%s4264_s24 + $0x1b4] sm:$0xf] %vm2772_vm1, %v3423_v15  ;;  %v2050_v22 = vadd.f32 %v3536_v4, %v1422_v16  ;;  %v2114_v23 = vadd.f32 %v3664_v5, %v1678_v17  ;;  %v1425_v24 = vadd.f32 %v4477_v61, %v1424_v20  ;;  %v1426_v26 = vpop.f32.mrb[95].mxu0  ;;  %v1682_v27 = vpop.f32.mrb[95].mxu1 }
 0x1b9   : > { %v1681_v25 = vadd.f32 %v4477_v61, %v1680_v21  ;;  %v3755_v26 = vld [vmem:[%s4236_s18 + $0x1d0] sm:$0xff]  }
 0x1ba   : > { %v2178_v30 = vmax.f32 %v2050_v22, 0.0  ;;  %v2242_v31 = vmax.f32 %v2114_v23, 0.0  ;;  %v2051_v32 = vadd.f32 %v3537_v12, %v1425_v24 }
 0x1bb   : > { %v2115_v33 = vadd.f32 %v3665_v13, %v1681_v25  ;;  %v3723_v25 = vld [vmem:[%s4236_s18 + $0xd0] sm:$0xff]  }
 0x1bc   : > { %v3360_v36 = vpack.c.bf16 %v2178_v30, %v2178_v30  ;;  %v3424_v37 = vpack.c.bf16 %v2242_v31, %v2242_v31  ;;  %v2179_v38 = vmax.f32 %v2051_v32, 0.0  ;;  %v3548_v31 = vunpack.c.l.bf16 %v3723_v25 }
 0x1bd   : > { %v2243_v39 = vmax.f32 %v2115_v33, 0.0  ;;  %v1429_v40 = vpop.f32.mrb[96].mxu0  ;;  %v1685_v41 = vpop.f32.mrb[96].mxu1  ;;  %v3676_v32 = vunpack.c.l.bf16 %v3755_v26 }
 0x1be   : > { %2819 = vst.msk [vmem:[%s4264_s24 + $0xb8] sm:$0xf] %vm2772_vm1, %v3360_v36  ;;  %2883 = vst.msk [vmem:[%s4264_s24 + $0x1b8] sm:$0xf] %vm2772_vm1, %v3424_v37  ;;  %v3361_v44 = vpack.c.bf16 %v2179_v38, %v2179_v38  ;;  %v1430_v46 = vadd.f32 %v4477_v61, %v1429_v40  ;;  %v1686_v47 = vadd.f32 %v4477_v61, %v1685_v41  ;;  %v1431_v48 = vpop.f32.mrb[97].mxu0  ;;  %v1687_v49 = vpop.f32.mrb[97].mxu1  ;;  %v3677_v40 = vunpack.c.h.bf16 %v3755_v26 }
 0x1bf   : > { %v3425_v45 = vpack.c.bf16 %v2243_v39, %v2243_v39  ;;  %v1432_v50 = vpop.f32.mrb[98].mxu0  ;;  %v1688_v51 = vpop.f32.mrb[98].mxu1  ;;  %v3549_v39 = vunpack.c.h.bf16 %v3723_v25 }
 0x1c0   : > { %2820 = vst.msk [vmem:[%s4264_s24 + $0xbc] sm:$0xf] %vm2772_vm1, %v3361_v44  ;;  %v2052_v52 = vadd.f32 %v3540_v34, %v1430_v46  ;;  %v2116_v53 = vadd.f32 %v3668_v35, %v1686_v47  ;;  %v1433_v54 = vadd.f32 %v4477_v61, %v1432_v50  ;;  %v1689_v55 = vadd.f32 %v4477_v61, %v1688_v51  ;;  %v1434_v58 = vpop.f32.mrb[99].mxu0  ;;  %v1690_v56 = vpop.f32.mrb[99].mxu1 }
 0x1c1   : > { %2884 = vst.msk [vmem:[%s4264_s24 + $0x1bc] sm:$0xf] %vm2772_vm1, %v3425_v45  ;;  %v3756_v58 = vld [vmem:[%s4236_s18 + $0x1d8] sm:$0xff]  }
 0x1c2   : > { %v2180_v60 = vmax.f32 %v2052_v52, 0.0  ;;  %v2244_v62 = vmax.f32 %v2116_v53, 0.0  ;;  %v2053_v63 = vadd.f32 %v3541_v42, %v1433_v54  ;;  %v2117_v0 = vadd.f32 %v3669_v43, %v1689_v55  ;;  %v3724_v55 = vld [vmem:[%s4236_s18 + $0xd8] sm:$0xff]  }
 0x1c4   : > { %v3362_v3 = vpack.c.bf16 %v2180_v60, %v2180_v60  ;;  %v3426_v4 = vpack.c.bf16 %v2244_v62, %v2244_v62  ;;  %v2181_v5 = vmax.f32 %v2053_v63, 0.0  ;;  %v2245_v6 = vmax.f32 %v2117_v0, 0.0 }
 0x1c5   : > { %v1437_v7 = vpop.f32.mrb[100].mxu0  ;;  %v1693_v8 = vpop.f32.mrb[100].mxu1  ;;  %v3552_v62 = vunpack.c.l.bf16 %v3724_v55  ;;  %v3680_v63 = vunpack.c.l.bf16 %v3756_v58 }
 0x1c6   : > { %2821 = vst.msk [vmem:[%s4264_s24 + $0xc0] sm:$0xf] %vm2772_vm1, %v3362_v3  ;;  %2885 = vst.msk [vmem:[%s4264_s24 + $0x1c0] sm:$0xf] %vm2772_vm1, %v3426_v4  ;;  %v3363_v11 = vpack.c.bf16 %v2181_v5, %v2181_v5  ;;  %v3427_v12 = vpack.c.bf16 %v2245_v6, %v2245_v6  ;;  %v1438_v13 = vadd.f32 %v4477_v61, %v1437_v7  ;;  %v1439_v15 = vpop.f32.mrb[101].mxu0  ;;  %v1695_v16 = vpop.f32.mrb[101].mxu1  ;;  %v3553_v6 = vunpack.c.h.bf16 %v3724_v55 }
 0x1c7   : > { %v1694_v14 = vadd.f32 %v4477_v61, %v1693_v8  ;;  %v1440_v17 = vpop.f32.mrb[102].mxu0  ;;  %v1696_v18 = vpop.f32.mrb[102].mxu1  ;;  %v3681_v7 = vunpack.c.h.bf16 %v3756_v58 }
 0x1c8   : > { %2822 = vst.msk [vmem:[%s4264_s24 + $0xc4] sm:$0xf] %vm2772_vm1, %v3363_v11  ;;  %2886 = vst.msk [vmem:[%s4264_s24 + $0x1c4] sm:$0xf] %vm2772_vm1, %v3427_v12  ;;  %v2054_v19 = vadd.f32 %v3544_v1, %v1438_v13  ;;  %v1441_v21 = vadd.f32 %v4477_v61, %v1440_v17  ;;  %v1697_v22 = vadd.f32 %v4477_v61, %v1696_v18  ;;  %v1442_v23 = vpop.f32.mrb[103].mxu0  ;;  %v1698_v24 = vpop.f32.mrb[103].mxu1 }
 0x1c9   : > { %v2118_v20 = vadd.f32 %v3672_v2, %v1694_v14  ;;  %v3757_v23 = vld [vmem:[%s4236_s18 + $0x1e0] sm:$0xff]  }
 0x1ca   : > { %v2182_v27 = vmax.f32 %v2054_v19, 0.0  ;;  %v2055_v29 = vadd.f32 %v3545_v9, %v1441_v21  ;;  %v2119_v30 = vadd.f32 %v3673_v10, %v1697_v22  ;;  %v3725_v22 = vld [vmem:[%s4236_s18 + $0xe0] sm:$0xff]  }
 0x1cb   : > { %v2246_v28 = vmax.f32 %v2118_v20, 0.0 }
 0x1cc   : > { %v3364_v33 = vpack.c.bf16 %v2182_v27, %v2182_v27  ;;  %v2183_v35 = vmax.f32 %v2055_v29, 0.0  ;;  %v2247_v36 = vmax.f32 %v2119_v30, 0.0  ;;  %v3684_v29 = vunpack.c.l.bf16 %v3757_v23 }
 0x1cd   : > { %v3428_v34 = vpack.c.bf16 %v2246_v28, %v2246_v28  ;;  %v1445_v37 = vpop.f32.mrb[104].mxu0  ;;  %v1701_v38 = vpop.f32.mrb[104].mxu1  ;;  %v3556_v28 = vunpack.c.l.bf16 %v3725_v22 }
 0x1ce   : > { %2823 = vst.msk [vmem:[%s4264_s24 + $0xc8] sm:$0xf] %vm2772_vm1, %v3364_v33  ;;  %v3365_v41 = vpack.c.bf16 %v2183_v35, %v2183_v35  ;;  %v3429_v42 = vpack.c.bf16 %v2247_v36, %v2247_v36  ;;  %v1446_v43 = vadd.f32 %v4477_v61, %v1445_v37  ;;  %v1702_v44 = vadd.f32 %v4477_v61, %v1701_v38  ;;  %v1447_v45 = vpop.f32.mrb[105].mxu0  ;;  %v1703_v46 = vpop.f32.mrb[105].mxu1 }
 0x1cf   : > { %2887 = vst.msk [vmem:[%s4264_s24 + $0x1c8] sm:$0xf] %vm2772_vm1, %v3428_v34  ;;  %v1448_v47 = vpop.f32.mrb[106].mxu0  ;;  %v1704_v48 = vpop.f32.mrb[106].mxu1  ;;  %v3557_v36 = vunpack.c.h.bf16 %v3725_v22  ;;  %v3685_v37 = vunpack.c.h.bf16 %v3757_v23 }
 0x1d0   : > { %2824 = vst.msk [vmem:[%s4264_s24 + $0xcc] sm:$0xf] %vm2772_vm1, %v3365_v41  ;;  %2888 = vst.msk [vmem:[%s4264_s24 + $0x1cc] sm:$0xf] %vm2772_vm1, %v3429_v42  ;;  %v2056_v49 = vadd.f32 %v3548_v31, %v1446_v43  ;;  %v2120_v50 = vadd.f32 %v3676_v32, %v1702_v44  ;;  %v1449_v51 = vadd.f32 %v4477_v61, %v1448_v47  ;;  %v1450_v53 = vpop.f32.mrb[107].mxu0  ;;  %v1706_v54 = vpop.f32.mrb[107].mxu1 }
 0x1d1   : > { %v1705_v52 = vadd.f32 %v4477_v61, %v1704_v48  ;;  %v3758_v53 = vld [vmem:[%s4236_s18 + $0x1e8] sm:$0xff]  }
 0x1d2   : > { %v2184_v56 = vmax.f32 %v2056_v49, 0.0  ;;  %v2248_v57 = vmax.f32 %v2120_v50, 0.0  ;;  %v2057_v59 = vadd.f32 %v3549_v39, %v1449_v51 }
 0x1d3   : > { %v2121_v60 = vadd.f32 %v3677_v40, %v1705_v52  ;;  %v3726_v52 = vld [vmem:[%s4236_s18 + $0xe8] sm:$0xff]  }
 0x1d4   : > { %v3366_v0 = vpack.c.bf16 %v2184_v56, %v2184_v56  ;;  %v3430_v1 = vpack.c.bf16 %v2248_v57, %v2248_v57  ;;  %v2185_v2 = vmax.f32 %v2057_v59, 0.0  ;;  %v3560_v57 = vunpack.c.l.bf16 %v3726_v52 }
 0x1d5   : > { %v2249_v3 = vmax.f32 %v2121_v60, 0.0  ;;  %v1453_v4 = vpop.f32.mrb[108].mxu0  ;;  %v1709_v5 = vpop.f32.mrb[108].mxu1  ;;  %v3688_v59 = vunpack.c.l.bf16 %v3758_v53 }
 0x1d6   : > { %2825 = vst.msk [vmem:[%s4264_s24 + $0xd0] sm:$0xf] %vm2772_vm1, %v3366_v0  ;;  %2889 = vst.msk [vmem:[%s4264_s24 + $0x1d0] sm:$0xf] %vm2772_vm1, %v3430_v1  ;;  %v3367_v8 = vpack.c.bf16 %v2185_v2, %v2185_v2  ;;  %v1454_v10 = vadd.f32 %v4477_v61, %v1453_v4  ;;  %v1710_v11 = vadd.f32 %v4477_v61, %v1709_v5  ;;  %v1455_v12 = vpop.f32.mrb[109].mxu0  ;;  %v1711_v13 = vpop.f32.mrb[109].mxu1  ;;  %v3689_v4 = vunpack.c.h.bf16 %v3758_v53 }
 0x1d7   : > { %v3431_v9 = vpack.c.bf16 %v2249_v3, %v2249_v3  ;;  %v1456_v14 = vpop.f32.mrb[110].mxu0  ;;  %v1712_v15 = vpop.f32.mrb[110].mxu1  ;;  %v3561_v3 = vunpack.c.h.bf16 %v3726_v52 }
 0x1d8   : > { %2826 = vst.msk [vmem:[%s4264_s24 + $0xd4] sm:$0xf] %vm2772_vm1, %v3367_v8  ;;  %v2058_v16 = vadd.f32 %v3552_v62, %v1454_v10  ;;  %v2122_v17 = vadd.f32 %v3680_v63, %v1710_v11  ;;  %v1457_v18 = vadd.f32 %v4477_v61, %v1456_v14  ;;  %v1713_v19 = vadd.f32 %v4477_v61, %v1712_v15  ;;  %v1458_v20 = vpop.f32.mrb[111].mxu0  ;;  %v1714_v21 = vpop.f32.mrb[111].mxu1  ;;  %v4698_v15 = vld [vmem:[%s4743_s2] ss:$0 sm:$0xff] }
 0x1d9   : > { %2890 = vst.msk [vmem:[%s4264_s24 + $0x1d4] sm:$0xf] %vm2772_vm1, %v3431_v9  ;;  %v3759_v20 = vld [vmem:[%s4236_s18 + $0x1f0] sm:$0xff]  }
 0x1da   : > { %v2186_v24 = vmax.f32 %v2058_v16, 0.0  ;;  %v2250_v25 = vmax.f32 %v2122_v17, 0.0  ;;  %v2059_v26 = vadd.f32 %v3553_v6, %v1457_v18  ;;  %v2123_v27 = vadd.f32 %v3681_v7, %v1713_v19  ;;  %v3727_v19 = vld [vmem:[%s4236_s18 + $0xf0] sm:$0xff]  }
 0x1dc   : > { %v3368_v30 = vpack.c.bf16 %v2186_v24, %v2186_v24  ;;  %v3432_v31 = vpack.c.bf16 %v2250_v25, %v2250_v25  ;;  %v2187_v32 = vmax.f32 %v2059_v26, 0.0  ;;  %v2251_v33 = vmax.f32 %v2123_v27, 0.0 }
 0x1dd   : > { %v1461_v34 = vpop.f32.mrb[112].mxu0  ;;  %v1717_v35 = vpop.f32.mrb[112].mxu1  ;;  %v3564_v25 = vunpack.c.l.bf16 %v3727_v19  ;;  %v3692_v26 = vunpack.c.l.bf16 %v3759_v20 }
 0x1de   : > { %2827 = vst.msk [vmem:[%s4264_s24 + $0xd8] sm:$0xf] %vm2772_vm1, %v3368_v30  ;;  %2891 = vst.msk [vmem:[%s4264_s24 + $0x1d8] sm:$0xf] %vm2772_vm1, %v3432_v31  ;;  %v3369_v38 = vpack.c.bf16 %v2187_v32, %v2187_v32  ;;  %v3433_v39 = vpack.c.bf16 %v2251_v33, %v2251_v33  ;;  %v1462_v40 = vadd.f32 %v4477_v61, %v1461_v34  ;;  %v1463_v42 = vpop.f32.mrb[113].mxu0  ;;  %v1719_v43 = vpop.f32.mrb[113].mxu1  ;;  %v3565_v33 = vunpack.c.h.bf16 %v3727_v19 }
 0x1df   : > { %v1718_v41 = vadd.f32 %v4477_v61, %v1717_v35  ;;  %v1464_v44 = vpop.f32.mrb[114].mxu0  ;;  %v1720_v45 = vpop.f32.mrb[114].mxu1  ;;  %v3693_v34 = vunpack.c.h.bf16 %v3759_v20 }
 0x1e0   : > { %2828 = vst.msk [vmem:[%s4264_s24 + $0xdc] sm:$0xf] %vm2772_vm1, %v3369_v38  ;;  %2892 = vst.msk [vmem:[%s4264_s24 + $0x1dc] sm:$0xf] %vm2772_vm1, %v3433_v39  ;;  %v2060_v46 = vadd.f32 %v3556_v28, %v1462_v40  ;;  %v1465_v48 = vadd.f32 %v4477_v61, %v1464_v44  ;;  %v1721_v49 = vadd.f32 %v4477_v61, %v1720_v45  ;;  %v1466_v50 = vpop.f32.mrb[115].mxu0  ;;  %v1722_v51 = vpop.f32.mrb[115].mxu1 }
 0x1e1   : > { %v2124_v47 = vadd.f32 %v3684_v29, %v1718_v41  ;;  %v3760_v50 = vld [vmem:[%s4236_s18 + $0x1f8] sm:$0xff]  }
 0x1e2   : > { %v2188_v54 = vmax.f32 %v2060_v46, 0.0  ;;  %v2061_v58 = vadd.f32 %v3557_v36, %v1465_v48  ;;  %v2125_v56 = vadd.f32 %v3685_v37, %v1721_v49  ;;  %v3728_v49 = vld [vmem:[%s4236_s18 + $0xf8] sm:$0xff]  }
 0x1e3   : > { %v2252_v55 = vmax.f32 %v2124_v47, 0.0 }
 0x1e4   : > { %v3370_v60 = vpack.c.bf16 %v2188_v54, %v2188_v54  ;;  %v2189_v63 = vmax.f32 %v2061_v58, 0.0  ;;  %v2253_v0 = vmax.f32 %v2125_v56, 0.0  ;;  %v3696_v58 = vunpack.c.l.bf16 %v3760_v50 }
 0x1e5   : > { %v3434_v62 = vpack.c.bf16 %v2252_v55, %v2252_v55  ;;  %v1469_v1 = vpop.f32.mrb[116].mxu0  ;;  %v1725_v2 = vpop.f32.mrb[116].mxu1  ;;  %v3568_v55 = vunpack.c.l.bf16 %v3728_v49 }
 0x1e6   : > { %2829 = vst.msk [vmem:[%s4264_s24 + $0xe0] sm:$0xf] %vm2772_vm1, %v3370_v60  ;;  %v3371_v5 = vpack.c.bf16 %v2189_v63, %v2189_v63  ;;  %v3435_v6 = vpack.c.bf16 %v2253_v0, %v2253_v0  ;;  %v1470_v7 = vadd.f32 %v4477_v61, %v1469_v1  ;;  %v1726_v8 = vadd.f32 %v4477_v61, %v1725_v2  ;;  %v1471_v9 = vpop.f32.mrb[117].mxu0  ;;  %v1727_v10 = vpop.f32.mrb[117].mxu1 }
 0x1e7   : > { %2893 = vst.msk [vmem:[%s4264_s24 + $0x1e0] sm:$0xf] %vm2772_vm1, %v3434_v62  ;;  %v1472_v11 = vpop.f32.mrb[118].mxu0  ;;  %v1728_v12 = vpop.f32.mrb[118].mxu1  ;;  %v3569_v0 = vunpack.c.h.bf16 %v3728_v49  ;;  %v3697_v1 = vunpack.c.h.bf16 %v3760_v50 }
 0x1e8   : > { %2830 = vst.msk [vmem:[%s4264_s24 + $0xe4] sm:$0xf] %vm2772_vm1, %v3371_v5  ;;  %2894 = vst.msk [vmem:[%s4264_s24 + $0x1e4] sm:$0xf] %vm2772_vm1, %v3435_v6  ;;  %v2062_v13 = vadd.f32 %v3560_v57, %v1470_v7  ;;  %v2126_v14 = vadd.f32 %v3688_v59, %v1726_v8  ;;  %v1473_v16 = vadd.f32 %v4698_v15, %v1472_v11  ;;  %v1474_v61 = vpop.f32.mrb[119].mxu0  ;;  %v1730_v18 = vpop.f32.mrb[119].mxu1 }
 0x1e9   : > { %v1729_v17 = vadd.f32 %v4698_v15, %v1728_v12 }
 0x1ea   : > { %v2190_v21 = vmax.f32 %v2062_v13, 0.0  ;;  %v2254_v22 = vmax.f32 %v2126_v14, 0.0  ;;  %v2063_v23 = vadd.f32 %v3561_v3, %v1473_v16 }
 0x1eb   : > { %v2127_v24 = vadd.f32 %v3689_v4, %v1729_v17 }
 0x1ec   : > { %v3372_v27 = vpack.c.bf16 %v2190_v21, %v2190_v21  ;;  %v3436_v28 = vpack.c.bf16 %v2254_v22, %v2254_v22  ;;  %v2191_v29 = vmax.f32 %v2063_v23, 0.0 }
 0x1ed   : > { %v2255_v30 = vmax.f32 %v2127_v24, 0.0  ;;  %v1477_v31 = vpop.f32.mrb[120].mxu0  ;;  %v1733_v32 = vpop.f32.mrb[120].mxu1 }
 0x1ee   : > { %2831 = vst.msk [vmem:[%s4264_s24 + $0xe8] sm:$0xf] %vm2772_vm1, %v3372_v27  ;;  %2895 = vst.msk [vmem:[%s4264_s24 + $0x1e8] sm:$0xf] %vm2772_vm1, %v3436_v28  ;;  %v3373_v35 = vpack.c.bf16 %v2191_v29, %v2191_v29  ;;  %v1478_v37 = vadd.f32 %v4698_v15, %v1477_v31  ;;  %v1734_v38 = vadd.f32 %v4698_v15, %v1733_v32  ;;  %v1479_v39 = vpop.f32.mrb[121].mxu0  ;;  %v1735_v40 = vpop.f32.mrb[121].mxu1 }
 0x1ef   : > { %v3437_v36 = vpack.c.bf16 %v2255_v30, %v2255_v30  ;;  %v1480_v41 = vpop.f32.mrb[122].mxu0  ;;  %v1736_v42 = vpop.f32.mrb[122].mxu1 }
 0x1f0   : > { %2832 = vst.msk [vmem:[%s4264_s24 + $0xec] sm:$0xf] %vm2772_vm1, %v3373_v35  ;;  %v2064_v43 = vadd.f32 %v3564_v25, %v1478_v37  ;;  %v2128_v44 = vadd.f32 %v3692_v26, %v1734_v38  ;;  %v1481_v45 = vadd.f32 %v4698_v15, %v1480_v41  ;;  %v1737_v46 = vadd.f32 %v4698_v15, %v1736_v42  ;;  %v1482_v47 = vpop.f32.mrb[123].mxu0  ;;  %v1738_v48 = vpop.f32.mrb[123].mxu1 }
 0x1f1   : > { %2896 = vst.msk [vmem:[%s4264_s24 + $0x1ec] sm:$0xf] %vm2772_vm1, %v3437_v36 }
 0x1f2   : > { %v2192_v51 = vmax.f32 %v2064_v43, 0.0  ;;  %v2256_v52 = vmax.f32 %v2128_v44, 0.0  ;;  %v2065_v53 = vadd.f32 %v3565_v33, %v1481_v45  ;;  %v2129_v54 = vadd.f32 %v3693_v34, %v1737_v46 }
 0x1f4   : > { %v3374_v56 = vpack.c.bf16 %v2192_v51, %v2192_v51  ;;  %v3438_v57 = vpack.c.bf16 %v2256_v52, %v2256_v52  ;;  %v2193_v59 = vmax.f32 %v2065_v53, 0.0  ;;  %v2257_v60 = vmax.f32 %v2129_v54, 0.0 }
 0x1f5   : > { %v1485_v62 = vpop.f32.mrb[124].mxu0  ;;  %v1741_v63 = vpop.f32.mrb[124].mxu1 }
 0x1f6   : > { %2833 = vst.msk [vmem:[%s4264_s24 + $0xf0] sm:$0xf] %vm2772_vm1, %v3374_v56  ;;  %2897 = vst.msk [vmem:[%s4264_s24 + $0x1f0] sm:$0xf] %vm2772_vm1, %v3438_v57  ;;  %v3375_v2 = vpack.c.bf16 %v2193_v59, %v2193_v59  ;;  %v3439_v3 = vpack.c.bf16 %v2257_v60, %v2257_v60  ;;  %v1486_v4 = vadd.f32 %v4698_v15, %v1485_v62  ;;  %v1487_v6 = vpop.f32.mrb[125].mxu0  ;;  %v1743_v7 = vpop.f32.mrb[125].mxu1 }
 0x1f7   : > { %v1742_v5 = vadd.f32 %v4698_v15, %v1741_v63  ;;  %v1488_v8 = vpop.f32.mrb[126].mxu0  ;;  %v1744_v9 = vpop.f32.mrb[126].mxu1 }
 0x1f8   : > { %2834 = vst.msk [vmem:[%s4264_s24 + $0xf4] sm:$0xf] %vm2772_vm1, %v3375_v2  ;;  %2898 = vst.msk [vmem:[%s4264_s24 + $0x1f4] sm:$0xf] %vm2772_vm1, %v3439_v3  ;;  %v2066_v10 = vadd.f32 %v3568_v55, %v1486_v4  ;;  %v1489_v12 = vadd.f32 %v4698_v15, %v1488_v8  ;;  %v1745_v13 = vadd.f32 %v4698_v15, %v1744_v9  ;;  %v1490_v14 = vpop.f32.mrb[127].mxu0  ;;  %v1746_v16 = vpop.f32.mrb[127].mxu1 }
 0x1f9   : > { %v2130_v11 = vadd.f32 %v3696_v58, %v1742_v5 }
 0x1fa   : > { %v2194_v17 = vmax.f32 %v2066_v10, 0.0  ;;  %v2067_v18 = vadd.f32 %v3569_v0, %v1489_v12  ;;  %v2131_v19 = vadd.f32 %v3697_v1, %v1745_v13 }
 0x1fb   : > { %v2258_v61 = vmax.f32 %v2130_v11, 0.0 }
 0x1fc   : > { %v3376_v20 = vpack.c.bf16 %v2194_v17, %v2194_v17  ;;  %v2195_v22 = vmax.f32 %v2067_v18, 0.0  ;;  %v2259_v23 = vmax.f32 %v2131_v19, 0.0 }
 0x1fd   : > { %v3440_v21 = vpack.c.bf16 %v2258_v61, %v2258_v61 }
 0x1fe   : > { %2835 = vst.msk [vmem:[%s4264_s24 + $0xf8] sm:$0xf] %vm2772_vm1, %v3376_v20  ;;  %v3377_v24 = vpack.c.bf16 %v2195_v22, %v2195_v22  ;;  %v3441_v25 = vpack.c.bf16 %v2259_v23, %v2259_v23 }
 0x1ff   : > { %2899 = vst.msk [vmem:[%s4264_s24 + $0x1f8] sm:$0xf] %vm2772_vm1, %v3440_v21 }
 0x200   : > { %2836 = vst.msk [vmem:[%s4264_s24 + $0xfc] sm:$0xf] %vm2772_vm1, %v3377_v24  ;;  %2900 = vst.msk [vmem:[%s4264_s24 + $0x1fc] sm:$0xf] %vm2772_vm1, %v3441_v25 }
 0x201 PF: > { %s14_s15 = sadd.s32 1, %s3997_s15  }
 0x202   : > { %p11_p4 = scmp.ge.s32.totalorder %s14_s15, 4  }
 0x204   :  { %13 = sbr.rel (!%p11_p4) target bundleno = 1 (0x1), region = 69 }

// kernel: model_forward.9
= control target key start
LH: loop header
LB: loop body
LE: loop exit
PB: predicated region body
PF: predicated region fallthrough
CT: control target
= control target key end

     0   :  { %v1646_v0 = vmov 0   ;;  %vm446_vm0 = vcmask 130048   ;;  %vm1219_vm2 = vcmask 519168   ;;  %s2374_s1 = inlined_call_operand.vmem [shape: bf16[144,64], index: 1, kind: input, shape index: {}]   ;;  %s2375_s0 = inlined_call_operand.vmem [shape: bf16[512,144], index: 0, kind: input, shape index: {}]   ;;  %s2376_s2 = inlined_call_operand.vmem [shape: f32[1,64], index: 2, kind: input, shape index: {}]   ;;  %s2377_s3 = inlined_call_operand.vmem [shape: bf16[512,64], index: 3, kind: output, shape index: {}]  }
   0x1   :  { %543 = vmatprep.subr.bf16.mxu0 %v1646_v0  ;;  %1522 = vmatprep.subr.bf16.mxu1 %v1646_v0  ;;  %v1541_v1 = vld [vmem:[%s2374_s1] sm:$0xff]   ;;  %v1542_v2 = vld [vmem:[%s2374_s1 + $0x8] sm:$0xff]   ;;  %v1543_v3 = vld [vmem:[%s2374_s1 + $0x10] sm:$0xff]  }
   0x2   :  { %544 = vmatpush1.bf16.msra.mxu0 %v1541_v1  ;;  %1531 = vmatpush1.bf16.msra.mxu1 %v1541_v1  ;;  %v1544_v4 = vld [vmem:[%s2374_s1 + $0x18] sm:$0xff]   ;;  %v1552_v5 = vld [vmem:[%s2375_s0 + $0x4] ss:$8 sps:$4 sm:$0xff]   ;;  %v1547_v9 = vld [vmem:[%s2374_s1 + $0x30] sm:$0xff]  }
   0x3   :  { %545 = vmatprep.subr.bf16.mxu0 %v1646_v0  ;;  %1523 = vmatprep.subr.bf16.mxu1 %v1646_v0  ;;  %v1555_v6 = vld [vmem:[%s2375_s0 + $0x104] ss:$8 sps:$4 sm:$0xff]   ;;  %v1548_v10 = vld [vmem:[%s2374_s1 + $0x38] sm:$0xff]   ;;  %v1550_v12 = vld [vmem:[%s2375_s0] ss:$8 sps:$4 sm:$0xff]  }
   0x4   :  { %1362 = vmatprep.mubr.msk.bf16.mxu0 %vm446_vm0, %v1552_v5  ;;  %1378 = vmatprep.mubr.msk.bf16.mxu1 %vm446_vm0, %v1555_v6  ;;  %v1545_v7 = vld [vmem:[%s2374_s1 + $0x20] sm:$0xff]   ;;  %v1546_v8 = vld [vmem:[%s2374_s1 + $0x28] sm:$0xff]   ;;  %v1556_v14 = vld [vmem:[%s2375_s0 + $0x14] ss:$8 sps:$4 sm:$0xff]  }
   0x5   :  { %v1549_v11 = vld [vmem:[%s2374_s1 + $0x40] sm:$0xff]   ;;  %v1558_v15 = vld [vmem:[%s2375_s0 + $0x114] ss:$8 sps:$4 sm:$0xff]   ;;  %v1560_v16 = vld [vmem:[%s2375_s0 + $0x10] ss:$8 sps:$4 sm:$0xff]  }
   0x6   :  { %546 = vmatpush1.bf16.msra.mxu0 %v1542_v2  ;;  %1532 = vmatpush1.bf16.msra.mxu1 %v1542_v2  ;;  %v1553_v13 = vld [vmem:[%s2375_s0 + $0x100] ss:$8 sps:$4 sm:$0xff]   ;;  %v1561_v17 = vld [vmem:[%s2375_s0 + $0x110] ss:$8 sps:$4 sm:$0xff]   ;;  %v1562_v18 = vld [vmem:[%s2375_s0 + $0x24] ss:$8 sps:$4 sm:$0xff]  }
   0x7   :  { %547 = vmatprep.subr.bf16.mxu0 %v1646_v0  ;;  %1524 = vmatprep.subr.bf16.mxu1 %v1646_v0  ;;  %v1564_v19 = vld [vmem:[%s2375_s0 + $0x124] ss:$8 sps:$4 sm:$0xff]   ;;  %v1566_v20 = vld [vmem:[%s2375_s0 + $0x20] ss:$8 sps:$4 sm:$0xff]   ;;  %v1568_v22 = vld [vmem:[%s2375_s0 + $0x34] ss:$8 sps:$4 sm:$0xff]  }
   0x8   :  { %v1567_v21 = vld [vmem:[%s2375_s0 + $0x120] ss:$8 sps:$4 sm:$0xff]   ;;  %v1570_v23 = vld [vmem:[%s2375_s0 + $0x134] ss:$8 sps:$4 sm:$0xff]   ;;  %v1572_v24 = vld [vmem:[%s2375_s0 + $0x30] ss:$8 sps:$4 sm:$0xff]  }
   0x9   :  { %v1573_v25 = vld [vmem:[%s2375_s0 + $0x130] ss:$8 sps:$4 sm:$0xff]   ;;  %v1574_v26 = vld [vmem:[%s2375_s0 + $0x44] ss:$8 sps:$4 sm:$0xff]   ;;  %v1578_v28 = vld [vmem:[%s2375_s0 + $0x40] ss:$8 sps:$4 sm:$0xff]  }
   0xa   :  { %548 = vmatpush1.bf16.msra.mxu0 %v1543_v3  ;;  %1533 = vmatpush1.bf16.msra.mxu1 %v1543_v3  ;;  %v1576_v27 = vld [vmem:[%s2375_s0 + $0x144] ss:$8 sps:$4 sm:$0xff]   ;;  %v1579_v29 = vld [vmem:[%s2375_s0 + $0x140] ss:$8 sps:$4 sm:$0xff]   ;;  %v1580_v30 = vld [vmem:[%s2375_s0 + $0x54] ss:$8 sps:$4 sm:$0xff]  }
   0xb   :  { %549 = vmatprep.subr.bf16.mxu0 %v1646_v0  ;;  %1525 = vmatprep.subr.bf16.mxu1 %v1646_v0  ;;  %v1582_v31 = vld [vmem:[%s2375_s0 + $0x154] ss:$8 sps:$4 sm:$0xff]   ;;  %v1584_v32 = vld [vmem:[%s2375_s0 + $0x50] ss:$8 sps:$4 sm:$0xff]   ;;  %v1586_v34 = vld [vmem:[%s2375_s0 + $0x64] ss:$8 sps:$4 sm:$0xff]  }
   0xc   :  { %v1585_v33 = vld [vmem:[%s2375_s0 + $0x150] ss:$8 sps:$4 sm:$0xff]   ;;  %v1588_v35 = vld [vmem:[%s2375_s0 + $0x164] ss:$8 sps:$4 sm:$0xff]   ;;  %v1590_v36 = vld [vmem:[%s2375_s0 + $0x60] ss:$8 sps:$4 sm:$0xff]  }
   0xd   :  { %v1591_v37 = vld [vmem:[%s2375_s0 + $0x160] ss:$8 sps:$4 sm:$0xff]   ;;  %v1592_v38 = vld [vmem:[%s2375_s0 + $0x74] ss:$8 sps:$4 sm:$0xff]   ;;  %v1596_v40 = vld [vmem:[%s2375_s0 + $0x70] ss:$8 sps:$4 sm:$0xff]  }
   0xe   :  { %550 = vmatpush1.bf16.msra.mxu0 %v1544_v4  ;;  %1534 = vmatpush1.bf16.msra.mxu1 %v1544_v4  ;;  %v1594_v39 = vld [vmem:[%s2375_s0 + $0x174] ss:$8 sps:$4 sm:$0xff]   ;;  %v1597_v41 = vld [vmem:[%s2375_s0 + $0x170] ss:$8 sps:$4 sm:$0xff]   ;;  %v1598_v42 = vld [vmem:[%s2375_s0 + $0x84] ss:$8 sps:$4 sm:$0xff]  }
   0xf   :  { %551 = vmatprep.subr.bf16.mxu0 %v1646_v0  ;;  %1526 = vmatprep.subr.bf16.mxu1 %v1646_v0  ;;  %v1600_v43 = vld [vmem:[%s2375_s0 + $0x184] ss:$8 sps:$4 sm:$0xff]   ;;  %v1602_v44 = vld [vmem:[%s2375_s0 + $0x80] ss:$8 sps:$4 sm:$0xff]   ;;  %v1604_v46 = vld [vmem:[%s2375_s0 + $0x94] ss:$8 sps:$4 sm:$0xff]  }
  0x10   :  { %v1603_v45 = vld [vmem:[%s2375_s0 + $0x180] ss:$8 sps:$4 sm:$0xff]   ;;  %v1606_v47 = vld [vmem:[%s2375_s0 + $0x194] ss:$8 sps:$4 sm:$0xff]   ;;  %v1608_v48 = vld [vmem:[%s2375_s0 + $0x90] ss:$8 sps:$4 sm:$0xff]  }
  0x11   :  { %v1609_v49 = vld [vmem:[%s2375_s0 + $0x190] ss:$8 sps:$4 sm:$0xff]   ;;  %v1610_v50 = vld [vmem:[%s2375_s0 + $0xa4] ss:$8 sps:$4 sm:$0xff]   ;;  %v1614_v52 = vld [vmem:[%s2375_s0 + $0xa0] ss:$8 sps:$4 sm:$0xff]  }
  0x12   :  { %552 = vmatpush1.bf16.msra.mxu0 %v1545_v7  ;;  %1535 = vmatpush1.bf16.msra.mxu1 %v1545_v7  ;;  %v1612_v51 = vld [vmem:[%s2375_s0 + $0x1a4] ss:$8 sps:$4 sm:$0xff]   ;;  %v1615_v53 = vld [vmem:[%s2375_s0 + $0x1a0] ss:$8 sps:$4 sm:$0xff]   ;;  %v1616_v54 = vld [vmem:[%s2375_s0 + $0xb4] ss:$8 sps:$4 sm:$0xff]  }
  0x13   :  { %553 = vmatprep.subr.bf16.mxu0 %v1646_v0  ;;  %1527 = vmatprep.subr.bf16.mxu1 %v1646_v0  ;;  %v1618_v55 = vld [vmem:[%s2375_s0 + $0x1b4] ss:$8 sps:$4 sm:$0xff]   ;;  %v1620_v56 = vld [vmem:[%s2375_s0 + $0xb0] ss:$8 sps:$4 sm:$0xff]   ;;  %v1622_v58 = vld [vmem:[%s2375_s0 + $0xc4] ss:$8 sps:$4 sm:$0xff]  }
  0x14   :  { %v1621_v57 = vld [vmem:[%s2375_s0 + $0x1b0] ss:$8 sps:$4 sm:$0xff]   ;;  %v1624_v59 = vld [vmem:[%s2375_s0 + $0x1c4] ss:$8 sps:$4 sm:$0xff]   ;;  %v1626_v60 = vld [vmem:[%s2375_s0 + $0xc0] ss:$8 sps:$4 sm:$0xff]  }
  0x15   :  { %v1627_v61 = vld [vmem:[%s2375_s0 + $0x1c0] ss:$8 sps:$4 sm:$0xff]   ;;  %v1628_v62 = vld [vmem:[%s2375_s0 + $0xd4] ss:$8 sps:$4 sm:$0xff]   ;;  %v1633_v1 = vld [vmem:[%s2375_s0 + $0x1d0] ss:$8 sps:$4 sm:$0xff]  }
  0x16   :  { %554 = vmatpush1.bf16.msra.mxu0 %v1546_v8  ;;  %1536 = vmatpush1.bf16.msra.mxu1 %v1546_v8  ;;  %v1630_v63 = vld [vmem:[%s2375_s0 + $0x1d4] ss:$8 sps:$4 sm:$0xff]   ;;  %v1634_v2 = vld [vmem:[%s2375_s0 + $0xe4] ss:$8 sps:$4 sm:$0xff]   ;;  %v1638_v4 = vld [vmem:[%s2375_s0 + $0xe0] ss:$8 sps:$4 sm:$0xff]  }
  0x17   :  { %555 = vmatprep.subr.bf16.mxu0 %v1646_v0  ;;  %1528 = vmatprep.subr.bf16.mxu1 %v1646_v0  ;;  %v1636_v3 = vld [vmem:[%s2375_s0 + $0x1e4] ss:$8 sps:$4 sm:$0xff]   ;;  %v1639_v5 = vld [vmem:[%s2375_s0 + $0x1e0] ss:$8 sps:$4 sm:$0xff]   ;;  %v1640_v6 = vld [vmem:[%s2375_s0 + $0xf4] ss:$8 sps:$4 sm:$0xff]  }
  0x18   :  { %v1642_v7 = vld [vmem:[%s2375_s0 + $0x1f4] ss:$8 sps:$4 sm:$0xff]   ;;  %v1644_v8 = vld [vmem:[%s2375_s0 + $0xf0] ss:$8 sps:$4 sm:$0xff]  }
  0x1a   :  { %556 = vmatpush1.bf16.msra.mxu0 %v1547_v9  ;;  %1537 = vmatpush1.bf16.msra.mxu1 %v1547_v9  ;;  %v1645_v9 = vld [vmem:[%s2375_s0 + $0x1f0] ss:$8 sps:$4 sm:$0xff]  }
  0x1b   :  { %557 = vmatprep.subr.bf16.mxu0 %v1646_v0  ;;  %1529 = vmatprep.subr.bf16.mxu1 %v1646_v0 }
  0x1e   :  { %558 = vmatpush1.bf16.msra.mxu0 %v1548_v10  ;;  %1538 = vmatpush1.bf16.msra.mxu1 %v1548_v10  ;;  %v832_v10 = vlaneseq }
  0x1f   :  { %559 = vmatprep.subr.bf16.mxu0 %v1646_v0  ;;  %1530 = vmatprep.subr.bf16.mxu1 %v1646_v0  ;;  %v1632_v0 = vld [vmem:[%s2375_s0 + $0xd0] ss:$8 sps:$4 sm:$0xff]  }
  0x22   :  { %560 = vmatpush1.bf16.msra.mxu0 %v1549_v11  ;;  %1539 = vmatpush1.bf16.msra.mxu1 %v1549_v11  ;;  %v1921_v11 = vld [vmem:[%s2376_s2] ss:$0 sm:$0xff] }
  0x25   :  { %576 = vmatmul.mubr.bf16.vlgmr.msra.gmra.mrb[0].mxu0 %v1550_v12  ;;  %704 = vmatmul.mubr.bf16.vlgmr.msra.gmra.mrb[0].mxu1 %v1553_v13  ;;  %v1923_v12 = vand.u32 127, %v832_v10 }
  0x26   :  { %1363 = vmatprep.mubr.msk.bf16.mxu0 %vm446_vm0, %v1556_v14  ;;  %1379 = vmatprep.mubr.msk.bf16.mxu1 %vm446_vm0, %v1558_v15 }
  0x27   :  { %vm834_vm1 = vcmp.lt.s32.totalorder %v1923_v12, 32 }
  0x2d   :  { %584 = vmatmul.mubr.bf16.gmra.mrb[4].mxu0 %v1560_v16  ;;  %712 = vmatmul.mubr.bf16.gmra.mrb[4].mxu1 %v1561_v17 }
  0x2e   :  { %1364 = vmatprep.mubr.msk.bf16.mxu0 %vm446_vm0, %v1562_v18  ;;  %1380 = vmatprep.mubr.msk.bf16.mxu1 %vm446_vm0, %v1564_v19 }
  0x35   :  { %592 = vmatmul.mubr.bf16.gmra.mrb[8].mxu0 %v1566_v20  ;;  %720 = vmatmul.mubr.bf16.gmra.mrb[8].mxu1 %v1567_v21 }
  0x36   :  { %1365 = vmatprep.mubr.msk.bf16.mxu0 %vm446_vm0, %v1568_v22  ;;  %1381 = vmatprep.mubr.msk.bf16.mxu1 %vm446_vm0, %v1570_v23 }
  0x3d   :  { %600 = vmatmul.mubr.bf16.gmra.mrb[12].mxu0 %v1572_v24  ;;  %728 = vmatmul.mubr.bf16.gmra.mrb[12].mxu1 %v1573_v25 }
  0x3e   :  { %1366 = vmatprep.mubr.msk.bf16.mxu0 %vm446_vm0, %v1574_v26  ;;  %1382 = vmatprep.mubr.msk.bf16.mxu1 %vm446_vm0, %v1576_v27 }
  0x45   :  { %608 = vmatmul.mubr.bf16.gmra.mrb[16].mxu0 %v1578_v28  ;;  %736 = vmatmul.mubr.bf16.gmra.mrb[16].mxu1 %v1579_v29 }
  0x46   :  { %1367 = vmatprep.mubr.msk.bf16.mxu0 %vm446_vm0, %v1580_v30  ;;  %1383 = vmatprep.mubr.msk.bf16.mxu1 %vm446_vm0, %v1582_v31 }
  0x4d   :  { %616 = vmatmul.mubr.bf16.gmra.mrb[20].mxu0 %v1584_v32  ;;  %744 = vmatmul.mubr.bf16.gmra.mrb[20].mxu1 %v1585_v33 }
  0x4e   :  { %1368 = vmatprep.mubr.msk.bf16.mxu0 %vm446_vm0, %v1586_v34  ;;  %1384 = vmatprep.mubr.msk.bf16.mxu1 %vm446_vm0, %v1588_v35 }
  0x55   :  { %624 = vmatmul.mubr.bf16.gmra.mrb[24].mxu0 %v1590_v36  ;;  %752 = vmatmul.mubr.bf16.gmra.mrb[24].mxu1 %v1591_v37 }
  0x56   :  { %1369 = vmatprep.mubr.msk.bf16.mxu0 %vm446_vm0, %v1592_v38  ;;  %1385 = vmatprep.mubr.msk.bf16.mxu1 %vm446_vm0, %v1594_v39 }
  0x5d   :  { %632 = vmatmul.mubr.bf16.gmra.mrb[28].mxu0 %v1596_v40  ;;  %760 = vmatmul.mubr.bf16.gmra.mrb[28].mxu1 %v1597_v41 }
  0x5e   :  { %1370 = vmatprep.mubr.msk.bf16.mxu0 %vm446_vm0, %v1598_v42  ;;  %1386 = vmatprep.mubr.msk.bf16.mxu1 %vm446_vm0, %v1600_v43 }
  0x65   :  { %640 = vmatmul.mubr.bf16.gmra.mrb[32].mxu0 %v1602_v44  ;;  %768 = vmatmul.mubr.bf16.gmra.mrb[32].mxu1 %v1603_v45 }
  0x66   :  { %1371 = vmatprep.mubr.msk.bf16.mxu0 %vm446_vm0, %v1604_v46  ;;  %1387 = vmatprep.mubr.msk.bf16.mxu1 %vm446_vm0, %v1606_v47 }
  0x6d   :  { %648 = vmatmul.mubr.bf16.gmra.mrb[36].mxu0 %v1608_v48  ;;  %776 = vmatmul.mubr.bf16.gmra.mrb[36].mxu1 %v1609_v49 }
  0x6e   :  { %1372 = vmatprep.mubr.msk.bf16.mxu0 %vm446_vm0, %v1610_v50  ;;  %1388 = vmatprep.mubr.msk.bf16.mxu1 %vm446_vm0, %v1612_v51 }
  0x75   :  { %656 = vmatmul.mubr.bf16.gmra.mrb[40].mxu0 %v1614_v52  ;;  %784 = vmatmul.mubr.bf16.gmra.mrb[40].mxu1 %v1615_v53 }
  0x76   :  { %1373 = vmatprep.mubr.msk.bf16.mxu0 %vm446_vm0, %v1616_v54  ;;  %1389 = vmatprep.mubr.msk.bf16.mxu1 %vm446_vm0, %v1618_v55 }
  0x7d   :  { %664 = vmatmul.mubr.bf16.gmra.mrb[44].mxu0 %v1620_v56  ;;  %792 = vmatmul.mubr.bf16.gmra.mrb[44].mxu1 %v1621_v57 }
  0x7e   :  { %1374 = vmatprep.mubr.msk.bf16.mxu0 %vm446_vm0, %v1622_v58  ;;  %1390 = vmatprep.mubr.msk.bf16.mxu1 %vm446_vm0, %v1624_v59 }
  0x85   :  { %672 = vmatmul.mubr.bf16.gmra.mrb[48].mxu0 %v1626_v60  ;;  %800 = vmatmul.mubr.bf16.gmra.mrb[48].mxu1 %v1627_v61 }
  0x86   :  { %1375 = vmatprep.mubr.msk.bf16.mxu0 %vm446_vm0, %v1628_v62  ;;  %1391 = vmatprep.mubr.msk.bf16.mxu1 %vm446_vm0, %v1630_v63 }
  0x8d   :  { %680 = vmatmul.mubr.bf16.gmra.mrb[52].mxu0 %v1632_v0  ;;  %808 = vmatmul.mubr.bf16.gmra.mrb[52].mxu1 %v1633_v1 }
  0x8e   :  { %1376 = vmatprep.mubr.msk.bf16.mxu0 %vm446_vm0, %v1634_v2  ;;  %1392 = vmatprep.mubr.msk.bf16.mxu1 %vm446_vm0, %v1636_v3 }
  0x95   :  { %688 = vmatmul.mubr.bf16.gmra.mrb[56].mxu0 %v1638_v4  ;;  %816 = vmatmul.mubr.bf16.gmra.mrb[56].mxu1 %v1639_v5 }
  0x96   :  { %1377 = vmatprep.mubr.msk.bf16.mxu0 %vm446_vm0, %v1640_v6  ;;  %1393 = vmatprep.mubr.msk.bf16.mxu1 %vm446_vm0, %v1642_v7 }
  0x9d   :  { %696 = vmatmul.mubr.bf16.gmra.mrb[60].mxu0 %v1644_v8  ;;  %824 = vmatmul.mubr.bf16.gmra.mrb[60].mxu1 %v1645_v9 }
  0xf8   :  { %v577_v13 = vpop.f32.mrb[0].mxu0  ;;  %v705_v14 = vpop.f32.mrb[0].mxu1 }
  0xf9   :  { %v578_v15 = vadd.f32 %v1921_v11, %v577_v13  ;;  %v706_v16 = vadd.f32 %v1921_v11, %v705_v14  ;;  %v579_v17 = vpop.f32.mrb[1].mxu0  ;;  %v707_v18 = vpop.f32.mrb[1].mxu1 }
  0xfa   :  { %v580_v19 = vpop.f32.mrb[2].mxu0  ;;  %v708_v20 = vpop.f32.mrb[2].mxu1 }
  0xfb   :  { %v835_v21 = vmax.f32 %v578_v15, 0.0  ;;  %v867_v22 = vmax.f32 %v706_v16, 0.0  ;;  %v581_v23 = vadd.f32 %v1921_v11, %v580_v19  ;;  %v709_v24 = vadd.f32 %v1921_v11, %v708_v20  ;;  %v582_v25 = vpop.f32.mrb[3].mxu0  ;;  %v710_v26 = vpop.f32.mrb[3].mxu1 }
  0xfd   :  { %v899_v27 = vsel %vm834_vm1, %v835_v21, %v578_v15  ;;  %v931_v28 = vsel %vm834_vm1, %v867_v22, %v706_v16  ;;  %v836_v29 = vmax.f32 %v581_v23, 0.0  ;;  %v868_v30 = vmax.f32 %v709_v24, 0.0 }
  0xfe   :  { %v1458_v31 = vpack.c.bf16 %v899_v27, %v899_v27  ;;  %v1490_v32 = vpack.c.bf16 %v931_v28, %v931_v28 }
  0xff   :  { %v900_v33 = vsel %vm834_vm1, %v836_v29, %v581_v23  ;;  %v932_v34 = vsel %vm834_vm1, %v868_v30, %v709_v24 }
 0x100   :  { %1220 = vst.msk [vmem:[%s2377_s3] sm:$0xf] %vm1219_vm2, %v1458_v31  ;;  %1252 = vst.msk [vmem:[%s2377_s3 + $0x80] sm:$0xf] %vm1219_vm2, %v1490_v32  ;;  %v1459_v35 = vpack.c.bf16 %v900_v33, %v900_v33  ;;  %v1491_v36 = vpack.c.bf16 %v932_v34, %v932_v34  ;;  %v585_v37 = vpop.f32.mrb[4].mxu0  ;;  %v713_v38 = vpop.f32.mrb[4].mxu1 }
 0x101   :  { %v586_v39 = vadd.f32 %v1921_v11, %v585_v37  ;;  %v714_v40 = vadd.f32 %v1921_v11, %v713_v38  ;;  %v587_v41 = vpop.f32.mrb[5].mxu0  ;;  %v715_v42 = vpop.f32.mrb[5].mxu1 }
 0x102   :  { %1221 = vst.msk [vmem:[%s2377_s3 + $0x4] sm:$0xf] %vm1219_vm2, %v1459_v35  ;;  %1253 = vst.msk [vmem:[%s2377_s3 + $0x84] sm:$0xf] %vm1219_vm2, %v1491_v36  ;;  %v588_v43 = vpop.f32.mrb[6].mxu0  ;;  %v716_v44 = vpop.f32.mrb[6].mxu1 }
 0x103   :  { %v837_v45 = vmax.f32 %v586_v39, 0.0  ;;  %v869_v46 = vmax.f32 %v714_v40, 0.0  ;;  %v589_v47 = vadd.f32 %v1921_v11, %v588_v43  ;;  %v717_v48 = vadd.f32 %v1921_v11, %v716_v44  ;;  %v590_v49 = vpop.f32.mrb[7].mxu0  ;;  %v718_v50 = vpop.f32.mrb[7].mxu1 }
 0x105   :  { %v901_v51 = vsel %vm834_vm1, %v837_v45, %v586_v39  ;;  %v933_v52 = vsel %vm834_vm1, %v869_v46, %v714_v40  ;;  %v838_v53 = vmax.f32 %v589_v47, 0.0  ;;  %v870_v54 = vmax.f32 %v717_v48, 0.0 }
 0x106   :  { %v1460_v55 = vpack.c.bf16 %v901_v51, %v901_v51  ;;  %v1492_v56 = vpack.c.bf16 %v933_v52, %v933_v52 }
 0x107   :  { %v902_v57 = vsel %vm834_vm1, %v838_v53, %v589_v47  ;;  %v934_v58 = vsel %vm834_vm1, %v870_v54, %v717_v48 }
 0x108   :  { %1222 = vst.msk [vmem:[%s2377_s3 + $0x8] sm:$0xf] %vm1219_vm2, %v1460_v55  ;;  %1254 = vst.msk [vmem:[%s2377_s3 + $0x88] sm:$0xf] %vm1219_vm2, %v1492_v56  ;;  %v1461_v59 = vpack.c.bf16 %v902_v57, %v902_v57  ;;  %v1493_v60 = vpack.c.bf16 %v934_v58, %v934_v58  ;;  %v593_v61 = vpop.f32.mrb[8].mxu0  ;;  %v721_v62 = vpop.f32.mrb[8].mxu1 }
 0x109   :  { %v594_v63 = vadd.f32 %v1921_v11, %v593_v61  ;;  %v722_v0 = vadd.f32 %v1921_v11, %v721_v62  ;;  %v595_v1 = vpop.f32.mrb[9].mxu0  ;;  %v723_v2 = vpop.f32.mrb[9].mxu1 }
 0x10a   :  { %1223 = vst.msk [vmem:[%s2377_s3 + $0xc] sm:$0xf] %vm1219_vm2, %v1461_v59  ;;  %1255 = vst.msk [vmem:[%s2377_s3 + $0x8c] sm:$0xf] %vm1219_vm2, %v1493_v60  ;;  %v596_v3 = vpop.f32.mrb[10].mxu0  ;;  %v724_v4 = vpop.f32.mrb[10].mxu1 }
 0x10b   :  { %v839_v5 = vmax.f32 %v594_v63, 0.0  ;;  %v871_v6 = vmax.f32 %v722_v0, 0.0  ;;  %v597_v7 = vadd.f32 %v1921_v11, %v596_v3  ;;  %v725_v8 = vadd.f32 %v1921_v11, %v724_v4  ;;  %v598_v9 = vpop.f32.mrb[11].mxu0  ;;  %v726_v10 = vpop.f32.mrb[11].mxu1 }
 0x10d   :  { %v903_v13 = vsel %vm834_vm1, %v839_v5, %v594_v63  ;;  %v935_v14 = vsel %vm834_vm1, %v871_v6, %v722_v0  ;;  %v840_v15 = vmax.f32 %v597_v7, 0.0  ;;  %v872_v16 = vmax.f32 %v725_v8, 0.0 }
 0x10e   :  { %v1462_v17 = vpack.c.bf16 %v903_v13, %v903_v13  ;;  %v1494_v18 = vpack.c.bf16 %v935_v14, %v935_v14 }
 0x10f   :  { %v904_v19 = vsel %vm834_vm1, %v840_v15, %v597_v7  ;;  %v936_v20 = vsel %vm834_vm1, %v872_v16, %v725_v8 }
 0x110   :  { %1224 = vst.msk [vmem:[%s2377_s3 + $0x10] sm:$0xf] %vm1219_vm2, %v1462_v17  ;;  %1256 = vst.msk [vmem:[%s2377_s3 + $0x90] sm:$0xf] %vm1219_vm2, %v1494_v18  ;;  %v1463_v21 = vpack.c.bf16 %v904_v19, %v904_v19  ;;  %v1495_v22 = vpack.c.bf16 %v936_v20, %v936_v20  ;;  %v601_v23 = vpop.f32.mrb[12].mxu0  ;;  %v729_v24 = vpop.f32.mrb[12].mxu1 }
 0x111   :  { %v602_v25 = vadd.f32 %v1921_v11, %v601_v23  ;;  %v730_v26 = vadd.f32 %v1921_v11, %v729_v24  ;;  %v603_v27 = vpop.f32.mrb[13].mxu0  ;;  %v731_v28 = vpop.f32.mrb[13].mxu1 }
 0x112   :  { %1225 = vst.msk [vmem:[%s2377_s3 + $0x14] sm:$0xf] %vm1219_vm2, %v1463_v21  ;;  %1257 = vst.msk [vmem:[%s2377_s3 + $0x94] sm:$0xf] %vm1219_vm2, %v1495_v22  ;;  %v604_v29 = vpop.f32.mrb[14].mxu0  ;;  %v732_v30 = vpop.f32.mrb[14].mxu1 }
 0x113   :  { %v841_v31 = vmax.f32 %v602_v25, 0.0  ;;  %v873_v32 = vmax.f32 %v730_v26, 0.0  ;;  %v605_v33 = vadd.f32 %v1921_v11, %v604_v29  ;;  %v733_v34 = vadd.f32 %v1921_v11, %v732_v30  ;;  %v606_v35 = vpop.f32.mrb[15].mxu0  ;;  %v734_v36 = vpop.f32.mrb[15].mxu1 }
 0x115   :  { %v905_v37 = vsel %vm834_vm1, %v841_v31, %v602_v25  ;;  %v937_v38 = vsel %vm834_vm1, %v873_v32, %v730_v26  ;;  %v842_v39 = vmax.f32 %v605_v33, 0.0  ;;  %v874_v40 = vmax.f32 %v733_v34, 0.0 }
 0x116   :  { %v1464_v41 = vpack.c.bf16 %v905_v37, %v905_v37  ;;  %v1496_v42 = vpack.c.bf16 %v937_v38, %v937_v38 }
 0x117   :  { %v906_v43 = vsel %vm834_vm1, %v842_v39, %v605_v33  ;;  %v938_v44 = vsel %vm834_vm1, %v874_v40, %v733_v34 }
 0x118   :  { %1226 = vst.msk [vmem:[%s2377_s3 + $0x18] sm:$0xf] %vm1219_vm2, %v1464_v41  ;;  %1258 = vst.msk [vmem:[%s2377_s3 + $0x98] sm:$0xf] %vm1219_vm2, %v1496_v42  ;;  %v1465_v45 = vpack.c.bf16 %v906_v43, %v906_v43  ;;  %v1497_v46 = vpack.c.bf16 %v938_v44, %v938_v44  ;;  %v609_v47 = vpop.f32.mrb[16].mxu0  ;;  %v737_v48 = vpop.f32.mrb[16].mxu1 }
 0x119   :  { %v610_v49 = vadd.f32 %v1921_v11, %v609_v47  ;;  %v738_v50 = vadd.f32 %v1921_v11, %v737_v48  ;;  %v611_v51 = vpop.f32.mrb[17].mxu0  ;;  %v739_v52 = vpop.f32.mrb[17].mxu1 }
 0x11a   :  { %1227 = vst.msk [vmem:[%s2377_s3 + $0x1c] sm:$0xf] %vm1219_vm2, %v1465_v45  ;;  %1259 = vst.msk [vmem:[%s2377_s3 + $0x9c] sm:$0xf] %vm1219_vm2, %v1497_v46  ;;  %v612_v53 = vpop.f32.mrb[18].mxu0  ;;  %v740_v54 = vpop.f32.mrb[18].mxu1 }
 0x11b   :  { %v843_v55 = vmax.f32 %v610_v49, 0.0  ;;  %v875_v56 = vmax.f32 %v738_v50, 0.0  ;;  %v613_v57 = vadd.f32 %v1921_v11, %v612_v53  ;;  %v741_v58 = vadd.f32 %v1921_v11, %v740_v54  ;;  %v614_v59 = vpop.f32.mrb[19].mxu0  ;;  %v742_v60 = vpop.f32.mrb[19].mxu1 }
 0x11d   :  { %v907_v61 = vsel %vm834_vm1, %v843_v55, %v610_v49  ;;  %v939_v62 = vsel %vm834_vm1, %v875_v56, %v738_v50  ;;  %v844_v63 = vmax.f32 %v613_v57, 0.0  ;;  %v876_v0 = vmax.f32 %v741_v58, 0.0 }
 0x11e   :  { %v1466_v1 = vpack.c.bf16 %v907_v61, %v907_v61  ;;  %v1498_v2 = vpack.c.bf16 %v939_v62, %v939_v62 }
 0x11f   :  { %v908_v3 = vsel %vm834_vm1, %v844_v63, %v613_v57  ;;  %v940_v4 = vsel %vm834_vm1, %v876_v0, %v741_v58 }
 0x120   :  { %1228 = vst.msk [vmem:[%s2377_s3 + $0x20] sm:$0xf] %vm1219_vm2, %v1466_v1  ;;  %1260 = vst.msk [vmem:[%s2377_s3 + $0xa0] sm:$0xf] %vm1219_vm2, %v1498_v2  ;;  %v1467_v5 = vpack.c.bf16 %v908_v3, %v908_v3  ;;  %v1499_v6 = vpack.c.bf16 %v940_v4, %v940_v4  ;;  %v617_v7 = vpop.f32.mrb[20].mxu0  ;;  %v745_v8 = vpop.f32.mrb[20].mxu1 }
 0x121   :  { %v618_v9 = vadd.f32 %v1921_v11, %v617_v7  ;;  %v746_v10 = vadd.f32 %v1921_v11, %v745_v8  ;;  %v619_v13 = vpop.f32.mrb[21].mxu0  ;;  %v747_v14 = vpop.f32.mrb[21].mxu1 }
 0x122   :  { %1229 = vst.msk [vmem:[%s2377_s3 + $0x24] sm:$0xf] %vm1219_vm2, %v1467_v5  ;;  %1261 = vst.msk [vmem:[%s2377_s3 + $0xa4] sm:$0xf] %vm1219_vm2, %v1499_v6  ;;  %v620_v15 = vpop.f32.mrb[22].mxu0  ;;  %v748_v16 = vpop.f32.mrb[22].mxu1 }
 0x123   :  { %v845_v17 = vmax.f32 %v618_v9, 0.0  ;;  %v877_v18 = vmax.f32 %v746_v10, 0.0  ;;  %v621_v19 = vadd.f32 %v1921_v11, %v620_v15  ;;  %v749_v20 = vadd.f32 %v1921_v11, %v748_v16  ;;  %v622_v21 = vpop.f32.mrb[23].mxu0  ;;  %v750_v22 = vpop.f32.mrb[23].mxu1 }
 0x125   :  { %v909_v23 = vsel %vm834_vm1, %v845_v17, %v618_v9  ;;  %v941_v24 = vsel %vm834_vm1, %v877_v18, %v746_v10  ;;  %v846_v25 = vmax.f32 %v621_v19, 0.0  ;;  %v878_v26 = vmax.f32 %v749_v20, 0.0 }
 0x126   :  { %v1468_v27 = vpack.c.bf16 %v909_v23, %v909_v23  ;;  %v1500_v28 = vpack.c.bf16 %v941_v24, %v941_v24 }
 0x127   :  { %v910_v29 = vsel %vm834_vm1, %v846_v25, %v621_v19  ;;  %v942_v30 = vsel %vm834_vm1, %v878_v26, %v749_v20 }
 0x128   :  { %1230 = vst.msk [vmem:[%s2377_s3 + $0x28] sm:$0xf] %vm1219_vm2, %v1468_v27  ;;  %1262 = vst.msk [vmem:[%s2377_s3 + $0xa8] sm:$0xf] %vm1219_vm2, %v1500_v28  ;;  %v1469_v31 = vpack.c.bf16 %v910_v29, %v910_v29  ;;  %v1501_v32 = vpack.c.bf16 %v942_v30, %v942_v30  ;;  %v625_v33 = vpop.f32.mrb[24].mxu0  ;;  %v753_v34 = vpop.f32.mrb[24].mxu1 }
 0x129   :  { %v626_v35 = vadd.f32 %v1921_v11, %v625_v33  ;;  %v754_v36 = vadd.f32 %v1921_v11, %v753_v34  ;;  %v627_v37 = vpop.f32.mrb[25].mxu0  ;;  %v755_v38 = vpop.f32.mrb[25].mxu1 }
 0x12a   :  { %1231 = vst.msk [vmem:[%s2377_s3 + $0x2c] sm:$0xf] %vm1219_vm2, %v1469_v31  ;;  %1263 = vst.msk [vmem:[%s2377_s3 + $0xac] sm:$0xf] %vm1219_vm2, %v1501_v32  ;;  %v628_v39 = vpop.f32.mrb[26].mxu0  ;;  %v756_v40 = vpop.f32.mrb[26].mxu1 }
 0x12b   :  { %v847_v41 = vmax.f32 %v626_v35, 0.0  ;;  %v879_v42 = vmax.f32 %v754_v36, 0.0  ;;  %v629_v43 = vadd.f32 %v1921_v11, %v628_v39  ;;  %v757_v44 = vadd.f32 %v1921_v11, %v756_v40  ;;  %v630_v45 = vpop.f32.mrb[27].mxu0  ;;  %v758_v46 = vpop.f32.mrb[27].mxu1 }
 0x12d   :  { %v911_v47 = vsel %vm834_vm1, %v847_v41, %v626_v35  ;;  %v943_v48 = vsel %vm834_vm1, %v879_v42, %v754_v36  ;;  %v848_v49 = vmax.f32 %v629_v43, 0.0  ;;  %v880_v50 = vmax.f32 %v757_v44, 0.0 }
 0x12e   :  { %v1470_v51 = vpack.c.bf16 %v911_v47, %v911_v47  ;;  %v1502_v52 = vpack.c.bf16 %v943_v48, %v943_v48 }
 0x12f   :  { %v912_v53 = vsel %vm834_vm1, %v848_v49, %v629_v43  ;;  %v944_v54 = vsel %vm834_vm1, %v880_v50, %v757_v44 }
 0x130   :  { %1232 = vst.msk [vmem:[%s2377_s3 + $0x30] sm:$0xf] %vm1219_vm2, %v1470_v51  ;;  %1264 = vst.msk [vmem:[%s2377_s3 + $0xb0] sm:$0xf] %vm1219_vm2, %v1502_v52  ;;  %v1471_v55 = vpack.c.bf16 %v912_v53, %v912_v53  ;;  %v1503_v56 = vpack.c.bf16 %v944_v54, %v944_v54  ;;  %v633_v57 = vpop.f32.mrb[28].mxu0  ;;  %v761_v58 = vpop.f32.mrb[28].mxu1 }
 0x131   :  { %v634_v59 = vadd.f32 %v1921_v11, %v633_v57  ;;  %v762_v60 = vadd.f32 %v1921_v11, %v761_v58  ;;  %v635_v61 = vpop.f32.mrb[29].mxu0  ;;  %v763_v62 = vpop.f32.mrb[29].mxu1 }
 0x132   :  { %1233 = vst.msk [vmem:[%s2377_s3 + $0x34] sm:$0xf] %vm1219_vm2, %v1471_v55  ;;  %1265 = vst.msk [vmem:[%s2377_s3 + $0xb4] sm:$0xf] %vm1219_vm2, %v1503_v56  ;;  %v636_v63 = vpop.f32.mrb[30].mxu0  ;;  %v764_v0 = vpop.f32.mrb[30].mxu1 }
 0x133   :  { %v849_v1 = vmax.f32 %v634_v59, 0.0  ;;  %v881_v2 = vmax.f32 %v762_v60, 0.0  ;;  %v637_v3 = vadd.f32 %v1921_v11, %v636_v63  ;;  %v765_v4 = vadd.f32 %v1921_v11, %v764_v0  ;;  %v638_v5 = vpop.f32.mrb[31].mxu0  ;;  %v766_v6 = vpop.f32.mrb[31].mxu1 }
 0x135   :  { %v913_v7 = vsel %vm834_vm1, %v849_v1, %v634_v59  ;;  %v945_v8 = vsel %vm834_vm1, %v881_v2, %v762_v60  ;;  %v850_v9 = vmax.f32 %v637_v3, 0.0  ;;  %v882_v10 = vmax.f32 %v765_v4, 0.0 }
 0x136   :  { %v1472_v13 = vpack.c.bf16 %v913_v7, %v913_v7  ;;  %v1504_v14 = vpack.c.bf16 %v945_v8, %v945_v8 }
 0x137   :  { %v914_v15 = vsel %vm834_vm1, %v850_v9, %v637_v3  ;;  %v946_v16 = vsel %vm834_vm1, %v882_v10, %v765_v4 }
 0x138   :  { %1234 = vst.msk [vmem:[%s2377_s3 + $0x38] sm:$0xf] %vm1219_vm2, %v1472_v13  ;;  %1266 = vst.msk [vmem:[%s2377_s3 + $0xb8] sm:$0xf] %vm1219_vm2, %v1504_v14  ;;  %v1473_v17 = vpack.c.bf16 %v914_v15, %v914_v15  ;;  %v1505_v18 = vpack.c.bf16 %v946_v16, %v946_v16  ;;  %v641_v19 = vpop.f32.mrb[32].mxu0  ;;  %v769_v20 = vpop.f32.mrb[32].mxu1 }
 0x139   :  { %v642_v21 = vadd.f32 %v1921_v11, %v641_v19  ;;  %v770_v22 = vadd.f32 %v1921_v11, %v769_v20  ;;  %v643_v23 = vpop.f32.mrb[33].mxu0  ;;  %v771_v24 = vpop.f32.mrb[33].mxu1 }
 0x13a   :  { %1235 = vst.msk [vmem:[%s2377_s3 + $0x3c] sm:$0xf] %vm1219_vm2, %v1473_v17  ;;  %1267 = vst.msk [vmem:[%s2377_s3 + $0xbc] sm:$0xf] %vm1219_vm2, %v1505_v18  ;;  %v644_v25 = vpop.f32.mrb[34].mxu0  ;;  %v772_v26 = vpop.f32.mrb[34].mxu1 }
 0x13b   :  { %v851_v27 = vmax.f32 %v642_v21, 0.0  ;;  %v883_v28 = vmax.f32 %v770_v22, 0.0  ;;  %v645_v29 = vadd.f32 %v1921_v11, %v644_v25  ;;  %v773_v30 = vadd.f32 %v1921_v11, %v772_v26  ;;  %v646_v31 = vpop.f32.mrb[35].mxu0  ;;  %v774_v32 = vpop.f32.mrb[35].mxu1 }
 0x13d   :  { %v915_v33 = vsel %vm834_vm1, %v851_v27, %v642_v21  ;;  %v947_v34 = vsel %vm834_vm1, %v883_v28, %v770_v22  ;;  %v852_v35 = vmax.f32 %v645_v29, 0.0  ;;  %v884_v36 = vmax.f32 %v773_v30, 0.0 }
 0x13e   :  { %v1474_v37 = vpack.c.bf16 %v915_v33, %v915_v33  ;;  %v1506_v38 = vpack.c.bf16 %v947_v34, %v947_v34 }
 0x13f   :  { %v916_v39 = vsel %vm834_vm1, %v852_v35, %v645_v29  ;;  %v948_v40 = vsel %vm834_vm1, %v884_v36, %v773_v30 }
 0x140   :  { %1236 = vst.msk [vmem:[%s2377_s3 + $0x40] sm:$0xf] %vm1219_vm2, %v1474_v37  ;;  %1268 = vst.msk [vmem:[%s2377_s3 + $0xc0] sm:$0xf] %vm1219_vm2, %v1506_v38  ;;  %v1475_v41 = vpack.c.bf16 %v916_v39, %v916_v39  ;;  %v1507_v42 = vpack.c.bf16 %v948_v40, %v948_v40  ;;  %v649_v43 = vpop.f32.mrb[36].mxu0  ;;  %v777_v44 = vpop.f32.mrb[36].mxu1 }
 0x141   :  { %v650_v45 = vadd.f32 %v1921_v11, %v649_v43  ;;  %v778_v46 = vadd.f32 %v1921_v11, %v777_v44  ;;  %v651_v47 = vpop.f32.mrb[37].mxu0  ;;  %v779_v48 = vpop.f32.mrb[37].mxu1 }
 0x142   :  { %1237 = vst.msk [vmem:[%s2377_s3 + $0x44] sm:$0xf] %vm1219_vm2, %v1475_v41  ;;  %1269 = vst.msk [vmem:[%s2377_s3 + $0xc4] sm:$0xf] %vm1219_vm2, %v1507_v42  ;;  %v652_v49 = vpop.f32.mrb[38].mxu0  ;;  %v780_v50 = vpop.f32.mrb[38].mxu1 }
 0x143   :  { %v853_v51 = vmax.f32 %v650_v45, 0.0  ;;  %v885_v52 = vmax.f32 %v778_v46, 0.0  ;;  %v653_v53 = vadd.f32 %v1921_v11, %v652_v49  ;;  %v781_v54 = vadd.f32 %v1921_v11, %v780_v50  ;;  %v654_v55 = vpop.f32.mrb[39].mxu0  ;;  %v782_v56 = vpop.f32.mrb[39].mxu1 }
 0x145   :  { %v917_v57 = vsel %vm834_vm1, %v853_v51, %v650_v45  ;;  %v949_v58 = vsel %vm834_vm1, %v885_v52, %v778_v46  ;;  %v854_v59 = vmax.f32 %v653_v53, 0.0  ;;  %v886_v60 = vmax.f32 %v781_v54, 0.0 }
 0x146   :  { %v1476_v61 = vpack.c.bf16 %v917_v57, %v917_v57  ;;  %v1508_v62 = vpack.c.bf16 %v949_v58, %v949_v58 }
 0x147   :  { %v918_v63 = vsel %vm834_vm1, %v854_v59, %v653_v53  ;;  %v950_v0 = vsel %vm834_vm1, %v886_v60, %v781_v54 }
 0x148   :  { %1238 = vst.msk [vmem:[%s2377_s3 + $0x48] sm:$0xf] %vm1219_vm2, %v1476_v61  ;;  %1270 = vst.msk [vmem:[%s2377_s3 + $0xc8] sm:$0xf] %vm1219_vm2, %v1508_v62  ;;  %v1477_v1 = vpack.c.bf16 %v918_v63, %v918_v63  ;;  %v1509_v2 = vpack.c.bf16 %v950_v0, %v950_v0  ;;  %v657_v3 = vpop.f32.mrb[40].mxu0  ;;  %v785_v4 = vpop.f32.mrb[40].mxu1 }
 0x149   :  { %v658_v5 = vadd.f32 %v1921_v11, %v657_v3  ;;  %v786_v6 = vadd.f32 %v1921_v11, %v785_v4  ;;  %v659_v7 = vpop.f32.mrb[41].mxu0  ;;  %v787_v8 = vpop.f32.mrb[41].mxu1 }
 0x14a   :  { %1239 = vst.msk [vmem:[%s2377_s3 + $0x4c] sm:$0xf] %vm1219_vm2, %v1477_v1  ;;  %1271 = vst.msk [vmem:[%s2377_s3 + $0xcc] sm:$0xf] %vm1219_vm2, %v1509_v2  ;;  %v660_v9 = vpop.f32.mrb[42].mxu0  ;;  %v788_v10 = vpop.f32.mrb[42].mxu1 }
 0x14b   :  { %v855_v13 = vmax.f32 %v658_v5, 0.0  ;;  %v887_v14 = vmax.f32 %v786_v6, 0.0  ;;  %v661_v15 = vadd.f32 %v1921_v11, %v660_v9  ;;  %v789_v16 = vadd.f32 %v1921_v11, %v788_v10  ;;  %v662_v17 = vpop.f32.mrb[43].mxu0  ;;  %v790_v18 = vpop.f32.mrb[43].mxu1 }
 0x14d   :  { %v919_v19 = vsel %vm834_vm1, %v855_v13, %v658_v5  ;;  %v951_v20 = vsel %vm834_vm1, %v887_v14, %v786_v6  ;;  %v856_v21 = vmax.f32 %v661_v15, 0.0  ;;  %v888_v22 = vmax.f32 %v789_v16, 0.0 }
 0x14e   :  { %v1478_v23 = vpack.c.bf16 %v919_v19, %v919_v19  ;;  %v1510_v24 = vpack.c.bf16 %v951_v20, %v951_v20 }
 0x14f   :  { %v920_v25 = vsel %vm834_vm1, %v856_v21, %v661_v15  ;;  %v952_v26 = vsel %vm834_vm1, %v888_v22, %v789_v16 }
 0x150   :  { %1240 = vst.msk [vmem:[%s2377_s3 + $0x50] sm:$0xf] %vm1219_vm2, %v1478_v23  ;;  %1272 = vst.msk [vmem:[%s2377_s3 + $0xd0] sm:$0xf] %vm1219_vm2, %v1510_v24  ;;  %v1479_v27 = vpack.c.bf16 %v920_v25, %v920_v25  ;;  %v1511_v28 = vpack.c.bf16 %v952_v26, %v952_v26  ;;  %v665_v29 = vpop.f32.mrb[44].mxu0  ;;  %v793_v30 = vpop.f32.mrb[44].mxu1 }
 0x151   :  { %v666_v31 = vadd.f32 %v1921_v11, %v665_v29  ;;  %v794_v32 = vadd.f32 %v1921_v11, %v793_v30  ;;  %v667_v33 = vpop.f32.mrb[45].mxu0  ;;  %v795_v34 = vpop.f32.mrb[45].mxu1 }
 0x152   :  { %1241 = vst.msk [vmem:[%s2377_s3 + $0x54] sm:$0xf] %vm1219_vm2, %v1479_v27  ;;  %1273 = vst.msk [vmem:[%s2377_s3 + $0xd4] sm:$0xf] %vm1219_vm2, %v1511_v28  ;;  %v668_v35 = vpop.f32.mrb[46].mxu0  ;;  %v796_v36 = vpop.f32.mrb[46].mxu1 }
 0x153   :  { %v857_v37 = vmax.f32 %v666_v31, 0.0  ;;  %v889_v38 = vmax.f32 %v794_v32, 0.0  ;;  %v669_v39 = vadd.f32 %v1921_v11, %v668_v35  ;;  %v797_v40 = vadd.f32 %v1921_v11, %v796_v36  ;;  %v670_v41 = vpop.f32.mrb[47].mxu0  ;;  %v798_v42 = vpop.f32.mrb[47].mxu1 }
 0x155   :  { %v921_v43 = vsel %vm834_vm1, %v857_v37, %v666_v31  ;;  %v953_v44 = vsel %vm834_vm1, %v889_v38, %v794_v32  ;;  %v858_v45 = vmax.f32 %v669_v39, 0.0  ;;  %v890_v46 = vmax.f32 %v797_v40, 0.0 }
 0x156   :  { %v1480_v47 = vpack.c.bf16 %v921_v43, %v921_v43  ;;  %v1512_v48 = vpack.c.bf16 %v953_v44, %v953_v44 }
 0x157   :  { %v922_v49 = vsel %vm834_vm1, %v858_v45, %v669_v39  ;;  %v954_v50 = vsel %vm834_vm1, %v890_v46, %v797_v40 }
 0x158   :  { %1242 = vst.msk [vmem:[%s2377_s3 + $0x58] sm:$0xf] %vm1219_vm2, %v1480_v47  ;;  %1274 = vst.msk [vmem:[%s2377_s3 + $0xd8] sm:$0xf] %vm1219_vm2, %v1512_v48  ;;  %v1481_v51 = vpack.c.bf16 %v922_v49, %v922_v49  ;;  %v1513_v52 = vpack.c.bf16 %v954_v50, %v954_v50  ;;  %v673_v53 = vpop.f32.mrb[48].mxu0  ;;  %v801_v54 = vpop.f32.mrb[48].mxu1 }
 0x159   :  { %v674_v55 = vadd.f32 %v1921_v11, %v673_v53  ;;  %v802_v56 = vadd.f32 %v1921_v11, %v801_v54  ;;  %v675_v57 = vpop.f32.mrb[49].mxu0  ;;  %v803_v58 = vpop.f32.mrb[49].mxu1 }
 0x15a   :  { %1243 = vst.msk [vmem:[%s2377_s3 + $0x5c] sm:$0xf] %vm1219_vm2, %v1481_v51  ;;  %1275 = vst.msk [vmem:[%s2377_s3 + $0xdc] sm:$0xf] %vm1219_vm2, %v1513_v52  ;;  %v676_v59 = vpop.f32.mrb[50].mxu0  ;;  %v804_v60 = vpop.f32.mrb[50].mxu1 }
 0x15b   :  { %v859_v61 = vmax.f32 %v674_v55, 0.0  ;;  %v891_v62 = vmax.f32 %v802_v56, 0.0  ;;  %v677_v63 = vadd.f32 %v1921_v11, %v676_v59  ;;  %v805_v0 = vadd.f32 %v1921_v11, %v804_v60  ;;  %v678_v1 = vpop.f32.mrb[51].mxu0  ;;  %v806_v2 = vpop.f32.mrb[51].mxu1 }
 0x15d   :  { %v923_v3 = vsel %vm834_vm1, %v859_v61, %v674_v55  ;;  %v955_v4 = vsel %vm834_vm1, %v891_v62, %v802_v56  ;;  %v860_v5 = vmax.f32 %v677_v63, 0.0  ;;  %v892_v6 = vmax.f32 %v805_v0, 0.0 }
 0x15e   :  { %v1482_v7 = vpack.c.bf16 %v923_v3, %v923_v3  ;;  %v1514_v8 = vpack.c.bf16 %v955_v4, %v955_v4 }
 0x15f   :  { %v924_v9 = vsel %vm834_vm1, %v860_v5, %v677_v63  ;;  %v956_v10 = vsel %vm834_vm1, %v892_v6, %v805_v0 }
 0x160   :  { %1244 = vst.msk [vmem:[%s2377_s3 + $0x60] sm:$0xf] %vm1219_vm2, %v1482_v7  ;;  %1276 = vst.msk [vmem:[%s2377_s3 + $0xe0] sm:$0xf] %vm1219_vm2, %v1514_v8  ;;  %v1483_v13 = vpack.c.bf16 %v924_v9, %v924_v9  ;;  %v1515_v14 = vpack.c.bf16 %v956_v10, %v956_v10  ;;  %v681_v15 = vpop.f32.mrb[52].mxu0  ;;  %v809_v16 = vpop.f32.mrb[52].mxu1 }
 0x161   :  { %v682_v17 = vadd.f32 %v1921_v11, %v681_v15  ;;  %v810_v18 = vadd.f32 %v1921_v11, %v809_v16  ;;  %v683_v19 = vpop.f32.mrb[53].mxu0  ;;  %v811_v20 = vpop.f32.mrb[53].mxu1 }
 0x162   :  { %1245 = vst.msk [vmem:[%s2377_s3 + $0x64] sm:$0xf] %vm1219_vm2, %v1483_v13  ;;  %1277 = vst.msk [vmem:[%s2377_s3 + $0xe4] sm:$0xf] %vm1219_vm2, %v1515_v14  ;;  %v684_v21 = vpop.f32.mrb[54].mxu0  ;;  %v812_v22 = vpop.f32.mrb[54].mxu1 }
 0x163   :  { %v861_v23 = vmax.f32 %v682_v17, 0.0  ;;  %v893_v24 = vmax.f32 %v810_v18, 0.0  ;;  %v685_v25 = vadd.f32 %v1921_v11, %v684_v21  ;;  %v813_v26 = vadd.f32 %v1921_v11, %v812_v22  ;;  %v686_v27 = vpop.f32.mrb[55].mxu0  ;;  %v814_v28 = vpop.f32.mrb[55].mxu1 }
 0x165   :  { %v925_v29 = vsel %vm834_vm1, %v861_v23, %v682_v17  ;;  %v957_v30 = vsel %vm834_vm1, %v893_v24, %v810_v18  ;;  %v862_v31 = vmax.f32 %v685_v25, 0.0  ;;  %v894_v32 = vmax.f32 %v813_v26, 0.0 }
 0x166   :  { %v1484_v33 = vpack.c.bf16 %v925_v29, %v925_v29  ;;  %v1516_v34 = vpack.c.bf16 %v957_v30, %v957_v30 }
 0x167   :  { %v926_v35 = vsel %vm834_vm1, %v862_v31, %v685_v25  ;;  %v958_v36 = vsel %vm834_vm1, %v894_v32, %v813_v26 }
 0x168   :  { %1246 = vst.msk [vmem:[%s2377_s3 + $0x68] sm:$0xf] %vm1219_vm2, %v1484_v33  ;;  %1278 = vst.msk [vmem:[%s2377_s3 + $0xe8] sm:$0xf] %vm1219_vm2, %v1516_v34  ;;  %v1485_v37 = vpack.c.bf16 %v926_v35, %v926_v35  ;;  %v1517_v38 = vpack.c.bf16 %v958_v36, %v958_v36  ;;  %v689_v39 = vpop.f32.mrb[56].mxu0  ;;  %v817_v40 = vpop.f32.mrb[56].mxu1 }
 0x169   :  { %v690_v41 = vadd.f32 %v1921_v11, %v689_v39  ;;  %v818_v42 = vadd.f32 %v1921_v11, %v817_v40  ;;  %v691_v43 = vpop.f32.mrb[57].mxu0  ;;  %v819_v44 = vpop.f32.mrb[57].mxu1 }
 0x16a   :  { %1247 = vst.msk [vmem:[%s2377_s3 + $0x6c] sm:$0xf] %vm1219_vm2, %v1485_v37  ;;  %1279 = vst.msk [vmem:[%s2377_s3 + $0xec] sm:$0xf] %vm1219_vm2, %v1517_v38  ;;  %v692_v45 = vpop.f32.mrb[58].mxu0  ;;  %v820_v46 = vpop.f32.mrb[58].mxu1 }
 0x16b   :  { %v863_v47 = vmax.f32 %v690_v41, 0.0  ;;  %v895_v48 = vmax.f32 %v818_v42, 0.0  ;;  %v693_v49 = vadd.f32 %v1921_v11, %v692_v45  ;;  %v821_v50 = vadd.f32 %v1921_v11, %v820_v46  ;;  %v694_v51 = vpop.f32.mrb[59].mxu0  ;;  %v822_v52 = vpop.f32.mrb[59].mxu1 }
 0x16d   :  { %v927_v53 = vsel %vm834_vm1, %v863_v47, %v690_v41  ;;  %v959_v54 = vsel %vm834_vm1, %v895_v48, %v818_v42  ;;  %v864_v55 = vmax.f32 %v693_v49, 0.0  ;;  %v896_v56 = vmax.f32 %v821_v50, 0.0 }
 0x16e   :  { %v1486_v57 = vpack.c.bf16 %v927_v53, %v927_v53  ;;  %v1518_v58 = vpack.c.bf16 %v959_v54, %v959_v54 }
 0x16f   :  { %v928_v59 = vsel %vm834_vm1, %v864_v55, %v693_v49  ;;  %v960_v60 = vsel %vm834_vm1, %v896_v56, %v821_v50 }
 0x170   :  { %1248 = vst.msk [vmem:[%s2377_s3 + $0x70] sm:$0xf] %vm1219_vm2, %v1486_v57  ;;  %1280 = vst.msk [vmem:[%s2377_s3 + $0xf0] sm:$0xf] %vm1219_vm2, %v1518_v58  ;;  %v1487_v61 = vpack.c.bf16 %v928_v59, %v928_v59  ;;  %v1519_v62 = vpack.c.bf16 %v960_v60, %v960_v60  ;;  %v697_v63 = vpop.f32.mrb[60].mxu0  ;;  %v825_v0 = vpop.f32.mrb[60].mxu1 }
 0x171   :  { %v698_v1 = vadd.f32 %v1921_v11, %v697_v63  ;;  %v826_v2 = vadd.f32 %v1921_v11, %v825_v0  ;;  %v699_v3 = vpop.f32.mrb[61].mxu0  ;;  %v827_v4 = vpop.f32.mrb[61].mxu1 }
 0x172   :  { %1249 = vst.msk [vmem:[%s2377_s3 + $0x74] sm:$0xf] %vm1219_vm2, %v1487_v61  ;;  %1281 = vst.msk [vmem:[%s2377_s3 + $0xf4] sm:$0xf] %vm1219_vm2, %v1519_v62  ;;  %v700_v5 = vpop.f32.mrb[62].mxu0  ;;  %v828_v6 = vpop.f32.mrb[62].mxu1 }
 0x173   :  { %v865_v7 = vmax.f32 %v698_v1, 0.0  ;;  %v897_v8 = vmax.f32 %v826_v2, 0.0  ;;  %v701_v9 = vadd.f32 %v1921_v11, %v700_v5  ;;  %v829_v10 = vadd.f32 %v1921_v11, %v828_v6  ;;  %v702_v13 = vpop.f32.mrb[63].mxu0  ;;  %v830_v14 = vpop.f32.mrb[63].mxu1 }
 0x175   :  { %v929_v15 = vsel %vm834_vm1, %v865_v7, %v698_v1  ;;  %v961_v16 = vsel %vm834_vm1, %v897_v8, %v826_v2  ;;  %v866_v17 = vmax.f32 %v701_v9, 0.0  ;;  %v898_v18 = vmax.f32 %v829_v10, 0.0 }
 0x176   :  { %v1488_v19 = vpack.c.bf16 %v929_v15, %v929_v15  ;;  %v1520_v20 = vpack.c.bf16 %v961_v16, %v961_v16 }
 0x177   :  { %v930_v21 = vsel %vm834_vm1, %v866_v17, %v701_v9  ;;  %v962_v22 = vsel %vm834_vm1, %v898_v18, %v829_v10 }
 0x178   :  { %1250 = vst.msk [vmem:[%s2377_s3 + $0x78] sm:$0xf] %vm1219_vm2, %v1488_v19  ;;  %1282 = vst.msk [vmem:[%s2377_s3 + $0xf8] sm:$0xf] %vm1219_vm2, %v1520_v20  ;;  %v1489_v11 = vpack.c.bf16 %v930_v21, %v930_v21  ;;  %v1521_v23 = vpack.c.bf16 %v962_v22, %v962_v22 }
 0x17a   :  { %1251 = vst.msk [vmem:[%s2377_s3 + $0x7c] sm:$0xf] %vm1219_vm2, %v1489_v11  ;;  %1283 = vst.msk [vmem:[%s2377_s3 + $0xfc] sm:$0xf] %vm1219_vm2, %v1521_v23 }

// kernel: model_forward.10
= control target key start
LH: loop header
LB: loop body
LE: loop exit
PB: predicated region body
PF: predicated region fallthrough
CT: control target
= control target key end

     0   :  { %v2749_v0 = vmov 0   ;;  %vm777_vm0 = vcmask 261120   ;;  %vm1964_vm1 = vcmask 257024   ;;  %s3831_s1 = inlined_call_operand.vmem [shape: bf16[288,32], index: 1, kind: input, shape index: {}]   ;;  %s3832_s0 = inlined_call_operand.vmem [shape: bf16[512,288], index: 0, kind: input, shape index: {}]   ;;  %s3833_s3 = inlined_call_operand.vmem [shape: bf16[512,32], index: 3, kind: input, shape index: {}]   ;;  %s3834_s2 = inlined_call_operand.vmem [shape: f32[1,32], index: 2, kind: input, shape index: {}]   ;;  %s3835_s4 = inlined_call_operand.vmem [shape: bf16[512,32], index: 4, kind: output, shape index: {}]  }
   0x1   :  { %874 = vmatprep.subr.bf16.mxu0 %v2749_v0  ;;  %2569 = vmatprep.subr.bf16.mxu1 %v2749_v0  ;;  %v2602_v1 = vld [vmem:[%s3831_s1] sm:$0xff]   ;;  %v2603_v2 = vld [vmem:[%s3831_s1 + $0x8] sm:$0xff]   ;;  %v2604_v3 = vld [vmem:[%s3831_s1 + $0x10] sm:$0xff]  }
   0x2   :  { %875 = vmatpush1.bf16.msra.mxu0 %v2602_v1  ;;  %2585 = vmatpush1.bf16.msra.mxu1 %v2602_v1  ;;  %v2605_v4 = vld [vmem:[%s3831_s1 + $0x18] sm:$0xff]   ;;  %v2606_v5 = vld [vmem:[%s3831_s1 + $0x20] sm:$0xff]   ;;  %v2607_v7 = vld [vmem:[%s3831_s1 + $0x28] sm:$0xff]  }
   0x3   :  { %876 = vmatprep.subr.bf16.mxu0 %v2749_v0  ;;  %2570 = vmatprep.subr.bf16.mxu1 %v2749_v0  ;;  %v2620_v6 = vld [vmem:[%s3832_s0 + $0x4] ss:$12 sps:$4 sm:$0xff]   ;;  %v2609_v10 = vld [vmem:[%s3831_s1 + $0x38] sm:$0xff]   ;;  %v2611_v12 = vld [vmem:[%s3831_s1 + $0x48] sm:$0xff]  }
   0x4   :  { %v2623_v8 = vld [vmem:[%s3832_s0 + $0x244] ss:$12 sps:$4 sm:$0xff]   ;;  %906 = vmatprep.mubr.bf16.mxu0 %v2620_v6  ;;  %v2613_v14 = vld [vmem:[%s3831_s1 + $0x58] sm:$0xff]   ;;  %v2615_v16 = vld [vmem:[%s3831_s1 + $0x68] sm:$0xff]  }
   0x5   :  { %1098 = vmatprep.mubr.bf16.mxu1 %v2623_v8  ;;  %v2608_v9 = vld [vmem:[%s3831_s1 + $0x30] sm:$0xff]   ;;  %v2610_v11 = vld [vmem:[%s3831_s1 + $0x40] sm:$0xff]   ;;  %v2617_v18 = vld [vmem:[%s3831_s1 + $0x78] sm:$0xff]  }
   0x6   :  { %877 = vmatpush1.bf16.msra.mxu0 %v2603_v2  ;;  %2586 = vmatpush1.bf16.msra.mxu1 %v2603_v2  ;;  %v2612_v13 = vld [vmem:[%s3831_s1 + $0x50] sm:$0xff]   ;;  %v2614_v15 = vld [vmem:[%s3831_s1 + $0x60] sm:$0xff]   ;;  %v2625_v22 = vld [vmem:[%s3832_s0 + $0x1c] ss:$12 sps:$4 sm:$0xff]  }
   0x7   :  { %878 = vmatprep.subr.bf16.mxu0 %v2749_v0  ;;  %2571 = vmatprep.subr.bf16.mxu1 %v2749_v0  ;;  %v2616_v17 = vld [vmem:[%s3831_s1 + $0x70] sm:$0xff]   ;;  %v2624_v19 = vld [vmem:[%s3831_s1 + $0x80] sm:$0xff]   ;;  %v2627_v23 = vld [vmem:[%s3832_s0 + $0x25c] ss:$12 sps:$4 sm:$0xff]  }
   0x8   :  { %v2618_v20 = vld [vmem:[%s3832_s0] ss:$12 sps:$4 sm:$0xff]   ;;  %v2629_v25 = vld [vmem:[%s3832_s0 + $0x18] ss:$12 sps:$4 sm:$0xff]   ;;  %v2635_v29 = vld [vmem:[%s3832_s0 + $0x30] ss:$12 sps:$4 sm:$0xff]  }
   0x9   :  { %v2621_v21 = vld [vmem:[%s3832_s0 + $0x240] ss:$12 sps:$4 sm:$0xff]   ;;  %v2630_v26 = vld [vmem:[%s3832_s0 + $0x258] ss:$12 sps:$4 sm:$0xff]   ;;  %v2636_v30 = vld [vmem:[%s3832_s0 + $0x270] ss:$12 sps:$4 sm:$0xff]  }
   0xa   :  { %879 = vmatpush1.bf16.msra.mxu0 %v2604_v3  ;;  %2587 = vmatpush1.bf16.msra.mxu1 %v2604_v3  ;;  %v2649_v24 = vld [vmem:[%s3831_s1 + $0x88] sm:$0xff]   ;;  %v2631_v27 = vld [vmem:[%s3832_s0 + $0x34] ss:$12 sps:$4 sm:$0xff]   ;;  %v2643_v35 = vld [vmem:[%s3832_s0 + $0x64] ss:$12 sps:$4 sm:$0xff]  }
   0xb   :  { %880 = vmatprep.subr.bf16.mxu0 %v2749_v0  ;;  %2572 = vmatprep.subr.bf16.mxu1 %v2749_v0  ;;  %v2633_v28 = vld [vmem:[%s3832_s0 + $0x274] ss:$12 sps:$4 sm:$0xff]   ;;  %v2637_v31 = vld [vmem:[%s3832_s0 + $0x4c] ss:$12 sps:$4 sm:$0xff]   ;;  %v2645_v36 = vld [vmem:[%s3832_s0 + $0x2a4] ss:$12 sps:$4 sm:$0xff]  }
   0xc   :  { %v2639_v32 = vld [vmem:[%s3832_s0 + $0x28c] ss:$12 sps:$4 sm:$0xff]   ;;  %v2641_v33 = vld [vmem:[%s3832_s0 + $0x48] ss:$12 sps:$4 sm:$0xff]   ;;  %v2660_v45 = vld [vmem:[%s3832_s0 + $0x90] ss:$12 sps:$4 sm:$0xff]  }
   0xd   :  { %v2642_v34 = vld [vmem:[%s3832_s0 + $0x288] ss:$12 sps:$4 sm:$0xff]   ;;  %v2647_v37 = vld [vmem:[%s3832_s0 + $0x60] ss:$12 sps:$4 sm:$0xff]   ;;  %v2654_v41 = vld [vmem:[%s3832_s0 + $0x78] ss:$12 sps:$4 sm:$0xff]  }
   0xe   :  { %881 = vmatpush1.bf16.msra.mxu0 %v2605_v4  ;;  %2588 = vmatpush1.bf16.msra.mxu1 %v2605_v4  ;;  %v2648_v38 = vld [vmem:[%s3832_s0 + $0x2a0] ss:$12 sps:$4 sm:$0xff]   ;;  %v2650_v39 = vld [vmem:[%s3832_s0 + $0x7c] ss:$12 sps:$4 sm:$0xff]   ;;  %v2655_v42 = vld [vmem:[%s3832_s0 + $0x2b8] ss:$12 sps:$4 sm:$0xff]  }
   0xf   :  { %882 = vmatprep.subr.bf16.mxu0 %v2749_v0  ;;  %2573 = vmatprep.subr.bf16.mxu1 %v2749_v0  ;;  %v2652_v40 = vld [vmem:[%s3832_s0 + $0x2bc] ss:$12 sps:$4 sm:$0xff]   ;;  %v2656_v43 = vld [vmem:[%s3832_s0 + $0x94] ss:$12 sps:$4 sm:$0xff]   ;;  %v2662_v47 = vld [vmem:[%s3832_s0 + $0xac] ss:$12 sps:$4 sm:$0xff]  }
  0x10   :  { %v2658_v44 = vld [vmem:[%s3832_s0 + $0x2d4] ss:$12 sps:$4 sm:$0xff]   ;;  %v2661_v46 = vld [vmem:[%s3832_s0 + $0x2d0] ss:$12 sps:$4 sm:$0xff]   ;;  %v2664_v48 = vld [vmem:[%s3832_s0 + $0x2ec] ss:$12 sps:$4 sm:$0xff]  }
  0x11   :  { %v2666_v49 = vld [vmem:[%s3832_s0 + $0xa8] ss:$12 sps:$4 sm:$0xff]   ;;  %v2668_v51 = vld [vmem:[%s3832_s0 + $0xc4] ss:$12 sps:$4 sm:$0xff]   ;;  %v2671_v53 = vld [vmem:[%s3832_s0 + $0xc0] ss:$12 sps:$4 sm:$0xff]  }
  0x12   :  { %883 = vmatpush1.bf16.msra.mxu0 %v2606_v5  ;;  %2589 = vmatpush1.bf16.msra.mxu1 %v2606_v5  ;;  %v2667_v50 = vld [vmem:[%s3832_s0 + $0x2e8] ss:$12 sps:$4 sm:$0xff]   ;;  %v2672_v54 = vld [vmem:[%s3832_s0 + $0x20] ss:$12 sps:$4 sm:$0xff]   ;;  %v2675_v56 = vld [vmem:[%s3832_s0 + $0x38] ss:$12 sps:$4 sm:$0xff]  }
  0x13   :  { %884 = vmatprep.subr.bf16.mxu0 %v2749_v0  ;;  %2574 = vmatprep.subr.bf16.mxu1 %v2749_v0  ;;  %v2670_v52 = vld [vmem:[%s3832_s0 + $0x8] ss:$12 sps:$4 sm:$0xff]   ;;  %v2676_v57 = vld [vmem:[%s3832_s0 + $0xd8] ss:$12 sps:$4 sm:$0xff]   ;;  %v2677_v58 = vld [vmem:[%s3832_s0 + $0x50] ss:$12 sps:$4 sm:$0xff]  }
  0x14   :  { %v2673_v55 = vld [vmem:[%s3832_s0 + $0xdc] ss:$12 sps:$4 sm:$0xff]   ;;  %v2678_v59 = vld [vmem:[%s3832_s0 + $0xf4] ss:$12 sps:$4 sm:$0xff]   ;;  %v2683_v63 = vld [vmem:[%s3832_s0 + $0x10c] ss:$12 sps:$4 sm:$0xff]  }
  0x15   :  { %v2680_v60 = vld [vmem:[%s3832_s0 + $0x68] ss:$12 sps:$4 sm:$0xff]   ;;  %v2681_v61 = vld [vmem:[%s3832_s0 + $0xf0] ss:$12 sps:$4 sm:$0xff]   ;;  %v2682_v62 = vld [vmem:[%s3832_s0 + $0x80] ss:$12 sps:$4 sm:$0xff]  }
  0x16   :  { %885 = vmatpush1.bf16.msra.mxu0 %v2607_v7  ;;  %2590 = vmatpush1.bf16.msra.mxu1 %v2607_v7  ;;  %v2686_v1 = vld [vmem:[%s3832_s0 + $0x108] ss:$12 sps:$4 sm:$0xff]   ;;  %v2687_v2 = vld [vmem:[%s3832_s0 + $0xb0] ss:$12 sps:$4 sm:$0xff]   ;;  %v2691_v5 = vld [vmem:[%s3832_s0 + $0x120] ss:$12 sps:$4 sm:$0xff]  }
  0x17   :  { %886 = vmatprep.subr.bf16.mxu0 %v2749_v0  ;;  %2575 = vmatprep.subr.bf16.mxu1 %v2749_v0  ;;  %v2688_v3 = vld [vmem:[%s3832_s0 + $0x124] ss:$12 sps:$4 sm:$0xff]   ;;  %v2690_v4 = vld [vmem:[%s3832_s0 + $0xc8] ss:$12 sps:$4 sm:$0xff]   ;;  %v2692_v6 = vld [vmem:[%s3832_s0 + $0xe0] ss:$12 sps:$4 sm:$0xff]  }
  0x18   :  { %v2693_v7 = vld [vmem:[%s3832_s0 + $0x13c] ss:$12 sps:$4 sm:$0xff]   ;;  %v2695_v8 = vld [vmem:[%s3832_s0 + $0xf8] ss:$12 sps:$4 sm:$0xff]  }
  0x1a   :  { %887 = vmatpush1.bf16.msra.mxu0 %v2608_v9  ;;  %2591 = vmatpush1.bf16.msra.mxu1 %v2608_v9  ;;  %v2696_v9 = vld [vmem:[%s3832_s0 + $0x138] ss:$12 sps:$4 sm:$0xff]  }
  0x1b   :  { %888 = vmatprep.subr.bf16.mxu0 %v2749_v0  ;;  %2576 = vmatprep.subr.bf16.mxu1 %v2749_v0 }
  0x1e   :  { %889 = vmatpush1.bf16.msra.mxu0 %v2609_v10  ;;  %2592 = vmatpush1.bf16.msra.mxu1 %v2609_v10  ;;  %v2697_v10 = vld [vmem:[%s3832_s0 + $0x110] ss:$12 sps:$4 sm:$0xff]  }
  0x1f   :  { %890 = vmatprep.subr.bf16.mxu0 %v2749_v0  ;;  %2577 = vmatprep.subr.bf16.mxu1 %v2749_v0 }
  0x22   :  { %891 = vmatpush1.bf16.msra.mxu0 %v2610_v11  ;;  %2593 = vmatpush1.bf16.msra.mxu1 %v2610_v11  ;;  %v2698_v11 = vld [vmem:[%s3832_s0 + $0x154] ss:$12 sps:$4 sm:$0xff]  }
  0x23   :  { %892 = vmatprep.subr.bf16.mxu0 %v2749_v0  ;;  %2578 = vmatprep.subr.bf16.mxu1 %v2749_v0 }
  0x26   :  { %893 = vmatpush1.bf16.msra.mxu0 %v2611_v12  ;;  %2594 = vmatpush1.bf16.msra.mxu1 %v2611_v12  ;;  %v2700_v12 = vld [vmem:[%s3832_s0 + $0x128] ss:$12 sps:$4 sm:$0xff]  }
  0x27   :  { %894 = vmatprep.subr.bf16.mxu0 %v2749_v0  ;;  %2579 = vmatprep.subr.bf16.mxu1 %v2749_v0 }
  0x2a   :  { %895 = vmatpush1.bf16.msra.mxu0 %v2612_v13  ;;  %2595 = vmatpush1.bf16.msra.mxu1 %v2612_v13  ;;  %v2701_v13 = vld [vmem:[%s3832_s0 + $0x150] ss:$12 sps:$4 sm:$0xff]  }
  0x2b   :  { %896 = vmatprep.subr.bf16.mxu0 %v2749_v0  ;;  %2580 = vmatprep.subr.bf16.mxu1 %v2749_v0 }
  0x2e   :  { %897 = vmatpush1.bf16.msra.mxu0 %v2613_v14  ;;  %2596 = vmatpush1.bf16.msra.mxu1 %v2613_v14  ;;  %v2702_v14 = vld [vmem:[%s3832_s0 + $0x140] ss:$12 sps:$4 sm:$0xff]  }
  0x2f   :  { %898 = vmatprep.subr.bf16.mxu0 %v2749_v0  ;;  %2581 = vmatprep.subr.bf16.mxu1 %v2749_v0 }
  0x32   :  { %899 = vmatpush1.bf16.msra.mxu0 %v2614_v15  ;;  %2597 = vmatpush1.bf16.msra.mxu1 %v2614_v15  ;;  %v2703_v15 = vld [vmem:[%s3832_s0 + $0x16c] ss:$12 sps:$4 sm:$0xff]  }
  0x33   :  { %900 = vmatprep.subr.bf16.mxu0 %v2749_v0  ;;  %2582 = vmatprep.subr.bf16.mxu1 %v2749_v0 }
  0x36   :  { %901 = vmatpush1.bf16.msra.mxu0 %v2615_v16  ;;  %2598 = vmatpush1.bf16.msra.mxu1 %v2615_v16  ;;  %v2705_v16 = vld [vmem:[%s3832_s0 + $0x158] ss:$12 sps:$4 sm:$0xff]  }
  0x37   :  { %902 = vmatprep.subr.bf16.mxu0 %v2749_v0  ;;  %2583 = vmatprep.subr.bf16.mxu1 %v2749_v0 }
  0x3a   :  { %903 = vmatpush1.bf16.msra.mxu0 %v2616_v17  ;;  %2599 = vmatpush1.bf16.msra.mxu1 %v2616_v17  ;;  %v2706_v17 = vld [vmem:[%s3832_s0 + $0x168] ss:$12 sps:$4 sm:$0xff]  }
  0x3b   :  { %904 = vmatprep.subr.bf16.mxu0 %v2749_v0  ;;  %2584 = vmatprep.subr.bf16.mxu1 %v2749_v0  ;;  %v2685_v0 = vld [vmem:[%s3832_s0 + $0x98] ss:$12 sps:$4 sm:$0xff]  }
  0x3e   :  { %905 = vmatpush1.bf16.msra.mxu0 %v2617_v18  ;;  %2600 = vmatpush1.bf16.msra.mxu1 %v2617_v18  ;;  %v2707_v18 = vld [vmem:[%s3832_s0 + $0x170] ss:$12 sps:$4 sm:$0xff]  }
  0x3f   :  { %2501 = vmatprep.subr.bf16.mxu1 %v2624_v19 }
  0x41   :  { %907 = vmatmul.mubr.bf16.vlgmr.msra.gmra.mrb[0].mxu0 %v2618_v20  ;;  %1099 = vmatmul.mubr.bf16.vlgmr.msra.gmra.mrb[0].mxu1 %v2621_v21  ;;  %v2710_v20 = vld [vmem:[%s3832_s0 + $0x188] ss:$12 sps:$4 sm:$0xff]   ;;  %v2711_v21 = vld [vmem:[%s3832_s0 + $0x180] ss:$12 sps:$4 sm:$0xff]  }
  0x42   :  { %2502 = vmatpush3.bf16.msra.mxu1 %v2624_v19  ;;  %914 = vmatprep.mubr.bf16.mxu0 %v2625_v22  ;;  %v2708_v19 = vld [vmem:[%s3832_s0 + $0x184] ss:$12 sps:$4 sm:$0xff]   ;;  %v2712_v22 = vld [vmem:[%s3832_s0 + $0x1a0] ss:$12 sps:$4 sm:$0xff]  }
  0x43   :  { %1106 = vmatprep.mubr.bf16.mxu1 %v2627_v23  ;;  %2503 = vmatprep.subr.bf16.mxu1 %v2649_v24  ;;  %v2713_v23 = vld [vmem:[%s3832_s0 + $0x19c] ss:$12 sps:$4 sm:$0xff]  }
  0x46   :  { %2504 = vmatpush3.bf16.msra.mxu1 %v2649_v24  ;;  %v2715_v24 = vld [vmem:[%s3832_s0 + $0x1b8] ss:$12 sps:$4 sm:$0xff]  }
  0x49   :  { %915 = vmatmul.mubr.bf16.gmra.mrb[4].mxu0 %v2629_v25  ;;  %1107 = vmatmul.mubr.bf16.gmra.mrb[4].mxu1 %v2630_v26  ;;  %v2716_v25 = vld [vmem:[%s3832_s0 + $0x198] ss:$12 sps:$4 sm:$0xff]   ;;  %v2717_v26 = vld [vmem:[%s3832_s0 + $0x1d0] ss:$12 sps:$4 sm:$0xff]  }
  0x4a   :  { %922 = vmatprep.mubr.bf16.mxu0 %v2631_v27  ;;  %1114 = vmatprep.mubr.bf16.mxu1 %v2633_v28  ;;  %v2718_v27 = vld [vmem:[%s3832_s0 + $0x1b4] ss:$12 sps:$4 sm:$0xff]  }
  0x4b   :  { %v2720_v28 = vld [vmem:[%s3832_s0 + $0x1e8] ss:$12 sps:$4 sm:$0xff]  }
  0x51   :  { %923 = vmatmul.mubr.bf16.gmra.mrb[8].mxu0 %v2635_v29  ;;  %1115 = vmatmul.mubr.bf16.gmra.mrb[8].mxu1 %v2636_v30  ;;  %v2721_v29 = vld [vmem:[%s3832_s0 + $0x1b0] ss:$12 sps:$4 sm:$0xff]   ;;  %v2722_v30 = vld [vmem:[%s3832_s0 + $0x200] ss:$12 sps:$4 sm:$0xff]  }
  0x52   :  { %930 = vmatprep.mubr.bf16.mxu0 %v2637_v31  ;;  %1122 = vmatprep.mubr.bf16.mxu1 %v2639_v32  ;;  %v2723_v31 = vld [vmem:[%s3832_s0 + $0x1cc] ss:$12 sps:$4 sm:$0xff]  }
  0x53   :  { %v2725_v32 = vld [vmem:[%s3832_s0 + $0x218] ss:$12 sps:$4 sm:$0xff]  }
  0x59   :  { %931 = vmatmul.mubr.bf16.gmra.mrb[12].mxu0 %v2641_v33  ;;  %1123 = vmatmul.mubr.bf16.gmra.mrb[12].mxu1 %v2642_v34  ;;  %v2726_v33 = vld [vmem:[%s3832_s0 + $0x1c8] ss:$12 sps:$4 sm:$0xff]   ;;  %v2727_v34 = vld [vmem:[%s3832_s0 + $0x230] ss:$12 sps:$4 sm:$0xff]  }
  0x5a   :  { %938 = vmatprep.mubr.bf16.mxu0 %v2643_v35  ;;  %1130 = vmatprep.mubr.bf16.mxu1 %v2645_v36  ;;  %v2728_v35 = vld [vmem:[%s3832_s0 + $0x1e4] ss:$12 sps:$4 sm:$0xff]   ;;  %v2730_v36 = vld [vmem:[%s3832_s0 + $0x248] ss:$12 sps:$4 sm:$0xff]  }
  0x61   :  { %939 = vmatmul.mubr.bf16.gmra.mrb[16].mxu0 %v2647_v37  ;;  %1131 = vmatmul.mubr.bf16.gmra.mrb[16].mxu1 %v2648_v38  ;;  %v2731_v37 = vld [vmem:[%s3832_s0 + $0x1e0] ss:$12 sps:$4 sm:$0xff]  }
  0x62   :  { %946 = vmatprep.mubr.bf16.mxu0 %v2650_v39  ;;  %1138 = vmatprep.mubr.bf16.mxu1 %v2652_v40  ;;  %v2732_v38 = vld [vmem:[%s3832_s0 + $0x260] ss:$12 sps:$4 sm:$0xff]   ;;  %v2733_v39 = vld [vmem:[%s3832_s0 + $0x1fc] ss:$12 sps:$4 sm:$0xff]   ;;  %v2735_v40 = vld [vmem:[%s3832_s0 + $0x278] ss:$12 sps:$4 sm:$0xff]  }
  0x69   :  { %947 = vmatmul.mubr.bf16.gmra.mrb[20].mxu0 %v2654_v41  ;;  %1139 = vmatmul.mubr.bf16.gmra.mrb[20].mxu1 %v2655_v42  ;;  %v2736_v41 = vld [vmem:[%s3832_s0 + $0x1f8] ss:$12 sps:$4 sm:$0xff]   ;;  %v2737_v42 = vld [vmem:[%s3832_s0 + $0x290] ss:$12 sps:$4 sm:$0xff]  }
  0x6a   :  { %954 = vmatprep.mubr.bf16.mxu0 %v2656_v43  ;;  %1146 = vmatprep.mubr.bf16.mxu1 %v2658_v44  ;;  %v2738_v43 = vld [vmem:[%s3832_s0 + $0x214] ss:$12 sps:$4 sm:$0xff]  }
  0x6b   :  { %v2740_v44 = vld [vmem:[%s3832_s0 + $0x2a8] ss:$12 sps:$4 sm:$0xff]  }
  0x71   :  { %955 = vmatmul.mubr.bf16.gmra.mrb[24].mxu0 %v2660_v45  ;;  %1147 = vmatmul.mubr.bf16.gmra.mrb[24].mxu1 %v2661_v46  ;;  %v2741_v45 = vld [vmem:[%s3832_s0 + $0x210] ss:$12 sps:$4 sm:$0xff]   ;;  %v2742_v46 = vld [vmem:[%s3832_s0 + $0x2c0] ss:$12 sps:$4 sm:$0xff]  }
  0x72   :  { %962 = vmatprep.mubr.bf16.mxu0 %v2662_v47  ;;  %1154 = vmatprep.mubr.bf16.mxu1 %v2664_v48  ;;  %v2743_v47 = vld [vmem:[%s3832_s0 + $0x22c] ss:$12 sps:$4 sm:$0xff]  }
  0x73   :  { %v2745_v48 = vld [vmem:[%s3832_s0 + $0x2d8] ss:$12 sps:$4 sm:$0xff]  }
  0x79   :  { %963 = vmatmul.mubr.bf16.gmra.mrb[28].mxu0 %v2666_v49  ;;  %1155 = vmatmul.mubr.bf16.gmra.mrb[28].mxu1 %v2667_v50  ;;  %v2746_v49 = vld [vmem:[%s3832_s0 + $0x228] ss:$12 sps:$4 sm:$0xff]   ;;  %v2747_v50 = vld [vmem:[%s3832_s0 + $0x2f0] ss:$12 sps:$4 sm:$0xff]  }
  0x7a   :  { %970 = vmatprep.mubr.bf16.mxu0 %v2668_v51  ;;  %2505 = vmatprep.mubr.msk.bf16.mxu1 %vm777_vm0, %v2670_v52 }
  0x81   :  { %971 = vmatmul.mubr.bf16.gmra.mrb[32].mxu0 %v2671_v53  ;;  %2506 = vmatmul.mubr.msk.bf16.vlgmr.msra.gmra.mrb[32].mxu1 %vm777_vm0, %v2672_v54 }
  0x82   :  { %978 = vmatprep.mubr.bf16.mxu0 %v2673_v55  ;;  %2509 = vmatprep.mubr.msk.bf16.mxu1 %vm777_vm0, %v2675_v56 }
  0x89   :  { %979 = vmatmul.mubr.bf16.gmra.mrb[36].mxu0 %v2676_v57  ;;  %2510 = vmatmul.mubr.msk.bf16.gmra.mrb[36].mxu1 %vm777_vm0, %v2677_v58 }
  0x8a   :  { %986 = vmatprep.mubr.bf16.mxu0 %v2678_v59  ;;  %2513 = vmatprep.mubr.msk.bf16.mxu1 %vm777_vm0, %v2680_v60 }
  0x91   :  { %987 = vmatmul.mubr.bf16.gmra.mrb[40].mxu0 %v2681_v61  ;;  %2514 = vmatmul.mubr.msk.bf16.gmra.mrb[40].mxu1 %vm777_vm0, %v2682_v62 }
  0x92   :  { %994 = vmatprep.mubr.bf16.mxu0 %v2683_v63  ;;  %2517 = vmatprep.mubr.msk.bf16.mxu1 %vm777_vm0, %v2685_v0 }
  0x99   :  { %995 = vmatmul.mubr.bf16.gmra.mrb[44].mxu0 %v2686_v1  ;;  %2518 = vmatmul.mubr.msk.bf16.gmra.mrb[44].mxu1 %vm777_vm0, %v2687_v2 }
  0x9a   :  { %1002 = vmatprep.mubr.bf16.mxu0 %v2688_v3  ;;  %2521 = vmatprep.mubr.msk.bf16.mxu1 %vm777_vm0, %v2690_v4 }
  0xa1   :  { %1003 = vmatmul.mubr.bf16.gmra.mrb[48].mxu0 %v2691_v5  ;;  %2522 = vmatmul.mubr.msk.bf16.gmra.mrb[48].mxu1 %vm777_vm0, %v2692_v6 }
  0xa2   :  { %1010 = vmatprep.mubr.bf16.mxu0 %v2693_v7  ;;  %2525 = vmatprep.mubr.msk.bf16.mxu1 %vm777_vm0, %v2695_v8 }
  0xa9   :  { %1011 = vmatmul.mubr.bf16.gmra.mrb[52].mxu0 %v2696_v9  ;;  %2526 = vmatmul.mubr.msk.bf16.gmra.mrb[52].mxu1 %vm777_vm0, %v2697_v10 }
  0xaa   :  { %1018 = vmatprep.mubr.bf16.mxu0 %v2698_v11  ;;  %2529 = vmatprep.mubr.msk.bf16.mxu1 %vm777_vm0, %v2700_v12 }
  0xb1   :  { %1019 = vmatmul.mubr.bf16.gmra.mrb[56].mxu0 %v2701_v13  ;;  %2530 = vmatmul.mubr.msk.bf16.gmra.mrb[56].mxu1 %vm777_vm0, %v2702_v14 }
  0xb2   :  { %1026 = vmatprep.mubr.bf16.mxu0 %v2703_v15  ;;  %2533 = vmatprep.mubr.msk.bf16.mxu1 %vm777_vm0, %v2705_v16 }
  0xb9   :  { %1027 = vmatmul.mubr.bf16.gmra.mrb[60].mxu0 %v2706_v17  ;;  %2534 = vmatmul.mubr.msk.bf16.gmra.mrb[60].mxu1 %vm777_vm0, %v2707_v18 }
  0xba   :  { %1034 = vmatprep.mubr.bf16.mxu0 %v2708_v19  ;;  %2537 = vmatprep.mubr.msk.bf16.mxu1 %vm777_vm0, %v2710_v20 }
  0xc1   :  { %1035 = vmatmul.mubr.bf16.gmra.mrb[64].mxu0 %v2711_v21  ;;  %2538 = vmatmul.mubr.msk.bf16.gmra.mrb[64].mxu1 %vm777_vm0, %v2712_v22 }
  0xc2   :  { %1042 = vmatprep.mubr.bf16.mxu0 %v2713_v23  ;;  %2541 = vmatprep.mubr.msk.bf16.mxu1 %vm777_vm0, %v2715_v24 }
  0xc9   :  { %1043 = vmatmul.mubr.bf16.gmra.mrb[68].mxu0 %v2716_v25  ;;  %2542 = vmatmul.mubr.msk.bf16.gmra.mrb[68].mxu1 %vm777_vm0, %v2717_v26 }
  0xca   :  { %1050 = vmatprep.mubr.bf16.mxu0 %v2718_v27  ;;  %2545 = vmatprep.mubr.msk.bf16.mxu1 %vm777_vm0, %v2720_v28 }
  0xd1   :  { %1051 = vmatmul.mubr.bf16.gmra.mrb[72].mxu0 %v2721_v29  ;;  %2546 = vmatmul.mubr.msk.bf16.gmra.mrb[72].mxu1 %vm777_vm0, %v2722_v30 }
  0xd2   :  { %1058 = vmatprep.mubr.bf16.mxu0 %v2723_v31  ;;  %2549 = vmatprep.mubr.msk.bf16.mxu1 %vm777_vm0, %v2725_v32 }
  0xd9   :  { %1059 = vmatmul.mubr.bf16.gmra.mrb[76].mxu0 %v2726_v33  ;;  %2550 = vmatmul.mubr.msk.bf16.gmra.mrb[76].mxu1 %vm777_vm0, %v2727_v34 }
  0xda   :  { %1066 = vmatprep.mubr.bf16.mxu0 %v2728_v35  ;;  %2553 = vmatprep.mubr.msk.bf16.mxu1 %vm777_vm0, %v2730_v36 }
  0xe1   :  { %1067 = vmatmul.mubr.bf16.gmra.mrb[80].mxu0 %v2731_v37  ;;  %2554 = vmatmul.mubr.msk.bf16.gmra.mrb[80].mxu1 %vm777_vm0, %v2732_v38 }
  0xe2   :  { %1074 = vmatprep.mubr.bf16.mxu0 %v2733_v39  ;;  %2557 = vmatprep.mubr.msk.bf16.mxu1 %vm777_vm0, %v2735_v40 }
  0xe9   :  { %1075 = vmatmul.mubr.bf16.gmra.mrb[84].mxu0 %v2736_v41  ;;  %2558 = vmatmul.mubr.msk.bf16.gmra.mrb[84].mxu1 %vm777_vm0, %v2737_v42 }
  0xea   :  { %1082 = vmatprep.mubr.bf16.mxu0 %v2738_v43  ;;  %2561 = vmatprep.mubr.msk.bf16.mxu1 %vm777_vm0, %v2740_v44 }
  0xf1   :  { %1083 = vmatmul.mubr.bf16.gmra.mrb[88].mxu0 %v2741_v45  ;;  %2562 = vmatmul.mubr.msk.bf16.gmra.mrb[88].mxu1 %vm777_vm0, %v2742_v46 }
  0xf2   :  { %1090 = vmatprep.mubr.bf16.mxu0 %v2743_v47  ;;  %2565 = vmatprep.mubr.msk.bf16.mxu1 %vm777_vm0, %v2745_v48 }
  0xf9   :  { %1091 = vmatmul.mubr.bf16.gmra.mrb[92].mxu0 %v2746_v49  ;;  %2566 = vmatmul.mubr.msk.bf16.gmra.mrb[92].mxu1 %vm777_vm0, %v2747_v50 }
 0x114   :  { %v3181_v51 = vpop.f32.mrb[0].mxu0  ;;  %v3183_v52 = vpop.f32.mrb[0].mxu1 }
 0x115   :  { %v910_v53 = vpop.f32.mrb[1].mxu0  ;;  %v1102_v54 = vpop.f32.mrb[1].mxu1 }
 0x116   :  { %v3185_v55 = vpop.f32.mrb[2].mxu0  ;;  %v3187_v56 = vpop.f32.mrb[2].mxu1  ;;  %v2436_v53 = vld [vmem:[%s3833_s3 + $0x8] sm:$0xff]   ;;  %v3249_v54 = vld [vmem:[%s3834_s2] ss:$0 sm:$0xff] }
 0x117   :  { %v913_v57 = vpop.f32.mrb[3].mxu0  ;;  %v1105_v58 = vpop.f32.mrb[3].mxu1 }
 0x118   :  { %v2309_v57 = vld [vmem:[%s3833_s3] sm:$0xff]  }
 0x11c   :  { %v916_v59 = vpop.f32.mrb[4].mxu0  ;;  %v3189_v60 = vpop.f32.mrb[4].mxu1 }
 0x11d   :  { %v918_v61 = vpop.f32.mrb[5].mxu0  ;;  %v1110_v62 = vpop.f32.mrb[5].mxu1  ;;  %v917_v58 = vadd.f32 %v3249_v54, %v916_v59 }
 0x11e   :  { %v3191_v63 = vpop.f32.mrb[6].mxu0  ;;  %v3193_v0 = vpop.f32.mrb[6].mxu1  ;;  %v2314_v61 = vunpack.c.l.bf16 %v2436_v53  ;;  %v909_v62 = vadd.f32 %v3249_v54, %v3181_v51 }
 0x11f   :  { %v921_v1 = vpop.f32.mrb[7].mxu0  ;;  %v1113_v2 = vpop.f32.mrb[7].mxu1 }
 0x124   :  { %v3195_v3 = vpop.f32.mrb[8].mxu0  ;;  %v3197_v4 = vpop.f32.mrb[8].mxu1 }
 0x125   :  { %v926_v5 = vpop.f32.mrb[9].mxu0  ;;  %v1118_v6 = vpop.f32.mrb[9].mxu1 }
 0x126   :  { %v3199_v7 = vpop.f32.mrb[10].mxu0  ;;  %v3201_v8 = vpop.f32.mrb[10].mxu1  ;;  %v2310_v5 = vunpack.c.l.bf16 %v2309_v57  ;;  %v920_v6 = vadd.f32 %v3249_v54, %v3191_v63  ;;  %v2438_v63 = vld [vmem:[%s3833_s3 + $0x18] sm:$0xff]  }
 0x127   :  { %v929_v9 = vpop.f32.mrb[11].mxu0  ;;  %v1121_v10 = vpop.f32.mrb[11].mxu1 }
 0x12c   :  { %v3203_v11 = vpop.f32.mrb[12].mxu0  ;;  %v3205_v12 = vpop.f32.mrb[12].mxu1 }
 0x12d   :  { %v934_v13 = vpop.f32.mrb[13].mxu0  ;;  %v1126_v14 = vpop.f32.mrb[13].mxu1 }
 0x12e   :  { %v3207_v15 = vpop.f32.mrb[14].mxu0  ;;  %v3209_v16 = vpop.f32.mrb[14].mxu1  ;;  %v2315_v14 = vunpack.c.h.bf16 %v2436_v53 }
 0x12f   :  { %v937_v17 = vpop.f32.mrb[15].mxu0  ;;  %v1129_v18 = vpop.f32.mrb[15].mxu1 }
 0x130   :  { %v912_v17 = vadd.f32 %v3249_v54, %v3185_v55  ;;  %v2437_v55 = vld [vmem:[%s3833_s3 + $0x10] sm:$0xff]  }
 0x134   :  { %v3211_v19 = vpop.f32.mrb[16].mxu0  ;;  %v3213_v20 = vpop.f32.mrb[16].mxu1 }
 0x135   :  { %v942_v21 = vpop.f32.mrb[17].mxu0  ;;  %v1134_v22 = vpop.f32.mrb[17].mxu1 }
 0x136   :  { %v3215_v23 = vpop.f32.mrb[18].mxu0  ;;  %v3217_v24 = vpop.f32.mrb[18].mxu1  ;;  %v2311_v22 = vunpack.c.h.bf16 %v2309_v57 }
 0x137   :  { %v945_v25 = vpop.f32.mrb[19].mxu0  ;;  %v1137_v26 = vpop.f32.mrb[19].mxu1 }
 0x13c   :  { %v3219_v27 = vpop.f32.mrb[20].mxu0  ;;  %v3221_v28 = vpop.f32.mrb[20].mxu1 }
 0x13d   :  { %v950_v29 = vpop.f32.mrb[21].mxu0  ;;  %v1142_v30 = vpop.f32.mrb[21].mxu1 }
 0x13e   :  { %v3223_v31 = vpop.f32.mrb[22].mxu0  ;;  %v3225_v32 = vpop.f32.mrb[22].mxu1 }
 0x13f   :  { %v953_v33 = vpop.f32.mrb[23].mxu0  ;;  %v1145_v34 = vpop.f32.mrb[23].mxu1 }
 0x144   :  { %v3227_v35 = vpop.f32.mrb[24].mxu0  ;;  %v3229_v36 = vpop.f32.mrb[24].mxu1 }
 0x145   :  { %v958_v37 = vpop.f32.mrb[25].mxu0  ;;  %v1150_v38 = vpop.f32.mrb[25].mxu1 }
 0x146   :  { %v3231_v39 = vpop.f32.mrb[26].mxu0  ;;  %v3233_v40 = vpop.f32.mrb[26].mxu1 }
 0x147   :  { %v961_v41 = vpop.f32.mrb[27].mxu0  ;;  %v1153_v42 = vpop.f32.mrb[27].mxu1 }
 0x148   :  { %v933_v42 = vadd.f32 %v3249_v54, %v3203_v11 }
 0x14c   :  { %v3235_v43 = vpop.f32.mrb[28].mxu0  ;;  %v3237_v44 = vpop.f32.mrb[28].mxu1 }
 0x14d   :  { %v966_v45 = vpop.f32.mrb[29].mxu0  ;;  %v1158_v46 = vpop.f32.mrb[29].mxu1 }
 0x14e   :  { %v3239_v47 = vpop.f32.mrb[30].mxu0  ;;  %v3241_v48 = vpop.f32.mrb[30].mxu1 }
 0x14f   :  { %v969_v49 = vpop.f32.mrb[31].mxu0  ;;  %v1161_v50 = vpop.f32.mrb[31].mxu1 }
 0x150   :  { %v2322_v49 = vunpack.c.l.bf16 %v2438_v63  ;;  %v925_v50 = vadd.f32 %v3249_v54, %v3195_v3  ;;  %v928_v3 = vadd.f32 %v3249_v54, %v3199_v7 }
 0x154   :  { %v3257_v1 = vpop.f32.mrb[32].mxu0  ;;  %v2507_v2 = vpop.f32.mrb[32].mxu1 }
 0x155   :  { %v1206_v9 = vadd.f32 %v2507_v2, %v917_v58  ;;  %v974_v10 = vpop.f32.mrb[33].mxu0  ;;  %v1197_v13 = vpop.f32.mrb[33].mxu1  ;;  %v936_v2 = vadd.f32 %v3249_v54, %v3207_v15 }
 0x156   :  { %v1198_v18 = vadd.f32 %v1197_v13, %v909_v62  ;;  %v3263_v59 = vpop.f32.mrb[34].mxu0  ;;  %v2508_v21 = vpop.f32.mrb[34].mxu1  ;;  %v2318_v62 = vunpack.c.l.bf16 %v2437_v55  ;;  %v2323_v10 = vunpack.c.h.bf16 %v2438_v63  ;;  %v2439_v63 = vld [vmem:[%s3833_s3 + $0x20] sm:$0xff]  }
 0x157   :  { %v1582_v51 = vadd.f32 %v2314_v61, %v1206_v9  ;;  %v1209_v25 = vadd.f32 %v2508_v21, %v920_v6  ;;  %v977_v26 = vpop.f32.mrb[35].mxu0  ;;  %v1200_v29 = vpop.f32.mrb[35].mxu1 }
 0x158   :  { %v1580_v30 = vadd.f32 %v2310_v5, %v1198_v18  ;;  %v1201_v33 = vadd.f32 %v1200_v29, %v912_v17  ;;  %v2319_v18 = vunpack.c.h.bf16 %v2437_v55  ;;  %v2440_v29 = vld [vmem:[%s3833_s3 + $0x28] sm:$0xff]   ;;  %v949_v55 = vadd.f32 %v3249_v54, %v3219_v27 }
 0x159   :  { %v1646_v34 = vmax.f32 %v1582_v51, 0.0  ;;  %v1583_v37 = vadd.f32 %v2315_v14, %v1209_v25 }
 0x15a   :  { %v1644_v38 = vmax.f32 %v1580_v30, 0.0  ;;  %v1581_v41 = vadd.f32 %v2311_v22, %v1201_v33 }
 0x15b   :  { %v2246_v45 = vpack.c.bf16 %v1646_v34, %v1646_v34  ;;  %v1647_v46 = vmax.f32 %v1583_v37, 0.0 }
 0x15c   :  { %v2244_v53 = vpack.c.bf16 %v1644_v38, %v1644_v38  ;;  %v1645_v57 = vmax.f32 %v1581_v41, 0.0  ;;  %v3275_v58 = vpop.f32.mrb[36].mxu0  ;;  %v2511_v61 = vpop.f32.mrb[36].mxu1 }
 0x15d   :  { %1967 = vst.msk [vmem:[%s3835_s4 + $0x8] sm:$0xf] %vm1964_vm1, %v2246_v45  ;;  %v2247_v11 = vpack.c.bf16 %v1647_v46, %v1647_v46  ;;  %v1222_v5 = vadd.f32 %v2511_v61, %v933_v42  ;;  %v982_v6 = vpop.f32.mrb[37].mxu0  ;;  %v1213_v9 = vpop.f32.mrb[37].mxu1  ;;  %v2330_v42 = vunpack.c.l.bf16 %v2440_v29  ;;  %v941_v45 = vadd.f32 %v3249_v54, %v3211_v19 }
 0x15e   :  { %1965 = vst.msk [vmem:[%s3835_s4] sm:$0xf] %vm1964_vm1, %v2244_v53  ;;  %v2245_v13 = vpack.c.bf16 %v1645_v57, %v1645_v57  ;;  %v1214_v15 = vadd.f32 %v1213_v9, %v925_v50  ;;  %v3289_v14 = vpop.f32.mrb[38].mxu0  ;;  %v2512_v17 = vpop.f32.mrb[38].mxu1  ;;  %v2326_v57 = vunpack.c.l.bf16 %v2439_v63  ;;  %v952_v61 = vadd.f32 %v3249_v54, %v3223_v31 }
 0x15f   :  { %1968 = vst.msk [vmem:[%s3835_s4 + $0xc] sm:$0xf] %vm1964_vm1, %v2247_v11  ;;  %v1586_v21 = vadd.f32 %v2322_v49, %v1222_v5  ;;  %v1225_v22 = vadd.f32 %v2512_v17, %v936_v2  ;;  %v985_v51 = vpop.f32.mrb[39].mxu0  ;;  %v1216_v7 = vpop.f32.mrb[39].mxu1  ;;  %v2331_v5 = vunpack.c.h.bf16 %v2440_v29  ;;  %v944_v19 = vadd.f32 %v3249_v54, %v3215_v23 }
 0x160   :  { %1966 = vst.msk [vmem:[%s3835_s4 + $0x4] sm:$0xf] %vm1964_vm1, %v2245_v13  ;;  %v1584_v25 = vadd.f32 %v2318_v62, %v1214_v15  ;;  %v1217_v26 = vadd.f32 %v1216_v7, %v928_v3  ;;  %v2327_v3 = vunpack.c.h.bf16 %v2439_v63 }
 0x161   :  { %v1650_v30 = vmax.f32 %v1586_v21, 0.0  ;;  %v1587_v33 = vadd.f32 %v2323_v10, %v1225_v22  ;;  %v2442_v22 = vld [vmem:[%s3833_s3 + $0x38] sm:$0xff]  }
 0x162   :  { %v1648_v34 = vmax.f32 %v1584_v25, 0.0  ;;  %v1585_v37 = vadd.f32 %v2319_v18, %v1217_v26  ;;  %v2441_v25 = vld [vmem:[%s3833_s3 + $0x30] sm:$0xff]  }
 0x163   :  { %v2250_v38 = vpack.c.bf16 %v1650_v30, %v1650_v30  ;;  %v1651_v41 = vmax.f32 %v1587_v33, 0.0  ;;  %v965_v30 = vadd.f32 %v3249_v54, %v3235_v43 }
 0x164   :  { %v2248_v46 = vpack.c.bf16 %v1648_v34, %v1648_v34  ;;  %v1649_v49 = vmax.f32 %v1585_v37, 0.0  ;;  %v3309_v50 = vpop.f32.mrb[40].mxu0  ;;  %v2515_v53 = vpop.f32.mrb[40].mxu1  ;;  %v2338_v34 = vunpack.c.l.bf16 %v2442_v22  ;;  %v957_v37 = vadd.f32 %v3249_v54, %v3227_v35 }
 0x165   :  { %1971 = vst.msk [vmem:[%s3835_s4 + $0x18] sm:$0xf] %vm1964_vm1, %v2250_v38  ;;  %v2251_v27 = vpack.c.bf16 %v1651_v41, %v1651_v41  ;;  %v1238_v62 = vadd.f32 %v2515_v53, %v949_v55  ;;  %v990_v2 = vpop.f32.mrb[41].mxu0  ;;  %v1229_v11 = vpop.f32.mrb[41].mxu1  ;;  %v960_v35 = vadd.f32 %v3249_v54, %v3231_v39 }
 0x166   :  { %1969 = vst.msk [vmem:[%s3835_s4 + $0x10] sm:$0xf] %vm1964_vm1, %v2248_v46  ;;  %v2249_v6 = vpack.c.bf16 %v1649_v49, %v1649_v49  ;;  %v1230_v31 = vadd.f32 %v1229_v11, %v941_v45  ;;  %v3323_v9 = vpop.f32.mrb[42].mxu0  ;;  %v2516_v10 = vpop.f32.mrb[42].mxu1  ;;  %v2334_v45 = vunpack.c.l.bf16 %v2441_v25  ;;  %v968_v46 = vadd.f32 %v3249_v54, %v3239_v47 }
 0x167   :  { %1972 = vst.msk [vmem:[%s3835_s4 + $0x1c] sm:$0xf] %vm1964_vm1, %v2251_v27  ;;  %v1590_v13 = vadd.f32 %v2330_v42, %v1238_v62  ;;  %v1241_v15 = vadd.f32 %v2516_v10, %v952_v61  ;;  %v993_v17 = vpop.f32.mrb[43].mxu0  ;;  %v1232_v23 = vpop.f32.mrb[43].mxu1  ;;  %v2339_v61 = vunpack.c.h.bf16 %v2442_v22  ;;  %v2335_v11 = vunpack.c.h.bf16 %v2441_v25 }
 0x168   :  { %1970 = vst.msk [vmem:[%s3835_s4 + $0x14] sm:$0xf] %vm1964_vm1, %v2249_v6  ;;  %v1588_v18 = vadd.f32 %v2326_v57, %v1230_v31  ;;  %v1233_v21 = vadd.f32 %v1232_v23, %v944_v19  ;;  %v2443_v17 = vld [vmem:[%s3833_s3 + $0x40] sm:$0xff]   ;;  %v973_v25 = vadd.f32 %v3249_v54, %v3257_v1  ;;  %v976_v1 = vadd.f32 %v3249_v54, %v3263_v59 }
 0x169   :  { %v1654_v51 = vmax.f32 %v1590_v13, 0.0  ;;  %v1591_v7 = vadd.f32 %v2331_v5, %v1241_v15 }
 0x16a   :  { %v1652_v26 = vmax.f32 %v1588_v18, 0.0  ;;  %v1589_v29 = vadd.f32 %v2327_v3, %v1233_v21  ;;  %v2444_v3 = vld [vmem:[%s3833_s3 + $0x48] sm:$0xff]   ;;  %v981_v21 = vadd.f32 %v3249_v54, %v3275_v58 }
 0x16b   :  { %v2254_v33 = vpack.c.bf16 %v1654_v51, %v1654_v51  ;;  %v1655_v63 = vmax.f32 %v1591_v7, 0.0  ;;  %v2346_v7 = vunpack.c.l.bf16 %v2444_v3 }
 0x16c   :  { %v2252_v55 = vpack.c.bf16 %v1652_v26, %v1652_v26  ;;  %v1653_v38 = vmax.f32 %v1589_v29, 0.0  ;;  %v3343_v41 = vpop.f32.mrb[44].mxu0  ;;  %v2519_v42 = vpop.f32.mrb[44].mxu1 }
 0x16d   :  { %1975 = vst.msk [vmem:[%s3835_s4 + $0x28] sm:$0xf] %vm1964_vm1, %v2254_v33  ;;  %v2255_v43 = vpack.c.bf16 %v1655_v63, %v1655_v63  ;;  %v1254_v49 = vadd.f32 %v2519_v42, %v965_v30  ;;  %v998_v53 = vpop.f32.mrb[45].mxu0  ;;  %v1245_v57 = vpop.f32.mrb[45].mxu1  ;;  %v2342_v63 = vunpack.c.l.bf16 %v2443_v17  ;;  %v2347_v42 = vunpack.c.h.bf16 %v2444_v3 }
 0x16e   :  { %1973 = vst.msk [vmem:[%s3835_s4 + $0x20] sm:$0xf] %vm1964_vm1, %v2252_v55  ;;  %v2253_v27 = vpack.c.bf16 %v1653_v38, %v1653_v38  ;;  %v1246_v47 = vadd.f32 %v1245_v57, %v957_v37  ;;  %v3357_v62 = vpop.f32.mrb[46].mxu0  ;;  %v2520_v2 = vpop.f32.mrb[46].mxu1 }
 0x16f   :  { %1976 = vst.msk [vmem:[%s3835_s4 + $0x2c] sm:$0xf] %vm1964_vm1, %v2255_v43  ;;  %v1594_v5 = vadd.f32 %v2338_v34, %v1254_v49  ;;  %v1257_v19 = vadd.f32 %v2520_v2, %v968_v46  ;;  %v1001_v6 = vpop.f32.mrb[47].mxu0  ;;  %v1248_v39 = vpop.f32.mrb[47].mxu1  ;;  %v984_v34 = vadd.f32 %v3249_v54, %v3289_v14  ;;  %v2343_v49 = vunpack.c.h.bf16 %v2443_v17 }
 0x170   :  { %1974 = vst.msk [vmem:[%s3835_s4 + $0x24] sm:$0xf] %vm1964_vm1, %v2253_v27  ;;  %v1592_v31 = vadd.f32 %v2334_v45, %v1246_v47  ;;  %v1249_v10 = vadd.f32 %v1248_v39, %v960_v35  ;;  %v2446_v47 = vld [vmem:[%s3833_s3 + $0x58] sm:$0xff]   ;;  %v997_v39 = vadd.f32 %v3249_v54, %v3343_v41 }
 0x171   :  { %v1658_v13 = vmax.f32 %v1594_v5, 0.0  ;;  %v1595_v15 = vadd.f32 %v2339_v61, %v1257_v19  ;;  %v2445_v5 = vld [vmem:[%s3833_s3 + $0x50] sm:$0xff]   ;;  %v2354_v3 = vunpack.c.l.bf16 %v2446_v47 }
 0x172   :  { %v1656_v23 = vmax.f32 %v1592_v31, 0.0  ;;  %v1593_v18 = vadd.f32 %v2335_v11, %v1249_v10 }
 0x173   :  { %v2258_v22 = vpack.c.bf16 %v1658_v13, %v1658_v13  ;;  %v1659_v51 = vmax.f32 %v1595_v15, 0.0  ;;  %v989_v13 = vadd.f32 %v3249_v54, %v3309_v50  ;;  %v992_v50 = vadd.f32 %v3249_v54, %v3323_v9 }
 0x174   :  { %v2256_v26 = vpack.c.bf16 %v1656_v23, %v1656_v23  ;;  %v1657_v29 = vmax.f32 %v1593_v18, 0.0  ;;  %v3377_v30 = vpop.f32.mrb[48].mxu0  ;;  %v2523_v33 = vpop.f32.mrb[48].mxu1 }
 0x175   :  { %1979 = vst.msk [vmem:[%s3835_s4 + $0x38] sm:$0xf] %vm1964_vm1, %v2258_v22  ;;  %v2259_v58 = vpack.c.bf16 %v1659_v51, %v1659_v51  ;;  %v1270_v37 = vadd.f32 %v2523_v33, %v981_v21  ;;  %v1006_v55 = vpop.f32.mrb[49].mxu0  ;;  %v1261_v38 = vpop.f32.mrb[49].mxu1  ;;  %v2350_v21 = vunpack.c.l.bf16 %v2445_v5  ;;  %v1000_v22 = vadd.f32 %v3249_v54, %v3357_v62 }
 0x176   :  { %1977 = vst.msk [vmem:[%s3835_s4 + $0x30] sm:$0xf] %vm1964_vm1, %v2256_v26  ;;  %v2257_v45 = vpack.c.bf16 %v1657_v29, %v1657_v29  ;;  %v1262_v14 = vadd.f32 %v1261_v38, %v973_v25  ;;  %v3391_v46 = vpop.f32.mrb[50].mxu0  ;;  %v2524_v43 = vpop.f32.mrb[50].mxu1  ;;  %v2355_v26 = vunpack.c.h.bf16 %v2446_v47 }
 0x177   :  { %1980 = vst.msk [vmem:[%s3835_s4 + $0x3c] sm:$0xf] %vm1964_vm1, %v2259_v58  ;;  %v1598_v53 = vadd.f32 %v2346_v7, %v1270_v37  ;;  %v1273_v57 = vadd.f32 %v2524_v43, %v984_v34  ;;  %v1009_v61 = vpop.f32.mrb[51].mxu0  ;;  %v1264_v59 = vpop.f32.mrb[51].mxu1  ;;  %v2351_v34 = vunpack.c.h.bf16 %v2445_v5  ;;  %v2447_v43 = vld [vmem:[%s3833_s3 + $0x60] sm:$0xff]  }
 0x178   :  { %1978 = vst.msk [vmem:[%s3835_s4 + $0x34] sm:$0xf] %vm1964_vm1, %v2257_v45  ;;  %v1596_v35 = vadd.f32 %v2342_v63, %v1262_v14  ;;  %v1265_v27 = vadd.f32 %v1264_v59, %v976_v1  ;;  %v2448_v1 = vld [vmem:[%s3833_s3 + $0x68] sm:$0xff]  }
 0x179   :  { %v1662_v2 = vmax.f32 %v1598_v53, 0.0  ;;  %v1599_v11 = vadd.f32 %v2347_v42, %v1273_v57 }
 0x17a   :  { %v1660_v19 = vmax.f32 %v1596_v35, 0.0  ;;  %v1597_v6 = vadd.f32 %v2343_v49, %v1265_v27  ;;  %v2362_v35 = vunpack.c.l.bf16 %v2448_v1  ;;  %v1005_v27 = vadd.f32 %v3249_v54, %v3377_v30 }
 0x17b   :  { %v2262_v31 = vpack.c.bf16 %v1662_v2, %v1662_v2  ;;  %v1663_v10 = vmax.f32 %v1599_v11, 0.0  ;;  %v1008_v30 = vadd.f32 %v3249_v54, %v3391_v46 }
 0x17c   :  { %v2260_v15 = vpack.c.bf16 %v1660_v19, %v1660_v19  ;;  %v1661_v17 = vmax.f32 %v1597_v6, 0.0  ;;  %v1012_v23 = vpop.f32.mrb[52].mxu0  ;;  %v2527_v18 = vpop.f32.mrb[52].mxu1  ;;  %v2358_v19 = vunpack.c.l.bf16 %v2447_v43 }
 0x17d   :  { %1983 = vst.msk [vmem:[%s3835_s4 + $0x48] sm:$0xf] %vm1964_vm1, %v2262_v31  ;;  %v2263_v41 = vpack.c.bf16 %v1663_v10, %v1663_v10  ;;  %v1286_v51 = vadd.f32 %v2527_v18, %v997_v39  ;;  %v1014_v7 = vpop.f32.mrb[53].mxu0  ;;  %v1277_v25 = vpop.f32.mrb[53].mxu1  ;;  %v1013_v57 = vadd.f32 %v3249_v54, %v1012_v23 }
 0x17e   :  { %1981 = vst.msk [vmem:[%s3835_s4 + $0x40] sm:$0xf] %vm1964_vm1, %v2260_v15  ;;  %v2261_v29 = vpack.c.bf16 %v1661_v17, %v1661_v17  ;;  %v1278_v62 = vadd.f32 %v1277_v25, %v989_v13  ;;  %v1015_v33 = vpop.f32.mrb[54].mxu0  ;;  %v2528_v63 = vpop.f32.mrb[54].mxu1  ;;  %v2363_v13 = vunpack.c.h.bf16 %v2448_v1 }
 0x17f   :  { %1984 = vst.msk [vmem:[%s3835_s4 + $0x4c] sm:$0xf] %vm1964_vm1, %v2263_v41  ;;  %v1602_v58 = vadd.f32 %v2354_v3, %v1286_v51  ;;  %v1289_v37 = vadd.f32 %v2528_v63, %v1000_v22  ;;  %v1017_v55 = vpop.f32.mrb[55].mxu0  ;;  %v1280_v38 = vpop.f32.mrb[55].mxu1  ;;  %v1016_v6 = vadd.f32 %v3249_v54, %v1015_v33  ;;  %v2450_v63 = vld [vmem:[%s3833_s3 + $0x78] sm:$0xff]  }
 0x180   :  { %1982 = vst.msk [vmem:[%s3835_s4 + $0x44] sm:$0xf] %vm1964_vm1, %v2261_v29  ;;  %v1600_v9 = vadd.f32 %v2350_v21, %v1278_v62  ;;  %v1281_v42 = vadd.f32 %v1280_v38, %v992_v50  ;;  %v2359_v21 = vunpack.c.h.bf16 %v2447_v43  ;;  %v2449_v29 = vld [vmem:[%s3833_s3 + $0x70] sm:$0xff]   ;;  %v2370_v43 = vunpack.c.l.bf16 %v2450_v63 }
 0x181   :  { %v1666_v45 = vmax.f32 %v1602_v58, 0.0  ;;  %v1603_v14 = vadd.f32 %v2355_v26, %v1289_v37  ;;  %v2366_v1 = vunpack.c.l.bf16 %v2449_v29 }
 0x182   :  { %v1664_v49 = vmax.f32 %v1600_v9, 0.0  ;;  %v1601_v53 = vadd.f32 %v2351_v34, %v1281_v42 }
 0x183   :  { %v2266_v61 = vpack.c.bf16 %v1666_v45, %v1666_v45  ;;  %v1667_v59 = vmax.f32 %v1603_v14, 0.0 }
 0x184   :  { %v2264_v47 = vpack.c.bf16 %v1664_v49, %v1664_v49  ;;  %v1665_v2 = vmax.f32 %v1601_v53, 0.0  ;;  %v1020_v11 = vpop.f32.mrb[56].mxu0  ;;  %v2531_v5 = vpop.f32.mrb[56].mxu1 }
 0x185   :  { %1987 = vst.msk [vmem:[%s3835_s4 + $0x58] sm:$0xf] %vm1964_vm1, %v2266_v61  ;;  %v2267_v39 = vpack.c.bf16 %v1667_v59, %v1667_v59  ;;  %v1302_v31 = vadd.f32 %v2531_v5, %v1013_v57  ;;  %v1022_v10 = vpop.f32.mrb[57].mxu0  ;;  %v1293_v3 = vpop.f32.mrb[57].mxu1  ;;  %v1021_v37 = vadd.f32 %v3249_v54, %v1020_v11  ;;  %v2371_v5 = vunpack.c.h.bf16 %v2450_v63 }
 0x186   :  { %1985 = vst.msk [vmem:[%s3835_s4 + $0x50] sm:$0xf] %vm1964_vm1, %v2264_v47  ;;  %v2265_v15 = vpack.c.bf16 %v1665_v2, %v1665_v2  ;;  %v1294_v17 = vadd.f32 %v1293_v3, %v1005_v27  ;;  %v1023_v23 = vpop.f32.mrb[58].mxu0  ;;  %v2532_v18 = vpop.f32.mrb[58].mxu1  ;;  %v2367_v47 = vunpack.c.h.bf16 %v2449_v29 }
 0x187   :  { %1988 = vst.msk [vmem:[%s3835_s4 + $0x5c] sm:$0xf] %vm1964_vm1, %v2267_v39  ;;  %v1606_v22 = vadd.f32 %v2362_v35, %v1302_v31  ;;  %v1305_v41 = vadd.f32 %v2532_v18, %v1016_v6  ;;  %v1025_v51 = vpop.f32.mrb[59].mxu0  ;;  %v1296_v7 = vpop.f32.mrb[59].mxu1  ;;  %v1024_v57 = vadd.f32 %v3249_v54, %v1023_v23 }
 0x188   :  { %1986 = vst.msk [vmem:[%s3835_s4 + $0x54] sm:$0xf] %vm1964_vm1, %v2265_v15  ;;  %v1604_v46 = vadd.f32 %v2358_v19, %v1294_v17  ;;  %v1297_v25 = vadd.f32 %v1296_v7, %v1008_v30  ;;  %v2451_v15 = vld [vmem:[%s3833_s3 + $0x80] sm:$0xff]  }
 0x189   :  { %v1670_v26 = vmax.f32 %v1606_v22, 0.0  ;;  %v1607_v50 = vadd.f32 %v2363_v13, %v1305_v41 }
 0x18a   :  { %v1668_v62 = vmax.f32 %v1604_v46, 0.0  ;;  %v1605_v33 = vadd.f32 %v2359_v21, %v1297_v25 }
 0x18b   :  { %v2270_v34 = vpack.c.bf16 %v1670_v26, %v1670_v26  ;;  %v1671_v58 = vmax.f32 %v1607_v50, 0.0  ;;  %v2374_v50 = vunpack.c.l.bf16 %v2451_v15 }
 0x18c   :  { %v2268_v55 = vpack.c.bf16 %v1668_v62, %v1668_v62  ;;  %v1669_v38 = vmax.f32 %v1605_v33, 0.0  ;;  %v1028_v9 = vpop.f32.mrb[60].mxu0  ;;  %v2535_v42 = vpop.f32.mrb[60].mxu1 }
 0x18d   :  { %1991 = vst.msk [vmem:[%s3835_s4 + $0x68] sm:$0xf] %vm1964_vm1, %v2270_v34  ;;  %v2271_v45 = vpack.c.bf16 %v1671_v58, %v1671_v58  ;;  %v1029_v14 = vadd.f32 %v3249_v54, %v1028_v9  ;;  %v1030_v49 = vpop.f32.mrb[61].mxu0  ;;  %v1309_v53 = vpop.f32.mrb[61].mxu1 }
 0x18e   :  { %1989 = vst.msk [vmem:[%s3835_s4 + $0x60] sm:$0xf] %vm1964_vm1, %v2268_v55  ;;  %v2269_v61 = vpack.c.bf16 %v1669_v38, %v1669_v38  ;;  %v1310_v59 = vadd.f32 %v1309_v53, %v1021_v37  ;;  %v1031_v35 = vpop.f32.mrb[62].mxu0  ;;  %v2536_v27 = vpop.f32.mrb[62].mxu1  ;;  %v2375_v38 = vunpack.c.h.bf16 %v2451_v15 }
 0x18f   :  { %1992 = vst.msk [vmem:[%s3835_s4 + $0x6c] sm:$0xf] %vm1964_vm1, %v2271_v45  ;;  %v1318_v2 = vadd.f32 %v2535_v42, %v1029_v14  ;;  %v1032_v11 = vadd.f32 %v3249_v54, %v1031_v35  ;;  %v1033_v19 = vpop.f32.mrb[63].mxu0  ;;  %v1312_v6 = vpop.f32.mrb[63].mxu1 }
 0x190   :  { %1990 = vst.msk [vmem:[%s3835_s4 + $0x64] sm:$0xf] %vm1964_vm1, %v2269_v61  ;;  %v1608_v39 = vadd.f32 %v2366_v1, %v1310_v59  ;;  %v1313_v31 = vadd.f32 %v1312_v6, %v1024_v57  ;;  %v2452_v1 = vld [vmem:[%s3833_s3 + $0x88] sm:$0xff]  }
 0x191   :  { %v1610_v10 = vadd.f32 %v2370_v43, %v1318_v2  ;;  %v1321_v3 = vadd.f32 %v2536_v27, %v1032_v11  ;;  %v2378_v59 = vunpack.c.l.bf16 %v2452_v1  ;;  %v2379_v6 = vunpack.c.h.bf16 %v2452_v1 }
 0x192   :  { %v1672_v13 = vmax.f32 %v1608_v39, 0.0  ;;  %v1609_v30 = vadd.f32 %v2367_v47, %v1313_v31 }
 0x193   :  { %v1674_v17 = vmax.f32 %v1610_v10, 0.0  ;;  %v1611_v23 = vadd.f32 %v2371_v5, %v1321_v3 }
 0x194   :  { %v2272_v18 = vpack.c.bf16 %v1672_v13, %v1672_v13  ;;  %v1673_v21 = vmax.f32 %v1609_v30, 0.0  ;;  %v1036_v22 = vpop.f32.mrb[64].mxu0  ;;  %v2539_v41 = vpop.f32.mrb[64].mxu1  ;;  %v2453_v13 = vld [vmem:[%s3833_s3 + $0x90] sm:$0xff]  }
 0x195   :  { %v2274_v51 = vpack.c.bf16 %v1674_v17, %v1674_v17  ;;  %v1675_v7 = vmax.f32 %v1611_v23, 0.0  ;;  %v1037_v46 = vadd.f32 %v3249_v54, %v1036_v22  ;;  %v1038_v25 = vpop.f32.mrb[65].mxu0  ;;  %v1325_v26 = vpop.f32.mrb[65].mxu1 }
 0x196   :  { %1993 = vst.msk [vmem:[%s3835_s4 + $0x70] sm:$0xf] %vm1964_vm1, %v2272_v18  ;;  %v2273_v29 = vpack.c.bf16 %v1673_v21, %v1673_v21  ;;  %v1039_v62 = vpop.f32.mrb[66].mxu0  ;;  %v2540_v33 = vpop.f32.mrb[66].mxu1 }
 0x197   :  { %1995 = vst.msk [vmem:[%s3835_s4 + $0x78] sm:$0xf] %vm1964_vm1, %v2274_v51  ;;  %v2275_v63 = vpack.c.bf16 %v1675_v7, %v1675_v7  ;;  %v1326_v34 = vadd.f32 %v1325_v26, %v1037_v46  ;;  %v1040_v58 = vadd.f32 %v3249_v54, %v1039_v62  ;;  %v1041_v37 = vpop.f32.mrb[67].mxu0  ;;  %v1328_v55 = vpop.f32.mrb[67].mxu1  ;;  %v2383_v62 = vunpack.c.h.bf16 %v2453_v13 }
 0x198   :  { %1994 = vst.msk [vmem:[%s3835_s4 + $0x74] sm:$0xf] %vm1964_vm1, %v2273_v29  ;;  %v2454_v37 = vld [vmem:[%s3833_s3 + $0x98] sm:$0xff]  }
 0x199   :  { %1996 = vst.msk [vmem:[%s3835_s4 + $0x7c] sm:$0xf] %vm1964_vm1, %v2275_v63  ;;  %v1612_v9 = vadd.f32 %v2374_v50, %v1326_v34  ;;  %v1329_v42 = vadd.f32 %v1328_v55, %v1040_v58 }
 0x19b   :  { %v1676_v45 = vmax.f32 %v1612_v9, 0.0  ;;  %v1613_v14 = vadd.f32 %v2375_v38, %v1329_v42 }
 0x19c   :  { %v1044_v43 = vpop.f32.mrb[68].mxu0  ;;  %v2543_v49 = vpop.f32.mrb[68].mxu1 }
 0x19d   :  { %v2276_v53 = vpack.c.bf16 %v1676_v45, %v1676_v45  ;;  %v1677_v57 = vmax.f32 %v1613_v14, 0.0  ;;  %v1045_v61 = vadd.f32 %v3249_v54, %v1044_v43  ;;  %v1046_v35 = vpop.f32.mrb[69].mxu0  ;;  %v1341_v27 = vpop.f32.mrb[69].mxu1  ;;  %v2386_v43 = vunpack.c.l.bf16 %v2454_v37 }
 0x19e   :  { %v1047_v47 = vpop.f32.mrb[70].mxu0  ;;  %v3510_v2 = vpop.f32.mrb[70].mxu1  ;;  %v1109_v35 = vadd.f32 %v3249_v54, %v3189_v60  ;;  %v2460_v60 = vld [vmem:[%s3833_s3 + $0xc8] sm:$0xff]  }
 0x19f   :  { %1997 = vst.msk [vmem:[%s3835_s4 + $0x80] sm:$0xf] %vm1964_vm1, %v2276_v53  ;;  %v2277_v11 = vpack.c.bf16 %v1677_v57, %v1677_v57  ;;  %v1334_v5 = vadd.f32 %v2539_v41, %v1045_v61  ;;  %v1048_v19 = vadd.f32 %v3249_v54, %v1047_v47  ;;  %v1049_v39 = vpop.f32.mrb[71].mxu0  ;;  %v1344_v31 = vpop.f32.mrb[71].mxu1  ;;  %v2382_v41 = vunpack.c.l.bf16 %v2453_v13 }
 0x1a0   :  { %v1101_v61 = vadd.f32 %v3249_v54, %v3183_v52  ;;  %v3588_v13 = vadd.f32 %v3249_v54, %v3205_v12  ;;  %v3610_v12 = vadd.f32 %v3249_v54, %v3217_v24  ;;  %v3626_v24 = vadd.f32 %v3249_v54, %v3221_v28 }
 0x1a1   :  { %1998 = vst.msk [vmem:[%s3835_s4 + $0x84] sm:$0xf] %vm1964_vm1, %v2277_v11  ;;  %v1614_v10 = vadd.f32 %v2378_v59, %v1334_v5  ;;  %v1337_v3 = vadd.f32 %v2540_v33, %v1048_v19  ;;  %v1104_v59 = vadd.f32 %v3249_v54, %v3187_v56  ;;  %v3568_v56 = vld [vmem:[%s3833_s3 + $0xa0] sm:$0xff]  }
 0x1a3   :  { %v1678_v30 = vmax.f32 %v1614_v10, 0.0  ;;  %v1615_v15 = vadd.f32 %v2379_v6, %v1337_v3  ;;  %v2387_v6 = vunpack.c.h.bf16 %v2454_v37  ;;  %v3580_v10 = vadd.f32 %v3249_v54, %v3197_v4 }
 0x1a4   :  { %v1052_v17 = vpop.f32.mrb[72].mxu0  ;;  %v3524_v23 = vpop.f32.mrb[72].mxu1  ;;  %v3584_v3 = vadd.f32 %v3249_v54, %v3201_v8  ;;  %v3606_v8 = vld [vmem:[%s3833_s3 + $0xd8] sm:$0xff]  }
 0x1a5   :  { %v2278_v18 = vpack.c.bf16 %v1678_v30, %v1678_v30  ;;  %v1679_v21 = vmax.f32 %v1615_v15, 0.0  ;;  %v1053_v22 = vadd.f32 %v3249_v54, %v1052_v17  ;;  %v1054_v51 = vpop.f32.mrb[73].mxu0  ;;  %v3527_v7 = vpop.f32.mrb[73].mxu1  ;;  %v3592_v30 = vadd.f32 %v3249_v54, %v3209_v16 }
 0x1a6   :  { %v1055_v46 = vpop.f32.mrb[74].mxu0  ;;  %v3529_v25 = vpop.f32.mrb[74].mxu1  ;;  %v3596_v15 = vadd.f32 %v3249_v54, %v3213_v20  ;;  %v2390_v16 = vunpack.c.l.bf16 %v3568_v56  ;;  %v2410_v20 = vunpack.c.l.bf16 %v2460_v60  ;;  %v3622_v51 = vld [vmem:[%s3833_s3 + $0xd0] sm:$0xff]  }
 0x1a7   :  { %1999 = vst.msk [vmem:[%s3835_s4 + $0x88] sm:$0xf] %vm1964_vm1, %v2278_v18  ;;  %v2279_v26 = vpack.c.bf16 %v1679_v21, %v1679_v21  ;;  %v1342_v50 = vadd.f32 %v1341_v27, %v1053_v22  ;;  %v1056_v29 = vadd.f32 %v3249_v54, %v1055_v46  ;;  %v1057_v33 = vpop.f32.mrb[75].mxu0  ;;  %v3536_v63 = vpop.f32.mrb[75].mxu1  ;;  %v2391_v22 = vunpack.c.h.bf16 %v3568_v56  ;;  %v3647_v56 = vld [vmem:[%s3833_s3 + $0xe8] sm:$0xff]  }
 0x1a8   :  { %v3630_v46 = vadd.f32 %v3249_v54, %v3225_v32  ;;  %v2414_v32 = vunpack.c.l.bf16 %v3622_v51 }
 0x1a9   :  { %2000 = vst.msk [vmem:[%s3835_s4 + $0x8c] sm:$0xf] %vm1964_vm1, %v2279_v26  ;;  %v1616_v34 = vadd.f32 %v2382_v41, %v1342_v50  ;;  %v1345_v58 = vadd.f32 %v1344_v31, %v1056_v29  ;;  %v2459_v31 = vld [vmem:[%s3833_s3 + $0xc0] sm:$0xff]   ;;  %v2411_v41 = vunpack.c.h.bf16 %v2460_v60 }
 0x1aa   :  { %v2406_v17 = vunpack.c.l.bf16 %v2459_v31  ;;  %v2407_v29 = vunpack.c.h.bf16 %v2459_v31 }
 0x1ab   :  { %v1680_v55 = vmax.f32 %v1616_v34, 0.0  ;;  %v1617_v38 = vadd.f32 %v2383_v62, %v1345_v58  ;;  %v2418_v62 = vunpack.c.l.bf16 %v3606_v8 }
 0x1ac   :  { %v1060_v9 = vpop.f32.mrb[76].mxu0  ;;  %v3545_v42 = vpop.f32.mrb[76].mxu1 }
 0x1ad   :  { %v2280_v1 = vpack.c.bf16 %v1680_v55, %v1680_v55  ;;  %v1681_v45 = vmax.f32 %v1617_v38, 0.0  ;;  %v1061_v14 = vadd.f32 %v3249_v54, %v1060_v9  ;;  %v1062_v53 = vpop.f32.mrb[77].mxu0  ;;  %v3548_v57 = vpop.f32.mrb[77].mxu1 }
 0x1ae   :  { %v1063_v27 = vpop.f32.mrb[78].mxu0  ;;  %v3556_v47 = vpop.f32.mrb[78].mxu1 }
 0x1af   :  { %2001 = vst.msk [vmem:[%s3835_s4 + $0x90] sm:$0xf] %vm1964_vm1, %v2280_v1  ;;  %v2281_v11 = vpack.c.bf16 %v1681_v45, %v1681_v45  ;;  %v1350_v5 = vadd.f32 %v2543_v49, %v1061_v14  ;;  %v1064_v19 = vadd.f32 %v3249_v54, %v1063_v27  ;;  %v1065_v52 = vpop.f32.mrb[79].mxu0  ;;  %v3563_v39 = vpop.f32.mrb[79].mxu1  ;;  %v1112_v49 = vadd.f32 %v3249_v54, %v3193_v0 }
 0x1b0   :  { %v2419_v14 = vunpack.c.h.bf16 %v3606_v8  ;;  %v2415_v52 = vunpack.c.h.bf16 %v3622_v51  ;;  %v2426_v51 = vunpack.c.l.bf16 %v3647_v56 }
 0x1b1   :  { %2002 = vst.msk [vmem:[%s3835_s4 + $0x94] sm:$0xf] %vm1964_vm1, %v2281_v11  ;;  %v1618_v0 = vadd.f32 %v2386_v43, %v1350_v5  ;;  %v1353_v4 = vadd.f32 %v3510_v2, %v1064_v19  ;;  %v3617_v2 = vld [vmem:[%s3833_s3 + $0xa8] sm:$0xff]  }
 0x1b2   :  { %v2394_v45 = vunpack.c.l.bf16 %v3617_v2 }
 0x1b3   :  { %v1682_v18 = vmax.f32 %v1618_v0, 0.0  ;;  %v1619_v21 = vadd.f32 %v2387_v6, %v1353_v4  ;;  %v2395_v0 = vunpack.c.h.bf16 %v3617_v2  ;;  %v3720_v2 = vld [vmem:[%s3833_s3 + $0xf8] sm:$0xff]  }
 0x1b4   :  { %v1068_v26 = vpop.f32.mrb[80].mxu0  ;;  %v2555_v50 = vpop.f32.mrb[80].mxu1 }
 0x1b5   :  { %v2282_v33 = vpack.c.bf16 %v1682_v18, %v1682_v18  ;;  %v1683_v34 = vmax.f32 %v1619_v21, 0.0  ;;  %v1069_v58 = vadd.f32 %v3249_v54, %v1068_v26  ;;  %v1398_v37 = vadd.f32 %v2555_v50, %v1109_v35  ;;  %v1070_v55 = vpop.f32.mrb[81].mxu0  ;;  %v1389_v38 = vpop.f32.mrb[81].mxu1 }
 0x1b6   :  { %v1390_v9 = vadd.f32 %v1389_v38, %v1101_v61  ;;  %v1071_v1 = vpop.f32.mrb[82].mxu0  ;;  %v2556_v28 = vpop.f32.mrb[82].mxu1 }
 0x1b7   :  { %2003 = vst.msk [vmem:[%s3835_s4 + $0x98] sm:$0xf] %vm1964_vm1, %v2282_v33  ;;  %v2283_v43 = vpack.c.bf16 %v1683_v34, %v1683_v34  ;;  %v1358_v53 = vadd.f32 %v3527_v7, %v1069_v58  ;;  %v1630_v35 = vadd.f32 %v2410_v20, %v1398_v37  ;;  %v1072_v27 = vadd.f32 %v3249_v54, %v1071_v1  ;;  %v1073_v61 = vpop.f32.mrb[83].mxu0  ;;  %v1392_v11 = vpop.f32.mrb[83].mxu1 }
 0x1b8   :  { %v1628_v5 = vadd.f32 %v2406_v17, %v1390_v9  ;;  %v1401_v19 = vadd.f32 %v2556_v28, %v1112_v49  ;;  %v1393_v6 = vadd.f32 %v1392_v11, %v1104_v59  ;;  %v3657_v59 = vadd.f32 %v3249_v54, %v3229_v36 }
 0x1b9   :  { %2004 = vst.msk [vmem:[%s3835_s4 + $0x9c] sm:$0xf] %vm1964_vm1, %v2283_v43  ;;  %v1620_v7 = vadd.f32 %v2390_v16, %v1358_v53  ;;  %v1694_v60 = vmax.f32 %v1630_v35, 0.0  ;;  %v1361_v31 = vadd.f32 %v3536_v63, %v1072_v27  ;;  %v3663_v16 = vld [vmem:[%s3833_s3 + $0xe0] sm:$0xff]   ;;  %v3667_v63 = vadd.f32 %v3249_v54, %v3233_v40  ;;  %v3678_v40 = vld [vmem:[%s3833_s3 + $0xb0] sm:$0xff]  }
 0x1ba   :  { %v1692_v49 = vmax.f32 %v1628_v5, 0.0  ;;  %v1631_v4 = vadd.f32 %v2411_v41, %v1401_v19  ;;  %v1629_v20 = vadd.f32 %v2407_v29, %v1393_v6 }
 0x1bb   :  { %v1684_v17 = vmax.f32 %v1620_v7, 0.0  ;;  %v2294_v18 = vpack.c.bf16 %v1694_v60, %v1694_v60  ;;  %v1621_v21 = vadd.f32 %v2391_v22, %v1361_v31  ;;  %v2427_v31 = vunpack.c.h.bf16 %v3647_v56 }
 0x1bc   :  { %v2292_v26 = vpack.c.bf16 %v1692_v49, %v1692_v49  ;;  %v1695_v36 = vmax.f32 %v1631_v4, 0.0  ;;  %v1693_v50 = vmax.f32 %v1629_v20, 0.0  ;;  %v1076_v33 = vpop.f32.mrb[84].mxu0  ;;  %v2559_v41 = vpop.f32.mrb[84].mxu1  ;;  %v2423_v49 = vunpack.c.h.bf16 %v3663_v16 }
 0x1bd   :  { %v2284_v29 = vpack.c.bf16 %v1684_v17, %v1684_v17  ;;  %2015 = vst.msk [vmem:[%s3835_s4 + $0xc8] sm:$0xf] %vm1964_vm1, %v2294_v18  ;;  %v1685_v22 = vmax.f32 %v1621_v21, 0.0  ;;  %v1077_v34 = vadd.f32 %v3249_v54, %v1076_v33  ;;  %v1414_v58 = vadd.f32 %v2559_v41, %v3588_v13  ;;  %v1078_v37 = vpop.f32.mrb[85].mxu0  ;;  %v1405_v55 = vpop.f32.mrb[85].mxu1 }
 0x1be   :  { %2013 = vst.msk [vmem:[%s3835_s4 + $0xc0] sm:$0xf] %vm1964_vm1, %v2292_v26  ;;  %v2295_v38 = vpack.c.bf16 %v1695_v36, %v1695_v36  ;;  %v2293_v9 = vpack.c.bf16 %v1693_v50, %v1693_v50  ;;  %v1406_v1 = vadd.f32 %v1405_v55, %v3580_v10  ;;  %v1079_v28 = vpop.f32.mrb[86].mxu0  ;;  %v2560_v43 = vpop.f32.mrb[86].mxu1  ;;  %v2422_v13 = vunpack.c.l.bf16 %v3663_v16  ;;  %v3731_v16 = vld [vmem:[%s3834_s2] ss:$0 sm:$0xff] }
 0x1bf   :  { %2005 = vst.msk [vmem:[%s3835_s4 + $0xa0] sm:$0xf] %vm1964_vm1, %v2284_v29  ;;  %v2285_v53 = vpack.c.bf16 %v1685_v22, %v1685_v22  ;;  %v1366_v35 = vadd.f32 %v3524_v23, %v1077_v34  ;;  %v1634_v27 = vadd.f32 %v2418_v62, %v1414_v58  ;;  %v1080_v61 = vadd.f32 %v3249_v54, %v1079_v28  ;;  %v1081_v11 = vpop.f32.mrb[87].mxu0  ;;  %v1408_v5 = vpop.f32.mrb[87].mxu1  ;;  %v3744_v37 = vld [vmem:[%s3833_s3 + $0xf0] sm:$0xff]  }
 0x1c0   :  { %2016 = vst.msk [vmem:[%s3835_s4 + $0xcc] sm:$0xf] %vm1964_vm1, %v2295_v38  ;;  %2014 = vst.msk [vmem:[%s3835_s4 + $0xc4] sm:$0xf] %vm1964_vm1, %v2293_v9  ;;  %v1632_v10 = vadd.f32 %v2414_v32, %v1406_v1  ;;  %v1417_v23 = vadd.f32 %v2560_v43, %v3592_v30  ;;  %v1409_v19 = vadd.f32 %v1408_v5, %v3584_v3  ;;  %v2398_v62 = vunpack.c.l.bf16 %v3678_v40  ;;  %v2458_v1 = vld [vmem:[%s3833_s3 + $0xb8] sm:$0xff]  }
 0x1c1   :  { %2006 = vst.msk [vmem:[%s3835_s4 + $0xa4] sm:$0xf] %vm1964_vm1, %v2285_v53  ;;  %v1622_v6 = vadd.f32 %v2394_v45, %v1366_v35  ;;  %v1698_v7 = vmax.f32 %v1634_v27, 0.0  ;;  %v1369_v60 = vadd.f32 %v3529_v25, %v1080_v61  ;;  %v2399_v18 = vunpack.c.h.bf16 %v3678_v40 }
 0x1c2   :  { %v1696_v32 = vmax.f32 %v1632_v10, 0.0  ;;  %v1635_v30 = vadd.f32 %v2419_v14, %v1417_v23  ;;  %v1633_v3 = vadd.f32 %v2415_v52, %v1409_v19  ;;  %v1157_v25 = vadd.f32 %v3249_v54, %v3237_v44 }
 0x1c3   :  { %v1686_v4 = vmax.f32 %v1622_v6, 0.0  ;;  %v2298_v20 = vpack.c.bf16 %v1698_v7, %v1698_v7  ;;  %v1623_v17 = vadd.f32 %v2395_v0, %v1369_v60  ;;  %v2434_v58 = vunpack.c.l.bf16 %v3720_v2 }
 0x1c4   :  { %v2296_v45 = vpack.c.bf16 %v1696_v32, %v1696_v32  ;;  %v1699_v21 = vmax.f32 %v1635_v30, 0.0  ;;  %v1697_v8 = vmax.f32 %v1633_v3, 0.0  ;;  %v1084_v14 = vpop.f32.mrb[88].mxu0  ;;  %v2563_v52 = vpop.f32.mrb[88].mxu1  ;;  %v1160_v28 = vadd.f32 %v3731_v16, %v3241_v48 }
 0x1c5   :  { %v2286_v26 = vpack.c.bf16 %v1686_v4, %v1686_v4  ;;  %2019 = vst.msk [vmem:[%s3835_s4 + $0xd8] sm:$0xf] %vm1964_vm1, %v2298_v20  ;;  %v1687_v0 = vmax.f32 %v1623_v17, 0.0  ;;  %v1085_v36 = vadd.f32 %v3731_v16, %v1084_v14  ;;  %v1430_v44 = vadd.f32 %v2563_v52, %v3626_v24  ;;  %v1086_v54 = vpop.f32.mrb[89].mxu0  ;;  %v1421_v50 = vpop.f32.mrb[89].mxu1 }
 0x1c6   :  { %2017 = vst.msk [vmem:[%s3835_s4 + $0xd0] sm:$0xf] %vm1964_vm1, %v2296_v45  ;;  %v2299_v33 = vpack.c.bf16 %v1699_v21, %v1699_v21  ;;  %v2297_v41 = vpack.c.bf16 %v1697_v8, %v1697_v8  ;;  %v1422_v29 = vadd.f32 %v1421_v50, %v3596_v15  ;;  %v1087_v22 = vpop.f32.mrb[90].mxu0  ;;  %v2564_v34 = vpop.f32.mrb[90].mxu1  ;;  %v2430_v35 = vunpack.c.l.bf16 %v3744_v37 }
 0x1c7   :  { %2007 = vst.msk [vmem:[%s3835_s4 + $0xa8] sm:$0xf] %vm1964_vm1, %v2286_v26  ;;  %v2287_v24 = vpack.c.bf16 %v1687_v0, %v1687_v0  ;;  %v1374_v55 = vadd.f32 %v3548_v57, %v1085_v36  ;;  %v1638_v15 = vadd.f32 %v2426_v51, %v1430_v44  ;;  %v1088_v40 = vadd.f32 %v3731_v16, %v1087_v22  ;;  %v1089_v38 = vpop.f32.mrb[91].mxu0  ;;  %v1424_v9 = vpop.f32.mrb[91].mxu1 }
 0x1c8   :  { %2020 = vst.msk [vmem:[%s3835_s4 + $0xdc] sm:$0xf] %vm1964_vm1, %v2299_v33  ;;  %2018 = vst.msk [vmem:[%s3835_s4 + $0xd4] sm:$0xf] %vm1964_vm1, %v2297_v41  ;;  %v1636_v57 = vadd.f32 %v2422_v13, %v1422_v29  ;;  %v1433_v56 = vadd.f32 %v2564_v34, %v3630_v46  ;;  %v1425_v51 = vadd.f32 %v1424_v9, %v3610_v12  ;;  %v2402_v5 = vunpack.c.l.bf16 %v2458_v1 }
 0x1c9   :  { %2008 = vst.msk [vmem:[%s3835_s4 + $0xac] sm:$0xf] %vm1964_vm1, %v2287_v24  ;;  %v1624_v48 = vadd.f32 %v2398_v62, %v1374_v55  ;;  %v1702_v43 = vmax.f32 %v1638_v15, 0.0  ;;  %v1377_v53 = vadd.f32 %v3563_v39, %v1088_v40  ;;  %v2435_v12 = vunpack.c.h.bf16 %v3720_v2 }
 0x1ca   :  { %v1700_v27 = vmax.f32 %v1636_v57, 0.0  ;;  %v1639_v61 = vadd.f32 %v2427_v31, %v1433_v56  ;;  %v1637_v11 = vadd.f32 %v2423_v49, %v1425_v51  ;;  %v2431_v62 = vunpack.c.h.bf16 %v3744_v37 }
 0x1cb   :  { %v1688_v13 = vmax.f32 %v1624_v48, 0.0  ;;  %v2302_v10 = vpack.c.bf16 %v1702_v43, %v1702_v43  ;;  %v1625_v46 = vadd.f32 %v2399_v18, %v1377_v53  ;;  %v2403_v2 = vunpack.c.h.bf16 %v2458_v1 }
 0x1cc   :  { %v2300_v23 = vpack.c.bf16 %v1700_v27, %v1700_v27  ;;  %v1703_v19 = vmax.f32 %v1639_v61, 0.0  ;;  %v1701_v6 = vmax.f32 %v1637_v11, 0.0  ;;  %v1092_v7 = vpop.f32.mrb[92].mxu0  ;;  %v2567_v60 = vpop.f32.mrb[92].mxu1 }
 0x1cd   :  { %v2288_v32 = vpack.c.bf16 %v1688_v13, %v1688_v13  ;;  %2023 = vst.msk [vmem:[%s3835_s4 + $0xe8] sm:$0xf] %vm1964_vm1, %v2302_v10  ;;  %v1689_v39 = vmax.f32 %v1625_v46, 0.0  ;;  %v1093_v31 = vadd.f32 %v3731_v16, %v1092_v7  ;;  %v1446_v30 = vadd.f32 %v2567_v60, %v1157_v25  ;;  %v1094_v3 = vpop.f32.mrb[93].mxu0  ;;  %v1437_v49 = vpop.f32.mrb[93].mxu1 }
 0x1ce   :  { %2021 = vst.msk [vmem:[%s3835_s4 + $0xe0] sm:$0xf] %vm1964_vm1, %v2300_v23  ;;  %v2303_v4 = vpack.c.bf16 %v1703_v19, %v1703_v19  ;;  %v2301_v20 = vpack.c.bf16 %v1701_v6, %v1701_v6  ;;  %v1438_v17 = vadd.f32 %v1437_v49, %v3657_v59  ;;  %v1095_v18 = vpop.f32.mrb[94].mxu0  ;;  %v2568_v45 = vpop.f32.mrb[94].mxu1 }
 0x1cf   :  { %2009 = vst.msk [vmem:[%s3835_s4 + $0xb0] sm:$0xf] %vm1964_vm1, %v2288_v32  ;;  %v2289_v25 = vpack.c.bf16 %v1689_v39, %v1689_v39  ;;  %v1382_v21 = vadd.f32 %v3545_v42, %v1093_v31  ;;  %v1642_v8 = vadd.f32 %v2434_v58, %v1446_v30  ;;  %v1096_v14 = vadd.f32 %v3731_v16, %v1095_v18  ;;  %v1097_v52 = vpop.f32.mrb[95].mxu0  ;;  %v1440_v26 = vpop.f32.mrb[95].mxu1 }
 0x1d0   :  { %2024 = vst.msk [vmem:[%s3835_s4 + $0xec] sm:$0xf] %vm1964_vm1, %v2303_v4  ;;  %2022 = vst.msk [vmem:[%s3835_s4 + $0xe4] sm:$0xf] %vm1964_vm1, %v2301_v20  ;;  %v1640_v59 = vadd.f32 %v2430_v35, %v1438_v17  ;;  %v1449_v0 = vadd.f32 %v2568_v45, %v1160_v28  ;;  %v1441_v36 = vadd.f32 %v1440_v26, %v3667_v63 }
 0x1d1   :  { %2010 = vst.msk [vmem:[%s3835_s4 + $0xb4] sm:$0xf] %vm1964_vm1, %v2289_v25  ;;  %v1626_v42 = vadd.f32 %v2402_v5, %v1382_v21  ;;  %v1706_v16 = vmax.f32 %v1642_v8, 0.0  ;;  %v1385_v44 = vadd.f32 %v3556_v47, %v1096_v14 }
 0x1d2   :  { %v1704_v54 = vmax.f32 %v1640_v59, 0.0  ;;  %v1643_v50 = vadd.f32 %v2435_v12, %v1449_v0  ;;  %v1641_v33 = vadd.f32 %v2431_v62, %v1441_v36 }
 0x1d3   :  { %v1690_v41 = vmax.f32 %v1626_v42, 0.0  ;;  %v2306_v29 = vpack.c.bf16 %v1706_v16, %v1706_v16  ;;  %v1627_v22 = vadd.f32 %v2403_v2, %v1385_v44 }
 0x1d4   :  { %v2304_v34 = vpack.c.bf16 %v1704_v54, %v1704_v54  ;;  %v1707_v58 = vmax.f32 %v1643_v50, 0.0  ;;  %v1705_v37 = vmax.f32 %v1641_v33, 0.0 }
 0x1d5   :  { %v2290_v24 = vpack.c.bf16 %v1690_v41, %v1690_v41  ;;  %2027 = vst.msk [vmem:[%s3835_s4 + $0xf8] sm:$0xf] %vm1964_vm1, %v2306_v29  ;;  %v1691_v63 = vmax.f32 %v1627_v22, 0.0 }
 0x1d6   :  { %2025 = vst.msk [vmem:[%s3835_s4 + $0xf0] sm:$0xf] %vm1964_vm1, %v2304_v34  ;;  %v2307_v47 = vpack.c.bf16 %v1707_v58, %v1707_v58  ;;  %v2305_v55 = vpack.c.bf16 %v1705_v37, %v1705_v37 }
 0x1d7   :  { %2011 = vst.msk [vmem:[%s3835_s4 + $0xb8] sm:$0xf] %vm1964_vm1, %v2290_v24  ;;  %v2291_v15 = vpack.c.bf16 %v1691_v63, %v1691_v63 }
 0x1d8   :  { %2028 = vst.msk [vmem:[%s3835_s4 + $0xfc] sm:$0xf] %vm1964_vm1, %v2307_v47  ;;  %2026 = vst.msk [vmem:[%s3835_s4 + $0xf4] sm:$0xf] %vm1964_vm1, %v2305_v55 }
 0x1d9   :  { %2012 = vst.msk [vmem:[%s3835_s4 + $0xbc] sm:$0xf] %vm1964_vm1, %v2291_v15 }

// kernel: model_forward.11
= control target key start
LH: loop header
LB: loop body
LE: loop exit
PB: predicated region body
PF: predicated region fallthrough
CT: control target
= control target key end

     0   :  { %12 = vsyncpa [#allocation3], 0  ;;  %v792_v1 = vmov 0.0   ;;  %vm793_vm0 = vmmov 0   ;;  %vm153_vm1 = vcmask 261120   ;;  %s1066_s0 = inlined_call_operand.vmem [shape: bf16[2,256,32], index: 0, kind: input, shape index: {}]   ;;  %s1067_s1 = inlined_call_operand.vmem [shape: bf16[32,128], index: 1, kind: input, shape index: {}]   ;;  %s1068_s2 = inlined_call_operand.vmem [shape: f32[1,128], index: 2, kind: input, shape index: {}]   ;;  %s1069_s3 = inlined_call_operand.vmem [shape: bf16[128,128], index: 3, kind: input, shape index: {}]   ;;  %s1070_s4 = inlined_call_operand.vmem [shape: f32[1,128], index: 4, kind: input, shape index: {}]   ;;  %s1071_s5 = inlined_call_operand.hbm [shape: f32[2,32], index: 5, kind: output, shape index: {0}]   ;;  %s1072_s6 = inlined_call_operand.hbm [shape: f32[2,128], index: 6, kind: output, shape index: {1}]  }
   0x1   :  { %v734_v0 = vld [vmem:[%s1067_s1] sm:$0xff]   ;;  %702 = vmatprep.subr.bf16.mxu0 %v792_v1  ;;  %710 = vmatprep.subr.bf16.mxu1 %v792_v1  ;;  %v735_v2 = vld [vmem:[%s1067_s1 + $0x8] sm:$0xff]   ;;  %v660_v10 = vld [vmem:[%s1066_s0 + $0x10] sm:$0xff]  }
   0x2   :  { %703 = vmatpush3.bf16.msra.mxu0 %v734_v0  ;;  %706 = vmatprep.mubr.msk.bf16.mxu0 %vm793_vm0, %v792_v1  ;;  %v532_v3 = vld [vmem:[%s1066_s0] sm:$0xff]   ;;  %v659_v4 = vld [vmem:[%s1066_s0 + $0x8] sm:$0xff]   ;;  %v541_v12 = vunpack.c.l.bf16 %v660_v10  ;;  %v738_v16 = vld [vmem:[%s1069_s3 + $0x10] sm:$0xff]   ;;  %v542_v19 = vunpack.c.h.bf16 %v660_v10 }
   0x3   :  { %704 = vmatprep.subr.bf16.mxu0 %v792_v1  ;;  %726 = vmatprep.mubr.msk.bf16.mxu1 %vm793_vm0, %v792_v1  ;;  %v736_v5 = vld [vmem:[%s1069_s3] sm:$0xff]   ;;  %v533_v6 = vunpack.c.l.bf16 %v532_v3  ;;  %v534_v7 = vunpack.c.h.bf16 %v532_v3  ;;  %v537_v8 = vunpack.c.l.bf16 %v659_v4  ;;  %v737_v9 = vld [vmem:[%s1069_s3 + $0x8] sm:$0xff]   ;;  %v538_v11 = vunpack.c.h.bf16 %v659_v4  ;;  %v661_v17 = vld [vmem:[%s1066_s0 + $0x18] sm:$0xff]  }
   0x4   :  { %711 = vmatpush3.bf16.msra.mxu1 %v736_v5  ;;  %v674_v20 = vld [vmem:[%s1066_s0 + $0x80] sm:$0xff]   ;;  %v675_v21 = vld [vmem:[%s1066_s0 + $0x88] sm:$0xff]   ;;  %v545_v24 = vunpack.c.l.bf16 %v661_v17  ;;  %v161_v25 = vsel %vm153_vm1, %v541_v12, 0.0  ;;  %v739_v26 = vld [vmem:[%s1069_s3 + $0x18] sm:$0xff]  }
   0x5   :  { %712 = vmatprep.subr.bf16.mxu1 %v792_v1  ;;  %v154_v13 = vsel %vm153_vm1, %v533_v6, 0.0  ;;  %v155_v14 = vsel %vm153_vm1, %v534_v7, 0.0  ;;  %v157_v15 = vsel %vm153_vm1, %v537_v8, 0.0  ;;  %v159_v22 = vsel %vm153_vm1, %v538_v11, 0.0 }
   0x6   :  { %705 = vmatpush3.bf16.msra.mxu0 %v735_v2  ;;  %v156_v18 = vadd.f32 %v155_v14, %v154_v13 }
   0x8   :  { %713 = vmatpush3.bf16.msra.mxu1 %v737_v9  ;;  %v158_v23 = vadd.f32 %v157_v15, %v156_v18 }
   0x9   :  { %714 = vmatprep.subr.bf16.mxu1 %v792_v1 }
   0xc   :  { %715 = vmatpush3.bf16.msra.mxu1 %v738_v16 }
   0xd   :  { %13 = vsyncpa [#allocation5], 0  ;;  %v662_v27 = vld [vmem:[%s1066_s0 + $0x20] sm:$0xff]   ;;  %v597_v28 = vunpack.c.l.bf16 %v674_v20  ;;  %v598_v29 = vunpack.c.h.bf16 %v674_v20  ;;  %v601_v30 = vunpack.c.l.bf16 %v675_v21  ;;  %v676_v31 = vld [vmem:[%s1066_s0 + $0x90] sm:$0xff]   ;;  %v160_v32 = vadd.f32 %v159_v22, %v158_v23  ;;  %716 = vmatprep.subr.bf16.mxu1 %v792_v1  ;;  %s794_s1 = smov [#allocation2]  }
   0xe   :  { %v546_v33 = vunpack.c.h.bf16 %v661_v17  ;;  %v163_v34 = vsel %vm153_vm1, %v542_v19, 0.0  ;;  %v602_v35 = vunpack.c.h.bf16 %v675_v21  ;;  %v549_v37 = vunpack.c.l.bf16 %v662_v27  ;;  %v740_v40 = vld [vmem:[%s1069_s3 + $0x20] sm:$0xff]   ;;  %v663_v41 = vld [vmem:[%s1066_s0 + $0x28] sm:$0xff]   ;;  %v677_v47 = vld [vmem:[%s1066_s0 + $0x98] sm:$0xff]   ;;  %s496_s7 = sshll.u32 %s794_s1, 4  ;;  %s497_s7 = int_to_ptr.vmem [resolvable:$true] %s496_s7 }
   0xf   :  { %v162_v36 = vadd.f32 %v161_v25, %v160_v32  ;;  %v605_v38 = vunpack.c.l.bf16 %v676_v31  ;;  %v165_v39 = vsel %vm153_vm1, %v545_v24, 0.0  ;;  %v223_v43 = vsel %vm153_vm1, %v597_v28, 0.0  ;;  %v741_v56 = vld [vmem:[%s1069_s3 + $0x28] sm:$0xff]   ;;  %v664_v57 = vld [vmem:[%s1066_s0 + $0x30] sm:$0xff]   ;;  %v678_v62 = vld [vmem:[%s1066_s0 + $0xa0] sm:$0xff]   ;;  %p749_p1 = scmp.lt.s32.totalorder %s497_s7, %s497_s7 }
  0x10   :  { %717 = vmatpush3.bf16.msra.mxu1 %v739_v26  ;;  %v224_v44 = vsel %vm153_vm1, %v598_v29, 0.0  ;;  %v226_v45 = vsel %vm153_vm1, %v601_v30, 0.0  ;;  %v550_v46 = vunpack.c.h.bf16 %v662_v27  ;;  %v167_v48 = vsel %vm153_vm1, %v546_v33, 0.0  ;;  %v665_v8 = vld [vmem:[%s1066_s0 + $0x38] sm:$0xff]   ;;  %v679_v13 = vld [vmem:[%s1066_s0 + $0xa8] sm:$0xff]   ;;  %v666_v22 = vld [vmem:[%s1066_s0 + $0x40] sm:$0xff]  }
  0x11   :  { %v164_v42 = vadd.f32 %v163_v34, %v162_v36  ;;  %718 = vmatprep.subr.bf16.mxu1 %v792_v1  ;;  %v225_v49 = vadd.f32 %v224_v44, %v223_v43  ;;  %v606_v50 = vunpack.c.h.bf16 %v676_v31  ;;  %v228_v52 = vsel %vm153_vm1, %v602_v35, 0.0  ;;  %v680_v27 = vld [vmem:[%s1066_s0 + $0xb0] sm:$0xff]   ;;  %v667_v36 = vld [vmem:[%s1066_s0 + $0x48] sm:$0xff]  }
  0x12   :  { %v553_v53 = vunpack.c.l.bf16 %v663_v41  ;;  %v169_v54 = vsel %vm153_vm1, %v549_v37, 0.0  ;;  %v609_v58 = vunpack.c.l.bf16 %v677_v47  ;;  %v230_v60 = vsel %vm153_vm1, %v605_v38, 0.0 }
  0x13   :  { %v166_v51 = vadd.f32 %v165_v39, %v164_v42  ;;  %v227_v55 = vadd.f32 %v226_v45, %v225_v49  ;;  %v554_v61 = vunpack.c.h.bf16 %v663_v41  ;;  %v171_v63 = vsel %vm153_vm1, %v550_v46, 0.0  ;;  %v681_v41 = vld [vmem:[%s1066_s0 + $0xb8] sm:$0xff]  }
  0x14   :  { %719 = vmatpush3.bf16.msra.mxu1 %v740_v40  ;;  %v610_v2 = vunpack.c.h.bf16 %v677_v47  ;;  %v232_v4 = vsel %vm153_vm1, %v606_v50, 0.0  ;;  %v557_v5 = vunpack.c.l.bf16 %v664_v57  ;;  %v173_v6 = vsel %vm153_vm1, %v553_v53, 0.0  ;;  %v668_v50 = vld [vmem:[%s1066_s0 + $0x50] sm:$0xff]  }
  0x15   :  { %v168_v59 = vadd.f32 %v167_v48, %v166_v51  ;;  %720 = vmatprep.subr.bf16.mxu1 %v792_v1  ;;  %v229_v0 = vadd.f32 %v228_v52, %v227_v55  ;;  %v613_v9 = vunpack.c.l.bf16 %v678_v62  ;;  %v234_v11 = vsel %vm153_vm1, %v609_v58, 0.0  ;;  %v682_v55 = vld [vmem:[%s1066_s0 + $0xc0] sm:$0xff]  }
  0x16   :  { %v558_v12 = vunpack.c.h.bf16 %v664_v57  ;;  %v175_v14 = vsel %vm153_vm1, %v554_v61, 0.0  ;;  %v614_v16 = vunpack.c.h.bf16 %v678_v62  ;;  %v236_v18 = vsel %vm153_vm1, %v610_v2, 0.0 }
  0x17   :  { %v170_v3 = vadd.f32 %v169_v54, %v168_v59  ;;  %v231_v7 = vadd.f32 %v230_v60, %v229_v0  ;;  %v561_v19 = vunpack.c.l.bf16 %v665_v8  ;;  %v177_v20 = vsel %vm153_vm1, %v557_v5, 0.0  ;;  %v669_v0 = vld [vmem:[%s1066_s0 + $0x58] sm:$0xff]  }
  0x18   :  { %721 = vmatpush3.bf16.msra.mxu1 %v741_v56  ;;  %v617_v23 = vunpack.c.l.bf16 %v679_v13  ;;  %v238_v25 = vsel %vm153_vm1, %v613_v9, 0.0  ;;  %v562_v26 = vunpack.c.h.bf16 %v665_v8  ;;  %v179_v28 = vsel %vm153_vm1, %v558_v12, 0.0 }
  0x19   :  { %v172_v10 = vadd.f32 %v171_v63, %v170_v3  ;;  %722 = vmatprep.subr.bf16.mxu1 %v792_v1  ;;  %v233_v15 = vadd.f32 %v232_v4, %v231_v7  ;;  %v618_v30 = vunpack.c.h.bf16 %v679_v13  ;;  %v240_v32 = vsel %vm153_vm1, %v614_v16, 0.0 }
  0x1a   :  { %v565_v33 = vunpack.c.l.bf16 %v666_v22  ;;  %v181_v34 = vsel %vm153_vm1, %v561_v19, 0.0  ;;  %v621_v37 = vunpack.c.l.bf16 %v680_v27  ;;  %v242_v39 = vsel %vm153_vm1, %v617_v23, 0.0 }
  0x1b   :  { %v174_v17 = vadd.f32 %v173_v6, %v172_v10  ;;  %v235_v21 = vadd.f32 %v234_v11, %v233_v15  ;;  %v566_v40 = vunpack.c.h.bf16 %v666_v22  ;;  %v183_v42 = vsel %vm153_vm1, %v562_v26, 0.0  ;;  %v683_v6 = vld [vmem:[%s1066_s0 + $0xc8] sm:$0xff]   ;;  %v670_v15 = vld [vmem:[%s1066_s0 + $0x60] sm:$0xff]  }
  0x1c   :  { %v622_v44 = vunpack.c.h.bf16 %v680_v27  ;;  %v244_v46 = vsel %vm153_vm1, %v618_v30, 0.0  ;;  %v569_v47 = vunpack.c.l.bf16 %v667_v36  ;;  %v185_v48 = vsel %vm153_vm1, %v565_v33, 0.0 }
  0x1d   :  { %v176_v24 = vadd.f32 %v175_v14, %v174_v17  ;;  %v237_v29 = vadd.f32 %v236_v18, %v235_v21  ;;  %v625_v51 = vunpack.c.l.bf16 %v681_v41  ;;  %v246_v53 = vsel %vm153_vm1, %v621_v37, 0.0 }
  0x1e   :  { %v570_v54 = vunpack.c.h.bf16 %v667_v36  ;;  %v187_v56 = vsel %vm153_vm1, %v566_v40, 0.0  ;;  %v626_v58 = vunpack.c.h.bf16 %v681_v41  ;;  %v248_v60 = vsel %vm153_vm1, %v622_v44, 0.0 }
  0x1f   :  { %v178_v31 = vadd.f32 %v177_v20, %v176_v24  ;;  %v239_v35 = vadd.f32 %v238_v25, %v237_v29  ;;  %v573_v61 = vunpack.c.l.bf16 %v668_v50  ;;  %v189_v62 = vsel %vm153_vm1, %v569_v47, 0.0  ;;  %v684_v20 = vld [vmem:[%s1066_s0 + $0xd0] sm:$0xff]   ;;  %v671_v29 = vld [vmem:[%s1066_s0 + $0x68] sm:$0xff]  }
  0x20   :  { %v629_v2 = vunpack.c.l.bf16 %v682_v55  ;;  %v250_v4 = vsel %vm153_vm1, %v625_v51, 0.0  ;;  %v574_v5 = vunpack.c.h.bf16 %v668_v50  ;;  %v191_v7 = vsel %vm153_vm1, %v570_v54, 0.0 }
  0x21   :  { %v180_v38 = vadd.f32 %v179_v28, %v178_v31  ;;  %v241_v43 = vadd.f32 %v240_v32, %v239_v35  ;;  %v630_v9 = vunpack.c.h.bf16 %v682_v55  ;;  %v252_v11 = vsel %vm153_vm1, %v626_v58, 0.0 }
  0x22   :  { %v577_v12 = vunpack.c.l.bf16 %v669_v0  ;;  %v193_v13 = vsel %vm153_vm1, %v573_v61, 0.0  ;;  %v633_v16 = vunpack.c.l.bf16 %v683_v6  ;;  %v254_v18 = vsel %vm153_vm1, %v629_v2, 0.0 }
  0x23   :  { %v182_v45 = vadd.f32 %v181_v34, %v180_v38  ;;  %v243_v49 = vadd.f32 %v242_v39, %v241_v43  ;;  %v578_v19 = vunpack.c.h.bf16 %v669_v0  ;;  %v195_v21 = vsel %vm153_vm1, %v574_v5, 0.0  ;;  %v685_v34 = vld [vmem:[%s1066_s0 + $0xd8] sm:$0xff]   ;;  %v672_v43 = vld [vmem:[%s1066_s0 + $0x70] sm:$0xff]  }
  0x24   :  { %v634_v23 = vunpack.c.h.bf16 %v683_v6  ;;  %v256_v25 = vsel %vm153_vm1, %v630_v9, 0.0  ;;  %v581_v26 = vunpack.c.l.bf16 %v670_v15  ;;  %v197_v27 = vsel %vm153_vm1, %v577_v12, 0.0  ;;  %v688_v12 = vld [vmem:[%s1066_s0 + $0xf0] sm:$0xff]  }
  0x25   :  { %v184_v52 = vadd.f32 %v183_v42, %v182_v45  ;;  %v245_v57 = vadd.f32 %v244_v46, %v243_v49  ;;  %v637_v30 = vunpack.c.l.bf16 %v684_v20  ;;  %v258_v32 = vsel %vm153_vm1, %v633_v16, 0.0 }
  0x26   :  { %v582_v33 = vunpack.c.h.bf16 %v670_v15  ;;  %v199_v35 = vsel %vm153_vm1, %v578_v19, 0.0  ;;  %v638_v37 = vunpack.c.h.bf16 %v684_v20  ;;  %v260_v39 = vsel %vm153_vm1, %v634_v23, 0.0  ;;  %v689_v23 = vld [vmem:[%s1066_s0 + $0xf8] sm:$0xff]  }
  0x27   :  { %v186_v59 = vadd.f32 %v185_v48, %v184_v52  ;;  %v247_v63 = vadd.f32 %v246_v53, %v245_v57  ;;  %v585_v40 = vunpack.c.l.bf16 %v671_v29  ;;  %v201_v41 = vsel %vm153_vm1, %v581_v26, 0.0  ;;  %v686_v48 = vld [vmem:[%s1066_s0 + $0xe0] sm:$0xff]   ;;  %v673_v57 = vld [vmem:[%s1066_s0 + $0x78] sm:$0xff]  }
  0x28   :  { %v641_v44 = vunpack.c.l.bf16 %v685_v34  ;;  %v262_v46 = vsel %vm153_vm1, %v637_v30, 0.0  ;;  %v586_v47 = vunpack.c.h.bf16 %v671_v29  ;;  %v203_v49 = vsel %vm153_vm1, %v582_v33, 0.0 }
  0x29   :  { %v188_v3 = vadd.f32 %v187_v56, %v186_v59  ;;  %v249_v8 = vadd.f32 %v248_v60, %v247_v63  ;;  %v642_v51 = vunpack.c.h.bf16 %v685_v34  ;;  %v264_v53 = vsel %vm153_vm1, %v638_v37, 0.0 }
  0x2a   :  { %v589_v54 = vunpack.c.l.bf16 %v672_v43  ;;  %v205_v55 = vsel %vm153_vm1, %v585_v40, 0.0  ;;  %v645_v58 = vunpack.c.l.bf16 %v686_v48  ;;  %v266_v60 = vsel %vm153_vm1, %v641_v44, 0.0 }
  0x2b   :  { %v190_v10 = vadd.f32 %v189_v62, %v188_v3  ;;  %v251_v14 = vadd.f32 %v250_v4, %v249_v8  ;;  %v590_v61 = vunpack.c.h.bf16 %v672_v43  ;;  %v687_v62 = vld [vmem:[%s1066_s0 + $0xe8] sm:$0xff]   ;;  %v207_v63 = vsel %vm153_vm1, %v586_v47, 0.0 }
  0x2c   :  { %v646_v2 = vunpack.c.h.bf16 %v686_v48  ;;  %v268_v4 = vsel %vm153_vm1, %v642_v51, 0.0  ;;  %v593_v5 = vunpack.c.l.bf16 %v673_v57  ;;  %v209_v6 = vsel %vm153_vm1, %v589_v54, 0.0 }
  0x2d   :  { %v192_v17 = vadd.f32 %v191_v7, %v190_v10  ;;  %v253_v22 = vadd.f32 %v252_v11, %v251_v14  ;;  %v649_v8 = vunpack.c.l.bf16 %v687_v62  ;;  %v270_v10 = vsel %vm153_vm1, %v645_v58, 0.0 }
  0x2e   :  { %v594_v11 = vunpack.c.h.bf16 %v673_v57  ;;  %v650_v15 = vunpack.c.h.bf16 %v687_v62  ;;  %v653_v20 = vunpack.c.l.bf16 %v688_v12  ;;  %v654_v26 = vunpack.c.h.bf16 %v688_v12  ;;  %v742_v62 = vld [vmem:[%s1069_s3 + $0x30] sm:$0xff]  }
  0x2f   :  { %v194_v24 = vadd.f32 %v193_v13, %v192_v17  ;;  %v255_v28 = vadd.f32 %v254_v18, %v253_v22  ;;  %v211_v13 = vsel %vm153_vm1, %v590_v61, 0.0  ;;  %v272_v17 = vsel %vm153_vm1, %v646_v2, 0.0  ;;  %723 = vmatpush3.bf16.msra.mxu1 %v742_v62 }
  0x30   :  { %v213_v18 = vsel %vm153_vm1, %v593_v5, 0.0  ;;  %v274_v22 = vsel %vm153_vm1, %v649_v8, 0.0  ;;  %v657_v30 = vunpack.c.l.bf16 %v689_v23  ;;  %v658_v34 = vunpack.c.h.bf16 %v689_v23  ;;  %724 = vmatprep.subr.bf16.mxu1 %v792_v1 }
  0x31   :  { %v196_v31 = vadd.f32 %v195_v21, %v194_v24  ;;  %v257_v36 = vadd.f32 %v256_v25, %v255_v28  ;;  %v215_v24 = vsel %vm153_vm1, %v594_v11, 0.0  ;;  %v276_v28 = vsel %vm153_vm1, %v650_v15, 0.0 }
  0x32   :  { %vm297_vm2 = vcmask 1041409   ;;  %vm300_vm3 = vcmask 254976  }
  0x33   :  { %v198_v38 = vadd.f32 %v197_v27, %v196_v31  ;;  %v259_v42 = vadd.f32 %v258_v32, %v257_v36  ;;  %v278_v32 = vsel %vm153_vm1, %v653_v20, 0.0  ;;  %v280_v36 = vsel %vm153_vm1, %v654_v26, 0.0 }
  0x35   :  { %v200_v45 = vadd.f32 %v199_v35, %v198_v38  ;;  %v261_v50 = vadd.f32 %v260_v39, %v259_v42  ;;  %v282_v39 = vsel %vm153_vm1, %v657_v30, 0.0  ;;  %v284_v42 = vsel %vm153_vm1, %v658_v34, 0.0 }
  0x37   :  { %v202_v52 = vadd.f32 %v201_v41, %v200_v45  ;;  %v263_v56 = vadd.f32 %v262_v46, %v261_v50 }
  0x39   :  { %v204_v59 = vadd.f32 %v203_v49, %v202_v52  ;;  %v265_v0 = vadd.f32 %v264_v53, %v263_v56 }
  0x3b   :  { %v206_v3 = vadd.f32 %v205_v55, %v204_v59  ;;  %v267_v7 = vadd.f32 %v266_v60, %v265_v0  ;;  %v518_v0 = vld [vmem:[%s1068_s2] ss:$0 sm:$0xff] }
  0x3d   :  { %v208_v9 = vadd.f32 %v207_v63, %v206_v3  ;;  %v269_v14 = vadd.f32 %v268_v4, %v267_v7  ;;  %v743_v63 = vld [vmem:[%s1069_s3 + $0x38] sm:$0xff]   ;;  %s744_s3 = scalar_lea.vmem %s497_s7, 32 }
  0x3e   :  { %725 = vmatpush3.bf16.msra.mxu1 %v743_v63  ;;  %p745_p0 = scmp.ne.s32.totalorder %s497_s7, %s744_s3  ;;  %p750_p2 = scmp.lt.s32.totalorder %s744_s3, %s744_s3 }
  0x3f   :  { %v210_v16 = vadd.f32 %v209_v6, %v208_v9  ;;  %v271_v19 = vadd.f32 %v270_v10, %v269_v14 }
  0x40   :  { %p751_p3 = por %p750_p2, %p749_p1 }
  0x41   :  { %v212_v21 = vadd.f32 %v211_v13, %v210_v16  ;;  %v273_v25 = vadd.f32 %v272_v17, %v271_v19 }
  0x42   :  { %p752_p4 = pnand %p751_p3, %p745_p0 }
  0x43   :  { %v214_v27 = vadd.f32 %v213_v18, %v212_v21  ;;  %v275_v29 = vadd.f32 %v274_v22, %v273_v25 }
  0x45   :  { %v216_v31 = vadd.f32 %v215_v24, %v214_v27  ;;  %v277_v33 = vadd.f32 %v276_v28, %v275_v29 }
  0x47   :  { %v217_v35 = vrot.slane %v216_v31, 4  ;;  %v279_v37 = vadd.f32 %v278_v32, %v277_v33 }
  0x49   :  { %v218_v38 = vadd.f32 %v217_v35, %v216_v31  ;;  %v281_v40 = vadd.f32 %v280_v36, %v279_v37 }
  0x4b   :  { %v219_v41 = vrot.slane %v218_v38, 2  ;;  %v283_v43 = vadd.f32 %v282_v39, %v281_v40 }
  0x4d   :  { %v220_v44 = vadd.f32 %v219_v41, %v218_v38  ;;  %v285_v45 = vadd.f32 %v284_v42, %v283_v43 }
  0x4f   :  { %v221_v46 = vrot.slane %v220_v44, 1  ;;  %v286_v47 = vrot.slane %v285_v45, 4 }
  0x51   :  { %v222_v48 = vadd.f32 %v221_v46, %v220_v44  ;;  %v287_v49 = vadd.f32 %v286_v47, %v285_v45 }
  0x53   :  { %v288_v50 = vrot.slane %v287_v49, 2  ;;  %v293_v52 = vmul.f32 0.00390625, %v222_v48 }
  0x55   :  { %v289_v51 = vadd.f32 %v288_v50, %v287_v49  ;;  %v302_v55 = vpack.c.bf16 %v293_v52, %v293_v52 }
  0x57   :  { %v290_v53 = vrot.slane %v289_v51, 1  ;;  %v317_v58 = vunpack.c.l.b16 %v302_v55 }
  0x59   :  { %v291_v54 = vadd.f32 %v290_v53, %v289_v51 }
  0x5b   :  { %v294_v56 = vmul.f32 0.00390625, %v291_v54 }
  0x5d   :  { %v303_v57 = vpack.c.bf16 %v294_v56, %v294_v56  ;;  %v298_v9 = vsel %vm297_vm2, %v294_v56, %v293_v52 }
  0x5e   :  { %301 = vst.msk [vmem:[#allocation2] sm:$0x3] %vm300_vm3, %v298_v9 }
  0x5f   :  { %v318_v59 = vunpack.c.l.b16 %v303_v57 }
  0x61   :  { %v319_v60 = vsel %vm297_vm2, %v318_v59, %v317_v58 }
  0x62   :  { %v320_v61 = vpack.c.b16 %v319_v60, %v319_v60 }
  0x64   :  { %707 = vmatmul.mubr.msk.bf16.vlgmr.msra.gmra.mrb[0].mxu0 %vm153_vm1, %v320_v61 }
 0x137   :  { %v370_v2 = vpop.f32.mrb[0].mxu0 }
 0x138   :  { %v371_v3 = vadd.f32 %v518_v0, %v370_v2  ;;  %v708_v4 = vpop.f32.mrb[1].mxu0 }
 0x139   :  { %v373_v5 = vpop.f32.mrb[2].mxu0 }
 0x13a   :  { %v376_v6 = vmax.f32 %v371_v3, 0.0  ;;  %v709_v7 = vpop.f32.mrb[3].mxu0 }
 0x13c   :  { %v377_v8 = vpack.c.bf16 %v376_v6, %v376_v6 }
 0x13e   :  { %727 = vmatmul.mubr.bf16.vlgmr.msra.gmra.mrb[0].mxu1 %v377_v8 }
 0x13f   :  { %755 = shalt.err (!%p752_p4)
}
 0x140   :  { %s756_s9 = scalar_lea.hbm %s1071_s5, 32 }
 0x141   :  { %p757_p5 = scmp.ne.s32.totalorder %s1071_s5, %s756_s9  ;;  %p760_p6 = scmp.lt.u32.totalorder %s756_s9, %s1071_s5 }
 0x143   :  { %p762_p7 = pnand %p760_p6, %p757_p5 }
 0x145   :  { %765 = shalt.err (!%p762_p7)
}
 0x146   :  { %499 = dma.vmem_to_hbm [thread:$0]  %s497_s7, 32, %s1071_s5, [#allocation3]   ;;  %v522_v1 = vld [vmem:[%s1070_s4] ss:$0 sm:$0xff] }
 0x147   :  { %s795_s18 = smov [#allocation4]  }
 0x148   :  { %s506_s19 = sshll.u32 %s795_s18, 4  ;;  %s507_s19 = int_to_ptr.vmem [resolvable:$true] %s506_s19 }
 0x149   :  { %s766_s20 = scalar_lea.vmem %s507_s19, 32  ;;  %p771_p9 = scmp.lt.s32.totalorder %s507_s19, %s507_s19 }
 0x14a   :  { %p767_p8 = scmp.ne.s32.totalorder %s507_s19, %s766_s20  ;;  %p772_p10 = scmp.lt.s32.totalorder %s766_s20, %s766_s20 }
 0x14c   :  { %p773_p11 = por %p772_p10, %p771_p9 }
 0x14e   :  { %p774_p12 = pnand %p773_p11, %p767_p8 }
 0x211   :  { %v483_v10 = vpop.f32.mrb[0].mxu1 }
 0x212   :  { %v484_v11 = vadd.f32 %v522_v1, %v483_v10  ;;  %v728_v12 = vpop.f32.mrb[1].mxu1 }
 0x213   :  { %v486_v13 = vpop.f32.mrb[2].mxu1 }
 0x214   :  { %489 = vst [vmem:[#allocation4] sm:$0x3] %v484_v11  ;;  %v729_v14 = vpop.f32.mrb[3].mxu1 }
 0x215   :  { %777 = shalt.err (!%p774_p12)
}
 0x216   :  { %s778_s4 = scalar_lea.hbm %s1072_s6, 32 }
 0x217   :  { %p779_p13 = scmp.ne.s32.totalorder %s1072_s6, %s778_s4  ;;  %p782_p0 = scmp.lt.u32.totalorder %s778_s4, %s1072_s6 }
 0x219   :  { %p784_p1 = pnand %p782_p0, %p779_p13 }
 0x21b   :  { %787 = shalt.err (!%p784_p1)
}
 0x21c   :  { %509 = dma.vmem_to_hbm [thread:$0]  %s507_s19, 32, %s1072_s6, [#allocation5]  }
 0x21d   :  { %788 = dma.done.wait [#allocation3], 32  }
 0x21e   :  { %789 = vsyncadd [#allocation3], 4294967264 }
 0x21f   :  { %790 = dma.done.wait [#allocation5], 32  }
 0x220   :  { %791 = vsyncadd [#allocation5], 4294967264 }
 0x221   :  { %516 = vsyncpa [#allocation3], 1 }
 0x222   :  { %517 = vsyncpa [#allocation5], 1 }

</bundles_post_ra>
